<compile_context>
chip_gen: v7x
topology: tpu7x:2x2x1
jax: 0.10.0
libtpu: 0.0.40
codegen_flags: <defaults>
</compile_context>

<pallas_src>
import jax
import jax.numpy as jnp
from jax.experimental import pallas as pl
from jax.experimental.pallas import tpu as pltpu

EPS = 1e-5


def _bn_kernel(x_ref, g_ref, b_ref, o_ref):
    # x_ref/o_ref: (N, TC, HW)   g_ref/b_ref: (1, TC, 1)
    x = x_ref[...].astype(jnp.float32)
    n, tc, hw = x.shape
    inv_count = 1.0 / (n * hw)

    # Pass 1: per-channel mean.  Reduce N on the VPU (cheap elementwise adds),
    # then one lane reduction per 8-row group.
    xs = jnp.sum(x, axis=0)                                   # (TC, HW)
    mean = jnp.sum(xs, axis=-1, keepdims=True) * inv_count    # (TC, 1)

    # Pass 2: centered residual + biased variance (PyTorch normalizes by 1/NHW).
    d = x - mean[None, :, :]                                  # (N, TC, HW)
    d2s = jnp.sum(d * d, axis=0)                              # (TC, HW)
    var = jnp.sum(d2s, axis=-1, keepdims=True) * inv_count    # (TC, 1)
    inv_std = jax.lax.rsqrt(var + EPS)                        # (TC, 1)

    # Fold gamma into inv_std; output is a single multiply-add on the residual.
    g = g_ref[...].astype(jnp.float32)                        # (1, TC, 1)
    b = b_ref[...].astype(jnp.float32)                        # (1, TC, 1)
    scale = (inv_std * g[0])[None, :, :]                      # (1, TC, 1)
    o_ref[...] = (d * scale + b).astype(o_ref.dtype)


def _default_num_blocks():
    """1 grid step on v5e/v6e; 2 core-parallel steps on v7x (2 TCs/chip)."""
    try:
        kind = jax.devices()[0].device_kind.lower()
        if "v7" in kind:
            return 2
    except Exception:
        pass
    return 1


def batchnorm2d(x_nchw, gamma, beta, *, num_blocks=None):
    """Training-mode BatchNorm2d forward (batch statistics), NCHW in/out."""
    n, c, h, w = x_nchw.shape
    hw = h * w
    itemsize = jnp.dtype(x_nchw.dtype).itemsize
    # Sublane packing: f32 -> 8, bf16 -> 16, int8/fp8 -> 32.
    sublane_mult = max(8, 8 * (4 // max(itemsize, 1)))

    if num_blocks is None:
        num_blocks = _default_num_blocks()
    if c % num_blocks != 0 or (c // num_blocks) % sublane_mult != 0:
        num_blocks = 1

    # (N, C, H, W) -> (N, C, H*W): pure row-major relabeling, zero-copy for any N.
    x3d = x_nchw.reshape(n, c, hw)
    g3d = gamma.reshape(1, c, 1)
    b3d = beta.reshape(1, c, 1)

    cost = pl.CostEstimate(
        flops=6 * n * c * hw,                     # 2 reduction passes + 1 FMA pass
        transcendentals=c,                        # rsqrt per channel
        bytes_accessed=2 * n * c * hw * itemsize + 2 * c * 4,
    )

    def _call(nb):
        ct = c // nb
        if nb > 1:
            # Shard channel blocks across TensorCores (v7x).
            sem = (pltpu.CORE_PARALLEL,)
        else:
            sem = ("arbitrary",)
        return pl.pallas_call(
            _bn_kernel,
            out_shape=jax.ShapeDtypeStruct((n, c, hw), x_nchw.dtype),
            grid_spec=pltpu.PrefetchScalarGridSpec(
                num_scalar_prefetch=0,
                grid=(nb,),
                in_specs=[
                    pl.BlockSpec((n, ct, hw), lambda i: (0, i, 0)),
                    pl.BlockSpec((1, ct, 1), lambda i: (0, i, 0)),
                    pl.BlockSpec((1, ct, 1), lambda i: (0, i, 0)),
                ],
                out_specs=pl.BlockSpec((n, ct, hw), lambda i: (0, i, 0)),
            ),
            compiler_params=pltpu.CompilerParams(dimension_semantics=sem),
            cost_estimate=cost,
        )(x3d, g3d, b3d)

    try:
        out3d = _call(num_blocks)
    except Exception:
        if num_blocks == 1:
            raise
        # Core-parallel lowering rejected on this generation: a serial second
        # grid step would only add overhead, so fall back to one block.
        out3d = _call(1)

    return out3d.reshape(n, c, h, w)


def _reference_bn(x, gamma, beta):
    xf = x.astype(jnp.float32)
    mean = jnp.mean(xf, axis=(0, 2, 3), keepdims=True)
    var = jnp.mean((xf - mean) ** 2, axis=(0, 2, 3), keepdims=True)
    y = (xf - mean) * jax.lax.rsqrt(var + EPS)
    return (y * gamma.reshape(1, -1, 1, 1) + beta.reshape(1, -1, 1, 1)).astype(x.dtype)


if __name__ == "__main__":
    # Shapes implied by the module's forward: x415 = randn([1, 960, 14, 14])
    N, C, H, W = 1, 960, 14, 14

    key = jax.random.PRNGKey(0)
    kx, kg, kb = jax.random.split(key, 3)
    x = jax.random.normal(kx, (N, C, H, W), dtype=jnp.float32)
    gamma = 1.0 + 0.1 * jax.random.normal(kg, (C,), dtype=jnp.float32)
    beta = 0.1 * jax.random.normal(kb, (C,), dtype=jnp.float32)

    out = jax.block_until_ready(batchnorm2d(x, gamma, beta))
    ref = _reference_bn(x, gamma, beta)
    assert out.shape == (N, C, H, W)
    assert jnp.max(jnp.abs(out - ref)) < 1e-4, "mismatch vs reference batchnorm (N=1)"

    # Exercise the N>1 transpose-free path with a non-zero DC offset
    # (checks the two-pass variance against cancellation).
    N2, C2, H2, W2 = 2, 64, 8, 8
    kx2, kg2, kb2 = jax.random.split(kb, 3)
    x2 = 3.0 + jax.random.normal(kx2, (N2, C2, H2, W2), dtype=jnp.float32)
    g2 = 1.0 + 0.1 * jax.random.normal(kg2, (C2,), dtype=jnp.float32)
    b2 = 0.1 * jax.random.normal(kb2, (C2,), dtype=jnp.float32)

    out2 = jax.block_until_ready(batchnorm2d(x2, g2, b2))
    ref2 = _reference_bn(x2, g2, b2)
    assert out2.shape == (N2, C2, H2, W2)
    assert jnp.max(jnp.abs(out2 - ref2)) < 1e-4, "mismatch vs reference batchnorm (N=2)"

    print("KERNEL_OK")
</pallas_src>

<mosaic_0001>
module attributes {stable_mosaic.version = 11 : i64} {
  func.func @_bn_kernel(%arg0: i32, %arg1: memref<1x960x196xf32, #tpu.memory_space<vmem>>, %arg2: memref<1x960x1xf32, #tpu.memory_space<vmem>>, %arg3: memref<1x960x1xf32, #tpu.memory_space<vmem>>, %arg4: memref<1x960x196xf32, #tpu.memory_space<vmem>>) attributes {dimension_semantics = [#tpu.dimension_semantics<arbitrary>], iteration_bounds = array<i64: 1>, scalar_prefetch = 0 : i64, scratch_operands = 0 : i64, tpu.core_type = #tpu.core_type<tc>, window_params = [{transform_indices = @transform_0, window_bounds = array<i64: 1, 960, 196>}, {transform_indices = @transform_1, window_bounds = array<i64: 1, 960, 1>}, {transform_indices = @transform_2, window_bounds = array<i64: 1, 960, 1>}, {transform_indices = @transform_3, window_bounds = array<i64: 1, 960, 196>}]} {
    %c0 = arith.constant 0 : index
    %c0_0 = arith.constant 0 : index
    %c0_1 = arith.constant 0 : index
    %0 = vector.load %arg1[%c0, %c0_0, %c0_1] : memref<1x960x196xf32, #tpu.memory_space<vmem>>, vector<1x960x196xf32>
    %cst = arith.constant dense<0.000000e+00> : vector<960x196xf32>
    %1 = vector.multi_reduction <add>, %0, %cst [0] : vector<1x960x196xf32> to vector<960x196xf32>
    %cst_2 = arith.constant dense<0.000000e+00> : vector<960xf32>
    %2 = vector.multi_reduction <add>, %1, %cst_2 [1] : vector<960x196xf32> to vector<960xf32>
    %3 = vector.shape_cast %2 : vector<960xf32> to vector<960x1xf32>
    %cst_3 = arith.constant 0.00510204071 : f32
    %4 = vector.broadcast %cst_3 : f32 to vector<960x1xf32>
    %5 = arith.mulf %3, %4 : vector<960x1xf32>
    %6 = vector.shape_cast %5 : vector<960x1xf32> to vector<1x960x1xf32>
    %7 = vector.broadcast %6 : vector<1x960x1xf32> to vector<1x960x196xf32>
    %8 = arith.subf %0, %7 : vector<1x960x196xf32>
    %9 = arith.mulf %8, %8 : vector<1x960x196xf32>
    %cst_4 = arith.constant dense<0.000000e+00> : vector<960x196xf32>
    %10 = vector.multi_reduction <add>, %9, %cst_4 [0] : vector<1x960x196xf32> to vector<960x196xf32>
    %cst_5 = arith.constant dense<0.000000e+00> : vector<960xf32>
    %11 = vector.multi_reduction <add>, %10, %cst_5 [1] : vector<960x196xf32> to vector<960xf32>
    %12 = vector.shape_cast %11 : vector<960xf32> to vector<960x1xf32>
    %cst_6 = arith.constant 0.00510204071 : f32
    %13 = vector.broadcast %cst_6 : f32 to vector<960x1xf32>
    %14 = arith.mulf %12, %13 : vector<960x1xf32>
    %cst_7 = arith.constant 9.99999974E-6 : f32
    %15 = vector.broadcast %cst_7 : f32 to vector<960x1xf32>
    %16 = arith.addf %14, %15 : vector<960x1xf32>
    %17 = math.rsqrt %16 : vector<960x1xf32>
    %c0_8 = arith.constant 0 : index
    %c0_9 = arith.constant 0 : index
    %c0_10 = arith.constant 0 : index
    %18 = vector.load %arg2[%c0_8, %c0_9, %c0_10] : memref<1x960x1xf32, #tpu.memory_space<vmem>>, vector<1x960x1xf32>
    %c0_11 = arith.constant 0 : index
    %c0_12 = arith.constant 0 : index
    %c0_13 = arith.constant 0 : index
    %19 = vector.load %arg3[%c0_11, %c0_12, %c0_13] : memref<1x960x1xf32, #tpu.memory_space<vmem>>, vector<1x960x1xf32>
    %20 = vector.shape_cast %18 : vector<1x960x1xf32> to vector<960x1xf32>
    %21 = arith.mulf %17, %20 : vector<960x1xf32>
    %22 = vector.shape_cast %21 : vector<960x1xf32> to vector<1x960x1xf32>
    %23 = vector.broadcast %22 : vector<1x960x1xf32> to vector<1x960x196xf32>
    %24 = arith.mulf %8, %23 : vector<1x960x196xf32>
    %25 = vector.broadcast %19 : vector<1x960x1xf32> to vector<1x960x196xf32>
    %26 = arith.addf %24, %25 : vector<1x960x196xf32>
    %c0_14 = arith.constant 0 : index
    %c0_15 = arith.constant 0 : index
    %c0_16 = arith.constant 0 : index
    %27 = vector.load %arg4[%c0_14, %c0_15, %c0_16] : memref<1x960x196xf32, #tpu.memory_space<vmem>>, vector<1x960x196xf32>
    tpu.vector_store %arg4[%c0_14, %c0_15, %c0_16], %26 {strides = array<i32>} : memref<1x960x196xf32, #tpu.memory_space<vmem>>, vector<1x960x196xf32>,
    return
  }
  func.func @transform_0(%arg0: i32) -> (i32, i32, i32) {
    %c0_i32 = arith.constant 0 : i32
    %c0_i32_0 = arith.constant 0 : i32
    %c0_i32_1 = arith.constant 0 : i32
    return %c0_i32, %arg0, %c0_i32_0 : i32, i32, i32
  }
  func.func @transform_1(%arg0: i32) -> (i32, i32, i32) {
    %c0_i32 = arith.constant 0 : i32
    %c0_i32_0 = arith.constant 0 : i32
    %c0_i32_1 = arith.constant 0 : i32
    return %c0_i32, %arg0, %c0_i32_0 : i32, i32, i32
  }
  func.func @transform_2(%arg0: i32) -> (i32, i32, i32) {
    %c0_i32 = arith.constant 0 : i32
    %c0_i32_0 = arith.constant 0 : i32
    %c0_i32_1 = arith.constant 0 : i32
    return %c0_i32, %arg0, %c0_i32_0 : i32, i32, i32
  }
  func.func @transform_3(%arg0: i32) -> (i32, i32, i32) {
    %c0_i32 = arith.constant 0 : i32
    %c0_i32_0 = arith.constant 0 : i32
    %c0_i32_1 = arith.constant 0 : i32
    return %c0_i32, %arg0, %c0_i32_0 : i32, i32, i32
  }
}

</mosaic_0001>

<bundles_post_ra>
// kernel: tpu_custom_call.1
= control target key start
LH: loop header
LB: loop body
LE: loop exit
PB: predicated region body
PF: predicated region fallthrough
CT: control target
= control target key end

     0   :  { %vm494_vm0 = vcmask 556032   ;;  %s11083_s0 = inlined_call_operand.vmem [shape: f32[1,960,196], index: 0, kind: input, shape index: {}]   ;;  %s11084_s1 = inlined_call_operand.vmem [shape: f32[1,960,1], index: 1, kind: input, shape index: {}]   ;;  %s11085_s2 = inlined_call_operand.vmem [shape: f32[1,960,1], index: 2, kind: input, shape index: {}]   ;;  %s11086_s3 = inlined_call_operand.vmem [shape: f32[1,960,196], index: 3, kind: output, shape index: {}]  }
   0x1   :  { %v18_v0 = vld [vmem:[%s11083_s0 + $0x20] sm:$0xff]  ;;  %v19_v1 = vld [vmem:[%s11083_s0 + $0x28] sm:$0xff]  ;;  %v20_v5 = vld [vmem:[%s11083_s0 + $0x30] sm:$0xff] }
   0x2   :  { %v14_v2 = vld [vmem:[%s11083_s0] sm:$0xff]  ;;  %v503_v3 = vsel %vm494_vm0, %v19_v1, 0.0  ;;  %v15_v4 = vld [vmem:[%s11083_s0 + $0x8] sm:$0xff]  ;;  %v21_v6 = vld [vmem:[%s11083_s0 + $0x38] sm:$0xff] }
   0x3   :  { %v504_v7 = vadd.f32 %v503_v3, %v18_v0  ;;  %v495_v8 = vsel %vm494_vm0, %v15_v4, 0.0  ;;  %v507_v9 = vsel %vm494_vm0, %v21_v6, 0.0  ;;  %v16_v10 = vld [vmem:[%s11083_s0 + $0x10] sm:$0xff]  ;;  %v17_v11 = vld [vmem:[%s11083_s0 + $0x18] sm:$0xff]  ;;  %v23_v15 = vld [vmem:[%s11083_s0 + $0x48] sm:$0xff] }
   0x4   :  { %v496_v12 = vadd.f32 %v495_v8, %v14_v2  ;;  %v499_v13 = vsel %vm494_vm0, %v17_v11, 0.0  ;;  %v25_v14 = vld [vmem:[%s11083_s0 + $0x58] sm:$0xff]  ;;  %v508_v16 = vadd.f32 %v507_v9, %v20_v5  ;;  %v24_v18 = vld [vmem:[%s11083_s0 + $0x50] sm:$0xff]  ;;  %v22_v20 = vld [vmem:[%s11083_s0 + $0x40] sm:$0xff]  ;;  %v511_v21 = vsel %vm494_vm0, %v23_v15, 0.0 }
   0x5   :  { %505 = vadd.xlane.f32.xlu1 %v504_v7  ;;  %v500_v17 = vadd.f32 %v499_v13, %v16_v10  ;;  %v515_v19 = vsel %vm494_vm0, %v25_v14, 0.0  ;;  %v29_v22 = vld [vmem:[%s11083_s0 + $0x78] sm:$0xff]  ;;  %v27_v23 = vld [vmem:[%s11083_s0 + $0x68] sm:$0xff]  ;;  %v512_v25 = vadd.f32 %v511_v21, %v22_v20  ;;  %v28_v26 = vld [vmem:[%s11083_s0 + $0x70] sm:$0xff] }
   0x6   :  { %497 = vadd.xlane.f32.xlu0 %v496_v12  ;;  %v516_v24 = vadd.f32 %v515_v19, %v24_v18  ;;  %v523_v27 = vsel %vm494_vm0, %v29_v22, 0.0  ;;  %v26_v28 = vld [vmem:[%s11083_s0 + $0x60] sm:$0xff]  ;;  %v519_v29 = vsel %vm494_vm0, %v27_v23, 0.0  ;;  %v33_v30 = vld [vmem:[%s11083_s0 + $0x98] sm:$0xff]  ;;  %v31_v31 = vld [vmem:[%s11083_s0 + $0x88] sm:$0xff] }
   0x7   :  { %v524_v32 = vadd.f32 %v523_v27, %v28_v26  ;;  %v520_v33 = vadd.f32 %v519_v29, %v26_v28  ;;  %v32_v34 = vld [vmem:[%s11083_s0 + $0x90] sm:$0xff]  ;;  %v531_v35 = vsel %vm494_vm0, %v33_v30, 0.0  ;;  %v30_v36 = vld [vmem:[%s11083_s0 + $0x80] sm:$0xff]  ;;  %v527_v37 = vsel %vm494_vm0, %v31_v31, 0.0  ;;  %v37_v38 = vld [vmem:[%s11083_s0 + $0xb8] sm:$0xff] }
   0x8   :  { %v35_v39 = vld [vmem:[%s11083_s0 + $0xa8] sm:$0xff]  ;;  %v532_v40 = vadd.f32 %v531_v35, %v32_v34  ;;  %v528_v41 = vadd.f32 %v527_v37, %v30_v36  ;;  %v36_v42 = vld [vmem:[%s11083_s0 + $0xb0] sm:$0xff]  ;;  %v539_v43 = vsel %vm494_vm0, %v37_v38, 0.0  ;;  %v34_v44 = vld [vmem:[%s11083_s0 + $0xa0] sm:$0xff] }
   0x9   :  { %509 = vadd.xlane.f32.xlu1 %v508_v16  ;;  %v535_v45 = vsel %vm494_vm0, %v35_v39, 0.0  ;;  %v41_v46 = vld [vmem:[%s11083_s0 + $0xd8] sm:$0xff]  ;;  %v39_v47 = vld [vmem:[%s11083_s0 + $0xc8] sm:$0xff]  ;;  %v540_v48 = vadd.f32 %v539_v43, %v36_v42  ;;  %v40_v50 = vld [vmem:[%s11083_s0 + $0xd0] sm:$0xff] }
   0xa   :  { %501 = vadd.xlane.f32.xlu0 %v500_v17  ;;  %v536_v49 = vadd.f32 %v535_v45, %v34_v44  ;;  %v547_v51 = vsel %vm494_vm0, %v41_v46, 0.0  ;;  %v38_v52 = vld [vmem:[%s11083_s0 + $0xc0] sm:$0xff]  ;;  %v543_v53 = vsel %vm494_vm0, %v39_v47, 0.0  ;;  %v45_v54 = vld [vmem:[%s11083_s0 + $0xf8] sm:$0xff]  ;;  %v43_v55 = vld [vmem:[%s11083_s0 + $0xe8] sm:$0xff] }
   0xb   :  { %v548_v56 = vadd.f32 %v547_v51, %v40_v50  ;;  %v544_v57 = vadd.f32 %v543_v53, %v38_v52  ;;  %v44_v58 = vld [vmem:[%s11083_s0 + $0xf0] sm:$0xff]  ;;  %v555_v59 = vsel %vm494_vm0, %v45_v54, 0.0  ;;  %v42_v60 = vld [vmem:[%s11083_s0 + $0xe0] sm:$0xff]  ;;  %v551_v61 = vsel %vm494_vm0, %v43_v55, 0.0  ;;  %v49_v62 = vld [vmem:[%s11083_s0 + $0x118] sm:$0xff] }
   0xc   :  { %v47_v63 = vld [vmem:[%s11083_s0 + $0x108] sm:$0xff]  ;;  %v556_v0 = vadd.f32 %v555_v59, %v44_v58  ;;  %v552_v1 = vadd.f32 %v551_v61, %v42_v60  ;;  %v48_v2 = vld [vmem:[%s11083_s0 + $0x110] sm:$0xff]  ;;  %v563_v3 = vsel %vm494_vm0, %v49_v62, 0.0  ;;  %v46_v4 = vld [vmem:[%s11083_s0 + $0x100] sm:$0xff] }
   0xd   :  { %517 = vadd.xlane.f32.xlu1 %v516_v24  ;;  %v559_v5 = vsel %vm494_vm0, %v47_v63, 0.0  ;;  %v53_v6 = vld [vmem:[%s11083_s0 + $0x138] sm:$0xff]  ;;  %v51_v7 = vld [vmem:[%s11083_s0 + $0x128] sm:$0xff]  ;;  %v564_v8 = vadd.f32 %v563_v3, %v48_v2  ;;  %v52_v10 = vld [vmem:[%s11083_s0 + $0x130] sm:$0xff] }
   0xe   :  { %513 = vadd.xlane.f32.xlu0 %v512_v25  ;;  %v560_v9 = vadd.f32 %v559_v5, %v46_v4  ;;  %v571_v11 = vsel %vm494_vm0, %v53_v6, 0.0  ;;  %v50_v12 = vld [vmem:[%s11083_s0 + $0x120] sm:$0xff]  ;;  %v567_v13 = vsel %vm494_vm0, %v51_v7, 0.0  ;;  %v57_v14 = vld [vmem:[%s11083_s0 + $0x158] sm:$0xff]  ;;  %v55_v15 = vld [vmem:[%s11083_s0 + $0x148] sm:$0xff] }
   0xf   :  { %v572_v16 = vadd.f32 %v571_v11, %v52_v10  ;;  %v568_v17 = vadd.f32 %v567_v13, %v50_v12  ;;  %v56_v18 = vld [vmem:[%s11083_s0 + $0x150] sm:$0xff]  ;;  %v579_v19 = vsel %vm494_vm0, %v57_v14, 0.0  ;;  %v54_v20 = vld [vmem:[%s11083_s0 + $0x140] sm:$0xff]  ;;  %v575_v21 = vsel %vm494_vm0, %v55_v15, 0.0  ;;  %v61_v22 = vld [vmem:[%s11083_s0 + $0x178] sm:$0xff] }
  0x10   :  { %v59_v23 = vld [vmem:[%s11083_s0 + $0x168] sm:$0xff]  ;;  %v580_v24 = vadd.f32 %v579_v19, %v56_v18  ;;  %v576_v25 = vadd.f32 %v575_v21, %v54_v20  ;;  %v60_v26 = vld [vmem:[%s11083_s0 + $0x170] sm:$0xff]  ;;  %v587_v27 = vsel %vm494_vm0, %v61_v22, 0.0  ;;  %v58_v28 = vld [vmem:[%s11083_s0 + $0x160] sm:$0xff] }
  0x11   :  { %525 = vadd.xlane.f32.xlu1 %v524_v32  ;;  %v583_v29 = vsel %vm494_vm0, %v59_v23, 0.0  ;;  %v65_v30 = vld [vmem:[%s11083_s0 + $0x198] sm:$0xff]  ;;  %v63_v31 = vld [vmem:[%s11083_s0 + $0x188] sm:$0xff]  ;;  %v588_v32 = vadd.f32 %v587_v27, %v60_v26  ;;  %v64_v34 = vld [vmem:[%s11083_s0 + $0x190] sm:$0xff] }
  0x12   :  { %521 = vadd.xlane.f32.xlu0 %v520_v33  ;;  %v584_v33 = vadd.f32 %v583_v29, %v58_v28  ;;  %v595_v35 = vsel %vm494_vm0, %v65_v30, 0.0  ;;  %v62_v36 = vld [vmem:[%s11083_s0 + $0x180] sm:$0xff]  ;;  %v591_v37 = vsel %vm494_vm0, %v63_v31, 0.0  ;;  %v69_v38 = vld [vmem:[%s11083_s0 + $0x1b8] sm:$0xff]  ;;  %v67_v39 = vld [vmem:[%s11083_s0 + $0x1a8] sm:$0xff] }
  0x13   :  { %v68_v42 = vld [vmem:[%s11083_s0 + $0x1b0] sm:$0xff]  ;;  %v603_v43 = vsel %vm494_vm0, %v69_v38, 0.0  ;;  %v66_v44 = vld [vmem:[%s11083_s0 + $0x1a0] sm:$0xff]  ;;  %v599_v45 = vsel %vm494_vm0, %v67_v39, 0.0  ;;  %v73_v46 = vld [vmem:[%s11083_s0 + $0x1d8] sm:$0xff] }
  0x14   :  { %v71_v47 = vld [vmem:[%s11083_s0 + $0x1c8] sm:$0xff]  ;;  %v72_v50 = vld [vmem:[%s11083_s0 + $0x1d0] sm:$0xff]  ;;  %v611_v51 = vsel %vm494_vm0, %v73_v46, 0.0  ;;  %v70_v52 = vld [vmem:[%s11083_s0 + $0x1c0] sm:$0xff] }
  0x15   :  { %533 = vadd.xlane.f32.xlu1 %v532_v40  ;;  %v596_v40 = vadd.f32 %v595_v35, %v64_v34  ;;  %v607_v53 = vsel %vm494_vm0, %v71_v47, 0.0  ;;  %v77_v54 = vld [vmem:[%s11083_s0 + $0x1f8] sm:$0xff]  ;;  %v75_v55 = vld [vmem:[%s11083_s0 + $0x1e8] sm:$0xff]  ;;  %v76_v58 = vld [vmem:[%s11083_s0 + $0x1f0] sm:$0xff] }
  0x16   :  { %529 = vadd.xlane.f32.xlu0 %v528_v41  ;;  %v592_v41 = vadd.f32 %v591_v37, %v62_v36  ;;  %v619_v59 = vsel %vm494_vm0, %v77_v54, 0.0  ;;  %v74_v60 = vld [vmem:[%s11083_s0 + $0x1e0] sm:$0xff]  ;;  %v615_v61 = vsel %vm494_vm0, %v75_v55, 0.0  ;;  %v81_v62 = vld [vmem:[%s11083_s0 + $0x218] sm:$0xff]  ;;  %v79_v63 = vld [vmem:[%s11083_s0 + $0x208] sm:$0xff] }
  0x17   :  { %v80_v2 = vld [vmem:[%s11083_s0 + $0x210] sm:$0xff]  ;;  %v627_v3 = vsel %vm494_vm0, %v81_v62, 0.0  ;;  %v78_v4 = vld [vmem:[%s11083_s0 + $0x200] sm:$0xff]  ;;  %v623_v5 = vsel %vm494_vm0, %v79_v63, 0.0  ;;  %v85_v6 = vld [vmem:[%s11083_s0 + $0x238] sm:$0xff] }
  0x18   :  { %v83_v7 = vld [vmem:[%s11083_s0 + $0x228] sm:$0xff]  ;;  %v84_v10 = vld [vmem:[%s11083_s0 + $0x230] sm:$0xff]  ;;  %v635_v11 = vsel %vm494_vm0, %v85_v6, 0.0  ;;  %v82_v12 = vld [vmem:[%s11083_s0 + $0x220] sm:$0xff] }
  0x19   :  { %541 = vadd.xlane.f32.xlu1 %v540_v48  ;;  %v604_v48 = vadd.f32 %v603_v43, %v68_v42  ;;  %v631_v13 = vsel %vm494_vm0, %v83_v7, 0.0  ;;  %v89_v14 = vld [vmem:[%s11083_s0 + $0x258] sm:$0xff]  ;;  %v87_v15 = vld [vmem:[%s11083_s0 + $0x248] sm:$0xff]  ;;  %v88_v18 = vld [vmem:[%s11083_s0 + $0x250] sm:$0xff] }
  0x1a   :  { %537 = vadd.xlane.f32.xlu0 %v536_v49  ;;  %v600_v49 = vadd.f32 %v599_v45, %v66_v44  ;;  %v643_v19 = vsel %vm494_vm0, %v89_v14, 0.0  ;;  %v86_v20 = vld [vmem:[%s11083_s0 + $0x240] sm:$0xff]  ;;  %v639_v21 = vsel %vm494_vm0, %v87_v15, 0.0  ;;  %v93_v22 = vld [vmem:[%s11083_s0 + $0x278] sm:$0xff]  ;;  %v91_v23 = vld [vmem:[%s11083_s0 + $0x268] sm:$0xff] }
  0x1b   :  { %v92_v26 = vld [vmem:[%s11083_s0 + $0x270] sm:$0xff]  ;;  %v651_v27 = vsel %vm494_vm0, %v93_v22, 0.0  ;;  %v90_v28 = vld [vmem:[%s11083_s0 + $0x260] sm:$0xff]  ;;  %v647_v29 = vsel %vm494_vm0, %v91_v23, 0.0  ;;  %v97_v30 = vld [vmem:[%s11083_s0 + $0x298] sm:$0xff] }
  0x1c   :  { %v95_v31 = vld [vmem:[%s11083_s0 + $0x288] sm:$0xff]  ;;  %v96_v34 = vld [vmem:[%s11083_s0 + $0x290] sm:$0xff]  ;;  %v659_v35 = vsel %vm494_vm0, %v97_v30, 0.0  ;;  %v94_v36 = vld [vmem:[%s11083_s0 + $0x280] sm:$0xff] }
  0x1d   :  { %549 = vadd.xlane.f32.xlu1 %v548_v56  ;;  %v612_v56 = vadd.f32 %v611_v51, %v72_v50  ;;  %v655_v37 = vsel %vm494_vm0, %v95_v31, 0.0  ;;  %v101_v38 = vld [vmem:[%s11083_s0 + $0x2b8] sm:$0xff]  ;;  %v99_v39 = vld [vmem:[%s11083_s0 + $0x2a8] sm:$0xff]  ;;  %v100_v42 = vld [vmem:[%s11083_s0 + $0x2b0] sm:$0xff] }
  0x1e   :  { %545 = vadd.xlane.f32.xlu0 %v544_v57  ;;  %v608_v57 = vadd.f32 %v607_v53, %v70_v52  ;;  %v667_v43 = vsel %vm494_vm0, %v101_v38, 0.0  ;;  %v98_v44 = vld [vmem:[%s11083_s0 + $0x2a0] sm:$0xff]  ;;  %v663_v45 = vsel %vm494_vm0, %v99_v39, 0.0  ;;  %v105_v46 = vld [vmem:[%s11083_s0 + $0x2d8] sm:$0xff]  ;;  %v103_v47 = vld [vmem:[%s11083_s0 + $0x2c8] sm:$0xff] }
  0x1f   :  { %v104_v50 = vld [vmem:[%s11083_s0 + $0x2d0] sm:$0xff]  ;;  %v675_v51 = vsel %vm494_vm0, %v105_v46, 0.0  ;;  %v102_v52 = vld [vmem:[%s11083_s0 + $0x2c0] sm:$0xff]  ;;  %v671_v53 = vsel %vm494_vm0, %v103_v47, 0.0  ;;  %v109_v54 = vld [vmem:[%s11083_s0 + $0x2f8] sm:$0xff] }
  0x20   :  { %v107_v55 = vld [vmem:[%s11083_s0 + $0x2e8] sm:$0xff]  ;;  %v113_v62 = vld [vmem:[%s11083_s0 + $0x318] sm:$0xff] }
  0x21   :  { %557 = vadd.xlane.f32.xlu1 %v556_v0  ;;  %v620_v0 = vadd.f32 %v619_v59, %v76_v58  ;;  %v108_v58 = vld [vmem:[%s11083_s0 + $0x2f0] sm:$0xff]  ;;  %v683_v59 = vsel %vm494_vm0, %v109_v54, 0.0  ;;  %v111_v63 = vld [vmem:[%s11083_s0 + $0x308] sm:$0xff]  ;;  %v117_v6 = vld [vmem:[%s11083_s0 + $0x338] sm:$0xff] }
  0x22   :  { %553 = vadd.xlane.f32.xlu0 %v552_v1  ;;  %v616_v1 = vadd.f32 %v615_v61, %v74_v60  ;;  %v106_v60 = vld [vmem:[%s11083_s0 + $0x2e0] sm:$0xff]  ;;  %v679_v61 = vsel %vm494_vm0, %v107_v55, 0.0  ;;  %v115_v7 = vld [vmem:[%s11083_s0 + $0x328] sm:$0xff]  ;;  %v121_v14 = vld [vmem:[%s11083_s0 + $0x358] sm:$0xff] }
  0x23   :  { %v119_v15 = vld [vmem:[%s11083_s0 + $0x348] sm:$0xff]  ;;  %v125_v22 = vld [vmem:[%s11083_s0 + $0x378] sm:$0xff] }
  0x24   :  { %v123_v23 = vld [vmem:[%s11083_s0 + $0x368] sm:$0xff]  ;;  %v129_v30 = vld [vmem:[%s11083_s0 + $0x398] sm:$0xff] }
  0x25   :  { %565 = vadd.xlane.f32.xlu1 %v564_v8  ;;  %v628_v8 = vadd.f32 %v627_v3, %v80_v2  ;;  %v112_v2 = vld [vmem:[%s11083_s0 + $0x310] sm:$0xff]  ;;  %v691_v3 = vsel %vm494_vm0, %v113_v62, 0.0  ;;  %v127_v31 = vld [vmem:[%s11083_s0 + $0x388] sm:$0xff]  ;;  %v133_v38 = vld [vmem:[%s11083_s0 + $0x3b8] sm:$0xff] }
  0x26   :  { %561 = vadd.xlane.f32.xlu0 %v560_v9  ;;  %v624_v9 = vadd.f32 %v623_v5, %v78_v4  ;;  %v110_v4 = vld [vmem:[%s11083_s0 + $0x300] sm:$0xff]  ;;  %v687_v5 = vsel %vm494_vm0, %v111_v63, 0.0  ;;  %v131_v39 = vld [vmem:[%s11083_s0 + $0x3a8] sm:$0xff]  ;;  %v137_v46 = vld [vmem:[%s11083_s0 + $0x3d8] sm:$0xff] }
  0x27   :  { %v135_v47 = vld [vmem:[%s11083_s0 + $0x3c8] sm:$0xff]  ;;  %v141_v54 = vld [vmem:[%s11083_s0 + $0x3f8] sm:$0xff] }
  0x28   :  { %v139_v55 = vld [vmem:[%s11083_s0 + $0x3e8] sm:$0xff]  ;;  %v145_v62 = vld [vmem:[%s11083_s0 + $0x418] sm:$0xff] }
  0x29   :  { %573 = vadd.xlane.f32.xlu1 %v572_v16  ;;  %v636_v16 = vadd.f32 %v635_v11, %v84_v10  ;;  %v116_v10 = vld [vmem:[%s11083_s0 + $0x330] sm:$0xff]  ;;  %v699_v11 = vsel %vm494_vm0, %v117_v6, 0.0  ;;  %v143_v63 = vld [vmem:[%s11083_s0 + $0x408] sm:$0xff]  ;;  %v149_v6 = vld [vmem:[%s11083_s0 + $0x438] sm:$0xff] }
  0x2a   :  { %569 = vadd.xlane.f32.xlu0 %v568_v17  ;;  %v632_v17 = vadd.f32 %v631_v13, %v82_v12  ;;  %v114_v12 = vld [vmem:[%s11083_s0 + $0x320] sm:$0xff]  ;;  %v695_v13 = vsel %vm494_vm0, %v115_v7, 0.0  ;;  %v147_v7 = vld [vmem:[%s11083_s0 + $0x428] sm:$0xff] }
  0x2d   :  { %581 = vadd.xlane.f32.xlu1 %v580_v24  ;;  %v644_v24 = vadd.f32 %v643_v19, %v88_v18  ;;  %v120_v18 = vld [vmem:[%s11083_s0 + $0x350] sm:$0xff]  ;;  %v707_v19 = vsel %vm494_vm0, %v121_v14, 0.0  ;;  %v153_v14 = vld [vmem:[%s11083_s0 + $0x458] sm:$0xff] }
  0x2e   :  { %577 = vadd.xlane.f32.xlu0 %v576_v25  ;;  %v640_v25 = vadd.f32 %v639_v21, %v86_v20  ;;  %v118_v20 = vld [vmem:[%s11083_s0 + $0x340] sm:$0xff]  ;;  %v703_v21 = vsel %vm494_vm0, %v119_v15, 0.0  ;;  %v151_v15 = vld [vmem:[%s11083_s0 + $0x448] sm:$0xff] }
  0x31   :  { %589 = vadd.xlane.f32.xlu1 %v588_v32  ;;  %v652_v32 = vadd.f32 %v651_v27, %v92_v26  ;;  %v124_v26 = vld [vmem:[%s11083_s0 + $0x370] sm:$0xff]  ;;  %v715_v27 = vsel %vm494_vm0, %v125_v22, 0.0  ;;  %v157_v22 = vld [vmem:[%s11083_s0 + $0x478] sm:$0xff] }
  0x32   :  { %585 = vadd.xlane.f32.xlu0 %v584_v33  ;;  %v648_v33 = vadd.f32 %v647_v29, %v90_v28  ;;  %v122_v28 = vld [vmem:[%s11083_s0 + $0x360] sm:$0xff]  ;;  %v711_v29 = vsel %vm494_vm0, %v123_v23, 0.0  ;;  %v155_v23 = vld [vmem:[%s11083_s0 + $0x468] sm:$0xff] }
  0x35   :  { %597 = vadd.xlane.f32.xlu1 %v596_v40  ;;  %v660_v40 = vadd.f32 %v659_v35, %v96_v34  ;;  %v128_v34 = vld [vmem:[%s11083_s0 + $0x390] sm:$0xff]  ;;  %v723_v35 = vsel %vm494_vm0, %v129_v30, 0.0  ;;  %v161_v30 = vld [vmem:[%s11083_s0 + $0x498] sm:$0xff] }
  0x36   :  { %593 = vadd.xlane.f32.xlu0 %v592_v41  ;;  %v656_v41 = vadd.f32 %v655_v37, %v94_v36  ;;  %v126_v36 = vld [vmem:[%s11083_s0 + $0x380] sm:$0xff]  ;;  %v719_v37 = vsel %vm494_vm0, %v127_v31, 0.0  ;;  %v159_v31 = vld [vmem:[%s11083_s0 + $0x488] sm:$0xff] }
  0x39   :  { %605 = vadd.xlane.f32.xlu1 %v604_v48  ;;  %v668_v48 = vadd.f32 %v667_v43, %v100_v42  ;;  %v132_v42 = vld [vmem:[%s11083_s0 + $0x3b0] sm:$0xff]  ;;  %v731_v43 = vsel %vm494_vm0, %v133_v38, 0.0  ;;  %v165_v38 = vld [vmem:[%s11083_s0 + $0x4b8] sm:$0xff] }
  0x3a   :  { %601 = vadd.xlane.f32.xlu0 %v600_v49  ;;  %v664_v49 = vadd.f32 %v663_v45, %v98_v44  ;;  %v130_v44 = vld [vmem:[%s11083_s0 + $0x3a0] sm:$0xff]  ;;  %v727_v45 = vsel %vm494_vm0, %v131_v39, 0.0  ;;  %v163_v39 = vld [vmem:[%s11083_s0 + $0x4a8] sm:$0xff] }
  0x3d   :  { %613 = vadd.xlane.f32.xlu1 %v612_v56  ;;  %v676_v56 = vadd.f32 %v675_v51, %v104_v50  ;;  %v136_v50 = vld [vmem:[%s11083_s0 + $0x3d0] sm:$0xff]  ;;  %v739_v51 = vsel %vm494_vm0, %v137_v46, 0.0  ;;  %v162_v46 = vld [vmem:[%s11083_s0 + $0x4a0] sm:$0xff] }
  0x3e   :  { %609 = vadd.xlane.f32.xlu0 %v608_v57  ;;  %v672_v57 = vadd.f32 %v671_v53, %v102_v52  ;;  %v134_v52 = vld [vmem:[%s11083_s0 + $0x3c0] sm:$0xff]  ;;  %v735_v53 = vsel %vm494_vm0, %v135_v47, 0.0  ;;  %v791_v47 = vsel %vm494_vm0, %v163_v39, 0.0  ;;  %v188_v39 = vld [vmem:[%s11083_s0 + $0x570] sm:$0xff] }
  0x41   :  { %621 = vadd.xlane.f32.xlu1 %v620_v0  ;;  %v684_v0 = vadd.f32 %v683_v59, %v108_v58  ;;  %v140_v58 = vld [vmem:[%s11083_s0 + $0x3f0] sm:$0xff]  ;;  %v747_v59 = vsel %vm494_vm0, %v141_v54, 0.0 }
  0x42   :  { %617 = vadd.xlane.f32.xlu0 %v616_v1  ;;  %v680_v1 = vadd.f32 %v679_v61, %v106_v60  ;;  %v138_v60 = vld [vmem:[%s11083_s0 + $0x3e0] sm:$0xff]  ;;  %v743_v61 = vsel %vm494_vm0, %v139_v55, 0.0 }
  0x45   :  { %629 = vadd.xlane.f32.xlu1 %v628_v8  ;;  %v692_v8 = vadd.f32 %v691_v3, %v112_v2  ;;  %v144_v2 = vld [vmem:[%s11083_s0 + $0x410] sm:$0xff]  ;;  %v755_v3 = vsel %vm494_vm0, %v145_v62, 0.0 }
  0x46   :  { %625 = vadd.xlane.f32.xlu0 %v624_v9  ;;  %v688_v9 = vadd.f32 %v687_v5, %v110_v4  ;;  %v142_v4 = vld [vmem:[%s11083_s0 + $0x400] sm:$0xff]  ;;  %v751_v5 = vsel %vm494_vm0, %v143_v63, 0.0  ;;  %v172_v63 = vld [vmem:[%s11083_s0 + $0x4f0] sm:$0xff] }
  0x49   :  { %637 = vadd.xlane.f32.xlu1 %v636_v16  ;;  %v700_v16 = vadd.f32 %v699_v11, %v116_v10  ;;  %v148_v10 = vld [vmem:[%s11083_s0 + $0x430] sm:$0xff]  ;;  %v763_v11 = vsel %vm494_vm0, %v149_v6, 0.0 }
  0x4a   :  { %633 = vadd.xlane.f32.xlu0 %v632_v17  ;;  %v696_v17 = vadd.f32 %v695_v13, %v114_v12  ;;  %v146_v12 = vld [vmem:[%s11083_s0 + $0x420] sm:$0xff]  ;;  %v759_v13 = vsel %vm494_vm0, %v147_v7, 0.0 }
  0x4d   :  { %645 = vadd.xlane.f32.xlu1 %v644_v24  ;;  %v708_v24 = vadd.f32 %v707_v19, %v120_v18  ;;  %v152_v18 = vld [vmem:[%s11083_s0 + $0x450] sm:$0xff]  ;;  %v771_v19 = vsel %vm494_vm0, %v153_v14, 0.0  ;;  %v181_v14 = vld [vmem:[%s11083_s0 + $0x538] sm:$0xff] }
  0x4e   :  { %641 = vadd.xlane.f32.xlu0 %v640_v25  ;;  %v704_v25 = vadd.f32 %v703_v21, %v118_v20  ;;  %v150_v20 = vld [vmem:[%s11083_s0 + $0x440] sm:$0xff]  ;;  %v767_v21 = vsel %vm494_vm0, %v151_v15, 0.0  ;;  %v179_v15 = vld [vmem:[%s11083_s0 + $0x528] sm:$0xff] }
  0x51   :  { %653 = vadd.xlane.f32.xlu1 %v652_v32  ;;  %v716_v32 = vadd.f32 %v715_v27, %v124_v26  ;;  %v156_v26 = vld [vmem:[%s11083_s0 + $0x470] sm:$0xff]  ;;  %v779_v27 = vsel %vm494_vm0, %v157_v22, 0.0  ;;  %v178_v22 = vld [vmem:[%s11083_s0 + $0x520] sm:$0xff] }
  0x52   :  { %649 = vadd.xlane.f32.xlu0 %v648_v33  ;;  %v712_v33 = vadd.f32 %v711_v29, %v122_v28  ;;  %v154_v28 = vld [vmem:[%s11083_s0 + $0x460] sm:$0xff]  ;;  %v775_v29 = vsel %vm494_vm0, %v155_v23, 0.0  ;;  %v823_v23 = vsel %vm494_vm0, %v179_v15, 0.0 }
  0x55   :  { %661 = vadd.xlane.f32.xlu1 %v660_v40  ;;  %v724_v40 = vadd.f32 %v723_v35, %v128_v34  ;;  %v160_v34 = vld [vmem:[%s11083_s0 + $0x490] sm:$0xff]  ;;  %v787_v35 = vsel %vm494_vm0, %v161_v30, 0.0 }
  0x56   :  { %657 = vadd.xlane.f32.xlu0 %v656_v41  ;;  %v720_v41 = vadd.f32 %v719_v37, %v126_v36  ;;  %v158_v36 = vld [vmem:[%s11083_s0 + $0x480] sm:$0xff]  ;;  %v783_v37 = vsel %vm494_vm0, %v159_v31, 0.0 }
  0x59   :  { %669 = vadd.xlane.f32.xlu1 %v668_v48  ;;  %v732_v48 = vadd.f32 %v731_v43, %v132_v42  ;;  %v784_v42 = vadd.f32 %v783_v37, %v158_v36  ;;  %v164_v43 = vld [vmem:[%s11083_s0 + $0x4b0] sm:$0xff] }
  0x5a   :  { %665 = vadd.xlane.f32.xlu0 %v664_v49  ;;  %v728_v49 = vadd.f32 %v727_v45, %v130_v44  ;;  %v795_v44 = vsel %vm494_vm0, %v165_v38, 0.0 }
  0x5d   :  { %677 = vadd.xlane.f32.xlu1 %v676_v56  ;;  %v740_v56 = vadd.f32 %v739_v51, %v136_v50  ;;  %v796_v50 = vadd.f32 %v795_v44, %v164_v43  ;;  %v186_v43 = vld [vmem:[%s11083_s0 + $0x560] sm:$0xff] }
  0x5e   :  { %673 = vadd.xlane.f32.xlu0 %v672_v57  ;;  %v736_v57 = vadd.f32 %v735_v53, %v134_v52  ;;  %v792_v52 = vadd.f32 %v791_v47, %v162_v46  ;;  %v168_v53 = vld [vmem:[%s11083_s0 + $0x4d0] sm:$0xff]  ;;  %v193_v46 = vld [vmem:[%s11083_s0 + $0x598] sm:$0xff]  ;;  %v191_v47 = vld [vmem:[%s11083_s0 + $0x588] sm:$0xff] }
  0x61   :  { %685 = vadd.xlane.f32.xlu1 %v684_v0  ;;  %v748_v0 = vadd.f32 %v747_v59, %v140_v58  ;;  %v173_v58 = vld [vmem:[%s11083_s0 + $0x4f8] sm:$0xff]  ;;  %v171_v59 = vld [vmem:[%s11083_s0 + $0x4e8] sm:$0xff] }
  0x62   :  { %681 = vadd.xlane.f32.xlu0 %v680_v1  ;;  %v744_v1 = vadd.f32 %v743_v61, %v138_v60 }
  0x65   :  { %693 = vadd.xlane.f32.xlu1 %v692_v8  ;;  %v756_v8 = vadd.f32 %v755_v3, %v144_v2  ;;  %v170_v2 = vld [vmem:[%s11083_s0 + $0x4e0] sm:$0xff]  ;;  %v807_v3 = vsel %vm494_vm0, %v171_v59, 0.0  ;;  %v195_v59 = vld [vmem:[%s11083_s0 + $0x5a8] sm:$0xff] }
  0x66   :  { %689 = vadd.xlane.f32.xlu0 %v688_v9  ;;  %v752_v9 = vadd.f32 %v751_v5, %v142_v4  ;;  %v177_v4 = vld [vmem:[%s11083_s0 + $0x518] sm:$0xff]  ;;  %v175_v5 = vld [vmem:[%s11083_s0 + $0x508] sm:$0xff] }
  0x69   :  { %701 = vadd.xlane.f32.xlu1 %v700_v16  ;;  %v764_v16 = vadd.f32 %v763_v11, %v148_v10  ;;  %v819_v10 = vsel %vm494_vm0, %v177_v4, 0.0  ;;  %v194_v4 = vld [vmem:[%s11083_s0 + $0x5a0] sm:$0xff] }
  0x6a   :  { %697 = vadd.xlane.f32.xlu0 %v696_v17  ;;  %v760_v17 = vadd.f32 %v759_v13, %v146_v12  ;;  %v174_v12 = vld [vmem:[%s11083_s0 + $0x500] sm:$0xff]  ;;  %v815_v13 = vsel %vm494_vm0, %v175_v5, 0.0  ;;  %v855_v5 = vsel %vm494_vm0, %v195_v59, 0.0 }
  0x6d   :  { %709 = vadd.xlane.f32.xlu1 %v708_v24  ;;  %v772_v24 = vadd.f32 %v771_v19, %v152_v18  ;;  %v816_v18 = vadd.f32 %v815_v13, %v174_v12  ;;  %v180_v19 = vld [vmem:[%s11083_s0 + $0x530] sm:$0xff]  ;;  %v856_v12 = vadd.f32 %v855_v5, %v194_v4 }
  0x6e   :  { %705 = vadd.xlane.f32.xlu0 %v704_v25  ;;  %v768_v25 = vadd.f32 %v767_v21, %v150_v20  ;;  %v827_v20 = vsel %vm494_vm0, %v181_v14, 0.0  ;;  %v200_v13 = vld [vmem:[%s11083_s0 + $0x5d0] sm:$0xff] }
  0x6f   :  { %v216_v5 = vld [vmem:[%s11083_s0 + $0x650] sm:$0xff] }
  0x71   :  { %717 = vadd.xlane.f32.xlu1 %v716_v32  ;;  %v780_v32 = vadd.f32 %v779_v27, %v156_v26  ;;  %v828_v26 = vadd.f32 %v827_v20, %v180_v19  ;;  %v205_v19 = vld [vmem:[%s11083_s0 + $0x5f8] sm:$0xff]  ;;  %v203_v20 = vld [vmem:[%s11083_s0 + $0x5e8] sm:$0xff] }
  0x72   :  { %713 = vadd.xlane.f32.xlu0 %v712_v33  ;;  %v776_v33 = vadd.f32 %v775_v29, %v154_v28  ;;  %v824_v28 = vadd.f32 %v823_v23, %v178_v22  ;;  %v184_v29 = vld [vmem:[%s11083_s0 + $0x550] sm:$0xff] }
  0x75   :  { %725 = vadd.xlane.f32.xlu1 %v724_v40  ;;  %v788_v40 = vadd.f32 %v787_v35, %v160_v34  ;;  %v189_v34 = vld [vmem:[%s11083_s0 + $0x578] sm:$0xff]  ;;  %v187_v35 = vld [vmem:[%s11083_s0 + $0x568] sm:$0xff] }
  0x76   :  { %721 = vadd.xlane.f32.xlu0 %v720_v41  ;;  %v839_v44 = vsel %vm494_vm0, %v187_v35, 0.0 }
  0x79   :  { %733 = vadd.xlane.f32.xlu1 %v732_v48  ;;  %v169_v48 = vld [vmem:[%s11083_s0 + $0x4d8] sm:$0xff] }
  0x7a   :  { %729 = vadd.xlane.f32.xlu0 %v728_v49  ;;  %v167_v49 = vld [vmem:[%s11083_s0 + $0x4c8] sm:$0xff]  ;;  %v803_v54 = vsel %vm494_vm0, %v169_v48, 0.0 }
  0x7b   :  { %v804_v60 = vadd.f32 %v803_v54, %v168_v53  ;;  %v851_v53 = vsel %vm494_vm0, %v193_v46, 0.0  ;;  %v213_v46 = vld [vmem:[%s11083_s0 + $0x638] sm:$0xff] }
  0x7d   :  { %741 = vadd.xlane.f32.xlu1 %v740_v56  ;;  %v166_v56 = vld [vmem:[%s11083_s0 + $0x4c0] sm:$0xff] }
  0x7e   :  { %737 = vadd.xlane.f32.xlu0 %v736_v57  ;;  %v799_v57 = vsel %vm494_vm0, %v167_v49, 0.0 }
  0x7f   :  { %v800_v62 = vadd.f32 %v799_v57, %v166_v56  ;;  %v190_v56 = vld [vmem:[%s11083_s0 + $0x580] sm:$0xff]  ;;  %v847_v57 = vsel %vm494_vm0, %v191_v47, 0.0  ;;  %v211_v47 = vld [vmem:[%s11083_s0 + $0x628] sm:$0xff] }
  0x80   :  { %v887_v59 = vsel %vm494_vm0, %v211_v47, 0.0  ;;  %v227_v47 = vld [vmem:[%s11083_s0 + $0x6a8] sm:$0xff] }
  0x81   :  { %749 = vadd.xlane.f32.xlu1 %v748_v0  ;;  %v811_v0 = vsel %vm494_vm0, %v173_v58, 0.0  ;;  %v197_v58 = vld [vmem:[%s11083_s0 + $0x5b8] sm:$0xff] }
  0x82   :  { %745 = vadd.xlane.f32.xlu0 %v744_v1  ;;  %v812_v6 = vadd.f32 %v811_v0, %v172_v63  ;;  %v848_v63 = vadd.f32 %v847_v57, %v190_v56  ;;  %v196_v0 = vld [vmem:[%s11083_s0 + $0x5b0] sm:$0xff]  ;;  %v891_v56 = vsel %vm494_vm0, %v213_v46, 0.0  ;;  %v229_v46 = vld [vmem:[%s11083_s0 + $0x6b8] sm:$0xff] }
  0x85   :  { %757 = vadd.xlane.f32.xlu1 %v756_v8  ;;  %v808_v8 = vadd.f32 %v807_v3, %v170_v2  ;;  %v859_v2 = vsel %vm494_vm0, %v197_v58, 0.0  ;;  %v210_v58 = vld [vmem:[%s11083_s0 + $0x620] sm:$0xff] }
  0x86   :  { %753 = vadd.xlane.f32.xlu0 %v752_v9  ;;  %v176_v9 = vld [vmem:[%s11083_s0 + $0x510] sm:$0xff]  ;;  %v888_v4 = vadd.f32 %v887_v59, %v210_v58  ;;  %v923_v58 = vsel %vm494_vm0, %v229_v46, 0.0 }
  0x89   :  { %765 = vadd.xlane.f32.xlu1 %v764_v16  ;;  %v820_v16 = vadd.f32 %v819_v10, %v176_v9  ;;  %v860_v9 = vadd.f32 %v859_v2, %v196_v0 }
  0x8a   :  { %761 = vadd.xlane.f32.xlu0 %v760_v17 }
  0x8d   :  { %773 = vadd.xlane.f32.xlu1 %v772_v24  ;;  %v185_v24 = vld [vmem:[%s11083_s0 + $0x558] sm:$0xff] }
  0x8e   :  { %769 = vadd.xlane.f32.xlu0 %v768_v25  ;;  %v183_v25 = vld [vmem:[%s11083_s0 + $0x548] sm:$0xff]  ;;  %v835_v30 = vsel %vm494_vm0, %v185_v24, 0.0 }
  0x8f   :  { %v836_v36 = vadd.f32 %v835_v30, %v184_v29  ;;  %v202_v29 = vld [vmem:[%s11083_s0 + $0x5e0] sm:$0xff]  ;;  %v871_v30 = vsel %vm494_vm0, %v203_v20, 0.0  ;;  %v220_v20 = vld [vmem:[%s11083_s0 + $0x670] sm:$0xff] }
  0x91   :  { %781 = vadd.xlane.f32.xlu1 %v780_v32  ;;  %v182_v32 = vld [vmem:[%s11083_s0 + $0x540] sm:$0xff] }
  0x92   :  { %777 = vadd.xlane.f32.xlu0 %v776_v33  ;;  %v5967_v41 = vpop.xlane.xlu1 %505  ;;  %v831_v33 = vsel %vm494_vm0, %v183_v25, 0.0  ;;  %v204_v25 = vld [vmem:[%s11083_s0 + $0x5f0] sm:$0xff] }
  0x93   :  { %v5973_v45 = vpop.xlane.xlu0 %497  ;;  %v832_v38 = vadd.f32 %v831_v33, %v182_v32  ;;  %v209_v32 = vld [vmem:[%s11083_s0 + $0x618] sm:$0xff]  ;;  %v207_v33 = vld [vmem:[%s11083_s0 + $0x608] sm:$0xff] }
  0x95   :  { %789 = vadd.xlane.f32.xlu1 %v788_v40  ;;  %v843_v40 = vsel %vm494_vm0, %v189_v34, 0.0 }
  0x96   :  { %785 = vadd.xlane.f32.xlu0 %v784_v42  ;;  %v5985_v51 = vpop.xlane.xlu1 %509  ;;  %v844_v48 = vadd.f32 %v843_v40, %v188_v39  ;;  %v883_v39 = vsel %vm494_vm0, %v209_v32, 0.0 }
  0x97   :  { %v5991_v55 = vpop.xlane.xlu0 %501 }
  0x99   :  { %797 = vadd.xlane.f32.xlu1 %v796_v50  ;;  %v840_v50 = vadd.f32 %v839_v44, %v186_v43  ;;  %v206_v43 = vld [vmem:[%s11083_s0 + $0x600] sm:$0xff]  ;;  %v879_v44 = vsel %vm494_vm0, %v207_v33, 0.0 }
  0x9a   :  { %793 = vadd.xlane.f32.xlu0 %v792_v52  ;;  %v6003_v61 = vpop.xlane.xlu1 %517  ;;  %v192_v52 = vld [vmem:[%s11083_s0 + $0x590] sm:$0xff] }
  0x9b   :  { %v6009_v1 = vpop.xlane.xlu0 %513 }
  0x9d   :  { %805 = vadd.xlane.f32.xlu1 %v804_v60  ;;  %v852_v60 = vadd.f32 %v851_v53, %v192_v52  ;;  %v880_v52 = vadd.f32 %v879_v44, %v206_v43  ;;  %v212_v53 = vld [vmem:[%s11083_s0 + $0x630] sm:$0xff]  ;;  %v222_v43 = vld [vmem:[%s11083_s0 + $0x680] sm:$0xff] }
  0x9e   :  { %801 = vadd.xlane.f32.xlu0 %v800_v62  ;;  %v6021_v7 = vpop.xlane.xlu1 %525  ;;  %v892_v0 = vadd.f32 %v891_v56, %v212_v53  ;;  %v228_v56 = vld [vmem:[%s11083_s0 + $0x6b0] sm:$0xff] }
  0x9f   :  { %v6027_v11 = vpop.xlane.xlu0 %521 }
  0xa1   :  { %813 = vadd.xlane.f32.xlu1 %v812_v6  ;;  %v201_v6 = vld [vmem:[%s11083_s0 + $0x5d8] sm:$0xff] }
  0xa2   :  { %809 = vadd.xlane.f32.xlu0 %v808_v8  ;;  %v6039_v17 = vpop.xlane.xlu1 %533  ;;  %v199_v8 = vld [vmem:[%s11083_s0 + $0x5c8] sm:$0xff]  ;;  %v867_v14 = vsel %vm494_vm0, %v201_v6, 0.0 }
  0xa3   :  { %v6045_v21 = vpop.xlane.xlu0 %529  ;;  %v868_v22 = vadd.f32 %v867_v14, %v200_v13  ;;  %v221_v13 = vld [vmem:[%s11083_s0 + $0x678] sm:$0xff]  ;;  %v219_v14 = vld [vmem:[%s11083_s0 + $0x668] sm:$0xff] }
  0xa5   :  { %821 = vadd.xlane.f32.xlu1 %v820_v16  ;;  %v198_v16 = vld [vmem:[%s11083_s0 + $0x5c0] sm:$0xff] }
  0xa6   :  { %817 = vadd.xlane.f32.xlu0 %v816_v18  ;;  %v6057_v27 = vpop.xlane.xlu1 %541  ;;  %v863_v18 = vsel %vm494_vm0, %v199_v8, 0.0 }
  0xa7   :  { %v6063_v31 = vpop.xlane.xlu0 %537  ;;  %v864_v24 = vadd.f32 %v863_v18, %v198_v16 }
  0xa9   :  { %829 = vadd.xlane.f32.xlu1 %v828_v26  ;;  %v875_v26 = vsel %vm494_vm0, %v205_v19, 0.0 }
  0xaa   :  { %825 = vadd.xlane.f32.xlu0 %v824_v28  ;;  %v6075_v37 = vpop.xlane.xlu1 %549  ;;  %v876_v34 = vadd.f32 %v875_v26, %v204_v25  ;;  %v218_v25 = vld [vmem:[%s11083_s0 + $0x660] sm:$0xff]  ;;  %v903_v26 = vsel %vm494_vm0, %v219_v14, 0.0 }
  0xab   :  { %v6081_v42 = vpop.xlane.xlu0 %545 }
  0xad   :  { %837 = vadd.xlane.f32.xlu1 %v836_v36  ;;  %v872_v36 = vadd.f32 %v871_v30, %v202_v29  ;;  %v225_v29 = vld [vmem:[%s11083_s0 + $0x698] sm:$0xff]  ;;  %v223_v30 = vld [vmem:[%s11083_s0 + $0x688] sm:$0xff] }
  0xae   :  { %833 = vadd.xlane.f32.xlu0 %v832_v38  ;;  %v6093_v49 = vpop.xlane.xlu1 %557  ;;  %v208_v38 = vld [vmem:[%s11083_s0 + $0x610] sm:$0xff]  ;;  %v911_v44 = vsel %vm494_vm0, %v223_v30, 0.0 }
  0xaf   :  { %v6099_v54 = vpop.xlane.xlu0 %553  ;;  %v912_v53 = vadd.f32 %v911_v44, %v222_v43  ;;  %v236_v30 = vld [vmem:[%s11083_s0 + $0x6f0] sm:$0xff]  ;;  %v241_v43 = vld [vmem:[%s11083_s0 + $0x718] sm:$0xff]  ;;  %v239_v44 = vld [vmem:[%s11083_s0 + $0x708] sm:$0xff] }
  0xb1   :  { %845 = vadd.xlane.f32.xlu1 %v844_v48  ;;  %v884_v48 = vadd.f32 %v883_v39, %v208_v38  ;;  %v915_v38 = vsel %vm494_vm0, %v225_v29, 0.0 }
  0xb2   :  { %841 = vadd.xlane.f32.xlu0 %v840_v50  ;;  %v6111_v62 = vpop.xlane.xlu1 %565 }
  0xb3   :  { %v6117_v3 = vpop.xlane.xlu0 %561 }
  0xb5   :  { %853 = vadd.xlane.f32.xlu1 %v852_v60  ;;  %v217_v60 = vld [vmem:[%s11083_s0 + $0x658] sm:$0xff] }
  0xb6   :  { %849 = vadd.xlane.f32.xlu0 %v848_v63  ;;  %v6129_v10 = vpop.xlane.xlu1 %573  ;;  %v215_v63 = vld [vmem:[%s11083_s0 + $0x648] sm:$0xff]  ;;  %v899_v6 = vsel %vm494_vm0, %v217_v60, 0.0  ;;  %v226_v60 = vld [vmem:[%s11083_s0 + $0x6a0] sm:$0xff] }
  0xb7   :  { %v6135_v15 = vpop.xlane.xlu0 %569  ;;  %v900_v16 = vadd.f32 %v899_v6, %v216_v5  ;;  %v924_v5 = vadd.f32 %v923_v58, %v228_v56  ;;  %v947_v56 = vsel %vm494_vm0, %v241_v43, 0.0  ;;  %v978_v43 = vmul.f32 0.0051020407, %v5985_v51  ;;  %v253_v51 = vld [vmem:[%s11083_s0 + $0x778] sm:$0xff] }
  0xb9   :  { %861 = vadd.xlane.f32.xlu1 %v860_v9  ;;  %v214_v9 = vld [vmem:[%s11083_s0 + $0x640] sm:$0xff] }
  0xba   :  { %857 = vadd.xlane.f32.xlu0 %v856_v12  ;;  %v6147_v23 = vpop.xlane.xlu1 %581  ;;  %v895_v12 = vsel %vm494_vm0, %v215_v63, 0.0  ;;  %v919_v63 = vsel %vm494_vm0, %v227_v47, 0.0 }
  0xbb   :  { %v6153_v28 = vpop.xlane.xlu0 %577  ;;  %v896_v19 = vadd.f32 %v895_v12, %v214_v9  ;;  %v920_v9 = vadd.f32 %v919_v63, %v226_v60  ;;  %v232_v12 = vld [vmem:[%s11083_s0 + $0x6d0] sm:$0xff]  ;;  %v238_v60 = vld [vmem:[%s11083_s0 + $0x700] sm:$0xff]  ;;  %v943_v63 = vsel %vm494_vm0, %v239_v44, 0.0 }
  0xbd   :  { %869 = vadd.xlane.f32.xlu1 %v868_v22  ;;  %v907_v22 = vsel %vm494_vm0, %v221_v13, 0.0 }
  0xbe   :  { %865 = vadd.xlane.f32.xlu0 %v864_v24  ;;  %v6165_v35 = vpop.xlane.xlu1 %589  ;;  %v908_v32 = vadd.f32 %v907_v22, %v220_v20  ;;  %v237_v20 = vld [vmem:[%s11083_s0 + $0x6f8] sm:$0xff]  ;;  %v235_v22 = vld [vmem:[%s11083_s0 + $0x6e8] sm:$0xff] }
  0xbf   :  { %v6171_v40 = vpop.xlane.xlu0 %585 }
  0xc1   :  { %877 = vadd.xlane.f32.xlu1 %v876_v34  ;;  %v904_v34 = vadd.f32 %v903_v26, %v218_v25 }
  0xc2   :  { %873 = vadd.xlane.f32.xlu0 %v872_v36  ;;  %v6183_v50 = vpop.xlane.xlu1 %597  ;;  %v224_v36 = vld [vmem:[%s11083_s0 + $0x690] sm:$0xff] }
  0xc3   :  { %v6189_v57 = vpop.xlane.xlu0 %593 }
  0xc5   :  { %885 = vadd.xlane.f32.xlu1 %v884_v48  ;;  %v916_v48 = vadd.f32 %v915_v38, %v224_v36  ;;  %v234_v36 = vld [vmem:[%s11083_s0 + $0x6e0] sm:$0xff]  ;;  %v935_v38 = vsel %vm494_vm0, %v235_v22, 0.0 }
  0xc6   :  { %881 = vadd.xlane.f32.xlu0 %v880_v52  ;;  %v6201_v2 = vpop.xlane.xlu1 %605 }
  0xc7   :  { %v6207_v8 = vpop.xlane.xlu0 %601 }
  0xc9   :  { %893 = vadd.xlane.f32.xlu1 %v892_v0  ;;  %v233_v0 = vld [vmem:[%s11083_s0 + $0x6d8] sm:$0xff] }
  0xca   :  { %889 = vadd.xlane.f32.xlu0 %v888_v4  ;;  %v6219_v18 = vpop.xlane.xlu1 %613  ;;  %v231_v4 = vld [vmem:[%s11083_s0 + $0x6c8] sm:$0xff]  ;;  %v931_v13 = vsel %vm494_vm0, %v233_v0, 0.0  ;;  %v245_v0 = vld [vmem:[%s11083_s0 + $0x738] sm:$0xff] }
  0xcb   :  { %v6225_v24 = vpop.xlane.xlu0 %609  ;;  %v932_v25 = vadd.f32 %v931_v13, %v232_v12  ;;  %v944_v12 = vadd.f32 %v943_v63, %v238_v60  ;;  %v244_v13 = vld [vmem:[%s11083_s0 + $0x730] sm:$0xff]  ;;  %v251_v63 = vld [vmem:[%s11083_s0 + $0x768] sm:$0xff] }
  0xcd   :  { %901 = vadd.xlane.f32.xlu1 %v900_v16  ;;  %v230_v16 = vld [vmem:[%s11083_s0 + $0x6c0] sm:$0xff] }
  0xce   :  { %897 = vadd.xlane.f32.xlu0 %v896_v19  ;;  %v6237_v33 = vpop.xlane.xlu1 %621  ;;  %v927_v19 = vsel %vm494_vm0, %v231_v4, 0.0  ;;  %v243_v4 = vld [vmem:[%s11083_s0 + $0x728] sm:$0xff] }
  0xcf   :  { %v6243_v39 = vpop.xlane.xlu0 %617  ;;  %v928_v29 = vadd.f32 %v927_v19, %v230_v16  ;;  %v955_v16 = vsel %vm494_vm0, %v245_v0, 0.0  ;;  %v951_v22 = vsel %vm494_vm0, %v243_v4, 0.0  ;;  %v5183_v0 = vld [vmem:[%s11083_s0 + $0x8] sm:$0xff] }
  0xd1   :  { %909 = vadd.xlane.f32.xlu1 %v908_v32  ;;  %v939_v32 = vsel %vm494_vm0, %v237_v20, 0.0  ;;  %v242_v20 = vld [vmem:[%s11083_s0 + $0x720] sm:$0xff] }
  0xd2   :  { %905 = vadd.xlane.f32.xlu0 %v904_v34  ;;  %v6255_v52 = vpop.xlane.xlu1 %629  ;;  %v940_v46 = vadd.f32 %v939_v32, %v236_v30  ;;  %v247_v30 = vld [vmem:[%s11083_s0 + $0x748] sm:$0xff]  ;;  %v975_v32 = vmul.f32 0.0051020407, %v5973_v45  ;;  %v246_v45 = vld [vmem:[%s11083_s0 + $0x740] sm:$0xff] }
  0xd3   :  { %v6261_v59 = vpop.xlane.xlu0 %625 }
  0xd4   :  { %v6375_v4 = vsub.f32 %v5183_v0, %v975_v32 }
  0xd5   :  { %917 = vadd.xlane.f32.xlu1 %v916_v48  ;;  %v936_v48 = vadd.f32 %v935_v38, %v234_v36  ;;  %v956_v36 = vadd.f32 %v955_v16, %v244_v13  ;;  %v977_v38 = vmul.f32 0.0051020407, %v5967_v41  ;;  %v959_v41 = vsel %vm494_vm0, %v247_v30, 0.0  ;;  %v5185_v16 = vld [vmem:[%s11083_s0 + $0x38] sm:$0xff]  ;;  %v252_v30 = vld [vmem:[%s11083_s0 + $0x770] sm:$0xff] }
  0xd6   :  { %913 = vadd.xlane.f32.xlu0 %v912_v53  ;;  %v6273_v6 = vpop.xlane.xlu1 %637  ;;  %v240_v53 = vld [vmem:[%s11083_s0 + $0x710] sm:$0xff]  ;;  %11395 = vst [vmem:[#allocation3_spill] sm:$0xff] %v6375_v4 }
  0xd7   :  { %v6279_v14 = vpop.xlane.xlu0 %633 }
  0xd9   :  { %925 = vadd.xlane.f32.xlu1 %v924_v5  ;;  %v948_v5 = vadd.f32 %v947_v56, %v240_v53  ;;  %v5182_v56 = vld [vmem:[%s11083_s0 + $0x18] sm:$0xff] }
  0xda   :  { %921 = vadd.xlane.f32.xlu0 %v920_v9  ;;  %v6291_v26 = vpop.xlane.xlu1 %645 }
  0xdb   :  { %v6297_v34 = vpop.xlane.xlu0 %641 }
  0xdd   :  { %933 = vadd.xlane.f32.xlu1 %v932_v25  ;;  %v249_v25 = vld [vmem:[%s11083_s0 + $0x758] sm:$0xff] }
  0xde   :  { %929 = vadd.xlane.f32.xlu0 %v928_v29  ;;  %v6309_v47 = vpop.xlane.xlu1 %653  ;;  %v976_v29 = vmul.f32 0.0051020407, %v5991_v55  ;;  %v248_v55 = vld [vmem:[%s11083_s0 + $0x750] sm:$0xff] }
  0xdf   :  { %v6315_v58 = vpop.xlane.xlu0 %649 }
  0xe0   :  { %v6367_v60 = vsub.f32 %v5182_v56, %v976_v29 }
  0xe1   :  { %941 = vadd.xlane.f32.xlu1 %v940_v46  ;;  %v952_v46 = vadd.f32 %v951_v22, %v242_v20  ;;  %v6385_v20 = vsub.f32 %v5185_v16, %v978_v43 }
  0xe2   :  { %937 = vadd.xlane.f32.xlu0 %v936_v48  ;;  %v6327_v9 = vpop.xlane.xlu1 %661  ;;  %v963_v48 = vsel %vm494_vm0, %v249_v25, 0.0  ;;  %11394 = vst [vmem:[#allocation2_spill] sm:$0xff] %v6367_v60  ;;  %v960_v25 = vadd.f32 %v959_v41, %v246_v45  ;;  %v967_v45 = vsel %vm494_vm0, %v251_v63, 0.0  ;;  %v5187_v41 = vld [vmem:[%s11083_s0] sm:$0xff]  ;;  %v1336_v63 = vmul.f32 %v6375_v4, %v6375_v4 }
  0xe3   :  { %v6333_v19 = vpop.xlane.xlu0 %657  ;;  %11397 = vst [vmem:[#allocation5_spill] sm:$0xff] %v6385_v20  ;;  %v6407_v0 = vsub.f32 %v5187_v41, %v975_v32 }
  0xe5   :  { %949 = vadd.xlane.f32.xlu1 %v948_v5  ;;  %v964_v5 = vadd.f32 %v963_v48, %v248_v55  ;;  %v5186_v55 = vld [vmem:[%s11083_s0 + $0x10] sm:$0xff]  ;;  %11400 = vst [vmem:[#allocation8_spill] sm:$0xff] %v6407_v0 }
  0xe6   :  { %945 = vadd.xlane.f32.xlu0 %v944_v12  ;;  %v6349_v44 = vpop.xlane.xlu1 %669  ;;  %v5184_v12 = vld [vmem:[%s11083_s0 + $0x28] sm:$0xff]  ;;  %v6396_v48 = vsub.f32 %v5186_v55, %v976_v29  ;;  %v980_v29 = vmul.f32 0.0051020407, %v6003_v61  ;;  %v979_v55 = vmul.f32 0.0051020407, %v6009_v1  ;;  %v5189_v61 = vld [vmem:[%s11083_s0 + $0x30] sm:$0xff] }
  0xe7   :  { %v6355_v53 = vpop.xlane.xlu0 %665  ;;  %v6380_v13 = vsub.f32 %v5184_v12, %v977_v38  ;;  %v5188_v12 = vld [vmem:[%s11083_s0 + $0x20] sm:$0xff]  ;;  %v6425_v41 = vsub.f32 %v5189_v61, %v978_v43  ;;  %v5190_v43 = vld [vmem:[%s11083_s0 + $0x58] sm:$0xff] }
  0xe8   :  { %11398 = vst [vmem:[#allocation6_spill] sm:$0xff] %v6396_v48  ;;  %v6415_v16 = vsub.f32 %v5188_v12, %v977_v38  ;;  %v1342_v38 = vmul.f32 %v6385_v20, %v6385_v20  ;;  %v1337_v1 = vmul.f32 %v6396_v48, %v6396_v48  ;;  %v6441_v61 = vsub.f32 %v5190_v43, %v980_v29 }
  0xe9   :  { %957 = vadd.xlane.f32.xlu1 %v956_v36  ;;  %11396 = vst [vmem:[#allocation4_spill] sm:$0xff] %v6380_v13  ;;  %v971_v36 = vsel %vm494_vm0, %v253_v51, 0.0  ;;  %v1338_v51 = vmul.f32 %v6367_v60, %v6367_v60  ;;  %v1340_v32 = vmul.f32 %v6380_v13, %v6380_v13  ;;  %11402 = vst [vmem:[#allocation10_spill] sm:$0xff] %v6425_v41  ;;  %v981_v13 = vmul.f32 0.0051020407, %v6027_v11  ;;  %v5193_v11 = vld [vmem:[%s11083_s0 + $0x40] sm:$0xff] }
  0xea   :  { %953 = vadd.xlane.f32.xlu0 %v952_v46  ;;  %v6387_v22 = vpop.xlane.xlu1 %677  ;;  %v250_v46 = vld [vmem:[%s11083_s0 + $0x760] sm:$0xff]  ;;  %11401 = vst [vmem:[#allocation9_spill] sm:$0xff] %v6415_v16  ;;  %11403 = vst [vmem:[#allocation11_spill] sm:$0xff] %v6441_v61  ;;  %v1341_v43 = vmul.f32 %v6425_v41, %v6425_v41 }
  0xeb   :  { %v6398_v56 = vpop.xlane.xlu0 %673  ;;  %v968_v4 = vadd.f32 %v967_v45, %v250_v46  ;;  %v1339_v46 = vmul.f32 %v6415_v16, %v6415_v16  ;;  %v1823_v60 = vsel %vm494_vm0, %v1340_v32, 0.0  ;;  %v1346_v32 = vmul.f32 %v6441_v61, %v6441_v61 }
  0xec   :  { %11399 = vst [vmem:[#allocation7_spill] sm:$0xff] %v6398_v56  ;;  %v972_v56 = vadd.f32 %v971_v36, %v252_v30  ;;  %v1335_v36 = vmul.f32 %v6407_v0, %v6407_v0  ;;  %v1815_v0 = vsel %vm494_vm0, %v1336_v63, 0.0  ;;  %v5194_v63 = vld [vmem:[%s11083_s0 + $0x78] sm:$0xff] }
  0xed   :  { %965 = vadd.xlane.f32.xlu1 %v964_v5  ;;  %v982_v5 = vmul.f32 0.0051020407, %v6021_v7  ;;  %v5191_v7 = vld [vmem:[%s11083_s0 + $0x48] sm:$0xff] }
  0xee   :  { %961 = vadd.xlane.f32.xlu0 %v960_v25  ;;  %v6429_v12 = vpop.xlane.xlu1 %685  ;;  %v1819_v25 = vsel %vm494_vm0, %v1338_v51, 0.0  ;;  %v6449_v45 = vsub.f32 %v5191_v7, %v979_v55  ;;  %v5192_v51 = vld [vmem:[%s11083_s0 + $0x50] sm:$0xff]  ;;  %v1827_v7 = vsel %vm494_vm0, %v1342_v38, 0.0  ;;  %v983_v38 = vmul.f32 0.0051020407, %v6045_v21 }
  0xef   :  { %v6434_v30 = vpop.xlane.xlu0 %681  ;;  %v6458_v20 = vsub.f32 %v5192_v51, %v980_v29  ;;  %v6472_v41 = vsub.f32 %v5194_v63, %v982_v5  ;;  %v1820_v51 = vadd.f32 %v1819_v25, %v1337_v1  ;;  %v1816_v48 = vadd.f32 %v1815_v0, %v1335_v36 }
  0xf0   :  { %11404 = vst [vmem:[#allocation12_spill] sm:$0xff] %v6449_v45  ;;  %v1828_v21 = vadd.f32 %v1827_v7, %v1341_v43  ;;  %v1824_v0 = vadd.f32 %v1823_v60, %v1339_v46  ;;  %v5198_v60 = vld [vmem:[%s11083_s0 + $0x60] sm:$0xff]  ;;  %v5199_v43 = vld [vmem:[%s11083_s0 + $0x88] sm:$0xff] }
  0xf1   :  { %973 = vadd.xlane.f32.xlu1 %v972_v56  ;;  %11405 = vst [vmem:[#allocation13_spill] sm:$0xff] %v6458_v20  ;;  %v6467_v56 = vsub.f32 %v5193_v11, %v979_v55  ;;  %11407 = vst [vmem:[#allocation15_spill] sm:$0xff] %v6472_v41  ;;  %v1344_v55 = vmul.f32 %v6449_v45, %v6449_v45  ;;  %v5195_v11 = vld [vmem:[%s11083_s0 + $0x68] sm:$0xff]  ;;  %v1345_v36 = vmul.f32 %v6458_v20, %v6458_v20 }
  0xf2   :  { %969 = vadd.xlane.f32.xlu0 %v968_v4  ;;  %v6460_v16 = vpop.xlane.xlu1 %693  ;;  %v984_v4 = vmul.f32 0.0051020407, %v6039_v17  ;;  %v6485_v63 = vsub.f32 %v5195_v11, %v981_v13  ;;  %v5196_v17 = vld [vmem:[%s11083_s0 + $0x70] sm:$0xff]  ;;  %v5197_v11 = vld [vmem:[%s11083_s0 + $0x98] sm:$0xff]  ;;  %v6510_v46 = vsub.f32 %v5198_v60, %v981_v13  ;;  %v6515_v7 = vsub.f32 %v5199_v43, %v983_v38 }
  0xf3   :  { %11406 = vst [vmem:[#allocation14_spill] sm:$0xff] %v6467_v56  ;;  %v6475_v29 = vpop.xlane.xlu0 %689  ;;  %v6490_v1 = vsub.f32 %v5196_v17, %v982_v5  ;;  %v1343_v45 = vmul.f32 %v6467_v56, %v6467_v56  ;;  %v986_v17 = vmul.f32 0.0051020407, %v6057_v27  ;;  %v1835_v56 = vsel %vm494_vm0, %v1346_v32, 0.0  ;;  %v5200_v60 = vld [vmem:[%s11083_s0 + $0x90] sm:$0xff]  ;;  %v5201_v27 = vld [vmem:[%s11083_s0 + $0x80] sm:$0xff] }
  0xf4   :  { %11408 = vst [vmem:[#allocation16_spill] sm:$0xff] %v6485_v63  ;;  %v6503_v5 = vsub.f32 %v5197_v11, %v984_v4  ;;  %11411 = vst [vmem:[#allocation19_spill] sm:$0xff] %v6510_v46  ;;  %v1348_v11 = vmul.f32 %v6485_v63, %v6485_v63  ;;  %v1831_v61 = vsel %vm494_vm0, %v1344_v55, 0.0  ;;  %v6528_v43 = vsub.f32 %v5200_v60, %v984_v4 }
  0xf5   :  { %1821 = vadd.xlane.f32.xlu1 %v1820_v51  ;;  %11409 = vst [vmem:[#allocation17_spill] sm:$0xff] %v6490_v1  ;;  %v1350_v51 = vmul.f32 %v6472_v41, %v6472_v41  ;;  %11412 = vst [vmem:[#allocation20_spill] sm:$0xff] %v6515_v7  ;;  %v985_v41 = vmul.f32 0.0051020407, %v6063_v31  ;;  %v1349_v13 = vmul.f32 %v6490_v1, %v6490_v1 }
  0xf6   :  { %1817 = vadd.xlane.f32.xlu0 %v1816_v48  ;;  %v6492_v25 = vpop.xlane.xlu1 %701  ;;  %11410 = vst [vmem:[#allocation18_spill] sm:$0xff] %v6503_v5  ;;  %11413 = vst [vmem:[#allocation21_spill] sm:$0xff] %v6528_v43  ;;  %v6533_v32 = vsub.f32 %v5201_v27, %v983_v38  ;;  %v1354_v55 = vmul.f32 %v6503_v5, %v6503_v5  ;;  %v1836_v1 = vadd.f32 %v1835_v56, %v1345_v36 }
  0xf7   :  { %v6505_v48 = vpop.xlane.xlu0 %697  ;;  %v1843_v4 = vsel %vm494_vm0, %v1350_v51, 0.0  ;;  %v1347_v60 = vmul.f32 %v6510_v46, %v6510_v46  ;;  %v1352_v38 = vmul.f32 %v6515_v7, %v6515_v7  ;;  %v1832_v5 = vadd.f32 %v1831_v61, %v1343_v45  ;;  %v5204_v61 = vld [vmem:[%s11083_s0 + $0xb0] sm:$0xff] }
  0xf8   :  { %11414 = vst [vmem:[#allocation22_spill] sm:$0xff] %v6533_v32  ;;  %v987_v36 = vmul.f32 0.0051020407, %v6081_v42  ;;  %v1839_v51 = vsel %vm494_vm0, %v1348_v11, 0.0  ;;  %v1353_v7 = vmul.f32 %v6528_v43, %v6528_v43  ;;  %v1351_v46 = vmul.f32 %v6533_v32, %v6533_v32  ;;  %v5205_v42 = vld [vmem:[%s11083_s0 + $0xa0] sm:$0xff]  ;;  %v5206_v11 = vld [vmem:[%s11083_s0 + $0xd8] sm:$0xff] }
  0xf9   :  { %1829 = vadd.xlane.f32.xlu1 %v1828_v21  ;;  %v988_v21 = vmul.f32 0.0051020407, %v6075_v37  ;;  %v5203_v37 = vld [vmem:[%s11083_s0 + $0xa8] sm:$0xff]  ;;  %v6566_v45 = vsub.f32 %v5204_v61, %v986_v17  ;;  %v990_v43 = vmul.f32 0.0051020407, %v6093_v49  ;;  %v1840_v61 = vadd.f32 %v1839_v51, %v1347_v60 }
  0xfa   :  { %1825 = vadd.xlane.f32.xlu0 %v1824_v0  ;;  %v6535_v31 = vpop.xlane.xlu1 %709  ;;  %v5202_v0 = vld [vmem:[%s11083_s0 + $0xb8] sm:$0xff]  ;;  %v6555_v56 = vsub.f32 %v5203_v37, %v985_v41  ;;  %v1844_v37 = vadd.f32 %v1843_v4, %v1349_v13  ;;  %v989_v4 = vmul.f32 0.0051020407, %v6099_v54  ;;  %v5208_v54 = vld [vmem:[%s11083_s0 + $0xd0] sm:$0xff] }
  0xfb   :  { %v6540_v63 = vpop.xlane.xlu0 %705  ;;  %v6550_v27 = vsub.f32 %v5202_v0, %v986_v17  ;;  %11417 = vst [vmem:[#allocation25_spill] sm:$0xff] %v6566_v45  ;;  %v6578_v32 = vsub.f32 %v5206_v11, %v988_v21  ;;  %v5207_v11 = vld [vmem:[%s11083_s0 + $0xc8] sm:$0xff]  ;;  %v6600_v60 = vsub.f32 %v5208_v54, %v988_v21 }
  0xfc   :  { %11416 = vst [vmem:[#allocation24_spill] sm:$0xff] %v6555_v56  ;;  %v6593_v49 = vsub.f32 %v5207_v11, %v987_v36 }
  0xfd   :  { %11415 = vst [vmem:[#allocation23_spill] sm:$0xff] %v6550_v27  ;;  %1837 = vadd.xlane.f32.xlu1 %v1836_v1  ;;  %v6573_v1 = vsub.f32 %v5205_v42, %v985_v41  ;;  %11419 = vst [vmem:[#allocation27_spill] sm:$0xff] %v6578_v32  ;;  %v1358_v13 = vmul.f32 %v6550_v27, %v6550_v27  ;;  %v1847_v41 = vsel %vm494_vm0, %v1352_v38, 0.0 }
  0xfe   :  { %1833 = vadd.xlane.f32.xlu0 %v1832_v5  ;;  %v6568_v0 = vpop.xlane.xlu1 %717  ;;  %v1851_v5 = vsel %vm494_vm0, %v1354_v55, 0.0  ;;  %v1356_v42 = vmul.f32 %v6555_v56, %v6555_v56  ;;  %11420 = vst [vmem:[#allocation28_spill] sm:$0xff] %v6593_v49  ;;  %v1357_v55 = vmul.f32 %v6566_v45, %v6566_v45  ;;  %11421 = vst [vmem:[#allocation29_spill] sm:$0xff] %v6600_v60 }
  0xff   :  { %11418 = vst [vmem:[#allocation26_spill] sm:$0xff] %v6573_v1  ;;  %v6581_v17 = vpop.xlane.xlu0 %713  ;;  %v1852_v51 = vadd.f32 %v1851_v5, %v1353_v7  ;;  %v1355_v56 = vmul.f32 %v6573_v1, %v6573_v1  ;;  %v1362_v11 = vmul.f32 %v6578_v32, %v6578_v32  ;;  %v1848_v21 = vadd.f32 %v1847_v41, %v1351_v46  ;;  %v5211_v5 = vld [vmem:[%s11083_s0 + $0xe8] sm:$0xff] }
 0x100   :  { %v6623_v54 = vsub.f32 %v5211_v5, %v989_v4  ;;  %v992_v1 = vmul.f32 0.0051020407, %v6111_v62  ;;  %v1360_v32 = vmul.f32 %v6593_v49, %v6593_v49  ;;  %v991_v46 = vmul.f32 0.0051020407, %v6117_v3  ;;  %v5213_v62 = vld [vmem:[%s11083_s0 + $0xe0] sm:$0xff] }
 0x101   :  { %1845 = vadd.xlane.f32.xlu1 %v1844_v37  ;;  %v5209_v37 = vld [vmem:[%s11083_s0 + $0xf8] sm:$0xff]  ;;  %v1855_v41 = vsel %vm494_vm0, %v1356_v42, 0.0 }
 0x102   :  { %1841 = vadd.xlane.f32.xlu0 %v1840_v61  ;;  %v6602_v38 = vpop.xlane.xlu1 %725  ;;  %v6611_v27 = vsub.f32 %v5209_v37, %v990_v43  ;;  %v5210_v61 = vld [vmem:[%s11083_s0 + $0xc0] sm:$0xff]  ;;  %11424 = vst [vmem:[#allocation32_spill] sm:$0xff] %v6623_v54  ;;  %v1859_v37 = vsel %vm494_vm0, %v1358_v13, 0.0  ;;  %v6641_v13 = vsub.f32 %v5213_v62, %v989_v4  ;;  %v1364_v4 = vmul.f32 %v6623_v54, %v6623_v54 }
 0x103   :  { %v6613_v45 = vpop.xlane.xlu0 %721  ;;  %v6618_v7 = vsub.f32 %v5210_v61, %v987_v36  ;;  %v1361_v36 = vmul.f32 %v6600_v60, %v6600_v60  ;;  %v5212_v61 = vld [vmem:[%s11083_s0 + $0xf0] sm:$0xff]  ;;  %v1860_v60 = vadd.f32 %v1859_v37, %v1357_v55  ;;  %v1863_v37 = vsel %vm494_vm0, %v1360_v32, 0.0 }
 0x104   :  { %11422 = vst [vmem:[#allocation30_spill] sm:$0xff] %v6611_v27  ;;  %v6636_v5 = vsub.f32 %v5212_v61, %v990_v43  ;;  %11426 = vst [vmem:[#allocation34_spill] sm:$0xff] %v6641_v13  ;;  %v1366_v42 = vmul.f32 %v6611_v27, %v6611_v27  ;;  %v1867_v43 = vsel %vm494_vm0, %v1362_v11, 0.0  ;;  %v1856_v27 = vadd.f32 %v1855_v41, %v1355_v56  ;;  %v5216_v56 = vld [vmem:[%s11083_s0 + $0x110] sm:$0xff] }
 0x105   :  { %11423 = vst [vmem:[#allocation31_spill] sm:$0xff] %v6618_v7  ;;  %1853 = vadd.xlane.f32.xlu1 %v1852_v51  ;;  %v994_v51 = vmul.f32 0.0051020407, %v6129_v10  ;;  %v1359_v61 = vmul.f32 %v6618_v7, %v6618_v7  ;;  %v5215_v10 = vld [vmem:[%s11083_s0 + $0x108] sm:$0xff]  ;;  %v993_v11 = vmul.f32 0.0051020407, %v6135_v15  ;;  %v1363_v7 = vmul.f32 %v6641_v13, %v6641_v13 }
 0x106   :  { %11425 = vst [vmem:[#allocation33_spill] sm:$0xff] %v6636_v5  ;;  %1849 = vadd.xlane.f32.xlu0 %v1848_v21  ;;  %v6643_v3 = vpop.xlane.xlu1 %733  ;;  %v5214_v21 = vld [vmem:[%s11083_s0 + $0x118] sm:$0xff]  ;;  %v6663_v55 = vsub.f32 %v5215_v10, %v991_v46  ;;  %v1365_v54 = vmul.f32 %v6636_v5, %v6636_v5  ;;  %v6674_v41 = vsub.f32 %v5216_v56, %v992_v1  ;;  %v5217_v15 = vld [vmem:[%s11083_s0 + $0x100] sm:$0xff]  ;;  %v996_v5 = vmul.f32 0.0051020407, %v6147_v23 }
 0x107   :  { %v6648_v49 = vpop.xlane.xlu0 %729  ;;  %v6658_v62 = vsub.f32 %v5214_v21, %v992_v1  ;;  %v1868_v10 = vadd.f32 %v1867_v43, %v1361_v36  ;;  %v6681_v32 = vsub.f32 %v5217_v15, %v991_v46  ;;  %v995_v43 = vmul.f32 0.0051020407, %v6153_v28  ;;  %v5220_v28 = vld [vmem:[%s11083_s0 + $0x130] sm:$0xff] }
 0x108   :  { %11428 = vst [vmem:[#allocation36_spill] sm:$0xff] %v6663_v55  ;;  %11429 = vst [vmem:[#allocation37_spill] sm:$0xff] %v6674_v41  ;;  %v1864_v56 = vadd.f32 %v1863_v37, %v1359_v61  ;;  %v1871_v46 = vsel %vm494_vm0, %v1364_v4, 0.0  ;;  %v1368_v15 = vmul.f32 %v6663_v55, %v6663_v55  ;;  %v6708_v61 = vsub.f32 %v5220_v28, %v994_v51 }
 0x109   :  { %11427 = vst [vmem:[#allocation35_spill] sm:$0xff] %v6658_v62  ;;  %1861 = vadd.xlane.f32.xlu1 %v1860_v60  ;;  %11430 = vst [vmem:[#allocation38_spill] sm:$0xff] %v6681_v32  ;;  %v5218_v60 = vld [vmem:[%s11083_s0 + $0x138] sm:$0xff]  ;;  %v1370_v36 = vmul.f32 %v6658_v62, %v6658_v62  ;;  %v1367_v55 = vmul.f32 %v6681_v32, %v6681_v32  ;;  %v998_v32 = vmul.f32 0.0051020407, %v6165_v35  ;;  %v5225_v35 = vld [vmem:[%s11083_s0 + $0x140] sm:$0xff] }
 0x10a   :  { %1857 = vadd.xlane.f32.xlu0 %v1856_v27  ;;  %v6676_v21 = vpop.xlane.xlu1 %741  ;;  %v6686_v13 = vsub.f32 %v5218_v60, %v994_v51  ;;  %v1875_v27 = vsel %vm494_vm0, %v1366_v42, 0.0  ;;  %v5219_v60 = vld [vmem:[%s11083_s0 + $0x128] sm:$0xff]  ;;  %v1369_v42 = vmul.f32 %v6674_v41, %v6674_v41  ;;  %11433 = vst [vmem:[#allocation41_spill] sm:$0xff] %v6708_v61  ;;  %v1872_v51 = vadd.f32 %v1871_v46, %v1363_v7 }
 0x10b   :  { %v6689_v1 = vpop.xlane.xlu0 %737  ;;  %v6701_v23 = vsub.f32 %v5219_v60, %v993_v11  ;;  %v1876_v37 = vadd.f32 %v1875_v27, %v1365_v54  ;;  %v5223_v27 = vld [vmem:[%s11083_s0 + $0x148] sm:$0xff]  ;;  %v997_v7 = vmul.f32 0.0051020407, %v6171_v40  ;;  %v1879_v46 = vsel %vm494_vm0, %v1368_v15, 0.0 }
 0x10c   :  { %11431 = vst [vmem:[#allocation39_spill] sm:$0xff] %v6686_v13  ;;  %v1374_v60 = vmul.f32 %v6686_v13, %v6686_v13  ;;  %v6731_v28 = vsub.f32 %v5223_v27, %v995_v43 }
 0x10d   :  { %11432 = vst [vmem:[#allocation40_spill] sm:$0xff] %v6701_v23  ;;  %1869 = vadd.xlane.f32.xlu1 %v1868_v10  ;;  %v5221_v10 = vld [vmem:[%s11083_s0 + $0x158] sm:$0xff]  ;;  %v1372_v13 = vmul.f32 %v6701_v23, %v6701_v23 }
 0x10e   :  { %1865 = vadd.xlane.f32.xlu0 %v1864_v56  ;;  %v6710_v4 = vpop.xlane.xlu1 %749  ;;  %v6719_v62 = vsub.f32 %v5221_v10, %v996_v5  ;;  %v5222_v56 = vld [vmem:[%s11083_s0 + $0x120] sm:$0xff]  ;;  %11436 = vst [vmem:[#allocation44_spill] sm:$0xff] %v6731_v28  ;;  %v1883_v10 = vsel %vm494_vm0, %v1370_v36, 0.0  ;;  %v6749_v36 = vsub.f32 %v5225_v35, %v995_v43  ;;  %v1376_v43 = vmul.f32 %v6731_v28, %v6731_v28 }
 0x10f   :  { %v6721_v41 = vpop.xlane.xlu0 %745  ;;  %v6726_v54 = vsub.f32 %v5222_v56, %v993_v11  ;;  %v1373_v11 = vmul.f32 %v6708_v61, %v6708_v61  ;;  %v5224_v56 = vld [vmem:[%s11083_s0 + $0x150] sm:$0xff]  ;;  %v1884_v61 = vadd.f32 %v1883_v10, %v1369_v42  ;;  %v1887_v10 = vsel %vm494_vm0, %v1372_v13, 0.0 }
 0x110   :  { %11434 = vst [vmem:[#allocation42_spill] sm:$0xff] %v6719_v62  ;;  %v6744_v27 = vsub.f32 %v5224_v56, %v996_v5  ;;  %11438 = vst [vmem:[#allocation46_spill] sm:$0xff] %v6749_v36  ;;  %v1378_v15 = vmul.f32 %v6719_v62, %v6719_v62  ;;  %v1891_v5 = vsel %vm494_vm0, %v1374_v60, 0.0  ;;  %v1880_v62 = vadd.f32 %v1879_v46, %v1367_v55  ;;  %v5228_v55 = vld [vmem:[%s11083_s0 + $0x170] sm:$0xff] }
 0x111   :  { %11435 = vst [vmem:[#allocation43_spill] sm:$0xff] %v6726_v54  ;;  %1877 = vadd.xlane.f32.xlu1 %v1876_v37  ;;  %v1000_v37 = vmul.f32 0.0051020407, %v6183_v50  ;;  %v1371_v56 = vmul.f32 %v6726_v54, %v6726_v54  ;;  %v5227_v50 = vld [vmem:[%s11083_s0 + $0x168] sm:$0xff]  ;;  %v999_v60 = vmul.f32 0.0051020407, %v6189_v57  ;;  %v1375_v54 = vmul.f32 %v6749_v36, %v6749_v36 }
 0x112   :  { %11437 = vst [vmem:[#allocation45_spill] sm:$0xff] %v6744_v27  ;;  %1873 = vadd.xlane.f32.xlu0 %v1872_v51  ;;  %v6751_v40 = vpop.xlane.xlu1 %757  ;;  %v5226_v51 = vld [vmem:[%s11083_s0 + $0x178] sm:$0xff]  ;;  %v6771_v42 = vsub.f32 %v5227_v50, %v997_v7  ;;  %v1377_v28 = vmul.f32 %v6744_v27, %v6744_v27  ;;  %v6782_v46 = vsub.f32 %v5228_v55, %v998_v32  ;;  %v5229_v57 = vld [vmem:[%s11083_s0 + $0x160] sm:$0xff]  ;;  %v1002_v27 = vmul.f32 0.0051020407, %v6201_v2 }
 0x113   :  { %v6756_v23 = vpop.xlane.xlu0 %753  ;;  %v6766_v35 = vsub.f32 %v5226_v51, %v998_v32  ;;  %v1892_v50 = vadd.f32 %v1891_v5, %v1373_v11  ;;  %v6789_v13 = vsub.f32 %v5229_v57, %v997_v7  ;;  %v1001_v5 = vmul.f32 0.0051020407, %v6207_v8  ;;  %v5232_v8 = vld [vmem:[%s11083_s0 + $0x190] sm:$0xff] }
 0x114   :  { %11440 = vst [vmem:[#allocation48_spill] sm:$0xff] %v6771_v42  ;;  %11441 = vst [vmem:[#allocation49_spill] sm:$0xff] %v6782_v46  ;;  %v1888_v55 = vadd.f32 %v1887_v10, %v1371_v56  ;;  %v1895_v7 = vsel %vm494_vm0, %v1376_v43, 0.0  ;;  %v1380_v57 = vmul.f32 %v6771_v42, %v6771_v42  ;;  %v6816_v56 = vsub.f32 %v5232_v8, %v1000_v37 }
 0x115   :  { %11439 = vst [vmem:[#allocation47_spill] sm:$0xff] %v6766_v35  ;;  %1885 = vadd.xlane.f32.xlu1 %v1884_v61  ;;  %11442 = vst [vmem:[#allocation50_spill] sm:$0xff] %v6789_v13  ;;  %v5230_v61 = vld [vmem:[%s11083_s0 + $0x198] sm:$0xff]  ;;  %v1382_v11 = vmul.f32 %v6766_v35, %v6766_v35  ;;  %v1379_v42 = vmul.f32 %v6789_v13, %v6789_v13  ;;  %v1004_v13 = vmul.f32 0.0051020407, %v6219_v18  ;;  %v5237_v18 = vld [vmem:[%s11083_s0 + $0x1a0] sm:$0xff] }
 0x116   :  { %1881 = vadd.xlane.f32.xlu0 %v1880_v62  ;;  %v6784_v51 = vpop.xlane.xlu1 %765  ;;  %v6794_v36 = vsub.f32 %v5230_v61, %v1000_v37  ;;  %v1899_v62 = vsel %vm494_vm0, %v1378_v15, 0.0  ;;  %v5231_v61 = vld [vmem:[%s11083_s0 + $0x188] sm:$0xff]  ;;  %v1381_v15 = vmul.f32 %v6782_v46, %v6782_v46  ;;  %11445 = vst [vmem:[#allocation53_spill] sm:$0xff] %v6816_v56  ;;  %v1896_v37 = vadd.f32 %v1895_v7, %v1375_v54 }
 0x117   :  { %v6797_v32 = vpop.xlane.xlu0 %761  ;;  %v6809_v2 = vsub.f32 %v5231_v61, %v999_v60  ;;  %v1900_v10 = vadd.f32 %v1899_v62, %v1377_v28  ;;  %v5235_v62 = vld [vmem:[%s11083_s0 + $0x1a8] sm:$0xff]  ;;  %v1003_v54 = vmul.f32 0.0051020407, %v6225_v24  ;;  %v1903_v7 = vsel %vm494_vm0, %v1380_v57, 0.0 }
 0x118   :  { %11443 = vst [vmem:[#allocation51_spill] sm:$0xff] %v6794_v36  ;;  %v1386_v61 = vmul.f32 %v6794_v36, %v6794_v36  ;;  %v6839_v8 = vsub.f32 %v5235_v62, %v1001_v5 }
 0x119   :  { %11444 = vst [vmem:[#allocation52_spill] sm:$0xff] %v6809_v2  ;;  %1893 = vadd.xlane.f32.xlu1 %v1892_v50  ;;  %v5233_v50 = vld [vmem:[%s11083_s0 + $0x1b8] sm:$0xff]  ;;  %v1384_v36 = vmul.f32 %v6809_v2, %v6809_v2 }
 0x11a   :  { %1889 = vadd.xlane.f32.xlu0 %v1888_v55  ;;  %v6818_v43 = vpop.xlane.xlu1 %773  ;;  %v6827_v35 = vsub.f32 %v5233_v50, %v1002_v27  ;;  %v5234_v55 = vld [vmem:[%s11083_s0 + $0x180] sm:$0xff]  ;;  %11448 = vst [vmem:[#allocation56_spill] sm:$0xff] %v6839_v8  ;;  %v1907_v50 = vsel %vm494_vm0, %v1382_v11, 0.0  ;;  %v6857_v11 = vsub.f32 %v5237_v18, %v1001_v5  ;;  %v1388_v5 = vmul.f32 %v6839_v8, %v6839_v8 }
 0x11b   :  { %v6829_v46 = vpop.xlane.xlu0 %769  ;;  %v6834_v28 = vsub.f32 %v5234_v55, %v999_v60  ;;  %v1385_v60 = vmul.f32 %v6816_v56, %v6816_v56  ;;  %v5236_v55 = vld [vmem:[%s11083_s0 + $0x1b0] sm:$0xff]  ;;  %v1908_v56 = vadd.f32 %v1907_v50, %v1381_v15  ;;  %v1911_v50 = vsel %vm494_vm0, %v1384_v36, 0.0 }
 0x11c   :  { %11446 = vst [vmem:[#allocation54_spill] sm:$0xff] %v6827_v35  ;;  %v6852_v62 = vsub.f32 %v5236_v55, %v1002_v27  ;;  %11450 = vst [vmem:[#allocation58_spill] sm:$0xff] %v6857_v11  ;;  %v1390_v57 = vmul.f32 %v6827_v35, %v6827_v35  ;;  %v1915_v27 = vsel %vm494_vm0, %v1386_v61, 0.0  ;;  %v1904_v35 = vadd.f32 %v1903_v7, %v1379_v42  ;;  %v5240_v42 = vld [vmem:[%s11083_s0 + $0x1d0] sm:$0xff] }
 0x11d   :  { %11447 = vst [vmem:[#allocation55_spill] sm:$0xff] %v6834_v28  ;;  %1901 = vadd.xlane.f32.xlu1 %v1900_v10  ;;  %v1006_v10 = vmul.f32 0.0051020407, %v6237_v33  ;;  %v1383_v55 = vmul.f32 %v6834_v28, %v6834_v28  ;;  %v5239_v33 = vld [vmem:[%s11083_s0 + $0x1c8] sm:$0xff]  ;;  %v1005_v61 = vmul.f32 0.0051020407, %v6243_v39  ;;  %v1387_v28 = vmul.f32 %v6857_v11, %v6857_v11 }
 0x11e   :  { %11449 = vst [vmem:[#allocation57_spill] sm:$0xff] %v6852_v62  ;;  %1897 = vadd.xlane.f32.xlu0 %v1896_v37  ;;  %v6859_v24 = vpop.xlane.xlu1 %781  ;;  %v5238_v37 = vld [vmem:[%s11083_s0 + $0x1d8] sm:$0xff]  ;;  %v6879_v15 = vsub.f32 %v5239_v33, %v1003_v54  ;;  %v1389_v8 = vmul.f32 %v6852_v62, %v6852_v62  ;;  %v6890_v7 = vsub.f32 %v5240_v42, %v1004_v13  ;;  %v5241_v39 = vld [vmem:[%s11083_s0 + $0x1c0] sm:$0xff]  ;;  %v1008_v62 = vmul.f32 0.0051020407, %v6255_v52 }
 0x11f   :  { %v6864_v2 = vpop.xlane.xlu0 %777  ;;  %v6874_v18 = vsub.f32 %v5238_v37, %v1004_v13  ;;  %v1916_v33 = vadd.f32 %v1915_v27, %v1385_v60  ;;  %v6897_v36 = vsub.f32 %v5241_v39, %v1003_v54  ;;  %v1007_v27 = vmul.f32 0.0051020407, %v6261_v59  ;;  %v5244_v59 = vld [vmem:[%s11083_s0 + $0x1f0] sm:$0xff] }
 0x120   :  { %11452 = vst [vmem:[#allocation60_spill] sm:$0xff] %v6879_v15  ;;  %11453 = vst [vmem:[#allocation61_spill] sm:$0xff] %v6890_v7  ;;  %v1912_v42 = vadd.f32 %v1911_v50, %v1383_v55  ;;  %v1919_v54 = vsel %vm494_vm0, %v1388_v5, 0.0  ;;  %v1392_v39 = vmul.f32 %v6879_v15, %v6879_v15  ;;  %v6924_v55 = vsub.f32 %v5244_v59, %v1006_v10 }
 0x121   :  { %11451 = vst [vmem:[#allocation59_spill] sm:$0xff] %v6874_v18  ;;  %1909 = vadd.xlane.f32.xlu1 %v1908_v56  ;;  %11454 = vst [vmem:[#allocation62_spill] sm:$0xff] %v6897_v36  ;;  %v5242_v56 = vld [vmem:[%s11083_s0 + $0x1f8] sm:$0xff]  ;;  %v1394_v60 = vmul.f32 %v6874_v18, %v6874_v18  ;;  %v1391_v15 = vmul.f32 %v6897_v36, %v6897_v36  ;;  %v1010_v36 = vmul.f32 0.0051020407, %v6273_v6  ;;  %v5249_v6 = vld [vmem:[%s11083_s0 + $0x200] sm:$0xff] }
 0x122   :  { %1905 = vadd.xlane.f32.xlu0 %v1904_v35  ;;  %v6892_v37 = vpop.xlane.xlu1 %789  ;;  %v6902_v11 = vsub.f32 %v5242_v56, %v1006_v10  ;;  %v1923_v35 = vsel %vm494_vm0, %v1390_v57, 0.0  ;;  %v5243_v56 = vld [vmem:[%s11083_s0 + $0x1e8] sm:$0xff]  ;;  %v1393_v57 = vmul.f32 %v6890_v7, %v6890_v7  ;;  %11457 = vst [vmem:[#allocation65_spill] sm:$0xff] %v6924_v55  ;;  %v1920_v10 = vadd.f32 %v1919_v54, %v1387_v28 }
 0x123   :  { %v6905_v13 = vpop.xlane.xlu0 %785  ;;  %v6917_v52 = vsub.f32 %v5243_v56, %v1005_v61  ;;  %v1924_v50 = vadd.f32 %v1923_v35, %v1389_v8  ;;  %v5247_v35 = vld [vmem:[%s11083_s0 + $0x208] sm:$0xff]  ;;  %v1009_v28 = vmul.f32 0.0051020407, %v6279_v14  ;;  %v1927_v54 = vsel %vm494_vm0, %v1392_v39, 0.0 }
 0x124   :  { %11455 = vst [vmem:[#allocation63_spill] sm:$0xff] %v6902_v11  ;;  %v1398_v56 = vmul.f32 %v6902_v11, %v6902_v11  ;;  %v6947_v59 = vsub.f32 %v5247_v35, %v1007_v27 }
 0x125   :  { %11456 = vst [vmem:[#allocation64_spill] sm:$0xff] %v6917_v52  ;;  %1917 = vadd.xlane.f32.xlu1 %v1916_v33  ;;  %v5245_v33 = vld [vmem:[%s11083_s0 + $0x218] sm:$0xff]  ;;  %v1396_v11 = vmul.f32 %v6917_v52, %v6917_v52 }
 0x126   :  { %1913 = vadd.xlane.f32.xlu0 %v1912_v42  ;;  %v6926_v5 = vpop.xlane.xlu1 %797  ;;  %v6935_v18 = vsub.f32 %v5245_v33, %v1008_v62  ;;  %v5246_v42 = vld [vmem:[%s11083_s0 + $0x1e0] sm:$0xff]  ;;  %11460 = vst [vmem:[#allocation68_spill] sm:$0xff] %v6947_v59  ;;  %v1931_v33 = vsel %vm494_vm0, %v1394_v60, 0.0  ;;  %v6965_v60 = vsub.f32 %v5249_v6, %v1007_v27  ;;  %v1400_v27 = vmul.f32 %v6947_v59, %v6947_v59 }
 0x127   :  { %v6937_v7 = vpop.xlane.xlu0 %793  ;;  %v6942_v8 = vsub.f32 %v5246_v42, %v1005_v61  ;;  %v1397_v61 = vmul.f32 %v6924_v55, %v6924_v55  ;;  %v5248_v42 = vld [vmem:[%s11083_s0 + $0x210] sm:$0xff]  ;;  %v1932_v55 = vadd.f32 %v1931_v33, %v1393_v57  ;;  %v1935_v33 = vsel %vm494_vm0, %v1396_v11, 0.0 }
 0x128   :  { %11458 = vst [vmem:[#allocation66_spill] sm:$0xff] %v6935_v18  ;;  %v6960_v35 = vsub.f32 %v5248_v42, %v1008_v62  ;;  %11462 = vst [vmem:[#allocation70_spill] sm:$0xff] %v6965_v60  ;;  %v1402_v39 = vmul.f32 %v6935_v18, %v6935_v18  ;;  %v1939_v62 = vsel %vm494_vm0, %v1398_v56, 0.0  ;;  %v1928_v18 = vadd.f32 %v1927_v54, %v1391_v15  ;;  %v5252_v15 = vld [vmem:[%s11083_s0 + $0x230] sm:$0xff] }
 0x129   :  { %11459 = vst [vmem:[#allocation67_spill] sm:$0xff] %v6942_v8  ;;  %1925 = vadd.xlane.f32.xlu1 %v1924_v50  ;;  %v1012_v50 = vmul.f32 0.0051020407, %v6291_v26  ;;  %v1395_v42 = vmul.f32 %v6942_v8, %v6942_v8  ;;  %v5251_v26 = vld [vmem:[%s11083_s0 + $0x228] sm:$0xff]  ;;  %v1011_v56 = vmul.f32 0.0051020407, %v6297_v34  ;;  %v1399_v8 = vmul.f32 %v6965_v60, %v6965_v60 }
 0x12a   :  { %11461 = vst [vmem:[#allocation69_spill] sm:$0xff] %v6960_v35  ;;  %1921 = vadd.xlane.f32.xlu0 %v1920_v10  ;;  %v6967_v14 = vpop.xlane.xlu1 %805  ;;  %v5250_v10 = vld [vmem:[%s11083_s0 + $0x238] sm:$0xff]  ;;  %v6987_v57 = vsub.f32 %v5251_v26, %v1009_v28  ;;  %v1401_v59 = vmul.f32 %v6960_v35, %v6960_v35  ;;  %v6998_v54 = vsub.f32 %v5252_v15, %v1010_v36  ;;  %v5253_v34 = vld [vmem:[%s11083_s0 + $0x220] sm:$0xff]  ;;  %v1014_v35 = vmul.f32 0.0051020407, %v6309_v47 }
 0x12b   :  { %v6972_v52 = vpop.xlane.xlu0 %801  ;;  %v6982_v6 = vsub.f32 %v5250_v10, %v1010_v36  ;;  %v1940_v26 = vadd.f32 %v1939_v62, %v1397_v61  ;;  %v7005_v11 = vsub.f32 %v5253_v34, %v1009_v28  ;;  %v1013_v62 = vmul.f32 0.0051020407, %v6315_v58  ;;  %v5256_v58 = vld [vmem:[%s11083_s0 + $0x250] sm:$0xff] }
 0x12c   :  { %11464 = vst [vmem:[#allocation72_spill] sm:$0xff] %v6987_v57  ;;  %11465 = vst [vmem:[#allocation73_spill] sm:$0xff] %v6998_v54  ;;  %v1936_v15 = vadd.f32 %v1935_v33, %v1395_v42  ;;  %v1943_v28 = vsel %vm494_vm0, %v1400_v27, 0.0  ;;  %v1404_v34 = vmul.f32 %v6987_v57, %v6987_v57  ;;  %v7032_v42 = vsub.f32 %v5256_v58, %v1012_v50 }
 0x12d   :  { %11463 = vst [vmem:[#allocation71_spill] sm:$0xff] %v6982_v6  ;;  %1933 = vadd.xlane.f32.xlu1 %v1932_v55  ;;  %11466 = vst [vmem:[#allocation74_spill] sm:$0xff] %v7005_v11  ;;  %v5254_v55 = vld [vmem:[%s11083_s0 + $0x258] sm:$0xff]  ;;  %v1406_v61 = vmul.f32 %v6982_v6, %v6982_v6  ;;  %v1403_v57 = vmul.f32 %v7005_v11, %v7005_v11  ;;  %v1016_v11 = vmul.f32 0.0051020407, %v6327_v9  ;;  %v5261_v9 = vld [vmem:[%s11083_s0 + $0x260] sm:$0xff] }
 0x12e   :  { %1929 = vadd.xlane.f32.xlu0 %v1928_v18  ;;  %v7000_v10 = vpop.xlane.xlu1 %813  ;;  %v7010_v60 = vsub.f32 %v5254_v55, %v1012_v50  ;;  %v1947_v18 = vsel %vm494_vm0, %v1402_v39, 0.0  ;;  %v5255_v55 = vld [vmem:[%s11083_s0 + $0x248] sm:$0xff]  ;;  %v1405_v39 = vmul.f32 %v6998_v54, %v6998_v54  ;;  %11469 = vst [vmem:[#allocation77_spill] sm:$0xff] %v7032_v42  ;;  %v1944_v50 = vadd.f32 %v1943_v28, %v1399_v8 }
 0x12f   :  { %v7013_v36 = vpop.xlane.xlu0 %809  ;;  %v7025_v47 = vsub.f32 %v5255_v55, %v1011_v56  ;;  %v1948_v33 = vadd.f32 %v1947_v18, %v1401_v59  ;;  %v5259_v18 = vld [vmem:[%s11083_s0 + $0x268] sm:$0xff]  ;;  %v1015_v8 = vmul.f32 0.0051020407, %v6333_v19  ;;  %v1951_v28 = vsel %vm494_vm0, %v1404_v34, 0.0 }
 0x130   :  { %11467 = vst [vmem:[#allocation75_spill] sm:$0xff] %v7010_v60  ;;  %v1410_v55 = vmul.f32 %v7010_v60, %v7010_v60  ;;  %v7055_v58 = vsub.f32 %v5259_v18, %v1013_v62 }
 0x131   :  { %11468 = vst [vmem:[#allocation76_spill] sm:$0xff] %v7025_v47  ;;  %1941 = vadd.xlane.f32.xlu1 %v1940_v26  ;;  %v5257_v26 = vld [vmem:[%s11083_s0 + $0x278] sm:$0xff]  ;;  %v1408_v60 = vmul.f32 %v7025_v47, %v7025_v47 }
 0x132   :  { %1937 = vadd.xlane.f32.xlu0 %v1936_v15  ;;  %v7034_v27 = vpop.xlane.xlu1 %821  ;;  %v7043_v6 = vsub.f32 %v5257_v26, %v1014_v35  ;;  %v5258_v15 = vld [vmem:[%s11083_s0 + $0x240] sm:$0xff]  ;;  %11472 = vst [vmem:[#allocation80_spill] sm:$0xff] %v7055_v58  ;;  %v1955_v26 = vsel %vm494_vm0, %v1406_v61, 0.0  ;;  %v7073_v61 = vsub.f32 %v5261_v9, %v1013_v62  ;;  %v1412_v62 = vmul.f32 %v7055_v58, %v7055_v58 }
 0x133   :  { %v7045_v54 = vpop.xlane.xlu0 %817  ;;  %v7050_v59 = vsub.f32 %v5258_v15, %v1011_v56  ;;  %v1409_v56 = vmul.f32 %v7032_v42, %v7032_v42  ;;  %v5260_v15 = vld [vmem:[%s11083_s0 + $0x270] sm:$0xff]  ;;  %v1956_v42 = vadd.f32 %v1955_v26, %v1405_v39  ;;  %v1959_v26 = vsel %vm494_vm0, %v1408_v60, 0.0 }
 0x134   :  { %11470 = vst [vmem:[#allocation78_spill] sm:$0xff] %v7043_v6  ;;  %v7068_v18 = vsub.f32 %v5260_v15, %v1014_v35  ;;  %11474 = vst [vmem:[#allocation82_spill] sm:$0xff] %v7073_v61  ;;  %v1414_v34 = vmul.f32 %v7043_v6, %v7043_v6  ;;  %v1963_v35 = vsel %vm494_vm0, %v1410_v55, 0.0  ;;  %v1952_v6 = vadd.f32 %v1951_v28, %v1403_v57  ;;  %v5264_v57 = vld [vmem:[%s11083_s0 + $0x290] sm:$0xff] }
 0x135   :  { %11471 = vst [vmem:[#allocation79_spill] sm:$0xff] %v7050_v59  ;;  %1949 = vadd.xlane.f32.xlu1 %v1948_v33  ;;  %v1018_v33 = vmul.f32 0.0051020407, %v6349_v44  ;;  %v1407_v15 = vmul.f32 %v7050_v59, %v7050_v59  ;;  %v5263_v44 = vld [vmem:[%s11083_s0 + $0x288] sm:$0xff]  ;;  %v1017_v55 = vmul.f32 0.0051020407, %v6355_v53  ;;  %v1411_v59 = vmul.f32 %v7073_v61, %v7073_v61 }
 0x136   :  { %11473 = vst [vmem:[#allocation81_spill] sm:$0xff] %v7068_v18  ;;  %1945 = vadd.xlane.f32.xlu0 %v1944_v50  ;;  %v7075_v19 = vpop.xlane.xlu1 %829  ;;  %v5262_v50 = vld [vmem:[%s11083_s0 + $0x298] sm:$0xff]  ;;  %v7095_v39 = vsub.f32 %v5263_v44, %v1015_v8  ;;  %v1413_v58 = vmul.f32 %v7068_v18, %v7068_v18  ;;  %v7106_v28 = vsub.f32 %v5264_v57, %v1016_v11  ;;  %v5265_v53 = vld [vmem:[%s11083_s0 + $0x280] sm:$0xff]  ;;  %v1020_v18 = vmul.f32 0.0051020407, %v6387_v22 }
 0x137   :  { %v7080_v47 = vpop.xlane.xlu0 %825  ;;  %v7090_v9 = vsub.f32 %v5262_v50, %v1016_v11  ;;  %v1964_v44 = vadd.f32 %v1963_v35, %v1409_v56  ;;  %v7113_v60 = vsub.f32 %v5265_v53, %v1015_v8  ;;  %v11480_v35 = vld [vmem:[#allocation7_spill] sm:$0xff]  ;;  %v1960_v20 = vadd.f32 %v1959_v26, %v1407_v15 }
 0x138   :  { %11476 = vst [vmem:[#allocation84_spill] sm:$0xff] %v7095_v39  ;;  %11477 = vst [vmem:[#allocation85_spill] sm:$0xff] %v7106_v28  ;;  %v1019_v57 = vmul.f32 0.0051020407, %v11480_v35  ;;  %v1967_v8 = vsel %vm494_vm0, %v1412_v62, 0.0  ;;  %v1416_v53 = vmul.f32 %v7095_v39, %v7095_v39  ;;  %v5268_v35 = vld [vmem:[%s11083_s0 + $0x2b0] sm:$0xff] }
 0x139   :  { %11475 = vst [vmem:[#allocation83_spill] sm:$0xff] %v7090_v9  ;;  %1957 = vadd.xlane.f32.xlu1 %v1956_v42  ;;  %11478 = vst [vmem:[#allocation86_spill] sm:$0xff] %v7113_v60  ;;  %v5266_v42 = vld [vmem:[%s11083_s0 + $0x2b8] sm:$0xff]  ;;  %v1418_v56 = vmul.f32 %v7090_v9, %v7090_v9  ;;  %v7140_v15 = vsub.f32 %v5268_v35, %v1018_v33  ;;  %v1415_v39 = vmul.f32 %v7113_v60, %v7113_v60 }
 0x13a   :  { %1953 = vadd.xlane.f32.xlu0 %v1952_v6  ;;  %v7108_v50 = vpop.xlane.xlu1 %837  ;;  %v7118_v61 = vsub.f32 %v5266_v42, %v1018_v33  ;;  %v1971_v6 = vsel %vm494_vm0, %v1414_v34, 0.0  ;;  %v5267_v42 = vld [vmem:[%s11083_s0 + $0x2a8] sm:$0xff]  ;;  %v1417_v34 = vmul.f32 %v7106_v28, %v7106_v28  ;;  %v1968_v33 = vadd.f32 %v1967_v8, %v1411_v59 }
 0x13b   :  { %v7121_v11 = vpop.xlane.xlu0 %833  ;;  %v7133_v22 = vsub.f32 %v5267_v42, %v1017_v55  ;;  %11482 = vst [vmem:[#allocation88_spill] sm:$0xff] %v7140_v15  ;;  %v1972_v26 = vadd.f32 %v1971_v6, %v1413_v58  ;;  %v5271_v6 = vld [vmem:[%s11083_s0 + $0x2c8] sm:$0xff]  ;;  %v1022_v60 = vmul.f32 0.0051020407, %v6429_v12  ;;  %v1021_v59 = vmul.f32 0.0051020407, %v6434_v30 }
 0x13c   :  { %11479 = vst [vmem:[#allocation87_spill] sm:$0xff] %v7118_v61  ;;  %v1422_v42 = vmul.f32 %v7118_v61, %v7118_v61  ;;  %v7163_v35 = vsub.f32 %v5271_v6, %v1019_v57  ;;  %v1975_v8 = vsel %vm494_vm0, %v1416_v53, 0.0  ;;  %v5273_v12 = vld [vmem:[%s11083_s0 + $0x2c0] sm:$0xff] }
 0x13d   :  { %11481 = vst [vmem:[#allocation7_spill] sm:$0xff] %v7133_v22  ;;  %1965 = vadd.xlane.f32.xlu1 %v1964_v44  ;;  %v5269_v44 = vld [vmem:[%s11083_s0 + $0x2d8] sm:$0xff]  ;;  %v1420_v61 = vmul.f32 %v7133_v22, %v7133_v22 }
 0x13e   :  { %1961 = vadd.xlane.f32.xlu0 %v1960_v20  ;;  %v7142_v62 = vpop.xlane.xlu1 %845  ;;  %v7151_v9 = vsub.f32 %v5269_v44, %v1020_v18  ;;  %v5270_v20 = vld [vmem:[%s11083_s0 + $0x2a0] sm:$0xff]  ;;  %11485 = vst [vmem:[#allocation91_spill] sm:$0xff] %v7163_v35  ;;  %v1979_v44 = vsel %vm494_vm0, %v1418_v56, 0.0  ;;  %v7181_v56 = vsub.f32 %v5273_v12, %v1019_v57  ;;  %v1424_v57 = vmul.f32 %v7163_v35, %v7163_v35 }
 0x13f   :  { %v7153_v28 = vpop.xlane.xlu0 %841  ;;  %v7158_v58 = vsub.f32 %v5270_v20, %v1017_v55  ;;  %v1421_v55 = vmul.f32 %v7140_v15, %v7140_v15  ;;  %v5272_v20 = vld [vmem:[%s11083_s0 + $0x2d0] sm:$0xff]  ;;  %v1980_v15 = vadd.f32 %v1979_v44, %v1417_v34  ;;  %v1983_v44 = vsel %vm494_vm0, %v1420_v61, 0.0 }
 0x140   :  { %11483 = vst [vmem:[#allocation89_spill] sm:$0xff] %v7151_v9  ;;  %v7176_v6 = vsub.f32 %v5272_v20, %v1020_v18  ;;  %11487 = vst [vmem:[#allocation93_spill] sm:$0xff] %v7181_v56  ;;  %v1426_v53 = vmul.f32 %v7151_v9, %v7151_v9  ;;  %v1987_v18 = vsel %vm494_vm0, %v1422_v42, 0.0  ;;  %v1976_v9 = vadd.f32 %v1975_v8, %v1415_v39  ;;  %v5276_v39 = vld [vmem:[%s11083_s0 + $0x2f0] sm:$0xff] }
 0x141   :  { %11484 = vst [vmem:[#allocation90_spill] sm:$0xff] %v7158_v58  ;;  %1973 = vadd.xlane.f32.xlu1 %v1972_v26  ;;  %v1024_v26 = vmul.f32 0.0051020407, %v6460_v16  ;;  %v1419_v20 = vmul.f32 %v7158_v58, %v7158_v58  ;;  %v5275_v16 = vld [vmem:[%s11083_s0 + $0x2e8] sm:$0xff]  ;;  %v1023_v42 = vmul.f32 0.0051020407, %v6475_v29  ;;  %v1423_v58 = vmul.f32 %v7181_v56, %v7181_v56 }
 0x142   :  { %11486 = vst [vmem:[#allocation92_spill] sm:$0xff] %v7176_v6  ;;  %1969 = vadd.xlane.f32.xlu0 %v1968_v33  ;;  %v7183_v30 = vpop.xlane.xlu1 %853  ;;  %v5274_v33 = vld [vmem:[%s11083_s0 + $0x2f8] sm:$0xff]  ;;  %v7203_v34 = vsub.f32 %v5275_v16, %v1021_v59  ;;  %v1425_v35 = vmul.f32 %v7176_v6, %v7176_v6  ;;  %v7214_v8 = vsub.f32 %v5276_v39, %v1022_v60  ;;  %v5277_v29 = vld [vmem:[%s11083_s0 + $0x2e0] sm:$0xff]  ;;  %v1026_v6 = vmul.f32 0.0051020407, %v6492_v25 }
 0x143   :  { %v7188_v22 = vpop.xlane.xlu0 %849  ;;  %v7198_v12 = vsub.f32 %v5274_v33, %v1022_v60  ;;  %v1988_v16 = vadd.f32 %v1987_v18, %v1421_v55  ;;  %v7221_v61 = vsub.f32 %v5277_v29, %v1021_v59  ;;  %v1025_v18 = vmul.f32 0.0051020407, %v6505_v48  ;;  %v5280_v48 = vld [vmem:[%s11083_s0 + $0x310] sm:$0xff] }
 0x144   :  { %11489 = vst [vmem:[#allocation95_spill] sm:$0xff] %v7203_v34  ;;  %11490 = vst [vmem:[#allocation96_spill] sm:$0xff] %v7214_v8  ;;  %v1984_v39 = vadd.f32 %v1983_v44, %v1419_v20  ;;  %v1991_v59 = vsel %vm494_vm0, %v1424_v57, 0.0  ;;  %v1428_v29 = vmul.f32 %v7203_v34, %v7203_v34  ;;  %v7248_v20 = vsub.f32 %v5280_v48, %v1024_v26 }
 0x145   :  { %11488 = vst [vmem:[#allocation94_spill] sm:$0xff] %v7198_v12  ;;  %1981 = vadd.xlane.f32.xlu1 %v1980_v15  ;;  %11491 = vst [vmem:[#allocation97_spill] sm:$0xff] %v7221_v61  ;;  %v5278_v15 = vld [vmem:[%s11083_s0 + $0x318] sm:$0xff]  ;;  %v1430_v55 = vmul.f32 %v7198_v12, %v7198_v12  ;;  %v1427_v34 = vmul.f32 %v7221_v61, %v7221_v61  ;;  %v1028_v61 = vmul.f32 0.0051020407, %v6535_v31  ;;  %v5285_v31 = vld [vmem:[%s11083_s0 + $0x320] sm:$0xff] }
 0x146   :  { %1977 = vadd.xlane.f32.xlu0 %v1976_v9  ;;  %v7216_v33 = vpop.xlane.xlu1 %861  ;;  %v7226_v56 = vsub.f32 %v5278_v15, %v1024_v26  ;;  %v1995_v9 = vsel %vm494_vm0, %v1426_v53, 0.0  ;;  %v5279_v15 = vld [vmem:[%s11083_s0 + $0x308] sm:$0xff]  ;;  %v1429_v53 = vmul.f32 %v7214_v8, %v7214_v8  ;;  %11494 = vst [vmem:[#allocation100_spill] sm:$0xff] %v7248_v20  ;;  %v1992_v26 = vadd.f32 %v1991_v59, %v1423_v58 }
 0x147   :  { %v7229_v60 = vpop.xlane.xlu0 %857  ;;  %v7241_v25 = vsub.f32 %v5279_v15, %v1023_v42  ;;  %v1996_v44 = vadd.f32 %v1995_v9, %v1425_v35  ;;  %v5283_v9 = vld [vmem:[%s11083_s0 + $0x328] sm:$0xff]  ;;  %v1027_v58 = vmul.f32 0.0051020407, %v6540_v63  ;;  %v1999_v59 = vsel %vm494_vm0, %v1428_v29, 0.0 }
 0x148   :  { %11492 = vst [vmem:[#allocation98_spill] sm:$0xff] %v7226_v56  ;;  %v1434_v15 = vmul.f32 %v7226_v56, %v7226_v56  ;;  %v7271_v48 = vsub.f32 %v5283_v9, %v1025_v18 }
 0x149   :  { %11493 = vst [vmem:[#allocation99_spill] sm:$0xff] %v7241_v25  ;;  %1989 = vadd.xlane.f32.xlu1 %v1988_v16  ;;  %v5281_v16 = vld [vmem:[%s11083_s0 + $0x338] sm:$0xff]  ;;  %v1432_v56 = vmul.f32 %v7241_v25, %v7241_v25 }
 0x14a   :  { %1985 = vadd.xlane.f32.xlu0 %v1984_v39  ;;  %v7250_v57 = vpop.xlane.xlu1 %869  ;;  %v7259_v12 = vsub.f32 %v5281_v16, %v1026_v6  ;;  %v5282_v39 = vld [vmem:[%s11083_s0 + $0x300] sm:$0xff]  ;;  %11497 = vst [vmem:[#allocation103_spill] sm:$0xff] %v7271_v48  ;;  %v2003_v16 = vsel %vm494_vm0, %v1430_v55, 0.0  ;;  %v7289_v55 = vsub.f32 %v5285_v31, %v1025_v18  ;;  %v1436_v18 = vmul.f32 %v7271_v48, %v7271_v48 }
 0x14b   :  { %v7261_v8 = vpop.xlane.xlu0 %865  ;;  %v7266_v35 = vsub.f32 %v5282_v39, %v1023_v42  ;;  %v1433_v42 = vmul.f32 %v7248_v20, %v7248_v20  ;;  %v5284_v39 = vld [vmem:[%s11083_s0 + $0x330] sm:$0xff]  ;;  %v2004_v20 = vadd.f32 %v2003_v16, %v1429_v53  ;;  %v2007_v16 = vsel %vm494_vm0, %v1432_v56, 0.0 }
 0x14c   :  { %11495 = vst [vmem:[#allocation101_spill] sm:$0xff] %v7259_v12  ;;  %v7284_v9 = vsub.f32 %v5284_v39, %v1026_v6  ;;  %11499 = vst [vmem:[#allocation105_spill] sm:$0xff] %v7289_v55  ;;  %v1438_v29 = vmul.f32 %v7259_v12, %v7259_v12  ;;  %v2011_v6 = vsel %vm494_vm0, %v1434_v15, 0.0  ;;  %v2000_v12 = vadd.f32 %v1999_v59, %v1427_v34  ;;  %v5288_v34 = vld [vmem:[%s11083_s0 + $0x350] sm:$0xff] }
 0x14d   :  { %11496 = vst [vmem:[#allocation102_spill] sm:$0xff] %v7266_v35  ;;  %1997 = vadd.xlane.f32.xlu1 %v1996_v44  ;;  %v1030_v44 = vmul.f32 0.0051020407, %v6568_v0  ;;  %v1431_v39 = vmul.f32 %v7266_v35, %v7266_v35  ;;  %v5287_v0 = vld [vmem:[%s11083_s0 + $0x348] sm:$0xff]  ;;  %v1029_v15 = vmul.f32 0.0051020407, %v6581_v17  ;;  %v1435_v35 = vmul.f32 %v7289_v55, %v7289_v55 }
 0x14e   :  { %11498 = vst [vmem:[#allocation104_spill] sm:$0xff] %v7284_v9  ;;  %1993 = vadd.xlane.f32.xlu0 %v1992_v26  ;;  %v7291_v63 = vpop.xlane.xlu1 %877  ;;  %v5286_v26 = vld [vmem:[%s11083_s0 + $0x358] sm:$0xff]  ;;  %v7311_v53 = vsub.f32 %v5287_v0, %v1027_v58  ;;  %v1437_v48 = vmul.f32 %v7284_v9, %v7284_v9  ;;  %v7322_v59 = vsub.f32 %v5288_v34, %v1028_v61  ;;  %v5289_v17 = vld [vmem:[%s11083_s0 + $0x340] sm:$0xff]  ;;  %v1032_v9 = vmul.f32 0.0051020407, %v6602_v38 }
 0x14f   :  { %v7296_v25 = vpop.xlane.xlu0 %873  ;;  %v7306_v31 = vsub.f32 %v5286_v26, %v1028_v61  ;;  %v2012_v0 = vadd.f32 %v2011_v6, %v1433_v42  ;;  %v7329_v56 = vsub.f32 %v5289_v17, %v1027_v58  ;;  %v1031_v6 = vmul.f32 0.0051020407, %v6613_v45  ;;  %v5292_v45 = vld [vmem:[%s11083_s0 + $0x370] sm:$0xff] }
 0x150   :  { %11501 = vst [vmem:[#allocation107_spill] sm:$0xff] %v7311_v53  ;;  %11502 = vst [vmem:[#allocation108_spill] sm:$0xff] %v7322_v59  ;;  %v2008_v34 = vadd.f32 %v2007_v16, %v1431_v39  ;;  %v2015_v58 = vsel %vm494_vm0, %v1436_v18, 0.0  ;;  %v1440_v17 = vmul.f32 %v7311_v53, %v7311_v53  ;;  %v7356_v39 = vsub.f32 %v5292_v45, %v1030_v44 }
 0x151   :  { %11500 = vst [vmem:[#allocation106_spill] sm:$0xff] %v7306_v31  ;;  %2005 = vadd.xlane.f32.xlu1 %v2004_v20  ;;  %11503 = vst [vmem:[#allocation109_spill] sm:$0xff] %v7329_v56  ;;  %v5290_v20 = vld [vmem:[%s11083_s0 + $0x378] sm:$0xff]  ;;  %v1442_v42 = vmul.f32 %v7306_v31, %v7306_v31  ;;  %v1439_v53 = vmul.f32 %v7329_v56, %v7329_v56  ;;  %v1034_v56 = vmul.f32 0.0051020407, %v6643_v3  ;;  %v5297_v3 = vld [vmem:[%s11083_s0 + $0x380] sm:$0xff] }
 0x152   :  { %2001 = vadd.xlane.f32.xlu0 %v2000_v12  ;;  %v7324_v26 = vpop.xlane.xlu1 %885  ;;  %v7334_v55 = vsub.f32 %v5290_v20, %v1030_v44  ;;  %v2019_v12 = vsel %vm494_vm0, %v1438_v29, 0.0  ;;  %v5291_v20 = vld [vmem:[%s11083_s0 + $0x368] sm:$0xff]  ;;  %v1441_v29 = vmul.f32 %v7322_v59, %v7322_v59  ;;  %11506 = vst [vmem:[#allocation112_spill] sm:$0xff] %v7356_v39  ;;  %v2016_v44 = vadd.f32 %v2015_v58, %v1435_v35 }
 0x153   :  { %v7337_v61 = vpop.xlane.xlu0 %881  ;;  %v7349_v38 = vsub.f32 %v5291_v20, %v1029_v15  ;;  %v2020_v16 = vadd.f32 %v2019_v12, %v1437_v48  ;;  %v5295_v12 = vld [vmem:[%s11083_s0 + $0x388] sm:$0xff]  ;;  %v1033_v35 = vmul.f32 0.0051020407, %v6648_v49  ;;  %v2023_v58 = vsel %vm494_vm0, %v1440_v17, 0.0 }
 0x154   :  { %11504 = vst [vmem:[#allocation110_spill] sm:$0xff] %v7334_v55  ;;  %v1446_v20 = vmul.f32 %v7334_v55, %v7334_v55  ;;  %v7379_v45 = vsub.f32 %v5295_v12, %v1031_v6 }
 0x155   :  { %11505 = vst [vmem:[#allocation111_spill] sm:$0xff] %v7349_v38  ;;  %2013 = vadd.xlane.f32.xlu1 %v2012_v0  ;;  %v5293_v0 = vld [vmem:[%s11083_s0 + $0x398] sm:$0xff]  ;;  %v1444_v55 = vmul.f32 %v7349_v38, %v7349_v38 }
 0x156   :  { %2009 = vadd.xlane.f32.xlu0 %v2008_v34  ;;  %v7358_v18 = vpop.xlane.xlu1 %893  ;;  %v7367_v31 = vsub.f32 %v5293_v0, %v1032_v9  ;;  %v5294_v34 = vld [vmem:[%s11083_s0 + $0x360] sm:$0xff]  ;;  %11509 = vst [vmem:[#allocation115_spill] sm:$0xff] %v7379_v45  ;;  %v2027_v0 = vsel %vm494_vm0, %v1442_v42, 0.0  ;;  %v7397_v42 = vsub.f32 %v5297_v3, %v1031_v6  ;;  %v1448_v6 = vmul.f32 %v7379_v45, %v7379_v45 }
 0x157   :  { %v7369_v59 = vpop.xlane.xlu0 %889  ;;  %v7374_v48 = vsub.f32 %v5294_v34, %v1029_v15  ;;  %v1445_v15 = vmul.f32 %v7356_v39, %v7356_v39  ;;  %v5296_v34 = vld [vmem:[%s11083_s0 + $0x390] sm:$0xff]  ;;  %v2028_v39 = vadd.f32 %v2027_v0, %v1441_v29  ;;  %v2031_v0 = vsel %vm494_vm0, %v1444_v55, 0.0 }
 0x158   :  { %11507 = vst [vmem:[#allocation113_spill] sm:$0xff] %v7367_v31  ;;  %v7392_v12 = vsub.f32 %v5296_v34, %v1032_v9  ;;  %11511 = vst [vmem:[#allocation117_spill] sm:$0xff] %v7397_v42  ;;  %v1450_v17 = vmul.f32 %v7367_v31, %v7367_v31  ;;  %v2035_v9 = vsel %vm494_vm0, %v1446_v20, 0.0  ;;  %v2024_v31 = vadd.f32 %v2023_v58, %v1439_v53  ;;  %v5300_v53 = vld [vmem:[%s11083_s0 + $0x3b0] sm:$0xff] }
 0x159   :  { %11508 = vst [vmem:[#allocation114_spill] sm:$0xff] %v7374_v48  ;;  %2021 = vadd.xlane.f32.xlu1 %v2020_v16  ;;  %v1036_v16 = vmul.f32 0.0051020407, %v6676_v21  ;;  %v1443_v34 = vmul.f32 %v7374_v48, %v7374_v48  ;;  %v5299_v21 = vld [vmem:[%s11083_s0 + $0x3a8] sm:$0xff]  ;;  %v1035_v20 = vmul.f32 0.0051020407, %v6689_v1  ;;  %v1447_v48 = vmul.f32 %v7397_v42, %v7397_v42 }
 0x15a   :  { %11510 = vst [vmem:[#allocation116_spill] sm:$0xff] %v7392_v12  ;;  %2017 = vadd.xlane.f32.xlu0 %v2016_v44  ;;  %v7399_v49 = vpop.xlane.xlu1 %901  ;;  %v5298_v44 = vld [vmem:[%s11083_s0 + $0x3b8] sm:$0xff]  ;;  %v7419_v29 = vsub.f32 %v5299_v21, %v1033_v35  ;;  %v1449_v45 = vmul.f32 %v7392_v12, %v7392_v12  ;;  %v7430_v58 = vsub.f32 %v5300_v53, %v1034_v56  ;;  %v5301_v1 = vld [vmem:[%s11083_s0 + $0x3a0] sm:$0xff]  ;;  %v1038_v12 = vmul.f32 0.0051020407, %v6710_v4 }
 0x15b   :  { %v7404_v38 = vpop.xlane.xlu0 %897  ;;  %v7414_v3 = vsub.f32 %v5298_v44, %v1034_v56  ;;  %v2036_v21 = vadd.f32 %v2035_v9, %v1445_v15  ;;  %v7437_v55 = vsub.f32 %v5301_v1, %v1033_v35  ;;  %v1037_v9 = vmul.f32 0.0051020407, %v6721_v41  ;;  %v5304_v41 = vld [vmem:[%s11083_s0 + $0x3d0] sm:$0xff] }
 0x15c   :  { %11513 = vst [vmem:[#allocation119_spill] sm:$0xff] %v7419_v29  ;;  %11514 = vst [vmem:[#allocation120_spill] sm:$0xff] %v7430_v58  ;;  %v2032_v53 = vadd.f32 %v2031_v0, %v1443_v34  ;;  %v2039_v35 = vsel %vm494_vm0, %v1448_v6, 0.0  ;;  %v1452_v1 = vmul.f32 %v7419_v29, %v7419_v29  ;;  %v7464_v34 = vsub.f32 %v5304_v41, %v1036_v16 }
 0x15d   :  { %11512 = vst [vmem:[#allocation118_spill] sm:$0xff] %v7414_v3  ;;  %2029 = vadd.xlane.f32.xlu1 %v2028_v39  ;;  %11515 = vst [vmem:[#allocation121_spill] sm:$0xff] %v7437_v55  ;;  %v5302_v39 = vld [vmem:[%s11083_s0 + $0x3d8] sm:$0xff]  ;;  %v1454_v15 = vmul.f32 %v7414_v3, %v7414_v3  ;;  %v1451_v29 = vmul.f32 %v7437_v55, %v7437_v55  ;;  %v1040_v55 = vmul.f32 0.0051020407, %v6751_v40  ;;  %v5309_v40 = vld [vmem:[%s11083_s0 + $0x3e0] sm:$0xff] }
 0x15e   :  { %2025 = vadd.xlane.f32.xlu0 %v2024_v31  ;;  %v7432_v44 = vpop.xlane.xlu1 %909  ;;  %v7442_v42 = vsub.f32 %v5302_v39, %v1036_v16  ;;  %v2043_v31 = vsel %vm494_vm0, %v1450_v17, 0.0  ;;  %v5303_v39 = vld [vmem:[%s11083_s0 + $0x3c8] sm:$0xff]  ;;  %v1453_v17 = vmul.f32 %v7430_v58, %v7430_v58  ;;  %11518 = vst [vmem:[#allocation124_spill] sm:$0xff] %v7464_v34  ;;  %v2040_v16 = vadd.f32 %v2039_v35, %v1447_v48 }
 0x15f   :  { %v7445_v56 = vpop.xlane.xlu0 %905  ;;  %v7457_v4 = vsub.f32 %v5303_v39, %v1035_v20  ;;  %v2044_v0 = vadd.f32 %v2043_v31, %v1449_v45  ;;  %v5307_v31 = vld [vmem:[%s11083_s0 + $0x3e8] sm:$0xff]  ;;  %v1039_v48 = vmul.f32 0.0051020407, %v6756_v23  ;;  %v2047_v35 = vsel %vm494_vm0, %v1452_v1, 0.0 }
 0x160   :  { %11516 = vst [vmem:[#allocation122_spill] sm:$0xff] %v7442_v42  ;;  %v1458_v39 = vmul.f32 %v7442_v42, %v7442_v42  ;;  %v7487_v41 = vsub.f32 %v5307_v31, %v1037_v9 }
 0x161   :  { %11517 = vst [vmem:[#allocation123_spill] sm:$0xff] %v7457_v4  ;;  %2037 = vadd.xlane.f32.xlu1 %v2036_v21  ;;  %v5305_v21 = vld [vmem:[%s11083_s0 + $0x3f8] sm:$0xff]  ;;  %v1456_v42 = vmul.f32 %v7457_v4, %v7457_v4 }
 0x162   :  { %2033 = vadd.xlane.f32.xlu0 %v2032_v53  ;;  %v7466_v6 = vpop.xlane.xlu1 %917  ;;  %v7475_v3 = vsub.f32 %v5305_v21, %v1038_v12  ;;  %v5306_v53 = vld [vmem:[%s11083_s0 + $0x3c0] sm:$0xff]  ;;  %11521 = vst [vmem:[#allocation127_spill] sm:$0xff] %v7487_v41  ;;  %v2051_v21 = vsel %vm494_vm0, %v1454_v15, 0.0  ;;  %v7505_v15 = vsub.f32 %v5309_v40, %v1037_v9  ;;  %v1460_v9 = vmul.f32 %v7487_v41, %v7487_v41 }
 0x163   :  { %v7477_v58 = vpop.xlane.xlu0 %913  ;;  %v7482_v45 = vsub.f32 %v5306_v53, %v1035_v20  ;;  %v1457_v20 = vmul.f32 %v7464_v34, %v7464_v34  ;;  %v5308_v53 = vld [vmem:[%s11083_s0 + $0x3f0] sm:$0xff]  ;;  %v2052_v34 = vadd.f32 %v2051_v21, %v1453_v17  ;;  %v2055_v21 = vsel %vm494_vm0, %v1456_v42, 0.0 }
 0x164   :  { %11519 = vst [vmem:[#allocation125_spill] sm:$0xff] %v7475_v3  ;;  %v7500_v31 = vsub.f32 %v5308_v53, %v1038_v12  ;;  %11523 = vst [vmem:[#allocation129_spill] sm:$0xff] %v7505_v15  ;;  %v1462_v1 = vmul.f32 %v7475_v3, %v7475_v3  ;;  %v2059_v12 = vsel %vm494_vm0, %v1458_v39, 0.0  ;;  %v2048_v3 = vadd.f32 %v2047_v35, %v1451_v29  ;;  %v5312_v29 = vld [vmem:[%s11083_s0 + $0x410] sm:$0xff] }
 0x165   :  { %11520 = vst [vmem:[#allocation126_spill] sm:$0xff] %v7482_v45  ;;  %2045 = vadd.xlane.f32.xlu1 %v2044_v0  ;;  %v1042_v0 = vmul.f32 0.0051020407, %v6784_v51  ;;  %v1455_v53 = vmul.f32 %v7482_v45, %v7482_v45  ;;  %v5311_v51 = vld [vmem:[%s11083_s0 + $0x408] sm:$0xff]  ;;  %v1041_v39 = vmul.f32 0.0051020407, %v6797_v32  ;;  %v1459_v45 = vmul.f32 %v7505_v15, %v7505_v15 }
 0x166   :  { %11522 = vst [vmem:[#allocation128_spill] sm:$0xff] %v7500_v31  ;;  %2041 = vadd.xlane.f32.xlu0 %v2040_v16  ;;  %v7507_v23 = vpop.xlane.xlu1 %925  ;;  %v5310_v16 = vld [vmem:[%s11083_s0 + $0x418] sm:$0xff]  ;;  %v7527_v17 = vsub.f32 %v5311_v51, %v1039_v48  ;;  %v1461_v41 = vmul.f32 %v7500_v31, %v7500_v31  ;;  %v7538_v35 = vsub.f32 %v5312_v29, %v1040_v55  ;;  %v5313_v32 = vld [vmem:[%s11083_s0 + $0x400] sm:$0xff]  ;;  %v1044_v31 = vmul.f32 0.0051020407, %v6818_v43 }
 0x167   :  { %v7512_v4 = vpop.xlane.xlu0 %921  ;;  %v7522_v40 = vsub.f32 %v5310_v16, %v1040_v55  ;;  %v2060_v51 = vadd.f32 %v2059_v12, %v1457_v20  ;;  %v7545_v42 = vsub.f32 %v5313_v32, %v1039_v48  ;;  %v1043_v12 = vmul.f32 0.0051020407, %v6829_v46  ;;  %v5316_v46 = vld [vmem:[%s11083_s0 + $0x430] sm:$0xff] }
 0x168   :  { %11525 = vst [vmem:[#allocation131_spill] sm:$0xff] %v7527_v17  ;;  %11526 = vst [vmem:[#allocation132_spill] sm:$0xff] %v7538_v35  ;;  %v2056_v29 = vadd.f32 %v2055_v21, %v1455_v53  ;;  %v2063_v48 = vsel %vm494_vm0, %v1460_v9, 0.0  ;;  %v1464_v32 = vmul.f32 %v7527_v17, %v7527_v17  ;;  %v7572_v53 = vsub.f32 %v5316_v46, %v1042_v0 }
 0x169   :  { %11524 = vst [vmem:[#allocation130_spill] sm:$0xff] %v7522_v40  ;;  %2053 = vadd.xlane.f32.xlu1 %v2052_v34  ;;  %11527 = vst [vmem:[#allocation133_spill] sm:$0xff] %v7545_v42  ;;  %v5314_v34 = vld [vmem:[%s11083_s0 + $0x438] sm:$0xff]  ;;  %v1466_v20 = vmul.f32 %v7522_v40, %v7522_v40  ;;  %v1463_v17 = vmul.f32 %v7545_v42, %v7545_v42  ;;  %v1046_v42 = vmul.f32 0.0051020407, %v6859_v24  ;;  %v5321_v24 = vld [vmem:[%s11083_s0 + $0x440] sm:$0xff] }
 0x16a   :  { %2049 = vadd.xlane.f32.xlu0 %v2048_v3  ;;  %v7540_v16 = vpop.xlane.xlu1 %933  ;;  %v7550_v15 = vsub.f32 %v5314_v34, %v1042_v0  ;;  %v2067_v3 = vsel %vm494_vm0, %v1462_v1, 0.0  ;;  %v5315_v34 = vld [vmem:[%s11083_s0 + $0x428] sm:$0xff]  ;;  %v1465_v1 = vmul.f32 %v7538_v35, %v7538_v35  ;;  %11530 = vst [vmem:[#allocation136_spill] sm:$0xff] %v7572_v53  ;;  %v2064_v0 = vadd.f32 %v2063_v48, %v1459_v45 }
 0x16b   :  { %v7553_v55 = vpop.xlane.xlu0 %929  ;;  %v7565_v43 = vsub.f32 %v5315_v34, %v1041_v39  ;;  %v2068_v21 = vadd.f32 %v2067_v3, %v1461_v41  ;;  %v5319_v3 = vld [vmem:[%s11083_s0 + $0x448] sm:$0xff]  ;;  %v1045_v45 = vmul.f32 0.0051020407, %v6864_v2  ;;  %v2071_v48 = vsel %vm494_vm0, %v1464_v32, 0.0 }
 0x16c   :  { %11528 = vst [vmem:[#allocation134_spill] sm:$0xff] %v7550_v15  ;;  %v1470_v34 = vmul.f32 %v7550_v15, %v7550_v15  ;;  %v7595_v46 = vsub.f32 %v5319_v3, %v1043_v12 }
 0x16d   :  { %11529 = vst [vmem:[#allocation135_spill] sm:$0xff] %v7565_v43  ;;  %2061 = vadd.xlane.f32.xlu1 %v2060_v51  ;;  %v5317_v51 = vld [vmem:[%s11083_s0 + $0x458] sm:$0xff]  ;;  %v1468_v15 = vmul.f32 %v7565_v43, %v7565_v43  ;;  %v1048_v43 = vmul.f32 0.0051020407, %v6892_v37  ;;  %v5323_v37 = vld [vmem:[%s11083_s0 + $0x468] sm:$0xff] }
 0x16e   :  { %2057 = vadd.xlane.f32.xlu0 %v2056_v29  ;;  %v7574_v9 = vpop.xlane.xlu1 %941  ;;  %v7583_v40 = vsub.f32 %v5317_v51, %v1044_v31  ;;  %v5318_v29 = vld [vmem:[%s11083_s0 + $0x420] sm:$0xff]  ;;  %11533 = vst [vmem:[#allocation139_spill] sm:$0xff] %v7595_v46  ;;  %v2075_v51 = vsel %vm494_vm0, %v1466_v20, 0.0  ;;  %v7613_v20 = vsub.f32 %v5321_v24, %v1043_v12  ;;  %v5322_v24 = vld [vmem:[%s11083_s0 + $0x478] sm:$0xff] }
 0x16f   :  { %v7585_v35 = vpop.xlane.xlu0 %937  ;;  %v7590_v41 = vsub.f32 %v5318_v29, %v1041_v39  ;;  %v1469_v39 = vmul.f32 %v7572_v53, %v7572_v53  ;;  %v5320_v29 = vld [vmem:[%s11083_s0 + $0x450] sm:$0xff] }
 0x170   :  { %11531 = vst [vmem:[#allocation137_spill] sm:$0xff] %v7583_v40  ;;  %v7608_v3 = vsub.f32 %v5320_v29, %v1044_v31  ;;  %11535 = vst [vmem:[#allocation141_spill] sm:$0xff] %v7613_v20  ;;  %v1474_v32 = vmul.f32 %v7583_v40, %v7583_v40  ;;  %v2076_v31 = vadd.f32 %v2075_v51, %v1465_v1  ;;  %v2083_v29 = vsel %vm494_vm0, %v1470_v34, 0.0 }
 0x171   :  { %11532 = vst [vmem:[#allocation138_spill] sm:$0xff] %v7590_v41  ;;  %2069 = vadd.xlane.f32.xlu1 %v2068_v21  ;;  %v5422_v21 = vmov 0   ;;  %v1467_v12 = vmul.f32 %v7590_v41, %v7590_v41  ;;  %v2072_v40 = vadd.f32 %v2071_v48, %v1463_v17  ;;  %v7635_v1 = vsub.f32 %v5323_v37, %v1045_v45  ;;  %v5324_v17 = vld [vmem:[%s11083_s0 + $0x470] sm:$0xff] }
 0x172   :  { %11534 = vst [vmem:[#allocation140_spill] sm:$0xff] %v7608_v3  ;;  %2065 = vadd.xlane.f32.xlu0 %v2064_v0  ;;  %v7615_v2 = vpop.xlane.xlu1 %949  ;;  %4941 = vset.pattern.permute.xlu1 %v5422_v21  ;;  %v1472_v0 = vmul.f32 %v7595_v46, %v7595_v46  ;;  %v1047_v34 = vmul.f32 0.0051020407, %v6905_v13  ;;  %v2079_v51 = vsel %vm494_vm0, %v1468_v15, 0.0  ;;  %v1471_v46 = vmul.f32 %v7613_v20, %v7613_v20  ;;  %v5325_v13 = vld [vmem:[%s11083_s0 + $0x460] sm:$0xff] }
 0x173   :  { %11536 = vst [vmem:[#allocation142_spill] sm:$0xff] %v7615_v2  ;;  %v7620_v53 = vpop.xlane.xlu0 %945  ;;  %4940 = vset.pattern.permute.xlu0 %v5422_v21  ;;  %v7630_v2 = vsub.f32 %v5322_v24, %v1046_v42  ;;  %11538 = vst [vmem:[#allocation144_spill] sm:$0xff] %v7635_v1  ;;  %v1473_v21 = vmul.f32 %v7608_v3, %v7608_v3  ;;  %v7646_v48 = vsub.f32 %v5324_v17, %v1046_v42 }
 0x174   :  { %v2084_v37 = vadd.f32 %v2083_v29, %v1469_v39  ;;  %v7653_v15 = vsub.f32 %v5325_v13, %v1045_v45  ;;  %v1050_v41 = vmul.f32 0.0051020407, %v6926_v5  ;;  %v1049_v29 = vmul.f32 0.0051020407, %v6937_v7  ;;  %v5328_v7 = vld [vmem:[%s11083_s0 + $0x490] sm:$0xff] }
 0x175   :  { %11537 = vst [vmem:[#allocation143_spill] sm:$0xff] %v7630_v2  ;;  %2077 = vadd.xlane.f32.xlu1 %v2076_v31  ;;  %11539 = vst [vmem:[#allocation145_spill] sm:$0xff] %v7646_v48  ;;  %v5326_v31 = vld [vmem:[%s11083_s0 + $0x498] sm:$0xff]  ;;  %v1478_v39 = vmul.f32 %v7630_v2, %v7630_v2  ;;  %v2080_v17 = vadd.f32 %v2079_v51, %v1467_v12  ;;  %v2087_v45 = vsel %vm494_vm0, %v1472_v0, 0.0 }
 0x176   :  { %2073 = vadd.xlane.f32.xlu0 %v2072_v40  ;;  %v7648_v24 = vpop.xlane.xlu1 %957  ;;  %11540 = vst [vmem:[#allocation146_spill] sm:$0xff] %v7653_v15  ;;  %v7658_v20 = vsub.f32 %v5326_v31, %v1048_v43  ;;  %v2091_v40 = vsel %vm494_vm0, %v1474_v32, 0.0  ;;  %v1476_v13 = vmul.f32 %v7635_v1, %v7635_v1  ;;  %v5327_v31 = vld [vmem:[%s11083_s0 + $0x488] sm:$0xff]  ;;  %v1477_v32 = vmul.f32 %v7646_v48, %v7646_v48 }
 0x177   :  { %v7661_v42 = vpop.xlane.xlu0 %953  ;;  %v7673_v5 = vsub.f32 %v5327_v31, %v1047_v34  ;;  %v7680_v12 = vsub.f32 %v5328_v7, %v1048_v43  ;;  %v2092_v51 = vadd.f32 %v2091_v40, %v1473_v21  ;;  %v1475_v1 = vmul.f32 %v7653_v15, %v7653_v15  ;;  %v5331_v40 = vld [vmem:[%s11083_s0 + $0x4a8] sm:$0xff] }
 0x178   :  { %11541 = vst [vmem:[#allocation147_spill] sm:$0xff] %v7658_v20  ;;  %v1482_v31 = vmul.f32 %v7658_v20, %v7658_v20  ;;  %v2088_v43 = vadd.f32 %v2087_v45, %v1471_v46  ;;  %v7703_v7 = vsub.f32 %v5331_v40, %v1049_v29  ;;  %v1052_v15 = vmul.f32 0.0051020407, %v6967_v14  ;;  %v5333_v14 = vld [vmem:[%s11083_s0 + $0x4a0] sm:$0xff] }
 0x179   :  { %11542 = vst [vmem:[#allocation148_spill] sm:$0xff] %v7673_v5  ;;  %2085 = vadd.xlane.f32.xlu1 %v2084_v37  ;;  %11543 = vst [vmem:[#allocation149_spill] sm:$0xff] %v7680_v12  ;;  %v5329_v37 = vld [vmem:[%s11083_s0 + $0x4b8] sm:$0xff]  ;;  %v1480_v20 = vmul.f32 %v7673_v5, %v7673_v5  ;;  %v1051_v46 = vmul.f32 0.0051020407, %v6972_v52  ;;  %v2095_v45 = vsel %vm494_vm0, %v1476_v13, 0.0 }
 0x17a   :  { %2081 = vadd.xlane.f32.xlu0 %v2080_v17  ;;  %v7682_v0 = vpop.xlane.xlu1 %965  ;;  %v7691_v2 = vsub.f32 %v5329_v37, %v1050_v41  ;;  %v5330_v17 = vld [vmem:[%s11083_s0 + $0x480] sm:$0xff]  ;;  %11546 = vst [vmem:[#allocation152_spill] sm:$0xff] %v7703_v7  ;;  %v2099_v37 = vsel %vm494_vm0, %v1478_v39, 0.0  ;;  %v7721_v39 = vsub.f32 %v5333_v14, %v1049_v29  ;;  %v1484_v29 = vmul.f32 %v7703_v7, %v7703_v7 }
 0x17b   :  { %v7693_v48 = vpop.xlane.xlu0 %961  ;;  %v7698_v21 = vsub.f32 %v5330_v17, %v1047_v34  ;;  %v1481_v34 = vmul.f32 %v7680_v12, %v7680_v12  ;;  %v5332_v17 = vld [vmem:[%s11083_s0 + $0x4b0] sm:$0xff]  ;;  %v2100_v12 = vadd.f32 %v2099_v37, %v1477_v32  ;;  %v2103_v37 = vsel %vm494_vm0, %v1480_v20, 0.0 }
 0x17c   :  { %11544 = vst [vmem:[#allocation150_spill] sm:$0xff] %v7691_v2  ;;  %v7716_v40 = vsub.f32 %v5332_v17, %v1050_v41  ;;  %11548 = vst [vmem:[#allocation154_spill] sm:$0xff] %v7721_v39  ;;  %v1486_v13 = vmul.f32 %v7691_v2, %v7691_v2  ;;  %v2107_v41 = vsel %vm494_vm0, %v1482_v31, 0.0  ;;  %v2096_v2 = vadd.f32 %v2095_v45, %v1475_v1  ;;  %v5336_v1 = vld [vmem:[%s11083_s0 + $0x4d0] sm:$0xff] }
 0x17d   :  { %11545 = vst [vmem:[#allocation151_spill] sm:$0xff] %v7698_v21  ;;  %2093 = vadd.xlane.f32.xlu1 %v2092_v51  ;;  %v1054_v51 = vmul.f32 0.0051020407, %v7000_v10  ;;  %v1479_v17 = vmul.f32 %v7698_v21, %v7698_v21  ;;  %v5335_v10 = vld [vmem:[%s11083_s0 + $0x4c8] sm:$0xff]  ;;  %v1053_v31 = vmul.f32 0.0051020407, %v7013_v36  ;;  %v1483_v21 = vmul.f32 %v7721_v39, %v7721_v39 }
 0x17e   :  { %11547 = vst [vmem:[#allocation153_spill] sm:$0xff] %v7716_v40  ;;  %2089 = vadd.xlane.f32.xlu0 %v2088_v43  ;;  %v7723_v52 = vpop.xlane.xlu1 %973  ;;  %v5334_v43 = vld [vmem:[%s11083_s0 + $0x4d8] sm:$0xff]  ;;  %v7743_v32 = vsub.f32 %v5335_v10, %v1051_v46  ;;  %v1485_v7 = vmul.f32 %v7716_v40, %v7716_v40  ;;  %v7754_v45 = vsub.f32 %v5336_v1, %v1052_v15  ;;  %v5337_v36 = vld [vmem:[%s11083_s0 + $0x4c0] sm:$0xff]  ;;  %v1056_v40 = vmul.f32 0.0051020407, %v7034_v27 }
 0x17f   :  { %v7728_v5 = vpop.xlane.xlu0 %969  ;;  %v7738_v14 = vsub.f32 %v5334_v43, %v1052_v15  ;;  %v2108_v10 = vadd.f32 %v2107_v41, %v1481_v34  ;;  %v7761_v20 = vsub.f32 %v5337_v36, %v1051_v46  ;;  %v1055_v41 = vmul.f32 0.0051020407, %v7045_v54  ;;  %v5340_v54 = vld [vmem:[%s11083_s0 + $0x4f0] sm:$0xff] }
 0x180   :  { %11550 = vst [vmem:[#allocation156_spill] sm:$0xff] %v7743_v32  ;;  %11551 = vst [vmem:[#allocation157_spill] sm:$0xff] %v7754_v45  ;;  %v2104_v1 = vadd.f32 %v2103_v37, %v1479_v17  ;;  %v2111_v46 = vsel %vm494_vm0, %v1484_v29, 0.0  ;;  %v1488_v36 = vmul.f32 %v7743_v32, %v7743_v32  ;;  %v7788_v17 = vsub.f32 %v5340_v54, %v1054_v51 }
 0x181   :  { %11549 = vst [vmem:[#allocation155_spill] sm:$0xff] %v7738_v14  ;;  %2101 = vadd.xlane.f32.xlu1 %v2100_v12  ;;  %11552 = vst [vmem:[#allocation158_spill] sm:$0xff] %v7761_v20  ;;  %v5338_v12 = vld [vmem:[%s11083_s0 + $0x4f8] sm:$0xff]  ;;  %v1490_v34 = vmul.f32 %v7738_v14, %v7738_v14  ;;  %v1487_v32 = vmul.f32 %v7761_v20, %v7761_v20  ;;  %v1058_v20 = vmul.f32 0.0051020407, %v7075_v19  ;;  %v5345_v19 = vld [vmem:[%s11083_s0 + $0x500] sm:$0xff] }
 0x182   :  { %2097 = vadd.xlane.f32.xlu0 %v2096_v2  ;;  %v7756_v43 = vpop.xlane.xlu1 %1821  ;;  %v7766_v39 = vsub.f32 %v5338_v12, %v1054_v51  ;;  %v2115_v2 = vsel %vm494_vm0, %v1486_v13, 0.0  ;;  %v5339_v12 = vld [vmem:[%s11083_s0 + $0x4e8] sm:$0xff]  ;;  %v1489_v13 = vmul.f32 %v7754_v45, %v7754_v45  ;;  %11555 = vst [vmem:[#allocation161_spill] sm:$0xff] %v7788_v17  ;;  %v2112_v51 = vadd.f32 %v2111_v46, %v1483_v21 }
 0x183   :  { %v7769_v15 = vpop.xlane.xlu0 %1817  ;;  %v7781_v27 = vsub.f32 %v5339_v12, %v1053_v31  ;;  %v2116_v37 = vadd.f32 %v2115_v2, %v1485_v7  ;;  %v5343_v2 = vld [vmem:[%s11083_s0 + $0x508] sm:$0xff]  ;;  %v1057_v21 = vmul.f32 0.0051020407, %v7080_v47  ;;  %v2119_v46 = vsel %vm494_vm0, %v1488_v36, 0.0 }
 0x184   :  { %11553 = vst [vmem:[#allocation159_spill] sm:$0xff] %v7766_v39  ;;  %v1494_v12 = vmul.f32 %v7766_v39, %v7766_v39  ;;  %v7811_v54 = vsub.f32 %v5343_v2, %v1055_v41 }
 0x185   :  { %11554 = vst [vmem:[#allocation160_spill] sm:$0xff] %v7781_v27  ;;  %2109 = vadd.xlane.f32.xlu1 %v2108_v10  ;;  %v5341_v10 = vld [vmem:[%s11083_s0 + $0x518] sm:$0xff]  ;;  %v1492_v39 = vmul.f32 %v7781_v27, %v7781_v27 }
 0x186   :  { %2105 = vadd.xlane.f32.xlu0 %v2104_v1  ;;  %v7790_v29 = vpop.xlane.xlu1 %1829  ;;  %v7799_v14 = vsub.f32 %v5341_v10, %v1056_v40  ;;  %v5342_v1 = vld [vmem:[%s11083_s0 + $0x4e0] sm:$0xff]  ;;  %11558 = vst [vmem:[#allocation164_spill] sm:$0xff] %v7811_v54  ;;  %v2123_v10 = vsel %vm494_vm0, %v1490_v34, 0.0  ;;  %v7829_v34 = vsub.f32 %v5345_v19, %v1055_v41  ;;  %v1496_v41 = vmul.f32 %v7811_v54, %v7811_v54 }
 0x187   :  { %v7801_v45 = vpop.xlane.xlu0 %1825  ;;  %v7806_v7 = vsub.f32 %v5342_v1, %v1053_v31  ;;  %v1493_v31 = vmul.f32 %v7788_v17, %v7788_v17  ;;  %v5344_v1 = vld [vmem:[%s11083_s0 + $0x510] sm:$0xff]  ;;  %v2124_v17 = vadd.f32 %v2123_v10, %v1489_v13  ;;  %v2127_v10 = vsel %vm494_vm0, %v1492_v39, 0.0 }
 0x188   :  { %11556 = vst [vmem:[#allocation162_spill] sm:$0xff] %v7799_v14  ;;  %v7824_v2 = vsub.f32 %v5344_v1, %v1056_v40  ;;  %11560 = vst [vmem:[#allocation166_spill] sm:$0xff] %v7829_v34  ;;  %v1498_v36 = vmul.f32 %v7799_v14, %v7799_v14  ;;  %v2131_v40 = vsel %vm494_vm0, %v1494_v12, 0.0  ;;  %v2120_v14 = vadd.f32 %v2119_v46, %v1487_v32  ;;  %v5348_v32 = vld [vmem:[%s11083_s0 + $0x530] sm:$0xff] }
 0x189   :  { %11557 = vst [vmem:[#allocation163_spill] sm:$0xff] %v7806_v7  ;;  %2117 = vadd.xlane.f32.xlu1 %v2116_v37  ;;  %v1060_v37 = vmul.f32 0.0051020407, %v7108_v50  ;;  %v1491_v1 = vmul.f32 %v7806_v7, %v7806_v7  ;;  %v5347_v50 = vld [vmem:[%s11083_s0 + $0x528] sm:$0xff]  ;;  %v1059_v12 = vmul.f32 0.0051020407, %v7121_v11  ;;  %v1495_v7 = vmul.f32 %v7829_v34, %v7829_v34 }
 0x18a   :  { %11559 = vst [vmem:[#allocation165_spill] sm:$0xff] %v7824_v2  ;;  %2113 = vadd.xlane.f32.xlu0 %v2112_v51  ;;  %v7831_v47 = vpop.xlane.xlu1 %1837  ;;  %v5346_v51 = vld [vmem:[%s11083_s0 + $0x538] sm:$0xff]  ;;  %v7851_v13 = vsub.f32 %v5347_v50, %v1057_v21  ;;  %v1497_v54 = vmul.f32 %v7824_v2, %v7824_v2  ;;  %v7862_v46 = vsub.f32 %v5348_v32, %v1058_v20  ;;  %v5349_v11 = vld [vmem:[%s11083_s0 + $0x520] sm:$0xff]  ;;  %v1062_v2 = vmul.f32 0.0051020407, %v7142_v62 }
 0x18b   :  { %v7836_v27 = vpop.xlane.xlu0 %1833  ;;  %v7846_v19 = vsub.f32 %v5346_v51, %v1058_v20  ;;  %v2132_v50 = vadd.f32 %v2131_v40, %v1493_v31  ;;  %v7869_v39 = vsub.f32 %v5349_v11, %v1057_v21  ;;  %v1061_v40 = vmul.f32 0.0051020407, %v7153_v28  ;;  %v5352_v28 = vld [vmem:[%s11083_s0 + $0x550] sm:$0xff] }
 0x18c   :  { %11562 = vst [vmem:[#allocation168_spill] sm:$0xff] %v7851_v13  ;;  %11563 = vst [vmem:[#allocation169_spill] sm:$0xff] %v7862_v46  ;;  %v2128_v32 = vadd.f32 %v2127_v10, %v1491_v1  ;;  %v2135_v21 = vsel %vm494_vm0, %v1496_v41, 0.0  ;;  %v1500_v11 = vmul.f32 %v7851_v13, %v7851_v13  ;;  %v7896_v1 = vsub.f32 %v5352_v28, %v1060_v37 }
 0x18d   :  { %11561 = vst [vmem:[#allocation167_spill] sm:$0xff] %v7846_v19  ;;  %2125 = vadd.xlane.f32.xlu1 %v2124_v17  ;;  %11564 = vst [vmem:[#allocation170_spill] sm:$0xff] %v7869_v39  ;;  %v5350_v17 = vld [vmem:[%s11083_s0 + $0x558] sm:$0xff]  ;;  %v1502_v31 = vmul.f32 %v7846_v19, %v7846_v19  ;;  %v1499_v13 = vmul.f32 %v7869_v39, %v7869_v39  ;;  %v1064_v39 = vmul.f32 0.0051020407, %v7183_v30  ;;  %v5357_v30 = vld [vmem:[%s11083_s0 + $0x560] sm:$0xff] }
 0x18e   :  { %2121 = vadd.xlane.f32.xlu0 %v2120_v14  ;;  %v7864_v51 = vpop.xlane.xlu1 %1845  ;;  %v7874_v34 = vsub.f32 %v5350_v17, %v1060_v37  ;;  %v2139_v14 = vsel %vm494_vm0, %v1498_v36, 0.0  ;;  %v5351_v17 = vld [vmem:[%s11083_s0 + $0x548] sm:$0xff]  ;;  %v1501_v36 = vmul.f32 %v7862_v46, %v7862_v46  ;;  %11567 = vst [vmem:[#allocation173_spill] sm:$0xff] %v7896_v1  ;;  %v2136_v37 = vadd.f32 %v2135_v21, %v1495_v7 }
 0x18f   :  { %v7877_v20 = vpop.xlane.xlu0 %1841  ;;  %v7889_v62 = vsub.f32 %v5351_v17, %v1059_v12  ;;  %v2140_v10 = vadd.f32 %v2139_v14, %v1497_v54  ;;  %v5355_v14 = vld [vmem:[%s11083_s0 + $0x568] sm:$0xff]  ;;  %v1063_v7 = vmul.f32 0.0051020407, %v7188_v22  ;;  %v2143_v21 = vsel %vm494_vm0, %v1500_v11, 0.0 }
 0x190   :  { %11565 = vst [vmem:[#allocation171_spill] sm:$0xff] %v7874_v34  ;;  %v1506_v17 = vmul.f32 %v7874_v34, %v7874_v34  ;;  %v7919_v28 = vsub.f32 %v5355_v14, %v1061_v40 }
 0x191   :  { %11566 = vst [vmem:[#allocation172_spill] sm:$0xff] %v7889_v62  ;;  %2133 = vadd.xlane.f32.xlu1 %v2132_v50  ;;  %v5353_v50 = vld [vmem:[%s11083_s0 + $0x578] sm:$0xff]  ;;  %v1504_v34 = vmul.f32 %v7889_v62, %v7889_v62 }
 0x192   :  { %2129 = vadd.xlane.f32.xlu0 %v2128_v32  ;;  %v7898_v41 = vpop.xlane.xlu1 %1853  ;;  %v7907_v19 = vsub.f32 %v5353_v50, %v1062_v2  ;;  %v5354_v32 = vld [vmem:[%s11083_s0 + $0x540] sm:$0xff]  ;;  %11570 = vst [vmem:[#allocation176_spill] sm:$0xff] %v7919_v28  ;;  %v2147_v50 = vsel %vm494_vm0, %v1502_v31, 0.0  ;;  %v7937_v31 = vsub.f32 %v5357_v30, %v1061_v40  ;;  %v1508_v40 = vmul.f32 %v7919_v28, %v7919_v28 }
 0x193   :  { %v7909_v46 = vpop.xlane.xlu0 %1849  ;;  %v7914_v54 = vsub.f32 %v5354_v32, %v1059_v12  ;;  %v1505_v12 = vmul.f32 %v7896_v1, %v7896_v1  ;;  %v5356_v32 = vld [vmem:[%s11083_s0 + $0x570] sm:$0xff]  ;;  %v2148_v1 = vadd.f32 %v2147_v50, %v1501_v36  ;;  %v2151_v50 = vsel %vm494_vm0, %v1504_v34, 0.0 }
 0x194   :  { %11568 = vst [vmem:[#allocation174_spill] sm:$0xff] %v7907_v19  ;;  %v7932_v14 = vsub.f32 %v5356_v32, %v1062_v2  ;;  %11572 = vst [vmem:[#allocation178_spill] sm:$0xff] %v7937_v31  ;;  %v1510_v11 = vmul.f32 %v7907_v19, %v7907_v19  ;;  %v2155_v2 = vsel %vm494_vm0, %v1506_v17, 0.0  ;;  %v2144_v19 = vadd.f32 %v2143_v21, %v1499_v13  ;;  %v5360_v13 = vld [vmem:[%s11083_s0 + $0x590] sm:$0xff] }
 0x195   :  { %11569 = vst [vmem:[#allocation175_spill] sm:$0xff] %v7914_v54  ;;  %2141 = vadd.xlane.f32.xlu1 %v2140_v10  ;;  %v1066_v10 = vmul.f32 0.0051020407, %v7216_v33  ;;  %v1503_v32 = vmul.f32 %v7914_v54, %v7914_v54  ;;  %v5359_v33 = vld [vmem:[%s11083_s0 + $0x588] sm:$0xff]  ;;  %v1065_v17 = vmul.f32 0.0051020407, %v7229_v60  ;;  %v1507_v54 = vmul.f32 %v7937_v31, %v7937_v31 }
 0x196   :  { %11571 = vst [vmem:[#allocation177_spill] sm:$0xff] %v7932_v14  ;;  %2137 = vadd.xlane.f32.xlu0 %v2136_v37  ;;  %v7939_v22 = vpop.xlane.xlu1 %1861  ;;  %v5358_v37 = vld [vmem:[%s11083_s0 + $0x598] sm:$0xff]  ;;  %v7959_v36 = vsub.f32 %v5359_v33, %v1063_v7  ;;  %v1509_v28 = vmul.f32 %v7932_v14, %v7932_v14  ;;  %v7970_v21 = vsub.f32 %v5360_v13, %v1064_v39  ;;  %v5361_v60 = vld [vmem:[%s11083_s0 + $0x580] sm:$0xff]  ;;  %v1068_v14 = vmul.f32 0.0051020407, %v7250_v57 }
 0x197   :  { %v7944_v62 = vpop.xlane.xlu0 %1857  ;;  %v7954_v30 = vsub.f32 %v5358_v37, %v1064_v39  ;;  %v2156_v33 = vadd.f32 %v2155_v2, %v1505_v12  ;;  %v7977_v34 = vsub.f32 %v5361_v60, %v1063_v7  ;;  %v1067_v2 = vmul.f32 0.0051020407, %v7261_v8  ;;  %v5364_v8 = vld [vmem:[%s11083_s0 + $0x5b0] sm:$0xff] }
 0x198   :  { %11574 = vst [vmem:[#allocation180_spill] sm:$0xff] %v7959_v36  ;;  %11575 = vst [vmem:[#allocation181_spill] sm:$0xff] %v7970_v21  ;;  %v2152_v13 = vadd.f32 %v2151_v50, %v1503_v32  ;;  %v2159_v7 = vsel %vm494_vm0, %v1508_v40, 0.0  ;;  %v1512_v60 = vmul.f32 %v7959_v36, %v7959_v36  ;;  %v8004_v32 = vsub.f32 %v5364_v8, %v1066_v10 }
 0x199   :  { %11573 = vst [vmem:[#allocation179_spill] sm:$0xff] %v7954_v30  ;;  %2149 = vadd.xlane.f32.xlu1 %v2148_v1  ;;  %11576 = vst [vmem:[#allocation182_spill] sm:$0xff] %v7977_v34  ;;  %v5362_v1 = vld [vmem:[%s11083_s0 + $0x5b8] sm:$0xff]  ;;  %v1514_v12 = vmul.f32 %v7954_v30, %v7954_v30  ;;  %v1511_v36 = vmul.f32 %v7977_v34, %v7977_v34  ;;  %v1070_v34 = vmul.f32 0.0051020407, %v7291_v63  ;;  %v5369_v63 = vld [vmem:[%s11083_s0 + $0x5c0] sm:$0xff] }
 0x19a   :  { %2145 = vadd.xlane.f32.xlu0 %v2144_v19  ;;  %v7972_v37 = vpop.xlane.xlu1 %1869  ;;  %v7982_v31 = vsub.f32 %v5362_v1, %v1066_v10  ;;  %v2163_v19 = vsel %vm494_vm0, %v1510_v11, 0.0  ;;  %v5363_v1 = vld [vmem:[%s11083_s0 + $0x5a8] sm:$0xff]  ;;  %v1513_v11 = vmul.f32 %v7970_v21, %v7970_v21  ;;  %11579 = vst [vmem:[#allocation185_spill] sm:$0xff] %v8004_v32  ;;  %v2160_v10 = vadd.f32 %v2159_v7, %v1507_v54 }
 0x19b   :  { %v7985_v39 = vpop.xlane.xlu0 %1865  ;;  %v7997_v57 = vsub.f32 %v5363_v1, %v1065_v17  ;;  %v2164_v50 = vadd.f32 %v2163_v19, %v1509_v28  ;;  %v5367_v19 = vld [vmem:[%s11083_s0 + $0x5c8] sm:$0xff]  ;;  %v1069_v54 = vmul.f32 0.0051020407, %v7296_v25  ;;  %v2167_v7 = vsel %vm494_vm0, %v1512_v60, 0.0 }
 0x19c   :  { %11577 = vst [vmem:[#allocation183_spill] sm:$0xff] %v7982_v31  ;;  %v1518_v1 = vmul.f32 %v7982_v31, %v7982_v31  ;;  %v8027_v8 = vsub.f32 %v5367_v19, %v1067_v2 }
 0x19d   :  { %11578 = vst [vmem:[#allocation184_spill] sm:$0xff] %v7997_v57  ;;  %2157 = vadd.xlane.f32.xlu1 %v2156_v33  ;;  %v5365_v33 = vld [vmem:[%s11083_s0 + $0x5d8] sm:$0xff]  ;;  %v1516_v31 = vmul.f32 %v7997_v57, %v7997_v57 }
 0x19e   :  { %2153 = vadd.xlane.f32.xlu0 %v2152_v13  ;;  %v8006_v40 = vpop.xlane.xlu1 %1877  ;;  %v8015_v30 = vsub.f32 %v5365_v33, %v1068_v14  ;;  %v5366_v13 = vld [vmem:[%s11083_s0 + $0x5a0] sm:$0xff]  ;;  %11582 = vst [vmem:[#allocation188_spill] sm:$0xff] %v8027_v8  ;;  %v2171_v33 = vsel %vm494_vm0, %v1514_v12, 0.0  ;;  %v8045_v12 = vsub.f32 %v5369_v63, %v1067_v2  ;;  %v1520_v2 = vmul.f32 %v8027_v8, %v8027_v8 }
 0x19f   :  { %v8017_v21 = vpop.xlane.xlu0 %1873  ;;  %v8022_v28 = vsub.f32 %v5366_v13, %v1065_v17  ;;  %v1517_v17 = vmul.f32 %v8004_v32, %v8004_v32  ;;  %v5368_v13 = vld [vmem:[%s11083_s0 + $0x5d0] sm:$0xff]  ;;  %v2172_v32 = vadd.f32 %v2171_v33, %v1513_v11  ;;  %v2175_v33 = vsel %vm494_vm0, %v1516_v31, 0.0 }
 0x1a0   :  { %11580 = vst [vmem:[#allocation186_spill] sm:$0xff] %v8015_v30  ;;  %v8040_v19 = vsub.f32 %v5368_v13, %v1068_v14  ;;  %11584 = vst [vmem:[#allocation190_spill] sm:$0xff] %v8045_v12  ;;  %v1522_v60 = vmul.f32 %v8015_v30, %v8015_v30  ;;  %v2179_v14 = vsel %vm494_vm0, %v1518_v1, 0.0  ;;  %v2168_v30 = vadd.f32 %v2167_v7, %v1511_v36  ;;  %v5372_v36 = vld [vmem:[%s11083_s0 + $0x5f0] sm:$0xff] }
 0x1a1   :  { %11581 = vst [vmem:[#allocation187_spill] sm:$0xff] %v8022_v28  ;;  %2165 = vadd.xlane.f32.xlu1 %v2164_v50  ;;  %v1072_v50 = vmul.f32 0.0051020407, %v7324_v26  ;;  %v1515_v13 = vmul.f32 %v8022_v28, %v8022_v28  ;;  %v5371_v26 = vld [vmem:[%s11083_s0 + $0x5e8] sm:$0xff]  ;;  %v1071_v1 = vmul.f32 0.0051020407, %v7337_v61  ;;  %v1519_v28 = vmul.f32 %v8045_v12, %v8045_v12 }
 0x1a2   :  { %11583 = vst [vmem:[#allocation189_spill] sm:$0xff] %v8040_v19  ;;  %2161 = vadd.xlane.f32.xlu0 %v2160_v10  ;;  %v8047_v25 = vpop.xlane.xlu1 %1885  ;;  %v5370_v10 = vld [vmem:[%s11083_s0 + $0x5f8] sm:$0xff]  ;;  %v8067_v11 = vsub.f32 %v5371_v26, %v1069_v54  ;;  %v1521_v8 = vmul.f32 %v8040_v19, %v8040_v19  ;;  %v8078_v7 = vsub.f32 %v5372_v36, %v1070_v34  ;;  %v5373_v61 = vld [vmem:[%s11083_s0 + $0x5e0] sm:$0xff]  ;;  %v1074_v19 = vmul.f32 0.0051020407, %v7358_v18 }
 0x1a3   :  { %v8052_v57 = vpop.xlane.xlu0 %1881  ;;  %v8062_v63 = vsub.f32 %v5370_v10, %v1070_v34  ;;  %v2180_v26 = vadd.f32 %v2179_v14, %v1517_v17  ;;  %v8085_v31 = vsub.f32 %v5373_v61, %v1069_v54  ;;  %v1073_v14 = vmul.f32 0.0051020407, %v7369_v59  ;;  %v5376_v59 = vld [vmem:[%s11083_s0 + $0x610] sm:$0xff] }
 0x1a4   :  { %11586 = vst [vmem:[#allocation192_spill] sm:$0xff] %v8067_v11  ;;  %11587 = vst [vmem:[#allocation193_spill] sm:$0xff] %v8078_v7  ;;  %v2176_v36 = vadd.f32 %v2175_v33, %v1515_v13  ;;  %v2183_v54 = vsel %vm494_vm0, %v1520_v2, 0.0  ;;  %v1524_v61 = vmul.f32 %v8067_v11, %v8067_v11  ;;  %v8112_v13 = vsub.f32 %v5376_v59, %v1072_v50 }
 0x1a5   :  { %11585 = vst [vmem:[#allocation191_spill] sm:$0xff] %v8062_v63  ;;  %2173 = vadd.xlane.f32.xlu1 %v2172_v32  ;;  %11588 = vst [vmem:[#allocation194_spill] sm:$0xff] %v8085_v31  ;;  %v5374_v32 = vld [vmem:[%s11083_s0 + $0x618] sm:$0xff]  ;;  %v1526_v17 = vmul.f32 %v8062_v63, %v8062_v63  ;;  %v1523_v11 = vmul.f32 %v8085_v31, %v8085_v31  ;;  %v1076_v31 = vmul.f32 0.0051020407, %v7399_v49  ;;  %v5381_v49 = vld [vmem:[%s11083_s0 + $0x620] sm:$0xff] }
 0x1a6   :  { %2169 = vadd.xlane.f32.xlu0 %v2168_v30  ;;  %v8080_v10 = vpop.xlane.xlu1 %1893  ;;  %v8090_v12 = vsub.f32 %v5374_v32, %v1072_v50  ;;  %v2187_v30 = vsel %vm494_vm0, %v1522_v60, 0.0  ;;  %v5375_v32 = vld [vmem:[%s11083_s0 + $0x608] sm:$0xff]  ;;  %v1525_v60 = vmul.f32 %v8078_v7, %v8078_v7  ;;  %11591 = vst [vmem:[#allocation197_spill] sm:$0xff] %v8112_v13  ;;  %v2184_v50 = vadd.f32 %v2183_v54, %v1519_v28 }
 0x1a7   :  { %v8093_v34 = vpop.xlane.xlu0 %1889  ;;  %v8105_v18 = vsub.f32 %v5375_v32, %v1071_v1  ;;  %v2188_v33 = vadd.f32 %v2187_v30, %v1521_v8  ;;  %v5379_v30 = vld [vmem:[%s11083_s0 + $0x628] sm:$0xff]  ;;  %v1075_v28 = vmul.f32 0.0051020407, %v7404_v38  ;;  %v2191_v54 = vsel %vm494_vm0, %v1524_v61, 0.0 }
 0x1a8   :  { %11589 = vst [vmem:[#allocation195_spill] sm:$0xff] %v8090_v12  ;;  %v1530_v32 = vmul.f32 %v8090_v12, %v8090_v12  ;;  %v8135_v59 = vsub.f32 %v5379_v30, %v1073_v14 }
 0x1a9   :  { %11590 = vst [vmem:[#allocation196_spill] sm:$0xff] %v8105_v18  ;;  %2181 = vadd.xlane.f32.xlu1 %v2180_v26  ;;  %v5377_v26 = vld [vmem:[%s11083_s0 + $0x638] sm:$0xff]  ;;  %v1528_v12 = vmul.f32 %v8105_v18, %v8105_v18 }
 0x1aa   :  { %2177 = vadd.xlane.f32.xlu0 %v2176_v36  ;;  %v8114_v2 = vpop.xlane.xlu1 %1901  ;;  %v8123_v63 = vsub.f32 %v5377_v26, %v1074_v19  ;;  %v5378_v36 = vld [vmem:[%s11083_s0 + $0x600] sm:$0xff]  ;;  %11594 = vst [vmem:[#allocation200_spill] sm:$0xff] %v8135_v59  ;;  %v2195_v26 = vsel %vm494_vm0, %v1526_v17, 0.0  ;;  %v8153_v17 = vsub.f32 %v5381_v49, %v1073_v14  ;;  %v1532_v14 = vmul.f32 %v8135_v59, %v8135_v59 }
 0x1ab   :  { %v8125_v7 = vpop.xlane.xlu0 %1897  ;;  %v8130_v8 = vsub.f32 %v5378_v36, %v1071_v1  ;;  %v1529_v1 = vmul.f32 %v8112_v13, %v8112_v13  ;;  %v5380_v36 = vld [vmem:[%s11083_s0 + $0x630] sm:$0xff]  ;;  %v2196_v13 = vadd.f32 %v2195_v26, %v1525_v60  ;;  %v2199_v26 = vsel %vm494_vm0, %v1528_v12, 0.0 }
 0x1ac   :  { %11592 = vst [vmem:[#allocation198_spill] sm:$0xff] %v8123_v63  ;;  %v8148_v30 = vsub.f32 %v5380_v36, %v1074_v19  ;;  %11596 = vst [vmem:[#allocation202_spill] sm:$0xff] %v8153_v17  ;;  %v1534_v61 = vmul.f32 %v8123_v63, %v8123_v63  ;;  %v2203_v19 = vsel %vm494_vm0, %v1530_v32, 0.0  ;;  %v2192_v63 = vadd.f32 %v2191_v54, %v1523_v11  ;;  %v5384_v11 = vld [vmem:[%s11083_s0 + $0x650] sm:$0xff] }
 0x1ad   :  { %11593 = vst [vmem:[#allocation199_spill] sm:$0xff] %v8130_v8  ;;  %2189 = vadd.xlane.f32.xlu1 %v2188_v33  ;;  %v1078_v33 = vmul.f32 0.0051020407, %v7432_v44  ;;  %v1527_v36 = vmul.f32 %v8130_v8, %v8130_v8  ;;  %v5383_v44 = vld [vmem:[%s11083_s0 + $0x648] sm:$0xff]  ;;  %v1077_v32 = vmul.f32 0.0051020407, %v7445_v56  ;;  %v1531_v8 = vmul.f32 %v8153_v17, %v8153_v17 }
 0x1ae   :  { %11595 = vst [vmem:[#allocation201_spill] sm:$0xff] %v8148_v30  ;;  %2185 = vadd.xlane.f32.xlu0 %v2184_v50  ;;  %v8155_v38 = vpop.xlane.xlu1 %1909  ;;  %v5382_v50 = vld [vmem:[%s11083_s0 + $0x658] sm:$0xff]  ;;  %v8175_v60 = vsub.f32 %v5383_v44, %v1075_v28  ;;  %v1533_v59 = vmul.f32 %v8148_v30, %v8148_v30  ;;  %v8186_v54 = vsub.f32 %v5384_v11, %v1076_v31  ;;  %v5385_v56 = vld [vmem:[%s11083_s0 + $0x640] sm:$0xff]  ;;  %v1080_v30 = vmul.f32 0.0051020407, %v7466_v6 }
 0x1af   :  { %v8160_v18 = vpop.xlane.xlu0 %1905  ;;  %v8170_v49 = vsub.f32 %v5382_v50, %v1076_v31  ;;  %v2204_v44 = vadd.f32 %v2203_v19, %v1529_v1  ;;  %v8193_v12 = vsub.f32 %v5385_v56, %v1075_v28  ;;  %v1079_v19 = vmul.f32 0.0051020407, %v7477_v58  ;;  %v5388_v58 = vld [vmem:[%s11083_s0 + $0x670] sm:$0xff] }
 0x1b0   :  { %11598 = vst [vmem:[#allocation204_spill] sm:$0xff] %v8175_v60  ;;  %11599 = vst [vmem:[#allocation205_spill] sm:$0xff] %v8186_v54  ;;  %v2200_v11 = vadd.f32 %v2199_v26, %v1527_v36  ;;  %v2207_v28 = vsel %vm494_vm0, %v1532_v14, 0.0  ;;  %v1536_v56 = vmul.f32 %v8175_v60, %v8175_v60  ;;  %v8220_v36 = vsub.f32 %v5388_v58, %v1078_v33 }
 0x1b1   :  { %11597 = vst [vmem:[#allocation203_spill] sm:$0xff] %v8170_v49  ;;  %2197 = vadd.xlane.f32.xlu1 %v2196_v13  ;;  %11600 = vst [vmem:[#allocation206_spill] sm:$0xff] %v8193_v12  ;;  %v5386_v13 = vld [vmem:[%s11083_s0 + $0x678] sm:$0xff]  ;;  %v1538_v1 = vmul.f32 %v8170_v49, %v8170_v49  ;;  %v1535_v60 = vmul.f32 %v8193_v12, %v8193_v12  ;;  %v1082_v12 = vmul.f32 0.0051020407, %v7507_v23 }
 0x1b2   :  { %2193 = vadd.xlane.f32.xlu0 %v2192_v63  ;;  %v8188_v50 = vpop.xlane.xlu1 %1917  ;;  %v8198_v17 = vsub.f32 %v5386_v13, %v1078_v33  ;;  %v2211_v63 = vsel %vm494_vm0, %v1534_v61, 0.0  ;;  %v5387_v13 = vld [vmem:[%s11083_s0 + $0x668] sm:$0xff]  ;;  %v1537_v61 = vmul.f32 %v8186_v54, %v8186_v54  ;;  %11603 = vst [vmem:[#allocation209_spill] sm:$0xff] %v8220_v36  ;;  %v2208_v33 = vadd.f32 %v2207_v28, %v1531_v8 }
 0x1b3   :  { %v8201_v31 = vpop.xlane.xlu0 %1913  ;;  %v8213_v6 = vsub.f32 %v5387_v13, %v1077_v32  ;;  %v2212_v26 = vadd.f32 %v2211_v63, %v1533_v59  ;;  %v5391_v63 = vld [vmem:[%s11083_s0 + $0x688] sm:$0xff]  ;;  %v1081_v8 = vmul.f32 0.0051020407, %v7512_v4  ;;  %v2215_v28 = vsel %vm494_vm0, %v1536_v56, 0.0  ;;  %v5393_v56 = vld [vmem:[%s11083_s0 + $0x680] sm:$0xff] }
 0x1b4   :  { %11601 = vst [vmem:[#allocation207_spill] sm:$0xff] %v8198_v17  ;;  %v1542_v13 = vmul.f32 %v8198_v17, %v8198_v17  ;;  %v8243_v58 = vsub.f32 %v5391_v63, %v1079_v19  ;;  %v1084_v23 = vmul.f32 0.0051020407, %v7540_v16  ;;  %v2216_v3 = vadd.f32 %v2215_v28, %v1535_v60 }
 0x1b5   :  { %11602 = vst [vmem:[#allocation208_spill] sm:$0xff] %v8213_v6  ;;  %2205 = vadd.xlane.f32.xlu1 %v2204_v44  ;;  %v5389_v44 = vld [vmem:[%s11083_s0 + $0x698] sm:$0xff]  ;;  %v1540_v17 = vmul.f32 %v8213_v6, %v8213_v6  ;;  %v1086_v60 = vmul.f32 0.0051020407, %v7574_v9 }
 0x1b6   :  { %2201 = vadd.xlane.f32.xlu0 %v2200_v11  ;;  %v8222_v14 = vpop.xlane.xlu1 %1925  ;;  %v8231_v49 = vsub.f32 %v5389_v44, %v1080_v30  ;;  %v5390_v11 = vld [vmem:[%s11083_s0 + $0x660] sm:$0xff]  ;;  %11606 = vst [vmem:[#allocation212_spill] sm:$0xff] %v8243_v58  ;;  %v2219_v44 = vsel %vm494_vm0, %v1538_v1, 0.0 }
 0x1b7   :  { %v8233_v54 = vpop.xlane.xlu0 %1921  ;;  %v8238_v59 = vsub.f32 %v5390_v11, %v1077_v32  ;;  %v1541_v32 = vmul.f32 %v8220_v36, %v8220_v36  ;;  %v5392_v11 = vld [vmem:[%s11083_s0 + $0x690] sm:$0xff]  ;;  %v2220_v36 = vadd.f32 %v2219_v44, %v1537_v61  ;;  %v2223_v44 = vsel %vm494_vm0, %v1540_v17, 0.0 }
 0x1b8   :  { %11604 = vst [vmem:[#allocation210_spill] sm:$0xff] %v8231_v49  ;;  %v8256_v63 = vsub.f32 %v5392_v11, %v1080_v30  ;;  %v1546_v4 = vmul.f32 %v8231_v49, %v8231_v49  ;;  %v2227_v30 = vsel %vm494_vm0, %v1542_v13, 0.0  ;;  %v5394_v11 = vld [vmem:[%s11083_s0 + $0x6b8] sm:$0xff]  ;;  %v1083_v13 = vmul.f32 0.0051020407, %v7553_v55  ;;  %v5397_v17 = vld [vmem:[%s11083_s0 + $0x6b0] sm:$0xff] }
 0x1b9   :  { %11605 = vst [vmem:[#allocation211_spill] sm:$0xff] %v8238_v59  ;;  %2213 = vadd.xlane.f32.xlu1 %v2212_v26  ;;  %v8266_v26 = vsub.f32 %v5393_v56, %v1079_v19  ;;  %v1539_v16 = vmul.f32 %v8238_v59, %v8238_v59  ;;  %v8278_v49 = vsub.f32 %v5394_v11, %v1082_v12  ;;  %v5395_v19 = vld [vmem:[%s11083_s0 + $0x6a8] sm:$0xff]  ;;  %v5396_v11 = vld [vmem:[%s11083_s0 + $0x6d8] sm:$0xff]  ;;  %v1085_v59 = vmul.f32 0.0051020407, %v7585_v35  ;;  %v5399_v35 = vld [vmem:[%s11083_s0 + $0x6d0] sm:$0xff] }
 0x1ba   :  { %11607 = vst [vmem:[#allocation213_spill] sm:$0xff] %v8256_v63  ;;  %2209 = vadd.xlane.f32.xlu0 %v2208_v33  ;;  %v8259_v1 = vpop.xlane.xlu1 %1933  ;;  %v1544_v33 = vmul.f32 %v8243_v58, %v8243_v58  ;;  %v8283_v61 = vsub.f32 %v5395_v19, %v1081_v8  ;;  %v1545_v56 = vmul.f32 %v8256_v63, %v8256_v63 }
 0x1bb   :  { %11608 = vst [vmem:[#allocation214_spill] sm:$0xff] %v8266_v26  ;;  %v8268_v6 = vpop.xlane.xlu0 %1929  ;;  %11609 = vst [vmem:[#allocation215_spill] sm:$0xff] %v8278_v49  ;;  %v8292_v58 = vsub.f32 %v5396_v11, %v1084_v23  ;;  %v2228_v19 = vadd.f32 %v2227_v30, %v1541_v32  ;;  %v1543_v55 = vmul.f32 %v8266_v26, %v8266_v26  ;;  %v2235_v11 = vsel %vm494_vm0, %v1546_v4, 0.0 }
 0x1bc   :  { %11610 = vst [vmem:[#allocation216_spill] sm:$0xff] %v8283_v61  ;;  %v1550_v9 = vmul.f32 %v8278_v49, %v8278_v49  ;;  %v2224_v30 = vadd.f32 %v2223_v44, %v1539_v16  ;;  %v2231_v26 = vsel %vm494_vm0, %v1544_v33, 0.0  ;;  %v8321_v4 = vsub.f32 %v5399_v35, %v1084_v23  ;;  %v5401_v16 = vld [vmem:[%s11083_s0 + $0x6f8] sm:$0xff] }
 0x1bd   :  { %2221 = vadd.xlane.f32.xlu1 %v2220_v36  ;;  %11611 = vst [vmem:[#allocation217_spill] sm:$0xff] %v8292_v58  ;;  %v8302_v36 = vsub.f32 %v5397_v17, %v1082_v12  ;;  %v1548_v12 = vmul.f32 %v8283_v61, %v8283_v61  ;;  %v5400_v17 = vld [vmem:[%s11083_s0 + $0x6c8] sm:$0xff]  ;;  %v8333_v33 = vsub.f32 %v5401_v16, %v1086_v60  ;;  %v1087_v16 = vmul.f32 0.0051020407, %v7620_v53 }
 0x1be   :  { %2217 = vadd.xlane.f32.xlu0 %v2216_v3  ;;  %v8295_v28 = vpop.xlane.xlu1 %1941  ;;  %v5398_v3 = vld [vmem:[%s11083_s0 + $0x6a0] sm:$0xff]  ;;  %11615 = vst [vmem:[#allocation221_spill] sm:$0xff] %v8321_v4  ;;  %v8326_v49 = vsub.f32 %v5400_v17, %v1083_v13  ;;  %v2236_v23 = vadd.f32 %v2235_v11, %v1545_v56 }
 0x1bf   :  { %11612 = vst [vmem:[#allocation218_spill] sm:$0xff] %v8302_v36  ;;  %v8305_v63 = vpop.xlane.xlu0 %1937  ;;  %v8313_v32 = vsub.f32 %v5398_v3, %v1081_v8  ;;  %v1554_v8 = vmul.f32 %v8292_v58, %v8292_v58  ;;  %11617 = vst [vmem:[#allocation223_spill] sm:$0xff] %v8333_v33  ;;  %v1549_v3 = vmul.f32 %v8302_v36, %v8302_v36  ;;  %v11619_v17 = vld [vmem:[#allocation142_spill] sm:$0xff]  ;;  %v2243_v36 = vsel %vm494_vm0, %v1550_v9, 0.0 }
 0x1c0   :  { %11613 = vst [vmem:[#allocation219_spill] sm:$0xff] %v8305_v63  ;;  %11616 = vst [vmem:[#allocation222_spill] sm:$0xff] %v8326_v49  ;;  %v1088_v61 = vmul.f32 0.0051020407, %v11619_v17  ;;  %v2232_v63 = vadd.f32 %v2231_v26, %v1543_v55  ;;  %v5403_v56 = vld [vmem:[%s11083_s0 + $0x6c0] sm:$0xff]  ;;  %v1552_v17 = vmul.f32 %v8326_v49, %v8326_v49  ;;  %v2239_v26 = vsel %vm494_vm0, %v1548_v12, 0.0 }
 0x1c1   :  { %11614 = vst [vmem:[#allocation220_spill] sm:$0xff] %v8313_v32  ;;  %2229 = vadd.xlane.f32.xlu1 %v2228_v19  ;;  %v5402_v19 = vld [vmem:[%s11083_s0 + $0x6e8] sm:$0xff]  ;;  %v8352_v11 = vsub.f32 %v5403_v56, %v1083_v13  ;;  %v5404_v55 = vld [vmem:[%s11083_s0 + $0x6f0] sm:$0xff]  ;;  %v1558_v53 = vmul.f32 %v8333_v33, %v8333_v33  ;;  %v5405_v13 = vld [vmem:[%s11083_s0 + $0x6e0] sm:$0xff]  ;;  %v2251_v12 = vsel %vm494_vm0, %v1554_v8, 0.0 }
 0x1c2   :  { %2225 = vadd.xlane.f32.xlu0 %v2224_v30  ;;  %v8335_v44 = vpop.xlane.xlu1 %1949  ;;  %v8342_v35 = vsub.f32 %v5402_v19, %v1085_v59  ;;  %v1547_v30 = vmul.f32 %v8313_v32, %v8313_v32  ;;  %v1553_v19 = vmul.f32 %v8321_v4, %v8321_v4  ;;  %v8364_v32 = vsub.f32 %v5404_v55, %v1086_v60  ;;  %v5406_v60 = vld [vmem:[%s11083_s0 + $0x718] sm:$0xff]  ;;  %v5407_v8 = vld [vmem:[%s11083_s0 + $0x708] sm:$0xff] }
 0x1c3   :  { %v8345_v58 = vpop.xlane.xlu0 %1945  ;;  %11621 = vst [vmem:[#allocation225_spill] sm:$0xff] %v8352_v11  ;;  %v8371_v9 = vsub.f32 %v5405_v13, %v1085_v59  ;;  %v8381_v55 = vsub.f32 %v5406_v60, %v1088_v61  ;;  %v1090_v49 = vmul.f32 0.0051020407, %v7648_v24  ;;  %v2244_v59 = vadd.f32 %v2243_v36, %v1549_v3  ;;  %v5408_v3 = vld [vmem:[%s11083_s0 + $0x710] sm:$0xff] }
 0x1c4   :  { %11618 = vst [vmem:[#allocation224_spill] sm:$0xff] %v8342_v35  ;;  %11620 = vst [vmem:[#allocation142_spill] sm:$0xff] %v8345_v58  ;;  %v8391_v13 = vsub.f32 %v5407_v8, %v1087_v16  ;;  %v2240_v4 = vadd.f32 %v2239_v26, %v1547_v30  ;;  %v2252_v60 = vadd.f32 %v2251_v12, %v1553_v19  ;;  %v2247_v58 = vsel %vm494_vm0, %v1552_v17, 0.0  ;;  %v5409_v19 = vld [vmem:[%s11083_s0 + $0x700] sm:$0xff]  ;;  %v5410_v26 = vld [vmem:[%s11083_s0 + $0x738] sm:$0xff] }
 0x1c5   :  { %2237 = vadd.xlane.f32.xlu1 %v2236_v23  ;;  %11622 = vst [vmem:[#allocation226_spill] sm:$0xff] %v8364_v32  ;;  %11623 = vst [vmem:[#allocation227_spill] sm:$0xff] %v8371_v9  ;;  %v1556_v23 = vmul.f32 %v8342_v35, %v8342_v35  ;;  %v1089_v35 = vmul.f32 0.0051020407, %v7661_v42  ;;  %v1557_v24 = vmul.f32 %v8364_v32, %v8364_v32  ;;  %v2259_v42 = vsel %vm494_vm0, %v1558_v53, 0.0 }
 0x1c6   :  { %2233 = vadd.xlane.f32.xlu0 %v2232_v63  ;;  %v8373_v56 = vpop.xlane.xlu1 %1957  ;;  %11624 = vst [vmem:[#allocation228_spill] sm:$0xff] %v8381_v55  ;;  %v1551_v63 = vmul.f32 %v8352_v11, %v8352_v11  ;;  %11625 = vst [vmem:[#allocation229_spill] sm:$0xff] %v8391_v13  ;;  %v1555_v36 = vmul.f32 %v8371_v9, %v8371_v9  ;;  %v8402_v11 = vsub.f32 %v5408_v3, %v1088_v61 }
 0x1c7   :  { %v8384_v33 = vpop.xlane.xlu0 %1953  ;;  %v1562_v30 = vmul.f32 %v8381_v55, %v8381_v55  ;;  %v8412_v17 = vsub.f32 %v5409_v19, %v1087_v16  ;;  %v8417_v61 = vsub.f32 %v5410_v26, %v1090_v49  ;;  %v2255_v12 = vsel %vm494_vm0, %v1556_v23, 0.0  ;;  %v5412_v23 = vld [vmem:[%s11083_s0 + $0x730] sm:$0xff] }
 0x1c8   :  { %11626 = vst [vmem:[#allocation230_spill] sm:$0xff] %v8402_v11  ;;  %v1560_v53 = vmul.f32 %v8391_v13, %v8391_v13  ;;  %v1092_v16 = vmul.f32 0.0051020407, %v7682_v0  ;;  %v2248_v19 = vadd.f32 %v2247_v58, %v1551_v63  ;;  %v1091_v9 = vmul.f32 0.0051020407, %v7693_v48  ;;  %v5413_v58 = vld [vmem:[%s11083_s0 + $0x720] sm:$0xff] }
 0x1c9   :  { %2245 = vadd.xlane.f32.xlu1 %v2244_v59  ;;  %11627 = vst [vmem:[#allocation231_spill] sm:$0xff] %v8412_v17  ;;  %11628 = vst [vmem:[#allocation232_spill] sm:$0xff] %v8417_v61  ;;  %v5411_v59 = vld [vmem:[%s11083_s0 + $0x728] sm:$0xff]  ;;  %v1561_v26 = vmul.f32 %v8402_v11, %v8402_v11  ;;  %v8436_v13 = vsub.f32 %v5412_v23, %v1090_v49  ;;  %v2256_v32 = vadd.f32 %v2255_v12, %v1555_v36  ;;  %v5414_v36 = vld [vmem:[%s11083_s0 + $0x758] sm:$0xff] }
 0x1ca   :  { %2241 = vadd.xlane.f32.xlu0 %v2240_v4  ;;  %v8404_v8 = vpop.xlane.xlu1 %1965  ;;  %v8427_v3 = vsub.f32 %v5411_v59, %v1089_v35  ;;  %v2260_v59 = vadd.f32 %v2259_v42, %v1557_v24  ;;  %v1559_v0 = vmul.f32 %v8412_v17, %v8412_v17  ;;  %v1566_v48 = vmul.f32 %v8417_v61, %v8417_v61 }
 0x1cb   :  { %v8419_v4 = vpop.xlane.xlu0 %1961  ;;  %11630 = vst [vmem:[#allocation234_spill] sm:$0xff] %v8436_v13  ;;  %v8447_v63 = vsub.f32 %v5413_v58, %v1089_v35  ;;  %v2267_v49 = vsel %vm494_vm0, %v1562_v30, 0.0  ;;  %v8457_v42 = vsub.f32 %v5414_v36, %v1092_v16  ;;  %v1094_v12 = vmul.f32 0.0051020407, %v7723_v52  ;;  %v5415_v35 = vld [vmem:[%s11083_s0 + $0x748] sm:$0xff] }
 0x1cc   :  { %11629 = vst [vmem:[#allocation233_spill] sm:$0xff] %v8427_v3  ;;  %v1564_v24 = vmul.f32 %v8427_v3, %v8427_v3  ;;  %v8464_v23 = vsub.f32 %v5415_v35, %v1091_v9  ;;  %v1093_v30 = vmul.f32 0.0051020407, %v7728_v5  ;;  %v1565_v58 = vmul.f32 %v8436_v13, %v8436_v13 }
 0x1cd   :  { %2253 = vadd.xlane.f32.xlu1 %v2252_v60  ;;  %11631 = vst [vmem:[#allocation235_spill] sm:$0xff] %v8447_v63  ;;  %11632 = vst [vmem:[#allocation236_spill] sm:$0xff] %v8457_v42  ;;  %v2268_v36 = vadd.f32 %v2267_v49, %v1561_v26  ;;  %v1563_v52 = vmul.f32 %v8447_v63, %v8447_v63  ;;  %v5417_v26 = vld [vmem:[%s11083_s0 + $0x740] sm:$0xff]  ;;  %v5418_v63 = vld [vmem:[%s11083_s0 + $0x778] sm:$0xff] }
 0x1ce   :  { %2249 = vadd.xlane.f32.xlu0 %v2248_v19  ;;  %v8438_v55 = vpop.xlane.xlu1 %1973  ;;  %v2263_v19 = vsel %vm494_vm0, %v1560_v53, 0.0  ;;  %11633 = vst [vmem:[#allocation237_spill] sm:$0xff] %v8464_v23  ;;  %v5416_v53 = vld [vmem:[%s11083_s0 + $0x750] sm:$0xff]  ;;  %v8486_v49 = vsub.f32 %v5417_v26, %v1091_v9 }
 0x1cf   :  { %v8449_v60 = vpop.xlane.xlu0 %1969  ;;  %v8476_v17 = vsub.f32 %v5416_v53, %v1092_v16  ;;  %v2264_v5 = vadd.f32 %v2263_v19, %v1559_v0  ;;  %v8491_v16 = vsub.f32 %v5418_v63, %v1094_v12  ;;  %v2271_v53 = vsel %vm494_vm0, %v1564_v24, 0.0  ;;  %v5420_v63 = vld [vmem:[%s11083_s0 + $0x770] sm:$0xff] }
 0x1d0   :  { %11635 = vst [vmem:[#allocation239_spill] sm:$0xff] %v8486_v49  ;;  %v1568_v0 = vmul.f32 %v8464_v23, %v8464_v23  ;;  %v8508_v24 = vsub.f32 %v5420_v63, %v1094_v12  ;;  %v2272_v61 = vadd.f32 %v2271_v53, %v1563_v52  ;;  %v2296_v53 = vmul.f32 0.0051020407, %v7756_v43 }
 0x1d1   :  { %2261 = vadd.xlane.f32.xlu1 %v2260_v59  ;;  %11634 = vst [vmem:[#allocation238_spill] sm:$0xff] %v8476_v17  ;;  %v2275_v59 = vsel %vm494_vm0, %v1566_v48, 0.0  ;;  %11636 = vst [vmem:[#allocation240_spill] sm:$0xff] %v8491_v16  ;;  %v5419_v48 = vld [vmem:[%s11083_s0 + $0x768] sm:$0xff]  ;;  %v1569_v26 = vmul.f32 %v8476_v17, %v8476_v17 }
 0x1d2   :  { %2257 = vadd.xlane.f32.xlu0 %v2256_v32  ;;  %v8469_v3 = vpop.xlane.xlu1 %1981  ;;  %v1570_v32 = vmul.f32 %v8457_v42, %v8457_v42  ;;  %v8499_v19 = vsub.f32 %v5419_v48, %v1093_v30  ;;  %11638 = vst [vmem:[#allocation242_spill] sm:$0xff] %v8508_v24  ;;  %v2276_v42 = vadd.f32 %v2275_v59, %v1565_v58  ;;  %v2279_v58 = vsel %vm494_vm0, %v1568_v0, 0.0 }
 0x1d3   :  { %v8478_v35 = vpop.xlane.xlu0 %1977  ;;  %v1567_v48 = vmul.f32 %v8486_v49, %v8486_v49  ;;  %v1573_v59 = vmul.f32 %v8508_v24, %v8508_v24  ;;  %v2416_v0 = vadd.f32 1e-05, %v2296_v53  ;;  %v2297_v49 = vmul.f32 0.0051020407, %v7801_v45 }
 0x1d4   :  { %11637 = vst [vmem:[#allocation241_spill] sm:$0xff] %v8499_v19  ;;  %v2283_v13 = vsel %vm494_vm0, %v1570_v32, 0.0  ;;  %v1572_v12 = vmul.f32 %v8499_v19, %v8499_v19  ;;  %v2304_v53 = vmul.f32 0.0051020407, %v7898_v41 }
 0x1d5   :  { %2269 = vadd.xlane.f32.xlu1 %v2268_v36  ;;  %v1574_v36 = vmul.f32 %v8491_v16, %v8491_v16  ;;  %4942 = vrsqrt.f32 %v2416_v0  ;;  %v2308_v0 = vmul.f32 0.0051020407, %v7972_v37  ;;  %v2657_v37 = vld [vmem:[%s11084_s1 + $0x10] sm:$0xff] }
 0x1d6   :  { %2265 = vadd.xlane.f32.xlu0 %v2264_v5  ;;  %v8501_v9 = vpop.xlane.xlu1 %1989  ;;  %v5421_v5 = vld [vmem:[%s11083_s0 + $0x760] sm:$0xff] }
 0x1d7   :  { %v8510_v23 = vpop.xlane.xlu0 %1985  ;;  %v8519_v17 = vsub.f32 %v5421_v5, %v1093_v30  ;;  %v2284_v30 = vadd.f32 %v2283_v13, %v1569_v26  ;;  %v2280_v5 = vadd.f32 %v2279_v58, %v1567_v48  ;;  %v2291_v19 = vsel %vm494_vm0, %v1574_v36, 0.0 }
 0x1d8   :  { %v2292_v43 = vadd.f32 %v2291_v19, %v1573_v59  ;;  %v2295_v13 = vmul.f32 0.0051020407, %v7769_v15  ;;  %v2298_v48 = vmul.f32 0.0051020407, %v7790_v29  ;;  %v2417_v36 = vadd.f32 1e-05, %v2297_v49 }
 0x1d9   :  { %11639 = vst [vmem:[#allocation243_spill] sm:$0xff] %v8519_v17  ;;  %2277 = vadd.xlane.f32.xlu1 %v2276_v42  ;;  %v1571_v32 = vmul.f32 %v8519_v17, %v8519_v17  ;;  %v2287_v42 = vsel %vm494_vm0, %v1572_v12, 0.0  ;;  %v2299_v19 = vmul.f32 0.0051020407, %v7836_v27  ;;  %v2306_v59 = vmul.f32 0.0051020407, %v7939_v22 }
 0x1da   :  { %2273 = vadd.xlane.f32.xlu0 %v2272_v61  ;;  %v8525_v52 = vpop.xlane.xlu1 %1997  ;;  %v2415_v58 = vadd.f32 1e-05, %v2295_v13  ;;  %4944 = vrsqrt.f32 %v2417_v36  ;;  %v2300_v29 = vmul.f32 0.0051020407, %v7831_v47  ;;  %v2656_v27 = vld [vmem:[%s11084_s1 + $0x8] sm:$0xff] }
 0x1db   :  { %v8530_v63 = vpop.xlane.xlu0 %1993  ;;  %v2288_v24 = vadd.f32 %v2287_v42, %v1571_v32  ;;  %v2419_v49 = vadd.f32 1e-05, %v2299_v19  ;;  %v2426_v42 = vadd.f32 1e-05, %v2306_v59  ;;  %v2301_v13 = vmul.f32 0.0051020407, %v7877_v20 }
 0x1dc   :  { %4946 = vrsqrt.f32 %v2415_v58  ;;  %v2420_v22 = vadd.f32 1e-05, %v2300_v29  ;;  %v2428_v58 = vadd.f32 1e-05, %v2308_v0  ;;  %v2655_v29 = vld [vmem:[%s11084_s1] sm:$0xff]  ;;  %v2658_v0 = vld [vmem:[%s11084_s1 + $0x18] sm:$0xff] }
 0x1dd   :  { %2285 = vadd.xlane.f32.xlu1 %v2284_v30  ;;  %v2418_v30 = vadd.f32 1e-05, %v2298_v48  ;;  %v2421_v20 = vadd.f32 1e-05, %v2301_v13 }
 0x1de   :  { %2281 = vadd.xlane.f32.xlu0 %v2280_v5  ;;  %v8536_v61 = vpop.xlane.xlu1 %2005 }
 0x1df   :  { %v8539_v16 = vpop.xlane.xlu0 %2001  ;;  %4948 = vrsqrt.f32 %v2418_v30  ;;  %v4943_v41 = vpop.eup %4942 }
 0x1e0   :  { %v2896_v47 = vmul.f32 %v4943_v41, %v2656_v27 }
 0x1e1   :  { %2293 = vadd.xlane.f32.xlu1 %v2292_v43 }
 0x1e2   :  { %2289 = vadd.xlane.f32.xlu0 %v2288_v24  ;;  %v8542_v26 = vpop.xlane.xlu1 %2013  ;;  %v2424_v24 = vadd.f32 1e-05, %v2304_v53  ;;  %v2310_v53 = vmul.f32 0.0051020407, %v8006_v40 }
 0x1e3   :  { %v8545_v12 = vpop.xlane.xlu0 %2009 }
 0x1e4   :  { %4950 = vrsqrt.f32 %v2424_v24  ;;  %v4945_v36 = vpop.eup %4944  ;;  %v2302_v24 = vmul.f32 0.0051020407, %v7864_v51  ;;  %v2430_v41 = vadd.f32 1e-05, %v2310_v53 }
 0x1e5   :  { %4952 = vrsqrt.f32 %v2419_v49  ;;  %v2897_v49 = vmul.f32 %v4945_v36, %v2657_v37  ;;  %v2664_v36 = vld [vmem:[%s11084_s1 + $0x48] sm:$0xff]  ;;  %v2314_v37 = vmul.f32 0.0051020407, %v8080_v10 }
 0x1e6   :  { %v8548_v45 = vpop.xlane.xlu1 %2021  ;;  %4954 = vrsqrt.f32 %v2426_v42  ;;  %v4947_v19 = vpop.eup %4946  ;;  %v2312_v42 = vmul.f32 0.0051020407, %v8047_v25  ;;  %v2422_v13 = vadd.f32 1e-05, %v2302_v24 }
 0x1e7   :  { %v8551_v15 = vpop.xlane.xlu0 %2017  ;;  %4956 = vrsqrt.f32 %v2420_v22  ;;  %v2895_v51 = vmul.f32 %v4947_v19, %v2655_v29  ;;  %v2659_v19 = vld [vmem:[%s11084_s1 + $0x20] sm:$0xff] }
 0x1e8   :  { %4958 = vrsqrt.f32 %v2428_v58  ;;  %v2432_v53 = vadd.f32 1e-05, %v2312_v42  ;;  %v2434_v42 = vadd.f32 1e-05, %v2314_v37 }
 0x1e9   :  { %v4949_v40 = vpop.eup %4948  ;;  %4960 = vrsqrt.f32 %v2421_v20 }
 0x1ea   :  { %v8554_v32 = vpop.xlane.xlu1 %2029  ;;  %v2898_v25 = vmul.f32 %v4949_v40, %v2658_v0  ;;  %4962 = vrsqrt.f32 %v2430_v41  ;;  %v2666_v40 = vld [vmem:[%s11084_s1 + $0x58] sm:$0xff]  ;;  %v2316_v0 = vmul.f32 0.0051020407, %v8114_v2 }
 0x1eb   :  { %v8557_v5 = vpop.xlane.xlu0 %2025  ;;  %4964 = vrsqrt.f32 %v2422_v13 }
 0x1ec   :  { %4966 = vrsqrt.f32 %v2432_v53  ;;  %v2436_v37 = vadd.f32 1e-05, %v2316_v0 }
 0x1ee   :  { %v8563_v43 = vpop.xlane.xlu1 %2037  ;;  %v4951_v22 = vpop.eup %4950 }
 0x1ef   :  { %v8566_v48 = vpop.xlane.xlu0 %2033  ;;  %v4953_v58 = vpop.eup %4952 }
 0x1f0   :  { %v4955_v20 = vpop.eup %4954  ;;  %v2899_v10 = vmul.f32 %v4953_v58, %v2659_v19  ;;  %v2668_v58 = vld [vmem:[%s11084_s1 + $0x68] sm:$0xff]  ;;  %v2318_v19 = vmul.f32 0.0051020407, %v8155_v38 }
 0x1f1   :  { %v4957_v41 = vpop.eup %4956 }
 0x1f2   :  { %3022 = vperm.xlu1 %4941, %v2896_v47   ;;  %v8572_v30 = vpop.xlane.xlu1 %2045  ;;  %v2303_v47 = vmul.f32 0.0051020407, %v7909_v46  ;;  %v2904_v46 = vmul.f32 %v4951_v22, %v2664_v36  ;;  %v2660_v22 = vld [vmem:[%s11084_s1 + $0x28] sm:$0xff]  ;;  %v2438_v0 = vadd.f32 1e-05, %v2318_v19 }
 0x1f3   :  { %v8575_v59 = vpop.xlane.xlu0 %2041  ;;  %v2900_v2 = vmul.f32 %v4957_v41, %v2660_v22  ;;  %v2670_v41 = vld [vmem:[%s11084_s1 + $0x78] sm:$0xff]  ;;  %v2320_v22 = vmul.f32 0.0051020407, %v8188_v50 }
 0x1f4   :  { %v2423_v29 = vadd.f32 1e-05, %v2303_v47  ;;  %v4959_v47 = vpop.eup %4958 }
 0x1f5   :  { %v4961_v53 = vpop.eup %4960  ;;  %v2440_v19 = vadd.f32 1e-05, %v2320_v22 }
 0x1f6   :  { %v8584_v27 = vpop.xlane.xlu1 %2053  ;;  %3027 = vperm.xlu1 %4941, %v2897_v49   ;;  %v2305_v49 = vmul.f32 0.0051020407, %v7944_v62  ;;  %v2906_v62 = vmul.f32 %v4955_v20, %v2666_v40  ;;  %4968 = vrsqrt.f32 %v2423_v29  ;;  %v2661_v20 = vld [vmem:[%s11084_s1 + $0x30] sm:$0xff] }
 0x1f7   :  { %v8587_v17 = vpop.xlane.xlu0 %2049  ;;  %4970 = vrsqrt.f32 %v2434_v42  ;;  %v2901_v38 = vmul.f32 %v4961_v53, %v2661_v20  ;;  %v2672_v53 = vld [vmem:[%s11084_s1 + $0x88] sm:$0xff]  ;;  %v2322_v20 = vmul.f32 0.0051020407, %v8222_v14 }
 0x1f8   :  { %3017 = vperm.xlu0 %4940, %v2895_v51   ;;  %v2425_v36 = vadd.f32 1e-05, %v2305_v49  ;;  %v4963_v49 = vpop.eup %4962 }
 0x1f9   :  { %v4965_v42 = vpop.eup %4964  ;;  %v2442_v22 = vadd.f32 1e-05, %v2322_v20 }
 0x1fa   :  { %v8596_v24 = vpop.xlane.xlu1 %2061  ;;  %3032 = vperm.xlu1 %4941, %v2898_v25   ;;  %v2307_v25 = vmul.f32 0.0051020407, %v7985_v39  ;;  %v2908_v39 = vmul.f32 %v4959_v47, %v2668_v58  ;;  %4972 = vrsqrt.f32 %v2425_v36  ;;  %v2662_v47 = vld [vmem:[%s11084_s1 + $0x38] sm:$0xff] }
 0x1fb   :  { %v8599_v51 = vpop.xlane.xlu0 %2057  ;;  %4974 = vrsqrt.f32 %v2436_v37  ;;  %v2902_v50 = vmul.f32 %v4965_v42, %v2662_v47  ;;  %v2674_v42 = vld [vmem:[%s11084_s1 + $0x98] sm:$0xff]  ;;  %v2324_v47 = vmul.f32 0.0051020407, %v8259_v1 }
 0x1fc   :  { %3062 = vperm.xlu0 %4940, %v2904_v46   ;;  %v2427_v40 = vadd.f32 1e-05, %v2307_v25  ;;  %v4967_v25 = vpop.eup %4966 }
 0x1fd   :  { %v2444_v20 = vadd.f32 1e-05, %v2324_v47 }
 0x1fe   :  { %v8608_v13 = vpop.xlane.xlu1 %2069  ;;  %3037 = vperm.xlu1 %4941, %v2899_v10   ;;  %v2309_v10 = vmul.f32 0.0051020407, %v8017_v21  ;;  %v2910_v21 = vmul.f32 %v4963_v49, %v2670_v41  ;;  %4976 = vrsqrt.f32 %v2427_v40  ;;  %v2663_v49 = vld [vmem:[%s11084_s1 + $0x40] sm:$0xff] }
 0x1ff   :  { %v8611_v46 = vpop.xlane.xlu0 %2065  ;;  %4978 = vrsqrt.f32 %v2438_v0 }
 0x200   :  { %3072 = vperm.xlu0 %4940, %v2906_v62   ;;  %v2429_v58 = vadd.f32 1e-05, %v2309_v10  ;;  %v4969_v37 = vpop.eup %4968 }
 0x201   :  { %v4971_v10 = vpop.eup %4970  ;;  %v2903_v14 = vmul.f32 %v4969_v37, %v2663_v49  ;;  %v2676_v37 = vld [vmem:[%s11084_s1 + $0xa8] sm:$0xff]  ;;  %v2326_v49 = vmul.f32 0.0051020407, %v8295_v28 }
 0x202   :  { %v8620_v29 = vpop.xlane.xlu1 %2077  ;;  %3042 = vperm.xlu1 %4941, %v2900_v2   ;;  %v2311_v2 = vmul.f32 0.0051020407, %v8052_v57  ;;  %v2912_v57 = vmul.f32 %v4967_v25, %v2672_v53  ;;  %4980 = vrsqrt.f32 %v2429_v58  ;;  %v2665_v25 = vld [vmem:[%s11084_s1 + $0x50] sm:$0xff] }
 0x203   :  { %v8623_v62 = vpop.xlane.xlu0 %2073  ;;  %4982 = vrsqrt.f32 %v2440_v19  ;;  %v2446_v47 = vadd.f32 1e-05, %v2326_v49 }
 0x204   :  { %3082 = vperm.xlu0 %4940, %v2908_v39   ;;  %v2431_v41 = vadd.f32 1e-05, %v2311_v2  ;;  %v4973_v0 = vpop.eup %4972 }
 0x205   :  { %v4975_v2 = vpop.eup %4974  ;;  %v2905_v1 = vmul.f32 %v4973_v0, %v2665_v25  ;;  %v2678_v0 = vld [vmem:[%s11084_s1 + $0xb8] sm:$0xff]  ;;  %v2328_v25 = vmul.f32 0.0051020407, %v8335_v44 }
 0x206   :  { %v8632_v36 = vpop.xlane.xlu1 %2085  ;;  %3047 = vperm.xlu1 %4941, %v2901_v38   ;;  %v2313_v38 = vmul.f32 0.0051020407, %v8093_v34  ;;  %v2914_v34 = vmul.f32 %v4971_v10, %v2674_v42  ;;  %4984 = vrsqrt.f32 %v2431_v41  ;;  %v2667_v10 = vld [vmem:[%s11084_s1 + $0x60] sm:$0xff] }
 0x207   :  { %v8635_v39 = vpop.xlane.xlu0 %2081  ;;  %4986 = vrsqrt.f32 %v2442_v22  ;;  %v2448_v49 = vadd.f32 1e-05, %v2328_v25 }
 0x208   :  { %3092 = vperm.xlu0 %4940, %v2910_v21   ;;  %v2433_v53 = vadd.f32 1e-05, %v2313_v38  ;;  %v4977_v19 = vpop.eup %4976 }
 0x209   :  { %v4979_v38 = vpop.eup %4978  ;;  %v2907_v28 = vmul.f32 %v4977_v19, %v2667_v10  ;;  %v2680_v19 = vld [vmem:[%s11084_s1 + $0xc8] sm:$0xff]  ;;  %v2330_v10 = vmul.f32 0.0051020407, %v8373_v56 }
 0x20a   :  { %v8644_v40 = vpop.xlane.xlu1 %2093  ;;  %3052 = vperm.xlu1 %4941, %v2902_v50   ;;  %v2315_v50 = vmul.f32 0.0051020407, %v8125_v7  ;;  %v2916_v7 = vmul.f32 %v4975_v2, %v2676_v37  ;;  %4988 = vrsqrt.f32 %v2433_v53  ;;  %v2669_v2 = vld [vmem:[%s11084_s1 + $0x70] sm:$0xff] }
 0x20b   :  { %v8647_v21 = vpop.xlane.xlu0 %2089  ;;  %4990 = vrsqrt.f32 %v2444_v20  ;;  %v2450_v25 = vadd.f32 1e-05, %v2330_v10 }
 0x20c   :  { %3102 = vperm.xlu0 %4940, %v2912_v57   ;;  %v2435_v42 = vadd.f32 1e-05, %v2315_v50  ;;  %v4981_v22 = vpop.eup %4980 }
 0x20d   :  { %v4983_v50 = vpop.eup %4982  ;;  %v2909_v44 = vmul.f32 %v4981_v22, %v2669_v2  ;;  %v2682_v22 = vld [vmem:[%s11084_s1 + $0xd8] sm:$0xff]  ;;  %v2332_v2 = vmul.f32 0.0051020407, %v8404_v8 }
 0x20e   :  { %v8656_v58 = vpop.xlane.xlu1 %2101  ;;  %3057 = vperm.xlu1 %4941, %v2903_v14   ;;  %v2317_v14 = vmul.f32 0.0051020407, %v8160_v18  ;;  %v2918_v18 = vmul.f32 %v4979_v38, %v2678_v0  ;;  %4992 = vrsqrt.f32 %v2435_v42  ;;  %v2671_v38 = vld [vmem:[%s11084_s1 + $0x80] sm:$0xff] }
 0x20f   :  { %v8659_v57 = vpop.xlane.xlu0 %2097  ;;  %4994 = vrsqrt.f32 %v2446_v47  ;;  %v2452_v10 = vadd.f32 1e-05, %v2332_v2 }
 0x210   :  { %3112 = vperm.xlu0 %4940, %v2914_v34   ;;  %v2437_v37 = vadd.f32 1e-05, %v2317_v14  ;;  %v4985_v20 = vpop.eup %4984 }
 0x211   :  { %v4987_v14 = vpop.eup %4986  ;;  %v2911_v56 = vmul.f32 %v4985_v20, %v2671_v38  ;;  %v2684_v20 = vld [vmem:[%s11084_s1 + $0xe8] sm:$0xff]  ;;  %v2334_v38 = vmul.f32 0.0051020407, %v8438_v55 }
 0x212   :  { %v8668_v41 = vpop.xlane.xlu1 %2109  ;;  %3067 = vperm.xlu1 %4941, %v2905_v1   ;;  %v2319_v1 = vmul.f32 0.0051020407, %v8201_v31  ;;  %v2920_v31 = vmul.f32 %v4983_v50, %v2680_v19  ;;  %4996 = vrsqrt.f32 %v2437_v37  ;;  %v2673_v50 = vld [vmem:[%s11084_s1 + $0x90] sm:$0xff] }
 0x213   :  { %v8671_v34 = vpop.xlane.xlu0 %2105  ;;  %4998 = vrsqrt.f32 %v2448_v49  ;;  %v2454_v2 = vadd.f32 1e-05, %v2334_v38 }
 0x214   :  { %3122 = vperm.xlu0 %4940, %v2916_v7   ;;  %v2439_v0 = vadd.f32 1e-05, %v2319_v1  ;;  %v4989_v47 = vpop.eup %4988 }
 0x215   :  { %v4991_v1 = vpop.eup %4990  ;;  %v2913_v8 = vmul.f32 %v4989_v47, %v2673_v50  ;;  %v2686_v47 = vld [vmem:[%s11084_s1 + $0xf8] sm:$0xff]  ;;  %v2336_v50 = vmul.f32 0.0051020407, %v8469_v3 }
 0x216   :  { %v8680_v53 = vpop.xlane.xlu1 %2117  ;;  %3077 = vperm.xlu1 %4941, %v2907_v28   ;;  %v2321_v28 = vmul.f32 0.0051020407, %v8233_v54  ;;  %v2922_v54 = vmul.f32 %v4987_v14, %v2682_v22  ;;  %5000 = vrsqrt.f32 %v2439_v0  ;;  %v2675_v14 = vld [vmem:[%s11084_s1 + $0xa0] sm:$0xff] }
 0x217   :  { %v8683_v7 = vpop.xlane.xlu0 %2113  ;;  %5002 = vrsqrt.f32 %v2450_v25  ;;  %v2456_v38 = vadd.f32 1e-05, %v2336_v50 }
 0x218   :  { %3132 = vperm.xlu0 %4940, %v2918_v18   ;;  %v2441_v19 = vadd.f32 1e-05, %v2321_v28  ;;  %v4993_v49 = vpop.eup %4992 }
 0x219   :  { %v4995_v28 = vpop.eup %4994  ;;  %v2915_v55 = vmul.f32 %v4993_v49, %v2675_v14  ;;  %v2688_v49 = vld [vmem:[%s11084_s1 + $0x108] sm:$0xff]  ;;  %v2338_v14 = vmul.f32 0.0051020407, %v8501_v9 }
 0x21a   :  { %v8692_v42 = vpop.xlane.xlu1 %2125  ;;  %3087 = vperm.xlu1 %4941, %v2909_v44   ;;  %v2323_v44 = vmul.f32 0.0051020407, %v8268_v6  ;;  %v2924_v6 = vmul.f32 %v4991_v1, %v2684_v20  ;;  %5004 = vrsqrt.f32 %v2441_v19  ;;  %v2677_v1 = vld [vmem:[%s11084_s1 + $0xb0] sm:$0xff] }
 0x21b   :  { %v8695_v18 = vpop.xlane.xlu0 %2121  ;;  %5006 = vrsqrt.f32 %v2452_v10  ;;  %v2458_v50 = vadd.f32 1e-05, %v2338_v14 }
 0x21c   :  { %3142 = vperm.xlu0 %4940, %v2920_v31   ;;  %v2443_v22 = vadd.f32 1e-05, %v2323_v44  ;;  %v4997_v25 = vpop.eup %4996  ;;  %v2926_v44 = vmul.f32 %v4995_v28, %v2686_v47  ;;  %v2679_v28 = vld [vmem:[%s11084_s1 + $0xc0] sm:$0xff] }
 0x21d   :  { %v4999_v20 = vpop.eup %4998  ;;  %v2917_v3 = vmul.f32 %v4997_v25, %v2677_v1  ;;  %v2690_v25 = vld [vmem:[%s11084_s1 + $0x118] sm:$0xff]  ;;  %v2340_v1 = vmul.f32 0.0051020407, %v8525_v52 }
 0x21e   :  { %v8704_v37 = vpop.xlane.xlu1 %2133  ;;  %3097 = vperm.xlu1 %4941, %v2911_v56   ;;  %v11640_v56 = vld [vmem:[#allocation219_spill] sm:$0xff]  ;;  %5008 = vrsqrt.f32 %v2443_v22  ;;  %v2928_v22 = vmul.f32 %v4999_v20, %v2688_v49  ;;  %v2681_v20 = vld [vmem:[%s11084_s1 + $0xd0] sm:$0xff] }
 0x21f   :  { %v8707_v31 = vpop.xlane.xlu0 %2129  ;;  %v2325_v11 = vmul.f32 0.0051020407, %v11640_v56  ;;  %v11642_v56 = vld [vmem:[#allocation142_spill] sm:$0xff]  ;;  %5010 = vrsqrt.f32 %v2454_v2  ;;  %v2460_v14 = vadd.f32 1e-05, %v2340_v1 }
 0x220   :  { %3152 = vperm.xlu0 %4940, %v2922_v54   ;;  %v5001_v10 = vpop.eup %5000 }
 0x221   :  { %v5003_v47 = vpop.eup %5002  ;;  %v2919_v9 = vmul.f32 %v5001_v10, %v2679_v28  ;;  %v2692_v10 = vld [vmem:[%s11084_s1 + $0x128] sm:$0xff]  ;;  %v2342_v28 = vmul.f32 0.0051020407, %v8536_v61 }
 0x222   :  { %v8716_v0 = vpop.xlane.xlu1 %2141  ;;  %3107 = vperm.xlu1 %4941, %v2913_v8   ;;  %v2445_v8 = vadd.f32 1e-05, %v2325_v11 }
 0x223   :  { %v8719_v54 = vpop.xlane.xlu0 %2137  ;;  %v2462_v1 = vadd.f32 1e-05, %v2342_v28 }
 0x224   :  { %11641 = vst [vmem:[#allocation219_spill] sm:$0xff] %v8719_v54  ;;  %3162 = vperm.xlu0 %4940, %v2924_v6   ;;  %v2327_v54 = vmul.f32 0.0051020407, %v11642_v56  ;;  %5012 = vrsqrt.f32 %v2445_v8  ;;  %v2329_v56 = vmul.f32 0.0051020407, %v8384_v33  ;;  %v5005_v2 = vpop.eup %5004  ;;  %v2930_v33 = vmul.f32 %v5003_v47, %v2690_v25  ;;  %v2683_v47 = vld [vmem:[%s11084_s1 + $0xe0] sm:$0xff] }
 0x225   :  { %5014 = vrsqrt.f32 %v2456_v38  ;;  %v5007_v8 = vpop.eup %5006  ;;  %v2921_v52 = vmul.f32 %v5005_v2, %v2681_v20  ;;  %v2694_v2 = vld [vmem:[%s11084_s1 + $0x138] sm:$0xff]  ;;  %v2344_v20 = vmul.f32 0.0051020407, %v8542_v26 }
 0x226   :  { %v8728_v19 = vpop.xlane.xlu1 %2149  ;;  %3117 = vperm.xlu1 %4941, %v2915_v55   ;;  %v2447_v55 = vadd.f32 1e-05, %v2327_v54  ;;  %v2449_v49 = vadd.f32 1e-05, %v2329_v56 }
 0x227   :  { %v8731_v6 = vpop.xlane.xlu0 %2145  ;;  %v2464_v28 = vadd.f32 1e-05, %v2344_v20 }
 0x228   :  { %3172 = vperm.xlu0 %4940, %v2926_v44   ;;  %5016 = vrsqrt.f32 %v2447_v55  ;;  %v5009_v38 = vpop.eup %5008 }
 0x229   :  { %5018 = vrsqrt.f32 %v2458_v50  ;;  %v5011_v56 = vpop.eup %5010  ;;  %v2923_v61 = vmul.f32 %v5009_v38, %v2683_v47  ;;  %v2696_v38 = vld [vmem:[%s11084_s1 + $0x148] sm:$0xff]  ;;  %v2346_v47 = vmul.f32 0.0051020407, %v8548_v45 }
 0x22a   :  { %v8740_v11 = vpop.xlane.xlu1 %2157  ;;  %3127 = vperm.xlu1 %4941, %v2917_v3   ;;  %v2331_v3 = vmul.f32 0.0051020407, %v8419_v4  ;;  %v2932_v4 = vmul.f32 %v5007_v8, %v2692_v10  ;;  %5020 = vrsqrt.f32 %v2449_v49  ;;  %v2685_v8 = vld [vmem:[%s11084_s1 + $0xf0] sm:$0xff] }
 0x22b   :  { %v8743_v44 = vpop.xlane.xlu0 %2153  ;;  %5022 = vrsqrt.f32 %v2460_v14  ;;  %v2466_v20 = vadd.f32 1e-05, %v2346_v47 }
 0x22c   :  { %3182 = vperm.xlu0 %4940, %v2928_v22   ;;  %v2451_v25 = vadd.f32 1e-05, %v2331_v3 }
 0x22e   :  { %v8752_v54 = vpop.xlane.xlu1 %2165  ;;  %3137 = vperm.xlu1 %4941, %v2919_v9   ;;  %v2333_v9 = vmul.f32 0.0051020407, %v8449_v60  ;;  %v5013_v50 = vpop.eup %5012  ;;  %v2934_v60 = vmul.f32 %v5011_v56, %v2694_v2  ;;  %5024 = vrsqrt.f32 %v2451_v25  ;;  %v2687_v56 = vld [vmem:[%s11084_s1 + $0x100] sm:$0xff] }
 0x22f   :  { %v8755_v22 = vpop.xlane.xlu0 %2161  ;;  %v5015_v3 = vpop.eup %5014  ;;  %v2925_v26 = vmul.f32 %v5013_v50, %v2685_v8  ;;  %5026 = vrsqrt.f32 %v2462_v1  ;;  %v2698_v50 = vld [vmem:[%s11084_s1 + $0x158] sm:$0xff]  ;;  %v2348_v8 = vmul.f32 0.0051020407, %v8554_v32 }
 0x230   :  { %3192 = vperm.xlu0 %4940, %v2930_v33   ;;  %v2453_v10 = vadd.f32 1e-05, %v2333_v9 }
 0x231   :  { %v2468_v47 = vadd.f32 1e-05, %v2348_v8 }
 0x232   :  { %v8764_v55 = vpop.xlane.xlu1 %2173  ;;  %3147 = vperm.xlu1 %4941, %v2921_v52   ;;  %v2335_v52 = vmul.f32 0.0051020407, %v8478_v35  ;;  %v5017_v14 = vpop.eup %5016  ;;  %v2936_v35 = vmul.f32 %v5015_v3, %v2696_v38  ;;  %5028 = vrsqrt.f32 %v2453_v10  ;;  %v2689_v3 = vld [vmem:[%s11084_s1 + $0x110] sm:$0xff] }
 0x233   :  { %v8767_v33 = vpop.xlane.xlu0 %2169  ;;  %v5019_v9 = vpop.eup %5018  ;;  %v2927_v45 = vmul.f32 %v5017_v14, %v2687_v56  ;;  %5030 = vrsqrt.f32 %v2464_v28  ;;  %v2700_v14 = vld [vmem:[%s11084_s1 + $0x168] sm:$0xff]  ;;  %v2350_v56 = vmul.f32 0.0051020407, %v8563_v43 }
 0x234   :  { %3202 = vperm.xlu0 %4940, %v2932_v4   ;;  %v2455_v2 = vadd.f32 1e-05, %v2335_v52  ;;  %v5021_v1 = vpop.eup %5020 }
 0x235   :  { %v5023_v52 = vpop.eup %5022  ;;  %v2929_v32 = vmul.f32 %v5021_v1, %v2689_v3  ;;  %v2702_v1 = vld [vmem:[%s11084_s1 + $0x178] sm:$0xff]  ;;  %v2470_v8 = vadd.f32 1e-05, %v2350_v56  ;;  %v2352_v3 = vmul.f32 0.0051020407, %v8572_v30 }
 0x236   :  { %v8776_v49 = vpop.xlane.xlu1 %2181  ;;  %3157 = vperm.xlu1 %4941, %v2923_v61   ;;  %v2337_v61 = vmul.f32 0.0051020407, %v8510_v23  ;;  %v2938_v23 = vmul.f32 %v5019_v9, %v2698_v50  ;;  %5032 = vrsqrt.f32 %v2455_v2  ;;  %v2691_v9 = vld [vmem:[%s11084_s1 + $0x120] sm:$0xff] }
 0x237   :  { %v8779_v4 = vpop.xlane.xlu0 %2177  ;;  %5034 = vrsqrt.f32 %v2466_v20  ;;  %v2472_v56 = vadd.f32 1e-05, %v2352_v3 }
 0x238   :  { %3212 = vperm.xlu0 %4940, %v2934_v60   ;;  %v2457_v38 = vadd.f32 1e-05, %v2337_v61  ;;  %v5025_v28 = vpop.eup %5024 }
 0x239   :  { %v5027_v61 = vpop.eup %5026  ;;  %v2931_v43 = vmul.f32 %v5025_v28, %v2691_v9  ;;  %v2704_v28 = vld [vmem:[%s11084_s1 + $0x188] sm:$0xff]  ;;  %v2354_v9 = vmul.f32 0.0051020407, %v8584_v27 }
 0x23a   :  { %v8788_v25 = vpop.xlane.xlu1 %2189  ;;  %3167 = vperm.xlu1 %4941, %v2925_v26   ;;  %v2339_v26 = vmul.f32 0.0051020407, %v8530_v63  ;;  %v2940_v63 = vmul.f32 %v5023_v52, %v2700_v14  ;;  %5036 = vrsqrt.f32 %v2457_v38  ;;  %v2693_v52 = vld [vmem:[%s11084_s1 + $0x130] sm:$0xff] }
 0x23b   :  { %v8791_v60 = vpop.xlane.xlu0 %2185  ;;  %5038 = vrsqrt.f32 %v2468_v47  ;;  %v2474_v3 = vadd.f32 1e-05, %v2354_v9 }
 0x23c   :  { %3222 = vperm.xlu0 %4940, %v2936_v35   ;;  %v2459_v50 = vadd.f32 1e-05, %v2339_v26  ;;  %v5029_v20 = vpop.eup %5028 }
 0x23d   :  { %v5031_v26 = vpop.eup %5030  ;;  %v2933_v30 = vmul.f32 %v5029_v20, %v2693_v52  ;;  %v2706_v20 = vld [vmem:[%s11084_s1 + $0x198] sm:$0xff]  ;;  %v2356_v52 = vmul.f32 0.0051020407, %v8596_v24 }
 0x23e   :  { %v8800_v10 = vpop.xlane.xlu1 %2197  ;;  %3177 = vperm.xlu1 %4941, %v2927_v45   ;;  %v2341_v45 = vmul.f32 0.0051020407, %v8539_v16  ;;  %v2942_v16 = vmul.f32 %v5027_v61, %v2702_v1  ;;  %5040 = vrsqrt.f32 %v2459_v50  ;;  %v2695_v61 = vld [vmem:[%s11084_s1 + $0x140] sm:$0xff] }
 0x23f   :  { %v8803_v35 = vpop.xlane.xlu0 %2193  ;;  %5042 = vrsqrt.f32 %v2470_v8  ;;  %v2476_v9 = vadd.f32 1e-05, %v2356_v52 }
 0x240   :  { %3232 = vperm.xlu0 %4940, %v2938_v23   ;;  %v2461_v14 = vadd.f32 1e-05, %v2341_v45  ;;  %v5033_v47 = vpop.eup %5032 }
 0x241   :  { %v5035_v45 = vpop.eup %5034  ;;  %v2935_v27 = vmul.f32 %v5033_v47, %v2695_v61  ;;  %v2708_v47 = vld [vmem:[%s11084_s1 + $0x1a8] sm:$0xff]  ;;  %v2358_v61 = vmul.f32 0.0051020407, %v8608_v13 }
 0x242   :  { %v8812_v2 = vpop.xlane.xlu1 %2205  ;;  %3187 = vperm.xlu1 %4941, %v2929_v32   ;;  %v2343_v32 = vmul.f32 0.0051020407, %v8545_v12  ;;  %v2944_v12 = vmul.f32 %v5031_v26, %v2704_v28  ;;  %5044 = vrsqrt.f32 %v2461_v14  ;;  %v2697_v26 = vld [vmem:[%s11084_s1 + $0x150] sm:$0xff] }
 0x243   :  { %v8815_v23 = vpop.xlane.xlu0 %2201  ;;  %5046 = vrsqrt.f32 %v2472_v56  ;;  %v2478_v52 = vadd.f32 1e-05, %v2358_v61 }
 0x244   :  { %3242 = vperm.xlu0 %4940, %v2940_v63   ;;  %v2463_v1 = vadd.f32 1e-05, %v2343_v32  ;;  %v5037_v8 = vpop.eup %5036 }
 0x245   :  { %v5039_v32 = vpop.eup %5038  ;;  %v2937_v24 = vmul.f32 %v5037_v8, %v2697_v26  ;;  %v2710_v8 = vld [vmem:[%s11084_s1 + $0x1b8] sm:$0xff]  ;;  %v2360_v26 = vmul.f32 0.0051020407, %v8620_v29 }
 0x246   :  { %v8824_v38 = vpop.xlane.xlu1 %2213  ;;  %3197 = vperm.xlu1 %4941, %v2931_v43   ;;  %v2345_v43 = vmul.f32 0.0051020407, %v8551_v15  ;;  %v2946_v15 = vmul.f32 %v5035_v45, %v2706_v20  ;;  %5048 = vrsqrt.f32 %v2463_v1  ;;  %v2699_v45 = vld [vmem:[%s11084_s1 + $0x160] sm:$0xff] }
 0x247   :  { %v8827_v63 = vpop.xlane.xlu0 %2209  ;;  %5050 = vrsqrt.f32 %v2474_v3  ;;  %v2480_v61 = vadd.f32 1e-05, %v2360_v26 }
 0x248   :  { %3252 = vperm.xlu0 %4940, %v2942_v16   ;;  %v2465_v28 = vadd.f32 1e-05, %v2345_v43  ;;  %v5041_v56 = vpop.eup %5040 }
 0x249   :  { %v5043_v43 = vpop.eup %5042  ;;  %v2939_v13 = vmul.f32 %v5041_v56, %v2699_v45  ;;  %v2712_v56 = vld [vmem:[%s11084_s1 + $0x1c8] sm:$0xff]  ;;  %v2362_v45 = vmul.f32 0.0051020407, %v8632_v36 }
 0x24a   :  { %v8836_v50 = vpop.xlane.xlu1 %2221  ;;  %3207 = vperm.xlu1 %4941, %v2933_v30   ;;  %v2347_v30 = vmul.f32 0.0051020407, %v8557_v5  ;;  %v2948_v5 = vmul.f32 %v5039_v32, %v2708_v47  ;;  %5052 = vrsqrt.f32 %v2465_v28  ;;  %v2701_v32 = vld [vmem:[%s11084_s1 + $0x170] sm:$0xff] }
 0x24b   :  { %v8839_v16 = vpop.xlane.xlu0 %2217  ;;  %5054 = vrsqrt.f32 %v2476_v9  ;;  %v2482_v26 = vadd.f32 1e-05, %v2362_v45 }
 0x24c   :  { %3262 = vperm.xlu0 %4940, %v2944_v12   ;;  %v2467_v20 = vadd.f32 1e-05, %v2347_v30  ;;  %v5045_v3 = vpop.eup %5044 }
 0x24d   :  { %v5047_v30 = vpop.eup %5046  ;;  %v2941_v29 = vmul.f32 %v5045_v3, %v2701_v32  ;;  %v2714_v3 = vld [vmem:[%s11084_s1 + $0x1d8] sm:$0xff]  ;;  %v2364_v32 = vmul.f32 0.0051020407, %v8644_v40 }
 0x24e   :  { %v8848_v14 = vpop.xlane.xlu1 %2229  ;;  %3217 = vperm.xlu1 %4941, %v2935_v27   ;;  %v2349_v27 = vmul.f32 0.0051020407, %v8566_v48  ;;  %v2950_v48 = vmul.f32 %v5043_v43, %v2710_v8  ;;  %5056 = vrsqrt.f32 %v2467_v20  ;;  %v2703_v43 = vld [vmem:[%s11084_s1 + $0x180] sm:$0xff] }
 0x24f   :  { %v8851_v12 = vpop.xlane.xlu0 %2225  ;;  %5058 = vrsqrt.f32 %v2478_v52  ;;  %v2484_v45 = vadd.f32 1e-05, %v2364_v32 }
 0x250   :  { %3272 = vperm.xlu0 %4940, %v2946_v15   ;;  %v2469_v47 = vadd.f32 1e-05, %v2349_v27  ;;  %v5049_v9 = vpop.eup %5048 }
 0x251   :  { %v5051_v27 = vpop.eup %5050  ;;  %v2943_v36 = vmul.f32 %v5049_v9, %v2703_v43  ;;  %v2716_v9 = vld [vmem:[%s11084_s1 + $0x1e8] sm:$0xff]  ;;  %v2366_v43 = vmul.f32 0.0051020407, %v8656_v58 }
 0x252   :  { %v8860_v1 = vpop.xlane.xlu1 %2237  ;;  %3227 = vperm.xlu1 %4941, %v2937_v24   ;;  %v2351_v24 = vmul.f32 0.0051020407, %v8575_v59  ;;  %v2952_v59 = vmul.f32 %v5047_v30, %v2712_v56  ;;  %5060 = vrsqrt.f32 %v2469_v47  ;;  %v2705_v30 = vld [vmem:[%s11084_s1 + $0x190] sm:$0xff] }
 0x253   :  { %v8863_v15 = vpop.xlane.xlu0 %2233  ;;  %5062 = vrsqrt.f32 %v2480_v61  ;;  %v2486_v32 = vadd.f32 1e-05, %v2366_v43 }
 0x254   :  { %3282 = vperm.xlu0 %4940, %v2948_v5   ;;  %v2471_v8 = vadd.f32 1e-05, %v2351_v24  ;;  %v5053_v52 = vpop.eup %5052 }
 0x255   :  { %v5055_v24 = vpop.eup %5054  ;;  %v2945_v40 = vmul.f32 %v5053_v52, %v2705_v30  ;;  %v2718_v52 = vld [vmem:[%s11084_s1 + $0x1f8] sm:$0xff]  ;;  %v2368_v30 = vmul.f32 0.0051020407, %v8668_v41 }
 0x256   :  { %v8872_v28 = vpop.xlane.xlu1 %2245  ;;  %3237 = vperm.xlu1 %4941, %v2939_v13   ;;  %v2353_v13 = vmul.f32 0.0051020407, %v8587_v17  ;;  %v2954_v17 = vmul.f32 %v5051_v27, %v2714_v3  ;;  %5064 = vrsqrt.f32 %v2471_v8  ;;  %v2707_v27 = vld [vmem:[%s11084_s1 + $0x1a0] sm:$0xff] }
 0x257   :  { %v8875_v5 = vpop.xlane.xlu0 %2241  ;;  %5066 = vrsqrt.f32 %v2482_v26  ;;  %v2488_v43 = vadd.f32 1e-05, %v2368_v30 }
 0x258   :  { %3292 = vperm.xlu0 %4940, %v2950_v48   ;;  %v2473_v56 = vadd.f32 1e-05, %v2353_v13  ;;  %v5057_v61 = vpop.eup %5056 }
 0x259   :  { %v5059_v13 = vpop.eup %5058  ;;  %v2947_v58 = vmul.f32 %v5057_v61, %v2707_v27  ;;  %v2720_v61 = vld [vmem:[%s11084_s1 + $0x208] sm:$0xff]  ;;  %v2370_v27 = vmul.f32 0.0051020407, %v8680_v53 }
 0x25a   :  { %v8884_v20 = vpop.xlane.xlu1 %2253  ;;  %3247 = vperm.xlu1 %4941, %v2941_v29   ;;  %v2355_v29 = vmul.f32 0.0051020407, %v8599_v51  ;;  %v2956_v51 = vmul.f32 %v5055_v24, %v2716_v9  ;;  %5068 = vrsqrt.f32 %v2473_v56  ;;  %v2709_v24 = vld [vmem:[%s11084_s1 + $0x1b0] sm:$0xff] }
 0x25b   :  { %v8887_v48 = vpop.xlane.xlu0 %2249  ;;  %5070 = vrsqrt.f32 %v2484_v45  ;;  %v2490_v30 = vadd.f32 1e-05, %v2370_v27 }
 0x25c   :  { %3302 = vperm.xlu0 %4940, %v2952_v59   ;;  %v2475_v3 = vadd.f32 1e-05, %v2355_v29  ;;  %v5061_v26 = vpop.eup %5060 }
 0x25d   :  { %v5063_v29 = vpop.eup %5062  ;;  %v2949_v41 = vmul.f32 %v5061_v26, %v2709_v24  ;;  %v2722_v26 = vld [vmem:[%s11084_s1 + $0x218] sm:$0xff]  ;;  %v2372_v24 = vmul.f32 0.0051020407, %v8692_v42 }
 0x25e   :  { %v8896_v47 = vpop.xlane.xlu1 %2261  ;;  %3257 = vperm.xlu1 %4941, %v2943_v36   ;;  %v2357_v36 = vmul.f32 0.0051020407, %v8611_v46  ;;  %v2958_v46 = vmul.f32 %v5059_v13, %v2718_v52  ;;  %5072 = vrsqrt.f32 %v2475_v3  ;;  %v2711_v13 = vld [vmem:[%s11084_s1 + $0x1c0] sm:$0xff] }
 0x25f   :  { %v8899_v59 = vpop.xlane.xlu0 %2257  ;;  %5074 = vrsqrt.f32 %v2486_v32  ;;  %v2492_v27 = vadd.f32 1e-05, %v2372_v24 }
 0x260   :  { %3312 = vperm.xlu0 %4940, %v2954_v17   ;;  %v2477_v9 = vadd.f32 1e-05, %v2357_v36  ;;  %v5065_v45 = vpop.eup %5064 }
 0x261   :  { %v5067_v36 = vpop.eup %5066  ;;  %v2951_v32 = vmul.f32 %v5065_v45, %v2711_v13  ;;  %v2724_v45 = vld [vmem:[%s11084_s1 + $0x228] sm:$0xff]  ;;  %v2374_v13 = vmul.f32 0.0051020407, %v8704_v37 }
 0x262   :  { %v8908_v8 = vpop.xlane.xlu1 %2269  ;;  %3267 = vperm.xlu1 %4941, %v2945_v40   ;;  %v2359_v40 = vmul.f32 0.0051020407, %v8623_v62  ;;  %v2960_v62 = vmul.f32 %v5063_v29, %v2720_v61  ;;  %5076 = vrsqrt.f32 %v2477_v9  ;;  %v2713_v29 = vld [vmem:[%s11084_s1 + $0x1d0] sm:$0xff] }
 0x263   :  { %v8911_v17 = vpop.xlane.xlu0 %2265  ;;  %5078 = vrsqrt.f32 %v2488_v43  ;;  %v2494_v24 = vadd.f32 1e-05, %v2374_v13 }
 0x264   :  { %3322 = vperm.xlu0 %4940, %v2956_v51   ;;  %v2479_v52 = vadd.f32 1e-05, %v2359_v40  ;;  %v5069_v53 = vpop.eup %5068 }
 0x265   :  { %v5071_v40 = vpop.eup %5070  ;;  %v2953_v42 = vmul.f32 %v5069_v53, %v2713_v29  ;;  %v2726_v53 = vld [vmem:[%s11084_s1 + $0x238] sm:$0xff]  ;;  %v2376_v29 = vmul.f32 0.0051020407, %v8716_v0 }
 0x266   :  { %v8920_v56 = vpop.xlane.xlu1 %2277  ;;  %3277 = vperm.xlu1 %4941, %v2947_v58   ;;  %v2361_v58 = vmul.f32 0.0051020407, %v8635_v39  ;;  %v2962_v39 = vmul.f32 %v5067_v36, %v2722_v26  ;;  %5080 = vrsqrt.f32 %v2479_v52  ;;  %v2964_v52 = vmul.f32 %v5071_v40, %v2724_v45 }
 0x267   :  { %v8923_v51 = vpop.xlane.xlu0 %2273  ;;  %5082 = vrsqrt.f32 %v2490_v30  ;;  %v2365_v26 = vmul.f32 0.0051020407, %v8659_v57  ;;  %v2367_v45 = vmul.f32 0.0051020407, %v8671_v34  ;;  %v2496_v13 = vadd.f32 1e-05, %v2376_v29 }
 0x268   :  { %3332 = vperm.xlu0 %4940, %v2958_v46   ;;  %v2481_v61 = vadd.f32 1e-05, %v2361_v58  ;;  %v5073_v43 = vpop.eup %5072 }
 0x26a   :  { %v8932_v3 = vpop.xlane.xlu1 %2285  ;;  %3287 = vperm.xlu1 %4941, %v2949_v41   ;;  %v2363_v41 = vmul.f32 0.0051020407, %v8647_v21  ;;  %v5075_v21 = vpop.eup %5074  ;;  %5084 = vrsqrt.f32 %v2481_v61 }
 0x26b   :  { %v8939_v46 = vpop.xlane.xlu0 %2281  ;;  %5086 = vrsqrt.f32 %v2492_v27  ;;  %v2966_v57 = vmul.f32 %v5075_v21, %v2726_v53  ;;  %v2369_v53 = vmul.f32 0.0051020407, %v8683_v7 }
 0x26c   :  { %3342 = vperm.xlu0 %4940, %v2960_v62   ;;  %v2715_v62 = vld [vmem:[%s11084_s1 + $0x1e0] sm:$0xff]  ;;  %v2483_v58 = vadd.f32 1e-05, %v2363_v41  ;;  %v5077_v30 = vpop.eup %5076  ;;  %v2485_v41 = vadd.f32 1e-05, %v2365_v26 }
 0x26d   :  { %v2955_v37 = vmul.f32 %v5073_v43, %v2715_v62  ;;  %v5079_v61 = vpop.eup %5078  ;;  %v2728_v43 = vld [vmem:[%s11084_s1 + $0x248] sm:$0xff]  ;;  %v2378_v62 = vmul.f32 0.0051020407, %v8728_v19  ;;  %v2487_v26 = vadd.f32 1e-05, %v2367_v45 }
 0x26e   :  { %v8944_v9 = vpop.xlane.xlu1 %2293  ;;  %3297 = vperm.xlu1 %4941, %v2951_v32   ;;  %5088 = vrsqrt.f32 %v2483_v58  ;;  %v2968_v34 = vmul.f32 %v5079_v61, %v2728_v43  ;;  %v2489_v45 = vadd.f32 1e-05, %v2369_v53  ;;  %v2371_v43 = vmul.f32 0.0051020407, %v8695_v18 }
 0x26f   :  { %v8957_v32 = vpop.xlane.xlu0 %2289  ;;  %5090 = vrsqrt.f32 %v2494_v24  ;;  %v2498_v29 = vadd.f32 1e-05, %v2378_v62 }
 0x270   :  { %3352 = vperm.xlu0 %4940, %v2962_v39   ;;  %v2717_v39 = vld [vmem:[%s11084_s1 + $0x1f0] sm:$0xff]  ;;  %v5081_v27 = vpop.eup %5080  ;;  %5092 = vrsqrt.f32 %v2485_v41  ;;  %v2491_v53 = vadd.f32 1e-05, %v2371_v43 }
 0x271   :  { %v2957_v0 = vmul.f32 %v5077_v30, %v2717_v39  ;;  %v5083_v58 = vpop.eup %5082  ;;  %v2730_v30 = vld [vmem:[%s11084_s1 + $0x258] sm:$0xff]  ;;  %5094 = vrsqrt.f32 %v2496_v13  ;;  %v2380_v39 = vmul.f32 0.0051020407, %v8740_v11 }
 0x272   :  { %v8954_v36 = vpop.permute.xlu1 %3022  ;;  %3307 = vperm.xlu1 %4941, %v2953_v42   ;;  %v2970_v7 = vmul.f32 %v5083_v58, %v2730_v30  ;;  %5096 = vrsqrt.f32 %v2487_v26  ;;  %v2373_v30 = vmul.f32 0.0051020407, %v8707_v31 }
 0x273   :  { %5098 = vrsqrt.f32 %v2498_v29  ;;  %v2500_v62 = vadd.f32 1e-05, %v2380_v39 }
 0x274   :  { %3362 = vperm.xlu0 %4940, %v2964_v52   ;;  %v2719_v52 = vld [vmem:[%s11084_s1 + $0x200] sm:$0xff]  ;;  %v5085_v24 = vpop.eup %5084  ;;  %5100 = vrsqrt.f32 %v2489_v45  ;;  %v2493_v43 = vadd.f32 1e-05, %v2373_v30 }
 0x275   :  { %v2959_v19 = vmul.f32 %v5081_v27, %v2719_v52  ;;  %v5087_v41 = vpop.eup %5086  ;;  %v2732_v27 = vld [vmem:[%s11084_s1 + $0x268] sm:$0xff]  ;;  %v2382_v52 = vmul.f32 0.0051020407, %v8752_v54  ;;  %5102 = vrsqrt.f32 %v2500_v62 }
 0x276   :  { %v8966_v40 = vpop.permute.xlu1 %3027  ;;  %3317 = vperm.xlu1 %4941, %v2955_v37   ;;  %v2972_v18 = vmul.f32 %v5087_v41, %v2732_v27  ;;  %5104 = vrsqrt.f32 %v2491_v53  ;;  %v11643_v27 = vld [vmem:[#allocation219_spill] sm:$0xff] }
 0x277   :  { %v8969_v42 = vpop.permute.xlu0 %3017  ;;  %v2502_v39 = vadd.f32 1e-05, %v2382_v52 }
 0x278   :  { %3372 = vperm.xlu0 %4940, %v2966_v57   ;;  %v2721_v57 = vld [vmem:[%s11084_s1 + $0x210] sm:$0xff]  ;;  %v5089_v13 = vpop.eup %5088 }
 0x279   :  { %v2961_v11 = vmul.f32 %v5085_v24, %v2721_v57  ;;  %v5091_v26 = vpop.eup %5090  ;;  %v2734_v24 = vld [vmem:[%s11084_s1 + $0x278] sm:$0xff]  ;;  %v2384_v57 = vmul.f32 0.0051020407, %v8764_v55  ;;  %5106 = vrsqrt.f32 %v2502_v39 }
 0x27a   :  { %v8978_v21 = vpop.permute.xlu1 %3032  ;;  %3327 = vperm.xlu1 %4941, %v2957_v0   ;;  %v5093_v29 = vpop.eup %5092  ;;  %v2974_v31 = vmul.f32 %v5091_v26, %v2734_v24  ;;  %v2727_v26 = vld [vmem:[%s11084_s1 + $0x240] sm:$0xff]  ;;  %5108 = vrsqrt.f32 %v2493_v43 }
 0x27b   :  { %v8981_v37 = vpop.permute.xlu0 %3062  ;;  %v5095_v45 = vpop.eup %5094  ;;  %v2504_v52 = vadd.f32 1e-05, %v2384_v57 }
 0x27c   :  { %3382 = vperm.xlu0 %4940, %v2968_v34   ;;  %v2723_v34 = vld [vmem:[%s11084_s1 + $0x220] sm:$0xff]  ;;  %v5097_v62 = vpop.eup %5096 }
 0x27d   :  { %v2963_v54 = vmul.f32 %v5089_v13, %v2723_v34  ;;  %v2736_v13 = vld [vmem:[%s11084_s1 + $0x288] sm:$0xff]  ;;  %v2386_v34 = vmul.f32 0.0051020407, %v8776_v49  ;;  %v5099_v24 = vpop.eup %5098  ;;  %v2967_v49 = vmul.f32 %v5097_v62, %v2727_v26  ;;  %5110 = vrsqrt.f32 %v2504_v52 }
 0x27e   :  { %v8990_v61 = vpop.permute.xlu1 %3037  ;;  %3337 = vperm.xlu1 %4941, %v2959_v19   ;;  %v2976_v30 = vmul.f32 %v5095_v45, %v2736_v13  ;;  %v5101_v39 = vpop.eup %5100  ;;  %v2729_v45 = vld [vmem:[%s11084_s1 + $0x250] sm:$0xff]  ;;  %v2740_v62 = vld [vmem:[%s11084_s1 + $0x2a8] sm:$0xff]  ;;  %v2390_v26 = vmul.f32 0.0051020407, %v8800_v10 }
 0x27f   :  { %v8993_v0 = vpop.permute.xlu0 %3072  ;;  %v2506_v57 = vadd.f32 1e-05, %v2386_v34 }
 0x280   :  { %3392 = vperm.xlu0 %4940, %v2970_v7   ;;  %v2725_v7 = vld [vmem:[%s11084_s1 + $0x230] sm:$0xff] }
 0x281   :  { %v2965_v55 = vmul.f32 %v5093_v29, %v2725_v7  ;;  %v2738_v29 = vld [vmem:[%s11084_s1 + $0x298] sm:$0xff]  ;;  %v2388_v7 = vmul.f32 0.0051020407, %v8788_v25  ;;  %v2969_v25 = vmul.f32 %v5101_v39, %v2729_v45  ;;  %v2392_v45 = vmul.f32 0.0051020407, %v8812_v2 }
 0x282   :  { %v9002_v58 = vpop.permute.xlu1 %3042  ;;  %3347 = vperm.xlu1 %4941, %v2961_v11   ;;  %v2375_v11 = vmul.f32 0.0051020407, %v11643_v27  ;;  %v2377_v27 = vmul.f32 0.0051020407, %v8731_v6  ;;  %v2978_v6 = vmul.f32 %v5099_v24, %v2738_v29  ;;  %v2731_v24 = vld [vmem:[%s11084_s1 + $0x260] sm:$0xff]  ;;  %v2742_v39 = vld [vmem:[%s11084_s1 + $0x2b8] sm:$0xff] }
 0x283   :  { %v9005_v19 = vpop.permute.xlu0 %3082  ;;  %v2508_v34 = vadd.f32 1e-05, %v2388_v7  ;;  %v2510_v7 = vadd.f32 1e-05, %v2390_v26  ;;  %v2512_v26 = vadd.f32 1e-05, %v2392_v45 }
 0x284   :  { %3402 = vperm.xlu0 %4940, %v2972_v18   ;;  %v2497_v13 = vadd.f32 1e-05, %v2377_v27 }
 0x286   :  { %v9014_v41 = vpop.permute.xlu1 %3047  ;;  %3357 = vperm.xlu1 %4941, %v2963_v54   ;;  %v2495_v54 = vadd.f32 1e-05, %v2375_v11  ;;  %v5103_v11 = vpop.eup %5102 }
 0x287   :  { %v9017_v18 = vpop.permute.xlu0 %3092  ;;  %v5105_v52 = vpop.eup %5104 }
 0x288   :  { %3412 = vperm.xlu0 %4940, %v2974_v31   ;;  %5112 = vrsqrt.f32 %v2495_v54  ;;  %v5107_v27 = vpop.eup %5106  ;;  %v2971_v10 = vmul.f32 %v5105_v52, %v2731_v24  ;;  %v2744_v52 = vld [vmem:[%s11084_s1 + $0x2c8] sm:$0xff]  ;;  %v2394_v24 = vmul.f32 0.0051020407, %v8824_v38 }
 0x289   :  { %5114 = vrsqrt.f32 %v2506_v57  ;;  %v5109_v57 = vpop.eup %5108 }
 0x28a   :  { %v9026_v53 = vpop.permute.xlu1 %3052  ;;  %3367 = vperm.xlu1 %4941, %v2965_v55   ;;  %v2379_v55 = vmul.f32 0.0051020407, %v8743_v44  ;;  %v2980_v44 = vmul.f32 %v5103_v11, %v2740_v62  ;;  %5116 = vrsqrt.f32 %v2497_v13  ;;  %v2733_v11 = vld [vmem:[%s11084_s1 + $0x270] sm:$0xff]  ;;  %v2514_v45 = vadd.f32 1e-05, %v2394_v24 }
 0x28b   :  { %v9029_v31 = vpop.permute.xlu0 %3102  ;;  %5118 = vrsqrt.f32 %v2508_v34  ;;  %v2973_v2 = vmul.f32 %v5109_v57, %v2733_v11  ;;  %v2746_v57 = vld [vmem:[%s11084_s1 + $0x2d8] sm:$0xff]  ;;  %v2396_v11 = vmul.f32 0.0051020407, %v8836_v50 }
 0x28c   :  { %3422 = vperm.xlu0 %4940, %v2976_v30   ;;  %v2499_v29 = vadd.f32 1e-05, %v2379_v55  ;;  %v5111_v55 = vpop.eup %5110 }
 0x28d   :  { %v2516_v24 = vadd.f32 1e-05, %v2396_v11 }
 0x28e   :  { %v9038_v43 = vpop.permute.xlu1 %3057  ;;  %3377 = vperm.xlu1 %4941, %v2967_v49   ;;  %v2381_v49 = vmul.f32 0.0051020407, %v8755_v22  ;;  %v2982_v22 = vmul.f32 %v5107_v27, %v2742_v39  ;;  %5120 = vrsqrt.f32 %v2499_v29  ;;  %v2735_v27 = vld [vmem:[%s11084_s1 + $0x280] sm:$0xff] }
 0x28f   :  { %v9041_v30 = vpop.permute.xlu0 %3112  ;;  %5122 = vrsqrt.f32 %v2510_v7 }
 0x290   :  { %3432 = vperm.xlu0 %4940, %v2978_v6   ;;  %v2501_v62 = vadd.f32 1e-05, %v2381_v49 }
 0x292   :  { %v9050_v54 = vpop.permute.xlu1 %3067  ;;  %3387 = vperm.xlu1 %4941, %v2969_v25   ;;  %v2383_v25 = vmul.f32 0.0051020407, %v8767_v33  ;;  %v5113_v34 = vpop.eup %5112  ;;  %v2984_v33 = vmul.f32 %v5111_v55, %v2744_v52  ;;  %5124 = vrsqrt.f32 %v2501_v62  ;;  %v2737_v55 = vld [vmem:[%s11084_s1 + $0x290] sm:$0xff] }
 0x293   :  { %v9053_v6 = vpop.permute.xlu0 %3122  ;;  %v5115_v49 = vpop.eup %5114  ;;  %v2975_v38 = vmul.f32 %v5113_v34, %v2735_v27  ;;  %5126 = vrsqrt.f32 %v2512_v26  ;;  %v2748_v34 = vld [vmem:[%s11084_s1 + $0x2e8] sm:$0xff]  ;;  %v2398_v27 = vmul.f32 0.0051020407, %v8848_v14 }
 0x294   :  { %3442 = vperm.xlu0 %4940, %v2980_v44   ;;  %v2503_v39 = vadd.f32 1e-05, %v2383_v25  ;;  %v5117_v7 = vpop.eup %5116 }
 0x295   :  { %v5119_v25 = vpop.eup %5118  ;;  %v2977_v50 = vmul.f32 %v5117_v7, %v2737_v55  ;;  %v2750_v7 = vld [vmem:[%s11084_s1 + $0x2f8] sm:$0xff]  ;;  %v2518_v11 = vadd.f32 1e-05, %v2398_v27  ;;  %v2400_v55 = vmul.f32 0.0051020407, %v8860_v1 }
 0x296   :  { %v9062_v13 = vpop.permute.xlu1 %3077  ;;  %3397 = vperm.xlu1 %4941, %v2971_v10   ;;  %v2385_v10 = vmul.f32 0.0051020407, %v8779_v4  ;;  %v2986_v4 = vmul.f32 %v5115_v49, %v2746_v57  ;;  %5128 = vrsqrt.f32 %v2503_v39  ;;  %v2739_v49 = vld [vmem:[%s11084_s1 + $0x2a0] sm:$0xff] }
 0x297   :  { %v9065_v44 = vpop.permute.xlu0 %3132  ;;  %5130 = vrsqrt.f32 %v2514_v45  ;;  %v2520_v27 = vadd.f32 1e-05, %v2400_v55 }
 0x298   :  { %3452 = vperm.xlu0 %4940, %v2982_v22   ;;  %v2505_v52 = vadd.f32 1e-05, %v2385_v10  ;;  %v5121_v26 = vpop.eup %5120 }
 0x299   :  { %v5123_v10 = vpop.eup %5122  ;;  %v2979_v14 = vmul.f32 %v5121_v26, %v2739_v49  ;;  %v2752_v26 = vld [vmem:[%s11084_s1 + $0x308] sm:$0xff]  ;;  %v2402_v49 = vmul.f32 0.0051020407, %v8872_v28 }
 0x29a   :  { %v9074_v29 = vpop.permute.xlu1 %3087  ;;  %3407 = vperm.xlu1 %4941, %v2973_v2   ;;  %v2387_v2 = vmul.f32 0.0051020407, %v8791_v60  ;;  %v2988_v60 = vmul.f32 %v5119_v25, %v2748_v34  ;;  %5132 = vrsqrt.f32 %v2505_v52  ;;  %v2741_v25 = vld [vmem:[%s11084_s1 + $0x2b0] sm:$0xff] }
 0x29b   :  { %v9077_v22 = vpop.permute.xlu0 %3142  ;;  %5134 = vrsqrt.f32 %v2516_v24  ;;  %v2522_v55 = vadd.f32 1e-05, %v2402_v49 }
 0x29c   :  { %3462 = vperm.xlu0 %4940, %v2984_v33   ;;  %v2507_v57 = vadd.f32 1e-05, %v2387_v2  ;;  %v5125_v45 = vpop.eup %5124 }
 0x29d   :  { %v5127_v2 = vpop.eup %5126  ;;  %v2981_v1 = vmul.f32 %v5125_v45, %v2741_v25  ;;  %v2754_v45 = vld [vmem:[%s11084_s1 + $0x318] sm:$0xff]  ;;  %v2404_v25 = vmul.f32 0.0051020407, %v8884_v20 }
 0x29e   :  { %v9086_v62 = vpop.permute.xlu1 %3097  ;;  %3417 = vperm.xlu1 %4941, %v2975_v38   ;;  %v2389_v38 = vmul.f32 0.0051020407, %v8803_v35  ;;  %v2990_v35 = vmul.f32 %v5123_v10, %v2750_v7  ;;  %5136 = vrsqrt.f32 %v2507_v57  ;;  %v2743_v10 = vld [vmem:[%s11084_s1 + $0x2c0] sm:$0xff] }
 0x29f   :  { %v9089_v33 = vpop.permute.xlu0 %3152  ;;  %5138 = vrsqrt.f32 %v2518_v11  ;;  %v2524_v49 = vadd.f32 1e-05, %v2404_v25 }
 0x2a0   :  { %3472 = vperm.xlu0 %4940, %v2986_v4   ;;  %v2509_v34 = vadd.f32 1e-05, %v2389_v38  ;;  %v5129_v24 = vpop.eup %5128 }
 0x2a1   :  { %v5131_v38 = vpop.eup %5130  ;;  %v2983_v28 = vmul.f32 %v5129_v24, %v2743_v10  ;;  %v2756_v24 = vld [vmem:[%s11084_s1 + $0x328] sm:$0xff]  ;;  %v2406_v10 = vmul.f32 0.0051020407, %v8896_v47 }
 0x2a2   :  { %v9098_v39 = vpop.permute.xlu1 %3107  ;;  %3427 = vperm.xlu1 %4941, %v2977_v50   ;;  %v2391_v50 = vmul.f32 0.0051020407, %v8815_v23  ;;  %v2992_v23 = vmul.f32 %v5127_v2, %v2752_v26  ;;  %5140 = vrsqrt.f32 %v2509_v34  ;;  %v2745_v2 = vld [vmem:[%s11084_s1 + $0x2d0] sm:$0xff] }
 0x2a3   :  { %v9101_v4 = vpop.permute.xlu0 %3162  ;;  %5142 = vrsqrt.f32 %v2520_v27  ;;  %v2526_v25 = vadd.f32 1e-05, %v2406_v10 }
 0x2a4   :  { %3482 = vperm.xlu0 %4940, %v2988_v60   ;;  %v2511_v7 = vadd.f32 1e-05, %v2391_v50  ;;  %v5133_v11 = vpop.eup %5132 }
 0x2a5   :  { %v5135_v50 = vpop.eup %5134  ;;  %v2985_v20 = vmul.f32 %v5133_v11, %v2745_v2  ;;  %v2758_v11 = vld [vmem:[%s11084_s1 + $0x338] sm:$0xff]  ;;  %v2408_v2 = vmul.f32 0.0051020407, %v8908_v8 }
 0x2a6   :  { %v9110_v52 = vpop.permute.xlu1 %3117  ;;  %3437 = vperm.xlu1 %4941, %v2979_v14   ;;  %v2393_v14 = vmul.f32 0.0051020407, %v8827_v63  ;;  %v2994_v63 = vmul.f32 %v5131_v38, %v2754_v45  ;;  %5144 = vrsqrt.f32 %v2511_v7  ;;  %v2747_v38 = vld [vmem:[%s11084_s1 + $0x2e0] sm:$0xff] }
 0x2a7   :  { %v9113_v60 = vpop.permute.xlu0 %3172  ;;  %5146 = vrsqrt.f32 %v2522_v55  ;;  %v2528_v10 = vadd.f32 1e-05, %v2408_v2 }
 0x2a8   :  { %3492 = vperm.xlu0 %4940, %v2990_v35   ;;  %v2513_v26 = vadd.f32 1e-05, %v2393_v14  ;;  %v5137_v27 = vpop.eup %5136 }
 0x2a9   :  { %v5139_v14 = vpop.eup %5138  ;;  %v2987_v47 = vmul.f32 %v5137_v27, %v2747_v38  ;;  %v2760_v27 = vld [vmem:[%s11084_s1 + $0x348] sm:$0xff]  ;;  %v2410_v38 = vmul.f32 0.0051020407, %v8920_v56 }
 0x2aa   :  { %v9122_v57 = vpop.permute.xlu1 %3127  ;;  %3447 = vperm.xlu1 %4941, %v2981_v1   ;;  %v2395_v1 = vmul.f32 0.0051020407, %v8839_v16  ;;  %v2996_v16 = vmul.f32 %v5135_v50, %v2756_v24  ;;  %5148 = vrsqrt.f32 %v2513_v26  ;;  %v2749_v50 = vld [vmem:[%s11084_s1 + $0x2f0] sm:$0xff] }
 0x2ab   :  { %v9125_v35 = vpop.permute.xlu0 %3182  ;;  %5150 = vrsqrt.f32 %v2524_v49  ;;  %v2530_v2 = vadd.f32 1e-05, %v2410_v38 }
 0x2ac   :  { %3502 = vperm.xlu0 %4940, %v2992_v23   ;;  %v2515_v45 = vadd.f32 1e-05, %v2395_v1  ;;  %v5141_v55 = vpop.eup %5140 }
 0x2ad   :  { %v5143_v1 = vpop.eup %5142  ;;  %v2989_v8 = vmul.f32 %v5141_v55, %v2749_v50  ;;  %v2762_v55 = vld [vmem:[%s11084_s1 + $0x358] sm:$0xff]  ;;  %v2412_v50 = vmul.f32 0.0051020407, %v8932_v3 }
 0x2ae   :  { %v9134_v34 = vpop.permute.xlu1 %3137  ;;  %3457 = vperm.xlu1 %4941, %v2983_v28   ;;  %v2397_v28 = vmul.f32 0.0051020407, %v8851_v12  ;;  %v2998_v12 = vmul.f32 %v5139_v14, %v2758_v11  ;;  %5152 = vrsqrt.f32 %v2515_v45  ;;  %v2751_v14 = vld [vmem:[%s11084_s1 + $0x300] sm:$0xff] }
 0x2af   :  { %v9137_v23 = vpop.permute.xlu0 %3192  ;;  %5154 = vrsqrt.f32 %v2526_v25  ;;  %v2532_v38 = vadd.f32 1e-05, %v2412_v50 }
 0x2b0   :  { %3512 = vperm.xlu0 %4940, %v2994_v63   ;;  %v2517_v24 = vadd.f32 1e-05, %v2397_v28  ;;  %v5145_v49 = vpop.eup %5144 }
 0x2b1   :  { %v5147_v28 = vpop.eup %5146  ;;  %v2991_v56 = vmul.f32 %v5145_v49, %v2751_v14  ;;  %v2764_v49 = vld [vmem:[%s11084_s1 + $0x368] sm:$0xff]  ;;  %v2414_v14 = vmul.f32 0.0051020407, %v8944_v9 }
 0x2b2   :  { %v9146_v7 = vpop.permute.xlu1 %3147  ;;  %3467 = vperm.xlu1 %4941, %v2985_v20   ;;  %v2399_v20 = vmul.f32 0.0051020407, %v8863_v15  ;;  %v3000_v15 = vmul.f32 %v5143_v1, %v2760_v27  ;;  %5156 = vrsqrt.f32 %v2517_v24  ;;  %v2753_v1 = vld [vmem:[%s11084_s1 + $0x310] sm:$0xff] }
 0x2b3   :  { %v9149_v63 = vpop.permute.xlu0 %3202  ;;  %5158 = vrsqrt.f32 %v2528_v10  ;;  %v2534_v50 = vadd.f32 1e-05, %v2414_v14 }
 0x2b4   :  { %3522 = vperm.xlu0 %4940, %v2996_v16   ;;  %v2519_v11 = vadd.f32 1e-05, %v2399_v20  ;;  %v5149_v25 = vpop.eup %5148 }
 0x2b5   :  { %v5151_v20 = vpop.eup %5150  ;;  %v2993_v3 = vmul.f32 %v5149_v25, %v2753_v1  ;;  %v2766_v25 = vld [vmem:[%s11084_s1 + $0x378] sm:$0xff]  ;;  %v2757_v1 = vld [vmem:[%s11084_s1 + $0x330] sm:$0xff] }
 0x2b6   :  { %v9158_v26 = vpop.permute.xlu1 %3157  ;;  %3477 = vperm.xlu1 %4941, %v2987_v47   ;;  %v2401_v47 = vmul.f32 0.0051020407, %v8875_v5  ;;  %v3002_v5 = vmul.f32 %v5147_v28, %v2762_v55  ;;  %5160 = vrsqrt.f32 %v2519_v11  ;;  %v2755_v28 = vld [vmem:[%s11084_s1 + $0x320] sm:$0xff] }
 0x2b7   :  { %v9161_v16 = vpop.permute.xlu0 %3212  ;;  %5162 = vrsqrt.f32 %v2530_v2 }
 0x2b8   :  { %3532 = vperm.xlu0 %4940, %v2998_v12   ;;  %v2521_v27 = vadd.f32 1e-05, %v2401_v47  ;;  %v5153_v10 = vpop.eup %5152 }
 0x2b9   :  { %v5155_v47 = vpop.eup %5154  ;;  %v2995_v9 = vmul.f32 %v5153_v10, %v2755_v28  ;;  %v2768_v10 = vld [vmem:[%s11084_s1 + $0x388] sm:$0xff]  ;;  %v2759_v28 = vld [vmem:[%s11084_s1 + $0x340] sm:$0xff] }
 0x2ba   :  { %v9170_v45 = vpop.permute.xlu1 %3167  ;;  %3487 = vperm.xlu1 %4941, %v2989_v8   ;;  %v2403_v8 = vmul.f32 0.0051020407, %v8887_v48  ;;  %v3004_v48 = vmul.f32 %v5151_v20, %v2764_v49  ;;  %5164 = vrsqrt.f32 %v2521_v27  ;;  %v3006_v27 = vmul.f32 %v5155_v47, %v2766_v25 }
 0x2bb   :  { %v9173_v12 = vpop.permute.xlu0 %3222  ;;  %5166 = vrsqrt.f32 %v2532_v38  ;;  %v2407_v49 = vmul.f32 0.0051020407, %v8911_v17 }
 0x2bc   :  { %3542 = vperm.xlu0 %4940, %v3000_v15   ;;  %v2523_v55 = vadd.f32 1e-05, %v2403_v8  ;;  %v5157_v2 = vpop.eup %5156 }
 0x2bd   :  { %v2997_v38 = vmul.f32 %v5157_v2, %v2757_v1  ;;  %v2527_v17 = vadd.f32 1e-05, %v2407_v49  ;;  %v2761_v1 = vld [vmem:[%s11084_s1 + $0x350] sm:$0xff]  ;;  %v2411_v49 = vmul.f32 0.0051020407, %v8939_v46 }
 0x2be   :  { %v9182_v24 = vpop.permute.xlu1 %3177  ;;  %3497 = vperm.xlu1 %4941, %v2991_v56   ;;  %v2405_v56 = vmul.f32 0.0051020407, %v8899_v59  ;;  %v5159_v59 = vpop.eup %5158  ;;  %5168 = vrsqrt.f32 %v2523_v55 }
 0x2bf   :  { %v9185_v15 = vpop.permute.xlu0 %3232  ;;  %5170 = vrsqrt.f32 %v2534_v50  ;;  %v3008_v47 = vmul.f32 %v5159_v59, %v2768_v10  ;;  %v2531_v46 = vadd.f32 1e-05, %v2411_v49 }
 0x2c0   :  { %3552 = vperm.xlu0 %4940, %v3002_v5   ;;  %v2525_v8 = vadd.f32 1e-05, %v2405_v56  ;;  %v5161_v14 = vpop.eup %5160  ;;  %v2409_v56 = vmul.f32 0.0051020407, %v8923_v51 }
 0x2c1   :  { %v5163_v55 = vpop.eup %5162  ;;  %v2999_v2 = vmul.f32 %v5161_v14, %v2759_v28 }
 0x2c2   :  { %v9194_v11 = vpop.permute.xlu1 %3187  ;;  %3507 = vperm.xlu1 %4941, %v2993_v3   ;;  %5172 = vrsqrt.f32 %v2525_v8  ;;  %v2529_v51 = vadd.f32 1e-05, %v2409_v56  ;;  %v2413_v56 = vmul.f32 0.0051020407, %v8957_v32 }
 0x2c3   :  { %v9197_v5 = vpop.permute.xlu0 %3242  ;;  %5174 = vrsqrt.f32 %v2527_v17 }
 0x2c4   :  { %3562 = vperm.xlu0 %4940, %v3004_v48   ;;  %v5165_v50 = vpop.eup %5164  ;;  %5176 = vrsqrt.f32 %v2529_v51  ;;  %v2533_v51 = vadd.f32 1e-05, %v2413_v56 }
 0x2c5   :  { %v5167_v8 = vpop.eup %5166  ;;  %v3001_v14 = vmul.f32 %v5165_v50, %v2761_v1  ;;  %v2774_v50 = vld [vmem:[%s11084_s1 + $0x3b8] sm:$0xff]  ;;  %5178 = vrsqrt.f32 %v2531_v46 }
 0x2c6   :  { %v9205_v20 = vpop.permute.xlu1 %3197  ;;  %3517 = vperm.xlu1 %4941, %v2995_v9   ;;  %v2770_v9 = vld [vmem:[%s11084_s1 + $0x398] sm:$0xff]  ;;  %5180 = vrsqrt.f32 %v2533_v51 }
 0x2c7   :  { %v9208_v3 = vpop.permute.xlu0 %3252  ;;  %v3010_v59 = vmul.f32 %v5163_v55, %v2770_v9 }
 0x2c8   :  { %3572 = vperm.xlu0 %4940, %v3006_v27   ;;  %v5169_v28 = vpop.eup %5168 }
 0x2c9   :  { %v5171_v17 = vpop.eup %5170 }
 0x2ca   :  { %v9216_v48 = vpop.permute.xlu1 %3207  ;;  %3527 = vperm.xlu1 %4941, %v2997_v38   ;;  %v2772_v38 = vld [vmem:[%s11084_s1 + $0x3a8] sm:$0xff] }
 0x2cb   :  { %v9219_v25 = vpop.permute.xlu0 %3262  ;;  %v3012_v55 = vmul.f32 %v5167_v8, %v2772_v38  ;;  %v3014_v8 = vmul.f32 %v5171_v17, %v2774_v50  ;;  %v2769_v50 = vld [vmem:[%s11084_s1 + $0x390] sm:$0xff] }
 0x2cc   :  { %3582 = vperm.xlu0 %4940, %v3008_v47   ;;  %v2763_v47 = vld [vmem:[%s11084_s1 + $0x360] sm:$0xff] }
 0x2cd   :  { %v3003_v1 = vmul.f32 %v5169_v28, %v2763_v47  ;;  %v2776_v28 = vld [vmem:[%s11085_s2 + $0x8] sm:$0xff]  ;;  %v2767_v47 = vld [vmem:[%s11084_s1 + $0x380] sm:$0xff] }
 0x2ce   :  { %v9227_v27 = vpop.permute.xlu1 %3217  ;;  %3537 = vperm.xlu1 %4941, %v2999_v2  }
 0x2cf   :  { %v9230_v10 = vpop.permute.xlu0 %3272 }
 0x2d0   :  { %3592 = vperm.xlu0 %4940, %v3010_v59   ;;  %v5173_v59 = vpop.eup %5172 }
 0x2d1   :  { %v5175_v38 = vpop.eup %5174 }
 0x2d2   :  { %v9238_v2 = vpop.permute.xlu1 %3227  ;;  %3547 = vperm.xlu1 %4941, %v3001_v14   ;;  %v3007_v46 = vmul.f32 %v5175_v38, %v2767_v47  ;;  %v5177_v56 = vpop.eup %5176  ;;  %v2771_v38 = vld [vmem:[%s11084_s1 + $0x3a0] sm:$0xff] }
 0x2d3   :  { %11644 = vst [vmem:[#allocation142_spill] sm:$0xff] %v9238_v2  ;;  %v9241_v9 = vpop.permute.xlu0 %3282  ;;  %v2765_v2 = vld [vmem:[%s11084_s1 + $0x370] sm:$0xff]  ;;  %v5179_v51 = vpop.eup %5178 }
 0x2d4   :  { %3602 = vperm.xlu0 %4940, %v3012_v55   ;;  %v3005_v49 = vmul.f32 %v5173_v59, %v2765_v2  ;;  %v2778_v2 = vld [vmem:[%s11085_s2 + $0x18] sm:$0xff] }
 0x2d6   :  { %v9249_v14 = vpop.permute.xlu1 %3237  ;;  %3557 = vperm.xlu1 %4941, %v3003_v1  }
 0x2d7   :  { %v9251_v32 = vpop.permute.xlu0 %3292 }
 0x2d8   :  { %3612 = vperm.xlu0 %4940, %v3014_v8   ;;  %v3009_v8 = vmul.f32 %v5177_v56, %v2769_v50  ;;  %v2782_v56 = vld [vmem:[%s11085_s2 + $0x38] sm:$0xff] }
 0x2da   :  { %v9259_v55 = vpop.permute.xlu1 %3247  ;;  %3567 = vperm.xlu1 %4941, %v3005_v49   ;;  %v2780_v49 = vld [vmem:[%s11085_s2 + $0x28] sm:$0xff] }
 0x2db   :  { %11645 = vst [vmem:[#allocation219_spill] sm:$0xff] %v9259_v55  ;;  %v9261_v17 = vpop.permute.xlu0 %3302  ;;  %v11712_v55 = vld [vmem:[#allocation5_spill] sm:$0xff] }
 0x2dc   :  { %11646 = vst [vmem:[#allocation244_spill] sm:$0xff] %v9261_v17  ;;  %3862 = vperm.xlu0 %4940, %v2776_v28   ;;  %v11711_v17 = vld [vmem:[#allocation10_spill] sm:$0xff] }
 0x2de   :  { %v9269_v1 = vpop.permute.xlu1 %3257  ;;  %3577 = vperm.xlu1 %4941, %v3007_v46   ;;  %v3011_v46 = vmul.f32 %v5179_v51, %v2771_v38  ;;  %v2784_v51 = vld [vmem:[%s11085_s2 + $0x48] sm:$0xff] }
 0x2df   :  { %11647 = vst [vmem:[#allocation245_spill] sm:$0xff] %v9269_v1  ;;  %v9271_v59 = vpop.permute.xlu0 %3312  ;;  %v5181_v1 = vpop.eup %5180 }
 0x2e0   :  { %11648 = vst [vmem:[#allocation246_spill] sm:$0xff] %v9271_v59  ;;  %3872 = vperm.xlu0 %4940, %v2778_v2   ;;  %v2773_v2 = vld [vmem:[%s11084_s1 + $0x3b0] sm:$0xff] }
 0x2e2   :  { %v9279_v28 = vpop.permute.xlu1 %3267  ;;  %3587 = vperm.xlu1 %4941, %v3009_v8   ;;  %v3013_v8 = vmul.f32 %v5181_v1, %v2773_v2  ;;  %v2777_v2 = vld [vmem:[%s11085_s2 + $0x10] sm:$0xff] }
 0x2e3   :  { %11649 = vst [vmem:[#allocation247_spill] sm:$0xff] %v9279_v28  ;;  %v9281_v47 = vpop.permute.xlu0 %3322  ;;  %v2842_v28 = vld [vmem:[%s11085_s2 + $0x218] sm:$0xff] }
 0x2e4   :  { %11650 = vst [vmem:[#allocation248_spill] sm:$0xff] %v9281_v47  ;;  %3882 = vperm.xlu0 %4940, %v2780_v49   ;;  %v2775_v47 = vld [vmem:[%s11085_s2] sm:$0xff] }
 0x2e6   :  { %v9289_v50 = vpop.permute.xlu1 %3277  ;;  %3597 = vperm.xlu1 %4941, %v3011_v46   ;;  %v2786_v46 = vld [vmem:[%s11085_s2 + $0x58] sm:$0xff] }
 0x2e7   :  { %11651 = vst [vmem:[#allocation249_spill] sm:$0xff] %v9289_v50  ;;  %v9291_v59 = vpop.permute.xlu0 %3332 }
 0x2e8   :  { %11652 = vst [vmem:[#allocation250_spill] sm:$0xff] %v9291_v59  ;;  %3892 = vperm.xlu0 %4940, %v2782_v56  }
 0x2ea   :  { %v9296_v49 = vpop.permute.xlu1 %3287  ;;  %3607 = vperm.xlu1 %4941, %v3013_v8   ;;  %v2788_v8 = vld [vmem:[%s11085_s2 + $0x68] sm:$0xff] }
 0x2eb   :  { %11653 = vst [vmem:[#allocation251_spill] sm:$0xff] %v9296_v49  ;;  %v9298_v38 = vpop.permute.xlu0 %3342  ;;  %v11710_v49 = vld [vmem:[#allocation2_spill] sm:$0xff] }
 0x2ec   :  { %11654 = vst [vmem:[#allocation252_spill] sm:$0xff] %v9298_v38  ;;  %3902 = vperm.xlu0 %4940, %v2784_v51   ;;  %v3618_v59 = vmul.f32 %v8954_v36, %v11710_v49 }
 0x2ee   :  { %v9306_v56 = vpop.permute.xlu1 %3297  ;;  %3857 = vperm.xlu1 %4941, %v2775_v47   ;;  %v2779_v47 = vld [vmem:[%s11085_s2 + $0x20] sm:$0xff] }
 0x2ef   :  { %11655 = vst [vmem:[#allocation253_spill] sm:$0xff] %v9306_v56  ;;  %v9308_v1 = vpop.permute.xlu0 %3352 }
 0x2f0   :  { %11656 = vst [vmem:[#allocation254_spill] sm:$0xff] %v9308_v1  ;;  %3912 = vperm.xlu0 %4940, %v2786_v46   ;;  %v2790_v1 = vld [vmem:[%s11085_s2 + $0x78] sm:$0xff] }
 0x2f2   :  { %v9316_v38 = vpop.permute.xlu1 %3307  ;;  %3867 = vperm.xlu1 %4941, %v2777_v2   ;;  %v2781_v2 = vld [vmem:[%s11085_s2 + $0x30] sm:$0xff] }
 0x2f3   :  { %11657 = vst [vmem:[#allocation255_spill] sm:$0xff] %v9316_v38  ;;  %v9318_v51 = vpop.permute.xlu0 %3362 }
 0x2f4   :  { %11658 = vst [vmem:[#allocation256_spill] sm:$0xff] %v9318_v51  ;;  %3922 = vperm.xlu0 %4940, %v2788_v8   ;;  %v2792_v51 = vld [vmem:[%s11085_s2 + $0x88] sm:$0xff] }
 0x2f6   :  { %v9326_v56 = vpop.permute.xlu1 %3317  ;;  %3877 = vperm.xlu1 %4941, %v2779_v47   ;;  %v2783_v47 = vld [vmem:[%s11085_s2 + $0x40] sm:$0xff] }
 0x2f7   :  { %11659 = vst [vmem:[#allocation257_spill] sm:$0xff] %v9326_v56  ;;  %v9328_v46 = vpop.permute.xlu0 %3372 }
 0x2f8   :  { %11660 = vst [vmem:[#allocation258_spill] sm:$0xff] %v9328_v46  ;;  %3932 = vperm.xlu0 %4940, %v2790_v1   ;;  %v2794_v46 = vld [vmem:[%s11085_s2 + $0x98] sm:$0xff] }
 0x2fa   :  { %v9336_v38 = vpop.permute.xlu1 %3327  ;;  %3887 = vperm.xlu1 %4941, %v2781_v2   ;;  %v2785_v2 = vld [vmem:[%s11085_s2 + $0x50] sm:$0xff] }
 0x2fb   :  { %11661 = vst [vmem:[#allocation259_spill] sm:$0xff] %v9336_v38  ;;  %v9338_v8 = vpop.permute.xlu0 %3382 }
 0x2fc   :  { %11662 = vst [vmem:[#allocation260_spill] sm:$0xff] %v9338_v8  ;;  %3942 = vperm.xlu0 %4940, %v2792_v51   ;;  %v2796_v8 = vld [vmem:[%s11085_s2 + $0xa8] sm:$0xff] }
 0x2fe   :  { %v9346_v56 = vpop.permute.xlu1 %3337  ;;  %3897 = vperm.xlu1 %4941, %v2783_v47   ;;  %v2787_v47 = vld [vmem:[%s11085_s2 + $0x60] sm:$0xff] }
 0x2ff   :  { %11663 = vst [vmem:[#allocation261_spill] sm:$0xff] %v9346_v56  ;;  %v9348_v1 = vpop.permute.xlu0 %3392 }
 0x300   :  { %11664 = vst [vmem:[#allocation262_spill] sm:$0xff] %v9348_v1  ;;  %3952 = vperm.xlu0 %4940, %v2794_v46   ;;  %v2798_v1 = vld [vmem:[%s11085_s2 + $0xb8] sm:$0xff] }
 0x302   :  { %v9356_v38 = vpop.permute.xlu1 %3347  ;;  %3907 = vperm.xlu1 %4941, %v2785_v2   ;;  %v2789_v2 = vld [vmem:[%s11085_s2 + $0x70] sm:$0xff] }
 0x303   :  { %11665 = vst [vmem:[#allocation263_spill] sm:$0xff] %v9356_v38  ;;  %v9358_v51 = vpop.permute.xlu0 %3402 }
 0x304   :  { %11666 = vst [vmem:[#allocation264_spill] sm:$0xff] %v9358_v51  ;;  %3962 = vperm.xlu0 %4940, %v2796_v8   ;;  %v2800_v51 = vld [vmem:[%s11085_s2 + $0xc8] sm:$0xff] }
 0x306   :  { %v9366_v56 = vpop.permute.xlu1 %3357  ;;  %3917 = vperm.xlu1 %4941, %v2787_v47   ;;  %v2791_v47 = vld [vmem:[%s11085_s2 + $0x80] sm:$0xff] }
 0x307   :  { %11667 = vst [vmem:[#allocation265_spill] sm:$0xff] %v9366_v56  ;;  %v9368_v46 = vpop.permute.xlu0 %3412 }
 0x308   :  { %11668 = vst [vmem:[#allocation266_spill] sm:$0xff] %v9368_v46  ;;  %3972 = vperm.xlu0 %4940, %v2798_v1   ;;  %v2802_v46 = vld [vmem:[%s11085_s2 + $0xd8] sm:$0xff] }
 0x30a   :  { %v9376_v38 = vpop.permute.xlu1 %3367  ;;  %3927 = vperm.xlu1 %4941, %v2789_v2   ;;  %v2793_v2 = vld [vmem:[%s11085_s2 + $0x90] sm:$0xff] }
 0x30b   :  { %11669 = vst [vmem:[#allocation267_spill] sm:$0xff] %v9376_v38  ;;  %v9378_v8 = vpop.permute.xlu0 %3422 }
 0x30c   :  { %11670 = vst [vmem:[#allocation268_spill] sm:$0xff] %v9378_v8  ;;  %3982 = vperm.xlu0 %4940, %v2800_v51   ;;  %v2804_v8 = vld [vmem:[%s11085_s2 + $0xe8] sm:$0xff] }
 0x30e   :  { %v9386_v56 = vpop.permute.xlu1 %3377  ;;  %3937 = vperm.xlu1 %4941, %v2791_v47   ;;  %v2795_v47 = vld [vmem:[%s11085_s2 + $0xa0] sm:$0xff] }
 0x30f   :  { %11671 = vst [vmem:[#allocation269_spill] sm:$0xff] %v9386_v56  ;;  %v9388_v1 = vpop.permute.xlu0 %3432 }
 0x310   :  { %11672 = vst [vmem:[#allocation270_spill] sm:$0xff] %v9388_v1  ;;  %3992 = vperm.xlu0 %4940, %v2802_v46   ;;  %v2806_v1 = vld [vmem:[%s11085_s2 + $0xf8] sm:$0xff] }
 0x312   :  { %v9396_v38 = vpop.permute.xlu1 %3387  ;;  %3947 = vperm.xlu1 %4941, %v2793_v2   ;;  %v2797_v2 = vld [vmem:[%s11085_s2 + $0xb0] sm:$0xff] }
 0x313   :  { %11673 = vst [vmem:[#allocation271_spill] sm:$0xff] %v9396_v38  ;;  %v9398_v51 = vpop.permute.xlu0 %3442 }
 0x314   :  { %11674 = vst [vmem:[#allocation272_spill] sm:$0xff] %v9398_v51  ;;  %4002 = vperm.xlu0 %4940, %v2804_v8   ;;  %v2808_v51 = vld [vmem:[%s11085_s2 + $0x108] sm:$0xff] }
 0x316   :  { %v9406_v56 = vpop.permute.xlu1 %3397  ;;  %3957 = vperm.xlu1 %4941, %v2795_v47   ;;  %v2799_v47 = vld [vmem:[%s11085_s2 + $0xc0] sm:$0xff] }
 0x317   :  { %11675 = vst [vmem:[#allocation273_spill] sm:$0xff] %v9406_v56  ;;  %v9408_v46 = vpop.permute.xlu0 %3452 }
 0x318   :  { %11676 = vst [vmem:[#allocation274_spill] sm:$0xff] %v9408_v46  ;;  %4012 = vperm.xlu0 %4940, %v2806_v1   ;;  %v2810_v46 = vld [vmem:[%s11085_s2 + $0x118] sm:$0xff] }
 0x31a   :  { %v9416_v38 = vpop.permute.xlu1 %3407  ;;  %3967 = vperm.xlu1 %4941, %v2797_v2   ;;  %v2801_v2 = vld [vmem:[%s11085_s2 + $0xd0] sm:$0xff] }
 0x31b   :  { %11677 = vst [vmem:[#allocation275_spill] sm:$0xff] %v9416_v38  ;;  %v9418_v8 = vpop.permute.xlu0 %3462 }
 0x31c   :  { %11678 = vst [vmem:[#allocation276_spill] sm:$0xff] %v9418_v8  ;;  %4022 = vperm.xlu0 %4940, %v2808_v51   ;;  %v2812_v8 = vld [vmem:[%s11085_s2 + $0x128] sm:$0xff] }
 0x31e   :  { %v9426_v56 = vpop.permute.xlu1 %3417  ;;  %3977 = vperm.xlu1 %4941, %v2799_v47   ;;  %v2803_v47 = vld [vmem:[%s11085_s2 + $0xe0] sm:$0xff] }
 0x31f   :  { %11679 = vst [vmem:[#allocation277_spill] sm:$0xff] %v9426_v56  ;;  %v9428_v1 = vpop.permute.xlu0 %3472 }
 0x320   :  { %11680 = vst [vmem:[#allocation278_spill] sm:$0xff] %v9428_v1  ;;  %4032 = vperm.xlu0 %4940, %v2810_v46   ;;  %v2814_v1 = vld [vmem:[%s11085_s2 + $0x138] sm:$0xff] }
 0x322   :  { %v9436_v38 = vpop.permute.xlu1 %3427  ;;  %3987 = vperm.xlu1 %4941, %v2801_v2   ;;  %v2805_v2 = vld [vmem:[%s11085_s2 + $0xf0] sm:$0xff] }
 0x323   :  { %11681 = vst [vmem:[#allocation279_spill] sm:$0xff] %v9436_v38  ;;  %v9438_v51 = vpop.permute.xlu0 %3482 }
 0x324   :  { %11682 = vst [vmem:[#allocation280_spill] sm:$0xff] %v9438_v51  ;;  %4042 = vperm.xlu0 %4940, %v2812_v8   ;;  %v2816_v51 = vld [vmem:[%s11085_s2 + $0x148] sm:$0xff] }
 0x326   :  { %v9446_v56 = vpop.permute.xlu1 %3437  ;;  %3997 = vperm.xlu1 %4941, %v2803_v47   ;;  %v2807_v47 = vld [vmem:[%s11085_s2 + $0x100] sm:$0xff] }
 0x327   :  { %11683 = vst [vmem:[#allocation281_spill] sm:$0xff] %v9446_v56  ;;  %v9448_v46 = vpop.permute.xlu0 %3492 }
 0x328   :  { %11684 = vst [vmem:[#allocation282_spill] sm:$0xff] %v9448_v46  ;;  %4052 = vperm.xlu0 %4940, %v2814_v1   ;;  %v2818_v46 = vld [vmem:[%s11085_s2 + $0x158] sm:$0xff] }
 0x32a   :  { %v9456_v38 = vpop.permute.xlu1 %3447  ;;  %4007 = vperm.xlu1 %4941, %v2805_v2   ;;  %v2809_v2 = vld [vmem:[%s11085_s2 + $0x110] sm:$0xff] }
 0x32b   :  { %11685 = vst [vmem:[#allocation283_spill] sm:$0xff] %v9456_v38  ;;  %v9458_v8 = vpop.permute.xlu0 %3502 }
 0x32c   :  { %11686 = vst [vmem:[#allocation284_spill] sm:$0xff] %v9458_v8  ;;  %4062 = vperm.xlu0 %4940, %v2816_v51   ;;  %v2820_v8 = vld [vmem:[%s11085_s2 + $0x168] sm:$0xff] }
 0x32e   :  { %v9466_v56 = vpop.permute.xlu1 %3457  ;;  %4017 = vperm.xlu1 %4941, %v2807_v47   ;;  %v2811_v47 = vld [vmem:[%s11085_s2 + $0x120] sm:$0xff] }
 0x32f   :  { %11687 = vst [vmem:[#allocation285_spill] sm:$0xff] %v9466_v56  ;;  %v9468_v1 = vpop.permute.xlu0 %3512 }
 0x330   :  { %11688 = vst [vmem:[#allocation286_spill] sm:$0xff] %v9468_v1  ;;  %4072 = vperm.xlu0 %4940, %v2818_v46   ;;  %v2822_v1 = vld [vmem:[%s11085_s2 + $0x178] sm:$0xff] }
 0x332   :  { %v9476_v38 = vpop.permute.xlu1 %3467  ;;  %4027 = vperm.xlu1 %4941, %v2809_v2   ;;  %v2813_v2 = vld [vmem:[%s11085_s2 + $0x130] sm:$0xff] }
 0x333   :  { %11689 = vst [vmem:[#allocation287_spill] sm:$0xff] %v9476_v38  ;;  %v9478_v51 = vpop.permute.xlu0 %3522 }
 0x334   :  { %11690 = vst [vmem:[#allocation288_spill] sm:$0xff] %v9478_v51  ;;  %4082 = vperm.xlu0 %4940, %v2820_v8   ;;  %v2824_v51 = vld [vmem:[%s11085_s2 + $0x188] sm:$0xff] }
 0x336   :  { %v9486_v56 = vpop.permute.xlu1 %3477  ;;  %4037 = vperm.xlu1 %4941, %v2811_v47   ;;  %v2815_v47 = vld [vmem:[%s11085_s2 + $0x140] sm:$0xff] }
 0x337   :  { %11691 = vst [vmem:[#allocation289_spill] sm:$0xff] %v9486_v56  ;;  %v9488_v46 = vpop.permute.xlu0 %3532 }
 0x338   :  { %11692 = vst [vmem:[#allocation290_spill] sm:$0xff] %v9488_v46  ;;  %4092 = vperm.xlu0 %4940, %v2822_v1   ;;  %v2826_v46 = vld [vmem:[%s11085_s2 + $0x198] sm:$0xff] }
 0x33a   :  { %v9496_v38 = vpop.permute.xlu1 %3487  ;;  %4047 = vperm.xlu1 %4941, %v2813_v2   ;;  %v2817_v2 = vld [vmem:[%s11085_s2 + $0x150] sm:$0xff] }
 0x33b   :  { %11693 = vst [vmem:[#allocation291_spill] sm:$0xff] %v9496_v38  ;;  %v9498_v8 = vpop.permute.xlu0 %3542 }
 0x33c   :  { %11694 = vst [vmem:[#allocation292_spill] sm:$0xff] %v9498_v8  ;;  %4102 = vperm.xlu0 %4940, %v2824_v51   ;;  %v2828_v8 = vld [vmem:[%s11085_s2 + $0x1a8] sm:$0xff] }
 0x33e   :  { %v9506_v56 = vpop.permute.xlu1 %3497  ;;  %4057 = vperm.xlu1 %4941, %v2815_v47   ;;  %v2819_v47 = vld [vmem:[%s11085_s2 + $0x160] sm:$0xff] }
 0x33f   :  { %11695 = vst [vmem:[#allocation293_spill] sm:$0xff] %v9506_v56  ;;  %v9508_v1 = vpop.permute.xlu0 %3552 }
 0x340   :  { %11696 = vst [vmem:[#allocation294_spill] sm:$0xff] %v9508_v1  ;;  %4112 = vperm.xlu0 %4940, %v2826_v46   ;;  %v2830_v1 = vld [vmem:[%s11085_s2 + $0x1b8] sm:$0xff] }
 0x342   :  { %v9516_v38 = vpop.permute.xlu1 %3507  ;;  %4067 = vperm.xlu1 %4941, %v2817_v2   ;;  %v2821_v2 = vld [vmem:[%s11085_s2 + $0x170] sm:$0xff] }
 0x343   :  { %11697 = vst [vmem:[#allocation295_spill] sm:$0xff] %v9516_v38  ;;  %v9518_v51 = vpop.permute.xlu0 %3562 }
 0x344   :  { %11698 = vst [vmem:[#allocation296_spill] sm:$0xff] %v9518_v51  ;;  %4122 = vperm.xlu0 %4940, %v2828_v8   ;;  %v2832_v51 = vld [vmem:[%s11085_s2 + $0x1c8] sm:$0xff] }
 0x346   :  { %v9526_v56 = vpop.permute.xlu1 %3517  ;;  %4077 = vperm.xlu1 %4941, %v2819_v47   ;;  %v2823_v47 = vld [vmem:[%s11085_s2 + $0x180] sm:$0xff] }
 0x347   :  { %11699 = vst [vmem:[#allocation297_spill] sm:$0xff] %v9526_v56  ;;  %v9528_v46 = vpop.permute.xlu0 %3572 }
 0x348   :  { %11700 = vst [vmem:[#allocation298_spill] sm:$0xff] %v9528_v46  ;;  %4132 = vperm.xlu0 %4940, %v2830_v1   ;;  %v2834_v46 = vld [vmem:[%s11085_s2 + $0x1d8] sm:$0xff] }
 0x34a   :  { %v9536_v38 = vpop.permute.xlu1 %3527  ;;  %4087 = vperm.xlu1 %4941, %v2821_v2   ;;  %v2825_v2 = vld [vmem:[%s11085_s2 + $0x190] sm:$0xff] }
 0x34b   :  { %11701 = vst [vmem:[#allocation299_spill] sm:$0xff] %v9536_v38  ;;  %v9538_v8 = vpop.permute.xlu0 %3582 }
 0x34c   :  { %11702 = vst [vmem:[#allocation300_spill] sm:$0xff] %v9538_v8  ;;  %4142 = vperm.xlu0 %4940, %v2832_v51   ;;  %v2836_v8 = vld [vmem:[%s11085_s2 + $0x1e8] sm:$0xff] }
 0x34e   :  { %v9546_v56 = vpop.permute.xlu1 %3537  ;;  %4097 = vperm.xlu1 %4941, %v2823_v47   ;;  %v2827_v47 = vld [vmem:[%s11085_s2 + $0x1a0] sm:$0xff] }
 0x34f   :  { %11703 = vst [vmem:[#allocation301_spill] sm:$0xff] %v9546_v56  ;;  %v9548_v1 = vpop.permute.xlu0 %3592 }
 0x350   :  { %11704 = vst [vmem:[#allocation302_spill] sm:$0xff] %v9548_v1  ;;  %4152 = vperm.xlu0 %4940, %v2834_v46   ;;  %v2838_v1 = vld [vmem:[%s11085_s2 + $0x1f8] sm:$0xff] }
 0x352   :  { %v9556_v38 = vpop.permute.xlu1 %3547  ;;  %4107 = vperm.xlu1 %4941, %v2825_v2   ;;  %v2829_v2 = vld [vmem:[%s11085_s2 + $0x1b0] sm:$0xff] }
 0x353   :  { %11705 = vst [vmem:[#allocation303_spill] sm:$0xff] %v9556_v38  ;;  %v9558_v51 = vpop.permute.xlu0 %3602  ;;  %v11709_v38 = vld [vmem:[#allocation6_spill] sm:$0xff] }
 0x354   :  { %11706 = vst [vmem:[#allocation304_spill] sm:$0xff] %v9558_v51  ;;  %4162 = vperm.xlu0 %4940, %v2836_v8   ;;  %v2840_v51 = vld [vmem:[%s11085_s2 + $0x208] sm:$0xff]  ;;  %v3617_v8 = vmul.f32 %v8954_v36, %v11709_v38  ;;  %v3621_v38 = vmul.f32 %v8978_v21, %v11711_v17  ;;  %v3622_v36 = vmul.f32 %v8978_v21, %v11712_v55  ;;  %v2833_v17 = vld [vmem:[%s11085_s2 + $0x1d0] sm:$0xff]  ;;  %v11713_v55 = vld [vmem:[#allocation13_spill] sm:$0xff] }
 0x355   :  { %v2844_v21 = vld [vmem:[%s11085_s2 + $0x228] sm:$0xff] }
 0x356   :  { %v9566_v56 = vpop.permute.xlu1 %3557  ;;  %4117 = vperm.xlu1 %4941, %v2827_v47  }
 0x357   :  { %11707 = vst [vmem:[#allocation305_spill] sm:$0xff] %v9566_v56  ;;  %v9568_v46 = vpop.permute.xlu0 %3612 }
 0x358   :  { %11708 = vst [vmem:[#allocation306_spill] sm:$0xff] %v9568_v46  ;;  %4172 = vperm.xlu0 %4940, %v2838_v1   ;;  %v2831_v46 = vld [vmem:[%s11085_s2 + $0x1c0] sm:$0xff] }
 0x35a   :  { %v9580_v50 = vpop.permute.xlu1 %3567  ;;  %4127 = vperm.xlu1 %4941, %v2829_v2  }
 0x35b   :  { %v3863_v47 = vpop.permute.xlu0 %3862 }
 0x35c   :  { %v4457_v56 = vadd.f32 %v3863_v47, %v3617_v8  ;;  %v4458_v1 = vadd.f32 %v3863_v47, %v3618_v59  ;;  %4182 = vperm.xlu0 %4940, %v2840_v51   ;;  %v11714_v8 = vld [vmem:[#allocation11_spill] sm:$0xff] }
 0x35d   :  { %v3626_v47 = vmul.f32 %v9002_v58, %v11714_v8 }
 0x35e   :  { %4697 = vst [vmem:[%s11086_s3 + $0x10] sm:$0xff] %v4457_v56  ;;  %4698 = vst.msk [vmem:[%s11086_s3 + $0x18] sm:$0xff] %vm494_vm0, %v4458_v1  ;;  %v9599_v59 = vpop.permute.xlu1 %3577  ;;  %4137 = vperm.xlu1 %4941, %v2831_v46   ;;  %v3625_v56 = vmul.f32 %v9002_v58, %v11713_v55  ;;  %v2835_v1 = vld [vmem:[%s11085_s2 + $0x1e0] sm:$0xff]  ;;  %v2846_v58 = vld [vmem:[%s11085_s2 + $0x238] sm:$0xff] }
 0x35f   :  { %v3873_v49 = vpop.permute.xlu0 %3872  ;;  %v11716_v55 = vld [vmem:[#allocation15_spill] sm:$0xff] }
 0x360   :  { %v4461_v51 = vadd.f32 %v3873_v49, %v3621_v38  ;;  %v4462_v2 = vadd.f32 %v3873_v49, %v3622_v36  ;;  %4192 = vperm.xlu0 %4940, %v2842_v28   ;;  %v11715_v49 = vld [vmem:[#allocation17_spill] sm:$0xff] }
 0x362   :  { %4701 = vst [vmem:[%s11086_s3 + $0x30] sm:$0xff] %v4461_v51  ;;  %4702 = vst.msk [vmem:[%s11086_s3 + $0x38] sm:$0xff] %vm494_vm0, %v4462_v2  ;;  %v9618_v28 = vpop.permute.xlu1 %3587  ;;  %4147 = vperm.xlu1 %4941, %v2833_v17   ;;  %v3629_v51 = vmul.f32 %v9026_v53, %v11715_v49  ;;  %v3630_v2 = vmul.f32 %v9026_v53, %v11716_v55  ;;  %v2848_v53 = vld [vmem:[%s11085_s2 + $0x248] sm:$0xff]  ;;  %v11719_v49 = vld [vmem:[#allocation18_spill] sm:$0xff] }
 0x363   :  { %v3883_v46 = vpop.permute.xlu0 %3882 }
 0x364   :  { %v4465_v38 = vadd.f32 %v3883_v46, %v3625_v56  ;;  %v4466_v36 = vadd.f32 %v3883_v46, %v3626_v47  ;;  %4202 = vperm.xlu0 %4940, %v2844_v21   ;;  %v2837_v56 = vld [vmem:[%s11085_s2 + $0x1f0] sm:$0xff]  ;;  %v11718_v46 = vld [vmem:[#allocation21_spill] sm:$0xff] }
 0x366   :  { %4705 = vst [vmem:[%s11086_s3 + $0x50] sm:$0xff] %v4465_v38  ;;  %4706 = vst.msk [vmem:[%s11086_s3 + $0x58] sm:$0xff] %vm494_vm0, %v4466_v36  ;;  %v9637_v17 = vpop.permute.xlu1 %3597  ;;  %4157 = vperm.xlu1 %4941, %v2835_v1   ;;  %v3633_v38 = vmul.f32 %v8981_v37, %v11718_v46  ;;  %v3634_v36 = vmul.f32 %v8981_v37, %v11719_v49  ;;  %v11721_v37 = vld [vmem:[#allocation8_spill] sm:$0xff] }
 0x367   :  { %11717 = vst [vmem:[#allocation6_spill] sm:$0xff] %v9637_v17  ;;  %v3893_v21 = vpop.permute.xlu0 %3892 }
 0x368   :  { %v4469_v8 = vadd.f32 %v3893_v21, %v3629_v51  ;;  %v4470_v47 = vadd.f32 %v3893_v21, %v3630_v2  ;;  %4212 = vperm.xlu0 %4940, %v2846_v58   ;;  %v2839_v51 = vld [vmem:[%s11085_s2 + $0x200] sm:$0xff]  ;;  %v3615_v21 = vmul.f32 %v8969_v42, %v11721_v37 }
 0x36a   :  { %4709 = vst [vmem:[%s11086_s3 + $0x70] sm:$0xff] %v4469_v8  ;;  %4710 = vst.msk [vmem:[%s11086_s3 + $0x78] sm:$0xff] %vm494_vm0, %v4470_v47  ;;  %4167 = vperm.xlu1 %4941, %v2837_v56   ;;  %v9656_v1 = vpop.permute.xlu1 %3607  ;;  %v11722_v8 = vld [vmem:[#allocation3_spill] sm:$0xff]  ;;  %v2850_v56 = vld [vmem:[%s11085_s2 + $0x258] sm:$0xff] }
 0x36b   :  { %11720 = vst [vmem:[#allocation2_spill] sm:$0xff] %v9656_v1  ;;  %v3903_v58 = vpop.permute.xlu0 %3902  ;;  %v3616_v46 = vmul.f32 %v8969_v42, %v11722_v8  ;;  %v11723_v47 = vld [vmem:[#allocation25_spill] sm:$0xff]  ;;  %v11724_v1 = vld [vmem:[#allocation23_spill] sm:$0xff]  ;;  %v11726_v8 = vld [vmem:[#allocation4_spill] sm:$0xff] }
 0x36c   :  { %v4473_v55 = vadd.f32 %v3903_v58, %v3633_v38  ;;  %v4474_v2 = vadd.f32 %v3903_v58, %v3634_v36  ;;  %4222 = vperm.xlu0 %4940, %v2848_v53   ;;  %v3637_v49 = vmul.f32 %v8993_v0, %v11723_v47  ;;  %v3638_v17 = vmul.f32 %v8993_v0, %v11724_v1  ;;  %v2841_v58 = vld [vmem:[%s11085_s2 + $0x210] sm:$0xff]  ;;  %v11725_v1 = vld [vmem:[#allocation9_spill] sm:$0xff] }
 0x36d   :  { %v3620_v47 = vmul.f32 %v8966_v40, %v11726_v8 }
 0x36e   :  { %4713 = vst [vmem:[%s11086_s3 + $0x90] sm:$0xff] %v4473_v55  ;;  %4714 = vst.msk [vmem:[%s11086_s3 + $0x98] sm:$0xff] %vm494_vm0, %v4474_v2  ;;  %4177 = vperm.xlu1 %4941, %v2839_v51   ;;  %v3858_v42 = vpop.permute.xlu1 %3857  ;;  %v3619_v55 = vmul.f32 %v8966_v40, %v11725_v1  ;;  %v11727_v51 = vld [vmem:[#allocation29_spill] sm:$0xff]  ;;  %v11730_v1 = vld [vmem:[#allocation12_spill] sm:$0xff] }
 0x36f   :  { %v4455_v53 = vadd.f32 %v3858_v42, %v3615_v21  ;;  %v4456_v38 = vadd.f32 %v3858_v42, %v3616_v46  ;;  %v3913_v36 = vpop.permute.xlu0 %3912  ;;  %v3641_v2 = vmul.f32 %v9005_v19, %v11727_v51  ;;  %v11728_v21 = vld [vmem:[#allocation27_spill] sm:$0xff]  ;;  %v3624_v8 = vmul.f32 %v8990_v61, %v11730_v1 }
 0x370   :  { %v4477_v37 = vadd.f32 %v3913_v36, %v3637_v49  ;;  %v4478_v0 = vadd.f32 %v3913_v36, %v3638_v17  ;;  %4232 = vperm.xlu0 %4940, %v2850_v56   ;;  %v2852_v17 = vld [vmem:[%s11085_s2 + $0x268] sm:$0xff]  ;;  %v3642_v46 = vmul.f32 %v9005_v19, %v11728_v21  ;;  %v11729_v36 = vld [vmem:[#allocation14_spill] sm:$0xff] }
 0x371   :  { %4695 = vst [vmem:[%s11086_s3] sm:$0xff] %v4455_v53  ;;  %4696 = vst.msk [vmem:[%s11086_s3 + $0x8] sm:$0xff] %vm494_vm0, %v4456_v38  ;;  %v2843_v53 = vld [vmem:[%s11085_s2 + $0x220] sm:$0xff] }
 0x372   :  { %4717 = vst [vmem:[%s11086_s3 + $0xb0] sm:$0xff] %v4477_v37  ;;  %4718 = vst.msk [vmem:[%s11086_s3 + $0xb8] sm:$0xff] %vm494_vm0, %v4478_v0  ;;  %4187 = vperm.xlu1 %4941, %v2841_v58   ;;  %v3868_v40 = vpop.permute.xlu1 %3867  ;;  %v3623_v37 = vmul.f32 %v8990_v61, %v11729_v36  ;;  %v2854_v58 = vld [vmem:[%s11085_s2 + $0x278] sm:$0xff] }
 0x373   :  { %v4459_v56 = vadd.f32 %v3868_v40, %v3619_v55  ;;  %v4460_v49 = vadd.f32 %v3868_v40, %v3620_v47  ;;  %v3923_v42 = vpop.permute.xlu0 %3922  ;;  %v11731_v0 = vld [vmem:[#allocation33_spill] sm:$0xff]  ;;  %v11732_v47 = vld [vmem:[#allocation30_spill] sm:$0xff] }
 0x374   :  { %v4481_v38 = vadd.f32 %v3923_v42, %v3641_v2  ;;  %v4482_v19 = vadd.f32 %v3923_v42, %v3642_v46  ;;  %4242 = vperm.xlu0 %4940, %v2852_v17   ;;  %v3645_v55 = vmul.f32 %v9017_v18, %v11731_v0  ;;  %v3646_v17 = vmul.f32 %v9017_v18, %v11732_v47  ;;  %v2845_v46 = vld [vmem:[%s11085_s2 + $0x230] sm:$0xff] }
 0x375   :  { %4699 = vst [vmem:[%s11086_s3 + $0x20] sm:$0xff] %v4459_v56  ;;  %4700 = vst.msk [vmem:[%s11086_s3 + $0x28] sm:$0xff] %vm494_vm0, %v4460_v49  ;;  %v11733_v56 = vld [vmem:[#allocation19_spill] sm:$0xff]  ;;  %v11734_v42 = vld [vmem:[#allocation16_spill] sm:$0xff] }
 0x376   :  { %4721 = vst [vmem:[%s11086_s3 + $0xd0] sm:$0xff] %v4481_v38  ;;  %4722 = vst.msk [vmem:[%s11086_s3 + $0xd8] sm:$0xff] %vm494_vm0, %v4482_v19  ;;  %4197 = vperm.xlu1 %4941, %v2843_v53   ;;  %v3878_v61 = vpop.permute.xlu1 %3877  ;;  %v3627_v49 = vmul.f32 %v9014_v41, %v11733_v56  ;;  %v3628_v38 = vmul.f32 %v9014_v41, %v11734_v42  ;;  %v2856_v53 = vld [vmem:[%s11085_s2 + $0x288] sm:$0xff]  ;;  %v11735_v19 = vld [vmem:[#allocation37_spill] sm:$0xff] }
 0x377   :  { %v4463_v51 = vadd.f32 %v3878_v61, %v3623_v37  ;;  %v4464_v2 = vadd.f32 %v3878_v61, %v3624_v8  ;;  %v3933_v21 = vpop.permute.xlu0 %3932  ;;  %v3649_v36 = vmul.f32 %v9029_v31, %v11735_v19  ;;  %v11736_v37 = vld [vmem:[#allocation35_spill] sm:$0xff] }
 0x378   :  { %v4485_v40 = vadd.f32 %v3933_v21, %v3645_v55  ;;  %v4486_v18 = vadd.f32 %v3933_v21, %v3646_v17  ;;  %4252 = vperm.xlu0 %4940, %v2854_v58   ;;  %v3650_v1 = vmul.f32 %v9029_v31, %v11736_v37  ;;  %v2847_v55 = vld [vmem:[%s11085_s2 + $0x240] sm:$0xff]  ;;  %v2858_v21 = vld [vmem:[%s11085_s2 + $0x298] sm:$0xff] }
 0x379   :  { %4703 = vst [vmem:[%s11086_s3 + $0x40] sm:$0xff] %v4463_v51  ;;  %4704 = vst.msk [vmem:[%s11086_s3 + $0x48] sm:$0xff] %vm494_vm0, %v4464_v2  ;;  %v11737_v17 = vld [vmem:[#allocation22_spill] sm:$0xff]  ;;  %v11738_v51 = vld [vmem:[#allocation20_spill] sm:$0xff] }
 0x37a   :  { %4725 = vst [vmem:[%s11086_s3 + $0xf0] sm:$0xff] %v4485_v40  ;;  %4726 = vst.msk [vmem:[%s11086_s3 + $0xf8] sm:$0xff] %vm494_vm0, %v4486_v18  ;;  %4207 = vperm.xlu1 %4941, %v2845_v46   ;;  %v3888_v41 = vpop.permute.xlu1 %3887  ;;  %v3631_v61 = vmul.f32 %v9038_v43, %v11737_v17  ;;  %v3632_v2 = vmul.f32 %v9038_v43, %v11738_v51  ;;  %v11739_v46 = vld [vmem:[#allocation41_spill] sm:$0xff]  ;;  %v11740_v18 = vld [vmem:[#allocation39_spill] sm:$0xff] }
 0x37b   :  { %v4467_v8 = vadd.f32 %v3888_v41, %v3627_v49  ;;  %v4468_v58 = vadd.f32 %v3888_v41, %v3628_v38  ;;  %v3943_v0 = vpop.permute.xlu0 %3942  ;;  %v3653_v40 = vmul.f32 %v9041_v30, %v11739_v46  ;;  %v3654_v56 = vmul.f32 %v9041_v30, %v11740_v18  ;;  %v2851_v51 = vld [vmem:[%s11085_s2 + $0x260] sm:$0xff] }
 0x37c   :  { %v4489_v47 = vadd.f32 %v3943_v0, %v3649_v36  ;;  %v4490_v31 = vadd.f32 %v3943_v0, %v3650_v1  ;;  %4262 = vperm.xlu0 %4940, %v2856_v53   ;;  %v2849_v53 = vld [vmem:[%s11085_s2 + $0x250] sm:$0xff]  ;;  %v11741_v36 = vld [vmem:[#allocation26_spill] sm:$0xff] }
 0x37d   :  { %4707 = vst [vmem:[%s11086_s3 + $0x60] sm:$0xff] %v4467_v8  ;;  %4708 = vst.msk [vmem:[%s11086_s3 + $0x68] sm:$0xff] %vm494_vm0, %v4468_v58  ;;  %v3635_v37 = vmul.f32 %v9050_v54, %v11741_v36  ;;  %v11742_v1 = vld [vmem:[#allocation24_spill] sm:$0xff]  ;;  %v2860_v8 = vld [vmem:[%s11085_s2 + $0x2a8] sm:$0xff] }
 0x37e   :  { %4729 = vst [vmem:[%s11086_s3 + $0x110] sm:$0xff] %v4489_v47  ;;  %4730 = vst.msk [vmem:[%s11086_s3 + $0x118] sm:$0xff] %vm494_vm0, %v4490_v31  ;;  %4217 = vperm.xlu1 %4941, %v2847_v55   ;;  %v3898_v43 = vpop.permute.xlu1 %3897  ;;  %v3636_v41 = vmul.f32 %v9050_v54, %v11742_v1  ;;  %v11743_v58 = vld [vmem:[#allocation45_spill] sm:$0xff]  ;;  %v11744_v55 = vld [vmem:[#allocation42_spill] sm:$0xff] }
 0x37f   :  { %v4471_v49 = vadd.f32 %v3898_v43, %v3631_v61  ;;  %v4472_v42 = vadd.f32 %v3898_v43, %v3632_v2  ;;  %v3953_v38 = vpop.permute.xlu0 %3952  ;;  %v3657_v0 = vmul.f32 %v9053_v6, %v11743_v58  ;;  %v3658_v47 = vmul.f32 %v9053_v6, %v11744_v55  ;;  %v11747_v43 = vld [vmem:[#allocation49_spill] sm:$0xff]  ;;  %v2853_v36 = vld [vmem:[%s11085_s2 + $0x270] sm:$0xff]  ;;  %v11749_v1 = vld [vmem:[#allocation34_spill] sm:$0xff] }
 0x380   :  { %v4493_v19 = vadd.f32 %v3953_v38, %v3653_v40  ;;  %v4494_v30 = vadd.f32 %v3953_v38, %v3654_v56  ;;  %4272 = vperm.xlu0 %4940, %v2858_v21   ;;  %v11745_v21 = vld [vmem:[#allocation31_spill] sm:$0xff]  ;;  %v11746_v40 = vld [vmem:[#allocation28_spill] sm:$0xff]  ;;  %v2862_v56 = vld [vmem:[%s11085_s2 + $0x2b8] sm:$0xff] }
 0x381   :  { %4711 = vst [vmem:[%s11086_s3 + $0x80] sm:$0xff] %v4471_v49  ;;  %4712 = vst.msk [vmem:[%s11086_s3 + $0x88] sm:$0xff] %vm494_vm0, %v4472_v42  ;;  %v3639_v46 = vmul.f32 %v9062_v13, %v11745_v21  ;;  %v3640_v18 = vmul.f32 %v9062_v13, %v11746_v40  ;;  %v3661_v49 = vmul.f32 %v9065_v44, %v11747_v43  ;;  %v11748_v42 = vld [vmem:[#allocation47_spill] sm:$0xff]  ;;  %v11751_v55 = vld [vmem:[#allocation53_spill] sm:$0xff] }
 0x382   :  { %4733 = vst [vmem:[%s11086_s3 + $0x130] sm:$0xff] %v4493_v19  ;;  %4734 = vst.msk [vmem:[%s11086_s3 + $0x138] sm:$0xff] %vm494_vm0, %v4494_v30  ;;  %4227 = vperm.xlu1 %4941, %v2849_v53   ;;  %v3908_v54 = vpop.permute.xlu1 %3907  ;;  %v3662_v38 = vmul.f32 %v9065_v44, %v11748_v42  ;;  %v11753_v21 = vld [vmem:[#allocation38_spill] sm:$0xff]  ;;  %v11754_v40 = vld [vmem:[#allocation36_spill] sm:$0xff] }
 0x383   :  { %v4475_v31 = vadd.f32 %v3908_v54, %v3635_v37  ;;  %v4476_v17 = vadd.f32 %v3908_v54, %v3636_v41  ;;  %v3963_v61 = vpop.permute.xlu0 %3962  ;;  %v3643_v41 = vmul.f32 %v9074_v29, %v11749_v1  ;;  %v11752_v54 = vld [vmem:[#allocation51_spill] sm:$0xff]  ;;  %v11755_v43 = vld [vmem:[#allocation57_spill] sm:$0xff]  ;;  %v11756_v42 = vld [vmem:[#allocation54_spill] sm:$0xff] }
 0x384   :  { %v4497_v2 = vadd.f32 %v3963_v61, %v3657_v0  ;;  %v4498_v6 = vadd.f32 %v3963_v61, %v3658_v47  ;;  %4282 = vperm.xlu0 %4940, %v2860_v8   ;;  %v11750_v8 = vld [vmem:[#allocation32_spill] sm:$0xff]  ;;  %v2864_v0 = vld [vmem:[%s11085_s2 + $0x2c8] sm:$0xff]  ;;  %v3665_v47 = vmul.f32 %v9077_v22, %v11751_v55 }
 0x385   :  { %4715 = vst [vmem:[%s11086_s3 + $0xa0] sm:$0xff] %v4475_v31  ;;  %4716 = vst.msk [vmem:[%s11086_s3 + $0xa8] sm:$0xff] %vm494_vm0, %v4476_v17  ;;  %v3644_v58 = vmul.f32 %v9074_v29, %v11750_v8  ;;  %v3666_v31 = vmul.f32 %v9077_v22, %v11752_v54  ;;  %v11758_v1 = vld [vmem:[#allocation40_spill] sm:$0xff]  ;;  %v2868_v8 = vld [vmem:[%s11085_s2 + $0x2e8] sm:$0xff] }
 0x386   :  { %4737 = vst [vmem:[%s11086_s3 + $0x150] sm:$0xff] %v4497_v2  ;;  %4738 = vst.msk [vmem:[%s11086_s3 + $0x158] sm:$0xff] %vm494_vm0, %v4498_v6  ;;  %4237 = vperm.xlu1 %4941, %v2851_v51   ;;  %v3918_v13 = vpop.permute.xlu1 %3917  ;;  %v2855_v2 = vld [vmem:[%s11085_s2 + $0x280] sm:$0xff]  ;;  %v11760_v55 = vld [vmem:[#allocation59_spill] sm:$0xff] }
 0x387   :  { %v4479_v53 = vadd.f32 %v3918_v13, %v3639_v46  ;;  %v4480_v19 = vadd.f32 %v3918_v13, %v3640_v18  ;;  %v3973_v30 = vpop.permute.xlu0 %3972  ;;  %v3647_v46 = vmul.f32 %v9086_v62, %v11753_v21  ;;  %v3648_v18 = vmul.f32 %v9086_v62, %v11754_v40  ;;  %v2870_v21 = vld [vmem:[%s11085_s2 + $0x2f8] sm:$0xff] }
 0x388   :  { %v4501_v37 = vadd.f32 %v3973_v30, %v3661_v49  ;;  %v4502_v44 = vadd.f32 %v3973_v30, %v3662_v38  ;;  %4292 = vperm.xlu0 %4940, %v2862_v56   ;;  %v2866_v56 = vld [vmem:[%s11085_s2 + $0x2d8] sm:$0xff]  ;;  %v3669_v49 = vmul.f32 %v9089_v33, %v11755_v43  ;;  %v3670_v38 = vmul.f32 %v9089_v33, %v11756_v42  ;;  %v2857_v30 = vld [vmem:[%s11085_s2 + $0x290] sm:$0xff] }
 0x389   :  { %4719 = vst [vmem:[%s11086_s3 + $0xc0] sm:$0xff] %v4479_v53  ;;  %4720 = vst.msk [vmem:[%s11086_s3 + $0xc8] sm:$0xff] %vm494_vm0, %v4480_v19 }
 0x38a   :  { %4741 = vst [vmem:[%s11086_s3 + $0x170] sm:$0xff] %v4501_v37  ;;  %4742 = vst.msk [vmem:[%s11086_s3 + $0x178] sm:$0xff] %vm494_vm0, %v4502_v44  ;;  %4247 = vperm.xlu1 %4941, %v2853_v36   ;;  %v3928_v29 = vpop.permute.xlu1 %3927  ;;  %v11757_v37 = vld [vmem:[#allocation43_spill] sm:$0xff] }
 0x38b   :  { %v4483_v17 = vadd.f32 %v3928_v29, %v3643_v41  ;;  %v4484_v61 = vadd.f32 %v3928_v29, %v3644_v58  ;;  %v3983_v51 = vpop.permute.xlu0 %3982  ;;  %v3651_v44 = vmul.f32 %v9098_v39, %v11757_v37  ;;  %v3652_v41 = vmul.f32 %v9098_v39, %v11758_v1  ;;  %v11759_v58 = vld [vmem:[#allocation61_spill] sm:$0xff] }
 0x38c   :  { %v4505_v6 = vadd.f32 %v3983_v51, %v3665_v47  ;;  %v4506_v22 = vadd.f32 %v3983_v51, %v3666_v31  ;;  %4302 = vperm.xlu0 %4940, %v2864_v0   ;;  %v3673_v0 = vmul.f32 %v9101_v4, %v11759_v58  ;;  %v3674_v47 = vmul.f32 %v9101_v4, %v11760_v55  ;;  %v11761_v51 = vld [vmem:[#allocation46_spill] sm:$0xff] }
 0x38d   :  { %4723 = vst [vmem:[%s11086_s3 + $0xe0] sm:$0xff] %v4483_v17  ;;  %4724 = vst.msk [vmem:[%s11086_s3 + $0xe8] sm:$0xff] %vm494_vm0, %v4484_v61  ;;  %v2859_v17 = vld [vmem:[%s11085_s2 + $0x2a0] sm:$0xff] }
 0x38e   :  { %4745 = vst [vmem:[%s11086_s3 + $0x190] sm:$0xff] %v4505_v6  ;;  %4746 = vst.msk [vmem:[%s11086_s3 + $0x198] sm:$0xff] %vm494_vm0, %v4506_v22  ;;  %4257 = vperm.xlu1 %4941, %v2855_v2   ;;  %v3938_v62 = vpop.permute.xlu1 %3937  ;;  %v3655_v2 = vmul.f32 %v9110_v52, %v11761_v51  ;;  %v11762_v6 = vld [vmem:[#allocation44_spill] sm:$0xff] }
 0x38f   :  { %v4487_v13 = vadd.f32 %v3938_v62, %v3647_v46  ;;  %v4488_v53 = vadd.f32 %v3938_v62, %v3648_v18  ;;  %v3993_v19 = vpop.permute.xlu0 %3992  ;;  %v3656_v22 = vmul.f32 %v9110_v52, %v11762_v6  ;;  %v11763_v46 = vld [vmem:[#allocation65_spill] sm:$0xff]  ;;  %v11764_v18 = vld [vmem:[#allocation63_spill] sm:$0xff] }
 0x390   :  { %v4509_v36 = vadd.f32 %v3993_v19, %v3669_v49  ;;  %v4510_v33 = vadd.f32 %v3993_v19, %v3670_v38  ;;  %4312 = vperm.xlu0 %4940, %v2866_v56   ;;  %v3677_v40 = vmul.f32 %v9113_v60, %v11763_v46  ;;  %v3678_v56 = vmul.f32 %v9113_v60, %v11764_v18  ;;  %v2861_v38 = vld [vmem:[%s11085_s2 + $0x2b0] sm:$0xff] }
 0x391   :  { %4727 = vst [vmem:[%s11086_s3 + $0x100] sm:$0xff] %v4487_v13  ;;  %4728 = vst.msk [vmem:[%s11086_s3 + $0x108] sm:$0xff] %vm494_vm0, %v4488_v53  ;;  %v11765_v13 = vld [vmem:[#allocation50_spill] sm:$0xff]  ;;  %v11766_v19 = vld [vmem:[#allocation48_spill] sm:$0xff] }
 0x392   :  { %4749 = vst [vmem:[%s11086_s3 + $0x1b0] sm:$0xff] %v4509_v36  ;;  %4750 = vst.msk [vmem:[%s11086_s3 + $0x1b8] sm:$0xff] %vm494_vm0, %v4510_v33  ;;  %4267 = vperm.xlu1 %4941, %v2857_v30   ;;  %v3948_v39 = vpop.permute.xlu1 %3947  ;;  %v3659_v53 = vmul.f32 %v9122_v57, %v11765_v13  ;;  %v3660_v30 = vmul.f32 %v9122_v57, %v11766_v19  ;;  %v2872_v36 = vld [vmem:[%s11085_s2 + $0x308] sm:$0xff]  ;;  %v11767_v33 = vld [vmem:[#allocation69_spill] sm:$0xff] }
 0x393   :  { %v4491_v54 = vadd.f32 %v3948_v39, %v3651_v44  ;;  %v4492_v31 = vadd.f32 %v3948_v39, %v3652_v41  ;;  %v4003_v29 = vpop.permute.xlu0 %4002  ;;  %v3681_v37 = vmul.f32 %v9125_v35, %v11767_v33  ;;  %v11768_v44 = vld [vmem:[#allocation66_spill] sm:$0xff] }
 0x394   :  { %v4513_v61 = vadd.f32 %v4003_v29, %v3673_v0  ;;  %v4514_v4 = vadd.f32 %v4003_v29, %v3674_v47  ;;  %4322 = vperm.xlu0 %4940, %v2868_v8   ;;  %v3682_v1 = vmul.f32 %v9125_v35, %v11768_v44  ;;  %v2863_v0 = vld [vmem:[%s11085_s2 + $0x2c0] sm:$0xff]  ;;  %v11769_v47 = vld [vmem:[#allocation55_spill] sm:$0xff]  ;;  %v2874_v29 = vld [vmem:[%s11085_s2 + $0x318] sm:$0xff] }
 0x395   :  { %4731 = vst [vmem:[%s11086_s3 + $0x120] sm:$0xff] %v4491_v54  ;;  %4732 = vst.msk [vmem:[%s11086_s3 + $0x128] sm:$0xff] %vm494_vm0, %v4492_v31  ;;  %v3663_v39 = vmul.f32 %v9134_v34, %v11769_v47  ;;  %v11770_v54 = vld [vmem:[#allocation52_spill] sm:$0xff]  ;;  %v2867_v19 = vld [vmem:[%s11085_s2 + $0x2e0] sm:$0xff] }
 0x396   :  { %4753 = vst [vmem:[%s11086_s3 + $0x1d0] sm:$0xff] %v4513_v61  ;;  %4754 = vst.msk [vmem:[%s11086_s3 + $0x1d8] sm:$0xff] %vm494_vm0, %v4514_v4  ;;  %4277 = vperm.xlu1 %4941, %v2859_v17   ;;  %v3958_v52 = vpop.permute.xlu1 %3957  ;;  %v3664_v31 = vmul.f32 %v9134_v34, %v11770_v54  ;;  %v11771_v17 = vld [vmem:[#allocation73_spill] sm:$0xff]  ;;  %v11772_v4 = vld [vmem:[#allocation71_spill] sm:$0xff] }
 0x397   :  { %v4495_v43 = vadd.f32 %v3958_v52, %v3655_v2  ;;  %v4496_v49 = vadd.f32 %v3958_v52, %v3656_v22  ;;  %v4013_v42 = vpop.permute.xlu0 %4012  ;;  %v3685_v61 = vmul.f32 %v9137_v23, %v11771_v17  ;;  %v3686_v51 = vmul.f32 %v9137_v23, %v11772_v4  ;;  %v2869_v47 = vld [vmem:[%s11085_s2 + $0x2f0] sm:$0xff]  ;;  %v11781_v54 = vld [vmem:[#allocation67_spill] sm:$0xff]  ;;  %v11783_v4 = vld [vmem:[#allocation85_spill] sm:$0xff] }
 0x398   :  { %v4517_v62 = vadd.f32 %v4013_v42, %v3677_v40  ;;  %v4518_v60 = vadd.f32 %v4013_v42, %v3678_v56  ;;  %4332 = vperm.xlu0 %4940, %v2870_v21   ;;  %v2865_v21 = vld [vmem:[%s11085_s2 + $0x2d0] sm:$0xff]  ;;  %v11773_v40 = vld [vmem:[#allocation58_spill] sm:$0xff] }
 0x399   :  { %4735 = vst [vmem:[%s11086_s3 + $0x140] sm:$0xff] %v4495_v43  ;;  %4736 = vst.msk [vmem:[%s11086_s3 + $0x148] sm:$0xff] %vm494_vm0, %v4496_v49  ;;  %v3667_v18 = vmul.f32 %v9146_v7, %v11773_v40  ;;  %v11774_v56 = vld [vmem:[#allocation56_spill] sm:$0xff]  ;;  %v2876_v43 = vld [vmem:[%s11085_s2 + $0x328] sm:$0xff] }
 0x39a   :  { %4757 = vst [vmem:[%s11086_s3 + $0x1f0] sm:$0xff] %v4517_v62  ;;  %4758 = vst.msk [vmem:[%s11086_s3 + $0x1f8] sm:$0xff] %vm494_vm0, %v4518_v60  ;;  %4287 = vperm.xlu1 %4941, %v2861_v38   ;;  %v3968_v57 = vpop.permute.xlu1 %3967  ;;  %v3668_v52 = vmul.f32 %v9146_v7, %v11774_v56  ;;  %v11775_v49 = vld [vmem:[#allocation77_spill] sm:$0xff]  ;;  %v11776_v38 = vld [vmem:[#allocation75_spill] sm:$0xff] }
 0x39b   :  { %v4499_v41 = vadd.f32 %v3968_v57, %v3659_v53  ;;  %v4500_v8 = vadd.f32 %v3968_v57, %v3660_v30  ;;  %v4023_v58 = vpop.permute.xlu0 %4022  ;;  %v3689_v42 = vmul.f32 %v9149_v63, %v11775_v49  ;;  %v3690_v62 = vmul.f32 %v9149_v63, %v11776_v38  ;;  %v11779_v57 = vld [vmem:[#allocation81_spill] sm:$0xff]  ;;  %v11785_v40 = vld [vmem:[#allocation70_spill] sm:$0xff]  ;;  %v11786_v56 = vld [vmem:[#allocation68_spill] sm:$0xff] }
 0x39c   :  { %v4521_v55 = vadd.f32 %v4023_v58, %v3681_v37  ;;  %v4522_v35 = vadd.f32 %v4023_v58, %v3682_v1  ;;  %4342 = vperm.xlu0 %4940, %v2872_v36   ;;  %v11777_v36 = vld [vmem:[#allocation62_spill] sm:$0xff]  ;;  %v11778_v37 = vld [vmem:[#allocation60_spill] sm:$0xff]  ;;  %v2878_v1 = vld [vmem:[%s11085_s2 + $0x338] sm:$0xff] }
 0x39d   :  { %4739 = vst [vmem:[%s11086_s3 + $0x160] sm:$0xff] %v4499_v41  ;;  %4740 = vst.msk [vmem:[%s11086_s3 + $0x168] sm:$0xff] %vm494_vm0, %v4500_v8  ;;  %v3671_v33 = vmul.f32 %v9158_v26, %v11777_v36  ;;  %v3672_v44 = vmul.f32 %v9158_v26, %v11778_v37  ;;  %v3693_v41 = vmul.f32 %v9161_v16, %v11779_v57  ;;  %v11780_v8 = vld [vmem:[#allocation78_spill] sm:$0xff]  ;;  %v11787_v49 = vld [vmem:[#allocation88_spill] sm:$0xff] }
 0x39e   :  { %4761 = vst [vmem:[%s11086_s3 + $0x210] sm:$0xff] %v4521_v55  ;;  %4762 = vst.msk [vmem:[%s11086_s3 + $0x218] sm:$0xff] %vm494_vm0, %v4522_v35  ;;  %4297 = vperm.xlu1 %4941, %v2863_v0   ;;  %v3978_v34 = vpop.permute.xlu1 %3977  ;;  %v3694_v58 = vmul.f32 %v9161_v16, %v11780_v8  ;;  %v11788_v38 = vld [vmem:[#allocation87_spill] sm:$0xff]  ;;  %v11790_v36 = vld [vmem:[#allocation72_spill] sm:$0xff] }
 0x39f   :  { %v4503_v2 = vadd.f32 %v3978_v34, %v3663_v39  ;;  %v4504_v6 = vadd.f32 %v3978_v34, %v3664_v31  ;;  %v4033_v22 = vpop.permute.xlu0 %4032  ;;  %v3675_v31 = vmul.f32 %v9170_v45, %v11781_v54  ;;  %v11784_v34 = vld [vmem:[#allocation83_spill] sm:$0xff]  ;;  %v11792_v57 = vld [vmem:[#allocation89_spill] sm:$0xff] }
 0x3a0   :  { %v4525_v46 = vadd.f32 %v4033_v22, %v3685_v61  ;;  %v4526_v23 = vadd.f32 %v4033_v22, %v3686_v51  ;;  %4352 = vperm.xlu0 %4940, %v2874_v29   ;;  %v11782_v29 = vld [vmem:[#allocation64_spill] sm:$0xff]  ;;  %v2880_v61 = vld [vmem:[%s11085_s2 + $0x348] sm:$0xff]  ;;  %v3697_v51 = vmul.f32 %v9173_v12, %v11783_v4  ;;  %v2886_v54 = vld [vmem:[%s11085_s2 + $0x378] sm:$0xff] }
 0x3a1   :  { %4743 = vst [vmem:[%s11086_s3 + $0x180] sm:$0xff] %v4503_v2  ;;  %4744 = vst.msk [vmem:[%s11086_s3 + $0x188] sm:$0xff] %vm494_vm0, %v4504_v6  ;;  %v3676_v17 = vmul.f32 %v9170_v45, %v11782_v29  ;;  %v3698_v2 = vmul.f32 %v9173_v12, %v11784_v34  ;;  %v2884_v37 = vld [vmem:[%s11085_s2 + $0x368] sm:$0xff] }
 0x3a2   :  { %4765 = vst [vmem:[%s11086_s3 + $0x230] sm:$0xff] %v4525_v46  ;;  %4766 = vst.msk [vmem:[%s11086_s3 + $0x238] sm:$0xff] %vm494_vm0, %v4526_v23  ;;  %4307 = vperm.xlu1 %4941, %v2865_v21   ;;  %v3988_v7 = vpop.permute.xlu1 %3987  ;;  %v2871_v46 = vld [vmem:[%s11085_s2 + $0x300] sm:$0xff] }
 0x3a3   :  { %v4507_v60 = vadd.f32 %v3988_v7, %v3667_v18  ;;  %v4508_v13 = vadd.f32 %v3988_v7, %v3668_v52  ;;  %v4043_v53 = vpop.permute.xlu0 %4042  ;;  %v3679_v18 = vmul.f32 %v9182_v24, %v11785_v40  ;;  %v3680_v52 = vmul.f32 %v9182_v24, %v11786_v56 }
 0x3a4   :  { %v4529_v30 = vadd.f32 %v4043_v53, %v3689_v42  ;;  %v4530_v63 = vadd.f32 %v4043_v53, %v3690_v62  ;;  %4362 = vperm.xlu0 %4940, %v2876_v43   ;;  %v2882_v43 = vld [vmem:[%s11085_s2 + $0x358] sm:$0xff]  ;;  %v3701_v42 = vmul.f32 %v9185_v15, %v11787_v49  ;;  %v3702_v62 = vmul.f32 %v9185_v15, %v11788_v38  ;;  %v2873_v53 = vld [vmem:[%s11085_s2 + $0x310] sm:$0xff] }
 0x3a5   :  { %4747 = vst [vmem:[%s11086_s3 + $0x1a0] sm:$0xff] %v4507_v60  ;;  %4748 = vst.msk [vmem:[%s11086_s3 + $0x1a8] sm:$0xff] %vm494_vm0, %v4508_v13 }
 0x3a6   :  { %4769 = vst [vmem:[%s11086_s3 + $0x250] sm:$0xff] %v4529_v30  ;;  %4770 = vst.msk [vmem:[%s11086_s3 + $0x258] sm:$0xff] %vm494_vm0, %v4530_v63  ;;  %4317 = vperm.xlu1 %4941, %v2867_v19   ;;  %v3998_v26 = vpop.permute.xlu1 %3997  ;;  %v11789_v30 = vld [vmem:[#allocation74_spill] sm:$0xff] }
 0x3a7   :  { %v4511_v0 = vadd.f32 %v3998_v26, %v3671_v33  ;;  %v4512_v55 = vadd.f32 %v3998_v26, %v3672_v44  ;;  %v4053_v35 = vpop.permute.xlu0 %4052  ;;  %v3683_v63 = vmul.f32 %v9194_v11, %v11789_v30  ;;  %v3684_v33 = vmul.f32 %v9194_v11, %v11790_v36  ;;  %v11791_v44 = vld [vmem:[#allocation92_spill] sm:$0xff] }
 0x3a8   :  { %v4533_v39 = vadd.f32 %v4053_v35, %v3693_v41  ;;  %v4534_v16 = vadd.f32 %v4053_v35, %v3694_v58  ;;  %4372 = vperm.xlu0 %4940, %v2878_v1   ;;  %v3705_v1 = vmul.f32 %v9197_v5, %v11791_v44  ;;  %v3706_v41 = vmul.f32 %v9197_v5, %v11792_v57  ;;  %v11793_v35 = vld [vmem:[#allocation79_spill] sm:$0xff]  ;;  %v11806_v57 = vld [vmem:[#allocation142_spill] sm:$0xff] }
 0x3a9   :  { %4751 = vst [vmem:[%s11086_s3 + $0x1c0] sm:$0xff] %v4511_v0  ;;  %4752 = vst.msk [vmem:[%s11086_s3 + $0x1c8] sm:$0xff] %vm494_vm0, %v4512_v55  ;;  %v2875_v0 = vld [vmem:[%s11085_s2 + $0x320] sm:$0xff] }
 0x3aa   :  { %4773 = vst [vmem:[%s11086_s3 + $0x270] sm:$0xff] %v4533_v39  ;;  %4774 = vst.msk [vmem:[%s11086_s3 + $0x278] sm:$0xff] %vm494_vm0, %v4534_v16  ;;  %4327 = vperm.xlu1 %4941, %v2869_v47   ;;  %v4008_v45 = vpop.permute.xlu1 %4007  ;;  %v3687_v47 = vmul.f32 %v9205_v20, %v11793_v35  ;;  %v11794_v39 = vld [vmem:[#allocation76_spill] sm:$0xff] }
 0x3ab   :  { %v4515_v6 = vadd.f32 %v4008_v45, %v3675_v31  ;;  %v4516_v22 = vadd.f32 %v4008_v45, %v3676_v17  ;;  %v4063_v21 = vpop.permute.xlu0 %4062  ;;  %v3688_v16 = vmul.f32 %v9205_v20, %v11794_v39  ;;  %v11795_v31 = vld [vmem:[#allocation96_spill] sm:$0xff]  ;;  %v11796_v17 = vld [vmem:[#allocation94_spill] sm:$0xff] }
 0x3ac   :  { %v4537_v23 = vadd.f32 %v4063_v21, %v3697_v51  ;;  %v4538_v12 = vadd.f32 %v4063_v21, %v3698_v2  ;;  %4382 = vperm.xlu0 %4940, %v2880_v61   ;;  %v3709_v29 = vmul.f32 %v9208_v3, %v11795_v31  ;;  %v3710_v61 = vmul.f32 %v9208_v3, %v11796_v17  ;;  %v2877_v2 = vld [vmem:[%s11085_s2 + $0x330] sm:$0xff] }
 0x3ad   :  { %4755 = vst [vmem:[%s11086_s3 + $0x1e0] sm:$0xff] %v4515_v6  ;;  %4756 = vst.msk [vmem:[%s11086_s3 + $0x1e8] sm:$0xff] %vm494_vm0, %v4516_v22  ;;  %v11797_v6 = vld [vmem:[#allocation82_spill] sm:$0xff]  ;;  %v11798_v21 = vld [vmem:[#allocation80_spill] sm:$0xff] }
 0x3ae   :  { %4777 = vst [vmem:[%s11086_s3 + $0x290] sm:$0xff] %v4537_v23  ;;  %4778 = vst.msk [vmem:[%s11086_s3 + $0x298] sm:$0xff] %vm494_vm0, %v4538_v12  ;;  %4337 = vperm.xlu1 %4941, %v2871_v46   ;;  %v4018_v24 = vpop.permute.xlu1 %4017  ;;  %v3691_v22 = vmul.f32 %v9216_v48, %v11797_v6  ;;  %v3692_v46 = vmul.f32 %v9216_v48, %v11798_v21  ;;  %v2888_v23 = vld [vmem:[%s11085_s2 + $0x388] sm:$0xff]  ;;  %v11799_v12 = vld [vmem:[#allocation100_spill] sm:$0xff] }
 0x3af   :  { %v4519_v7 = vadd.f32 %v4018_v24, %v3679_v18  ;;  %v4520_v60 = vadd.f32 %v4018_v24, %v3680_v52  ;;  %v4073_v13 = vpop.permute.xlu0 %4072  ;;  %v3713_v40 = vmul.f32 %v9219_v25, %v11799_v12  ;;  %v11800_v18 = vld [vmem:[#allocation98_spill] sm:$0xff]  ;;  %v2885_v21 = vld [vmem:[%s11085_s2 + $0x370] sm:$0xff]  ;;  %v11815_v12 = vld [vmem:[#allocation219_spill] sm:$0xff] }
 0x3b0   :  { %v4541_v19 = vadd.f32 %v4073_v13, %v3701_v42  ;;  %v4542_v15 = vadd.f32 %v4073_v13, %v3702_v62  ;;  %4392 = vperm.xlu0 %4940, %v2882_v43   ;;  %v3714_v56 = vmul.f32 %v9219_v25, %v11800_v18  ;;  %v2879_v42 = vld [vmem:[%s11085_s2 + $0x340] sm:$0xff]  ;;  %v2890_v13 = vld [vmem:[%s11085_s2 + $0x398] sm:$0xff]  ;;  %v11816_v18 = vld [vmem:[#allocation95_spill] sm:$0xff] }
 0x3b1   :  { %4759 = vst [vmem:[%s11086_s3 + $0x200] sm:$0xff] %v4519_v7  ;;  %4760 = vst.msk [vmem:[%s11086_s3 + $0x208] sm:$0xff] %vm494_vm0, %v4520_v60  ;;  %v11801_v62 = vld [vmem:[#allocation86_spill] sm:$0xff]  ;;  %v11802_v7 = vld [vmem:[#allocation84_spill] sm:$0xff] }
 0x3b2   :  { %4781 = vst [vmem:[%s11086_s3 + $0x2b0] sm:$0xff] %v4541_v19  ;;  %4782 = vst.msk [vmem:[%s11086_s3 + $0x2b8] sm:$0xff] %vm494_vm0, %v4542_v15  ;;  %4347 = vperm.xlu1 %4941, %v2873_v53   ;;  %v4028_v11 = vpop.permute.xlu1 %4027  ;;  %v3695_v24 = vmul.f32 %v9227_v27, %v11801_v62  ;;  %v3696_v60 = vmul.f32 %v9227_v27, %v11802_v7  ;;  %v11803_v53 = vld [vmem:[#allocation104_spill] sm:$0xff]  ;;  %v11804_v15 = vld [vmem:[#allocation101_spill] sm:$0xff] }
 0x3b3   :  { %v4523_v8 = vadd.f32 %v4028_v11, %v3683_v63  ;;  %v4524_v58 = vadd.f32 %v4028_v11, %v3684_v33  ;;  %v4083_v26 = vpop.permute.xlu0 %4082  ;;  %v3717_v19 = vmul.f32 %v9230_v10, %v11803_v53  ;;  %v3718_v30 = vmul.f32 %v9230_v10, %v11804_v15  ;;  %v11807_v11 = vld [vmem:[#allocation7_spill] sm:$0xff]  ;;  %v2887_v7 = vld [vmem:[%s11085_s2 + $0x380] sm:$0xff] }
 0x3b4   :  { %v4545_v55 = vadd.f32 %v4083_v26, %v3705_v1  ;;  %v4546_v5 = vadd.f32 %v4083_v26, %v3706_v41  ;;  %4402 = vperm.xlu0 %4940, %v2884_v37   ;;  %v2881_v37 = vld [vmem:[%s11085_s2 + $0x350] sm:$0xff]  ;;  %v11805_v1 = vld [vmem:[#allocation90_spill] sm:$0xff] }
 0x3b5   :  { %4763 = vst [vmem:[%s11086_s3 + $0x220] sm:$0xff] %v4523_v8  ;;  %4764 = vst.msk [vmem:[%s11086_s3 + $0x228] sm:$0xff] %vm494_vm0, %v4524_v58  ;;  %v3699_v41 = vmul.f32 %v11806_v57, %v11805_v1  ;;  %v3700_v8 = vmul.f32 %v11806_v57, %v11807_v11  ;;  %v2892_v58 = vld [vmem:[%s11085_s2 + $0x3a8] sm:$0xff]  ;;  %v11808_v26 = vld [vmem:[#allocation108_spill] sm:$0xff] }
 0x3b6   :  { %4785 = vst [vmem:[%s11086_s3 + $0x2d0] sm:$0xff] %v4545_v55  ;;  %4786 = vst.msk [vmem:[%s11086_s3 + $0x2d8] sm:$0xff] %vm494_vm0, %v4546_v5  ;;  %4357 = vperm.xlu1 %4941, %v2875_v0   ;;  %v4038_v20 = vpop.permute.xlu1 %4037  ;;  %v3721_v0 = vmul.f32 %v9241_v9, %v11808_v26  ;;  %v11809_v55 = vld [vmem:[#allocation106_spill] sm:$0xff]  ;;  %v2889_v11 = vld [vmem:[%s11085_s2 + $0x390] sm:$0xff] }
 0x3b7   :  { %v4527_v4 = vadd.f32 %v4038_v20, %v3687_v47  ;;  %v4528_v51 = vadd.f32 %v4038_v20, %v3688_v16  ;;  %v4093_v34 = vpop.permute.xlu0 %4092  ;;  %v3722_v5 = vmul.f32 %v9241_v9, %v11809_v55  ;;  %v11820_v53 = vld [vmem:[#allocation102_spill] sm:$0xff]  ;;  %v11826_v26 = vld [vmem:[#allocation105_spill] sm:$0xff] }
 0x3b8   :  { %v4549_v45 = vadd.f32 %v4093_v34, %v3709_v29  ;;  %v4550_v3 = vadd.f32 %v4093_v34, %v3710_v61  ;;  %4412 = vperm.xlu0 %4940, %v2886_v54   ;;  %v2883_v54 = vld [vmem:[%s11085_s2 + $0x360] sm:$0xff]  ;;  %v11810_v29 = vld [vmem:[#allocation93_spill] sm:$0xff]  ;;  %v11811_v61 = vld [vmem:[#allocation91_spill] sm:$0xff] }
 0x3b9   :  { %4767 = vst [vmem:[%s11086_s3 + $0x240] sm:$0xff] %v4527_v4  ;;  %4768 = vst.msk [vmem:[%s11086_s3 + $0x248] sm:$0xff] %vm494_vm0, %v4528_v51  ;;  %v3703_v17 = vmul.f32 %v9249_v14, %v11810_v29  ;;  %v3704_v20 = vmul.f32 %v9249_v14, %v11811_v61  ;;  %v2894_v4 = vld [vmem:[%s11085_s2 + $0x3b8] sm:$0xff]  ;;  %v11812_v51 = vld [vmem:[#allocation112_spill] sm:$0xff] }
 0x3ba   :  { %4789 = vst [vmem:[%s11086_s3 + $0x2f0] sm:$0xff] %v4549_v45  ;;  %4790 = vst.msk [vmem:[%s11086_s3 + $0x2f8] sm:$0xff] %vm494_vm0, %v4550_v3  ;;  %4367 = vperm.xlu1 %4941, %v2877_v2   ;;  %v4048_v48 = vpop.permute.xlu1 %4047  ;;  %v3725_v34 = vmul.f32 %v9251_v32, %v11812_v51  ;;  %v11813_v2 = vld [vmem:[#allocation110_spill] sm:$0xff] }
 0x3bb   :  { %v4531_v52 = vadd.f32 %v4048_v48, %v3691_v22  ;;  %v4532_v43 = vadd.f32 %v4048_v48, %v3692_v46  ;;  %v4103_v49 = vpop.permute.xlu0 %4102  ;;  %v3726_v45 = vmul.f32 %v9251_v32, %v11813_v2  ;;  %v11817_v48 = vld [vmem:[#allocation116_spill] sm:$0xff]  ;;  %v11833_v2 = vld [vmem:[#allocation249_spill] sm:$0xff] }
 0x3bc   :  { %v4553_v38 = vadd.f32 %v4103_v49, %v3713_v40  ;;  %v4554_v25 = vadd.f32 %v4103_v49, %v3714_v56  ;;  %4422 = vperm.xlu0 %4940, %v2888_v23   ;;  %v11814_v23 = vld [vmem:[#allocation97_spill] sm:$0xff]  ;;  %v3708_v56 = vmul.f32 %v11815_v12, %v11816_v18 }
 0x3bd   :  { %4771 = vst [vmem:[%s11086_s3 + $0x260] sm:$0xff] %v4531_v52  ;;  %4772 = vst.msk [vmem:[%s11086_s3 + $0x268] sm:$0xff] %vm494_vm0, %v4532_v43  ;;  %v3707_v40 = vmul.f32 %v11815_v12, %v11814_v23  ;;  %v11818_v52 = vld [vmem:[#allocation244_spill] sm:$0xff]  ;;  %v11819_v49 = vld [vmem:[#allocation113_spill] sm:$0xff] }
 0x3be   :  { %4793 = vst [vmem:[%s11086_s3 + $0x310] sm:$0xff] %v4553_v38  ;;  %4794 = vst.msk [vmem:[%s11086_s3 + $0x318] sm:$0xff] %vm494_vm0, %v4554_v25  ;;  %4377 = vperm.xlu1 %4941, %v2879_v42   ;;  %v4058_v27 = vpop.permute.xlu1 %4057  ;;  %v3729_v43 = vmul.f32 %v11818_v52, %v11817_v48  ;;  %v3730_v42 = vmul.f32 %v11818_v52, %v11819_v49  ;;  %v11839_v49 = vld [vmem:[#allocation251_spill] sm:$0xff] }
 0x3bf   :  { %v4535_v63 = vadd.f32 %v4058_v27, %v3695_v24  ;;  %v4536_v36 = vadd.f32 %v4058_v27, %v3696_v60  ;;  %v4113_v33 = vpop.permute.xlu0 %4112 }
 0x3c0   :  { %v4557_v44 = vadd.f32 %v4113_v33, %v3717_v19  ;;  %v4558_v10 = vadd.f32 %v4113_v33, %v3718_v30  ;;  %4432 = vperm.xlu0 %4940, %v2890_v13   ;;  %v11821_v19 = vld [vmem:[#allocation245_spill] sm:$0xff]  ;;  %v11822_v30 = vld [vmem:[#allocation99_spill] sm:$0xff] }
 0x3c1   :  { %4775 = vst [vmem:[%s11086_s3 + $0x280] sm:$0xff] %v4535_v63  ;;  %4776 = vst.msk [vmem:[%s11086_s3 + $0x288] sm:$0xff] %vm494_vm0, %v4536_v36  ;;  %v3711_v15 = vmul.f32 %v11821_v19, %v11820_v53  ;;  %v3712_v27 = vmul.f32 %v11821_v19, %v11822_v30  ;;  %v11823_v63 = vld [vmem:[#allocation120_spill] sm:$0xff]  ;;  %v11824_v36 = vld [vmem:[#allocation246_spill] sm:$0xff] }
 0x3c2   :  { %4797 = vst [vmem:[%s11086_s3 + $0x330] sm:$0xff] %v4557_v44  ;;  %4798 = vst.msk [vmem:[%s11086_s3 + $0x338] sm:$0xff] %vm494_vm0, %v4558_v10  ;;  %4387 = vperm.xlu1 %4941, %v2881_v37   ;;  %v4068_v35 = vpop.permute.xlu1 %4067  ;;  %v3733_v33 = vmul.f32 %v11824_v36, %v11823_v63  ;;  %v11825_v37 = vld [vmem:[#allocation118_spill] sm:$0xff] }
 0x3c3   :  { %v4539_v47 = vadd.f32 %v4068_v35, %v3699_v41  ;;  %v4540_v39 = vadd.f32 %v4068_v35, %v3700_v8  ;;  %v4123_v16 = vpop.permute.xlu0 %4122  ;;  %v3734_v44 = vmul.f32 %v11824_v36, %v11825_v37  ;;  %v11844_v36 = vld [vmem:[#allocation117_spill] sm:$0xff] }
 0x3c4   :  { %v4561_v31 = vadd.f32 %v4123_v16, %v3721_v0  ;;  %v4562_v9 = vadd.f32 %v4123_v16, %v3722_v5  ;;  %4442 = vperm.xlu0 %4940, %v2892_v58   ;;  %v11827_v0 = vld [vmem:[#allocation247_spill] sm:$0xff] }
 0x3c5   :  { %4779 = vst [vmem:[%s11086_s3 + $0x2a0] sm:$0xff] %v4539_v47  ;;  %4780 = vst.msk [vmem:[%s11086_s3 + $0x2a8] sm:$0xff] %vm494_vm0, %v4540_v39  ;;  %v3715_v55 = vmul.f32 %v11827_v0, %v11826_v26  ;;  %v11828_v5 = vld [vmem:[#allocation103_spill] sm:$0xff]  ;;  %v11829_v47 = vld [vmem:[#allocation124_spill] sm:$0xff] }
 0x3c6   :  { %4801 = vst [vmem:[%s11086_s3 + $0x350] sm:$0xff] %v4561_v31  ;;  %4802 = vst.msk [vmem:[%s11086_s3 + $0x358] sm:$0xff] %vm494_vm0, %v4562_v9  ;;  %4397 = vperm.xlu1 %4941, %v2883_v54   ;;  %v4078_v14 = vpop.permute.xlu1 %4077  ;;  %v3716_v35 = vmul.f32 %v11827_v0, %v11828_v5  ;;  %v11830_v39 = vld [vmem:[#allocation248_spill] sm:$0xff]  ;;  %v11831_v54 = vld [vmem:[#allocation122_spill] sm:$0xff] }
 0x3c7   :  { %v4543_v3 = vadd.f32 %v4078_v14, %v3703_v17  ;;  %v4544_v6 = vadd.f32 %v4078_v14, %v3704_v20  ;;  %v4133_v22 = vpop.permute.xlu0 %4132  ;;  %v3737_v16 = vmul.f32 %v11830_v39, %v11829_v47  ;;  %v3738_v31 = vmul.f32 %v11830_v39, %v11831_v54  ;;  %v2891_v20 = vld [vmem:[%s11085_s2 + $0x3a0] sm:$0xff]  ;;  %v11834_v14 = vld [vmem:[#allocation107_spill] sm:$0xff]  ;;  %v11850_v47 = vld [vmem:[#allocation121_spill] sm:$0xff] }
 0x3c8   :  { %v4565_v46 = vadd.f32 %v4133_v22, %v3725_v34  ;;  %v4566_v32 = vadd.f32 %v4133_v22, %v3726_v45  ;;  %4452 = vperm.xlu0 %4940, %v2894_v4   ;;  %v11832_v34 = vld [vmem:[#allocation109_spill] sm:$0xff]  ;;  %v11836_v22 = vld [vmem:[#allocation250_spill] sm:$0xff]  ;;  %v11851_v39 = vld [vmem:[#allocation255_spill] sm:$0xff] }
 0x3c9   :  { %4783 = vst [vmem:[%s11086_s3 + $0x2c0] sm:$0xff] %v4543_v3  ;;  %4784 = vst.msk [vmem:[%s11086_s3 + $0x2c8] sm:$0xff] %vm494_vm0, %v4544_v6  ;;  %v3719_v45 = vmul.f32 %v11833_v2, %v11832_v34  ;;  %v3720_v3 = vmul.f32 %v11833_v2, %v11834_v14  ;;  %v11835_v6 = vld [vmem:[#allocation128_spill] sm:$0xff]  ;;  %v11852_v54 = vld [vmem:[#allocation119_spill] sm:$0xff] }
 0x3ca   :  { %4805 = vst [vmem:[%s11086_s3 + $0x370] sm:$0xff] %v4565_v46  ;;  %4806 = vst.msk [vmem:[%s11086_s3 + $0x378] sm:$0xff] %vm494_vm0, %v4566_v32  ;;  %4407 = vperm.xlu1 %4941, %v2885_v21   ;;  %v4088_v38 = vpop.permute.xlu1 %4087  ;;  %v3741_v21 = vmul.f32 %v11836_v22, %v11835_v6  ;;  %v11837_v46 = vld [vmem:[#allocation125_spill] sm:$0xff] }
 0x3cb   :  { %v4547_v25 = vadd.f32 %v4088_v38, %v3707_v40  ;;  %v4548_v62 = vadd.f32 %v4088_v38, %v3708_v56  ;;  %v4143_v24 = vpop.permute.xlu0 %4142  ;;  %v3742_v32 = vmul.f32 %v11836_v22, %v11837_v46  ;;  %v2893_v56 = vld [vmem:[%s11085_s2 + $0x3b0] sm:$0xff]  ;;  %v11840_v38 = vld [vmem:[#allocation111_spill] sm:$0xff]  ;;  %v11857_v6 = vld [vmem:[#allocation257_spill] sm:$0xff] }
 0x3cc   :  { %v4569_v60 = vadd.f32 %v4143_v24, %v3729_v43  ;;  %v4570_v13 = vadd.f32 %v4143_v24, %v3730_v42  ;;  %v11838_v43 = vld [vmem:[#allocation114_spill] sm:$0xff]  ;;  %v11842_v24 = vld [vmem:[#allocation252_spill] sm:$0xff] }
 0x3cd   :  { %4787 = vst [vmem:[%s11086_s3 + $0x2e0] sm:$0xff] %v4547_v25  ;;  %4788 = vst.msk [vmem:[%s11086_s3 + $0x2e8] sm:$0xff] %vm494_vm0, %v4548_v62  ;;  %v3723_v42 = vmul.f32 %v11839_v49, %v11838_v43  ;;  %v3724_v25 = vmul.f32 %v11839_v49, %v11840_v38  ;;  %v11841_v62 = vld [vmem:[#allocation132_spill] sm:$0xff]  ;;  %v11862_v38 = vld [vmem:[#allocation129_spill] sm:$0xff] }
 0x3ce   :  { %4809 = vst [vmem:[%s11086_s3 + $0x390] sm:$0xff] %v4569_v60  ;;  %4810 = vst.msk [vmem:[%s11086_s3 + $0x398] sm:$0xff] %vm494_vm0, %v4570_v13  ;;  %4417 = vperm.xlu1 %4941, %v2887_v7   ;;  %v4098_v10 = vpop.permute.xlu1 %4097  ;;  %v3745_v7 = vmul.f32 %v11842_v24, %v11841_v62  ;;  %v11843_v60 = vld [vmem:[#allocation130_spill] sm:$0xff] }
 0x3cf   :  { %v4551_v1 = vadd.f32 %v4098_v10, %v3711_v15  ;;  %v4552_v57 = vadd.f32 %v4098_v10, %v3712_v27  ;;  %v4153_v41 = vpop.permute.xlu0 %4152  ;;  %v3746_v13 = vmul.f32 %v11842_v24, %v11843_v60  ;;  %v11864_v24 = vld [vmem:[#allocation127_spill] sm:$0xff]  ;;  %v11865_v60 = vld [vmem:[#allocation149_spill] sm:$0xff] }
 0x3d0   :  { %v4573_v8 = vadd.f32 %v4153_v41, %v3733_v33  ;;  %v4574_v58 = vadd.f32 %v4153_v41, %v3734_v44  ;;  %v11845_v33 = vld [vmem:[#allocation253_spill] sm:$0xff]  ;;  %v11846_v44 = vld [vmem:[#allocation115_spill] sm:$0xff] }
 0x3d1   :  { %4791 = vst [vmem:[%s11086_s3 + $0x300] sm:$0xff] %v4551_v1  ;;  %4792 = vst.msk [vmem:[%s11086_s3 + $0x308] sm:$0xff] %vm494_vm0, %v4552_v57  ;;  %v3727_v37 = vmul.f32 %v11845_v33, %v11844_v36  ;;  %v3728_v10 = vmul.f32 %v11845_v33, %v11846_v44  ;;  %v11847_v1 = vld [vmem:[#allocation136_spill] sm:$0xff]  ;;  %v11848_v57 = vld [vmem:[#allocation254_spill] sm:$0xff] }
 0x3d2   :  { %4813 = vst [vmem:[%s11086_s3 + $0x3b0] sm:$0xff] %v4573_v8  ;;  %4814 = vst.msk [vmem:[%s11086_s3 + $0x3b8] sm:$0xff] %vm494_vm0, %v4574_v58  ;;  %4427 = vperm.xlu1 %4941, %v2889_v11   ;;  %v4108_v9 = vpop.permute.xlu1 %4107  ;;  %v3749_v41 = vmul.f32 %v11848_v57, %v11847_v1  ;;  %v11849_v11 = vld [vmem:[#allocation134_spill] sm:$0xff]  ;;  %v11868_v44 = vld [vmem:[#allocation133_spill] sm:$0xff] }
 0x3d3   :  { %v4555_v29 = vadd.f32 %v4108_v9, %v3715_v55  ;;  %v4556_v17 = vadd.f32 %v4108_v9, %v3716_v35  ;;  %v4163_v61 = vpop.permute.xlu0 %4162  ;;  %v3750_v8 = vmul.f32 %v11848_v57, %v11849_v11  ;;  %v11853_v9 = vld [vmem:[#allocation140_spill] sm:$0xff]  ;;  %v11870_v57 = vld [vmem:[#allocation131_spill] sm:$0xff]  ;;  %v11871_v11 = vld [vmem:[#allocation153_spill] sm:$0xff] }
 0x3d4   :  { %v4577_v4 = vadd.f32 %v4163_v61, %v3737_v16  ;;  %v4578_v51 = vadd.f32 %v4163_v61, %v3738_v31  ;;  %v3731_v16 = vmul.f32 %v11851_v39, %v11850_v47  ;;  %v3732_v31 = vmul.f32 %v11851_v39, %v11852_v54  ;;  %v11855_v61 = vld [vmem:[#allocation137_spill] sm:$0xff]  ;;  %v11874_v54 = vld [vmem:[#allocation138_spill] sm:$0xff] }
 0x3d5   :  { %4795 = vst [vmem:[%s11086_s3 + $0x320] sm:$0xff] %v4555_v29  ;;  %4796 = vst.msk [vmem:[%s11086_s3 + $0x328] sm:$0xff] %vm494_vm0, %v4556_v17  ;;  %v11854_v29 = vld [vmem:[#allocation256_spill] sm:$0xff] }
 0x3d6   :  { %4817 = vst [vmem:[%s11086_s3 + $0x3d0] sm:$0xff] %v4577_v4  ;;  %4818 = vst.msk [vmem:[%s11086_s3 + $0x3d8] sm:$0xff] %vm494_vm0, %v4578_v51  ;;  %4437 = vperm.xlu1 %4941, %v2891_v20   ;;  %v4118_v23 = vpop.permute.xlu1 %4117  ;;  %v3753_v17 = vmul.f32 %v11854_v29, %v11853_v9  ;;  %v3754_v20 = vmul.f32 %v11854_v29, %v11855_v61  ;;  %v11876_v29 = vld [vmem:[#allocation135_spill] sm:$0xff]  ;;  %v11877_v61 = vld [vmem:[#allocation157_spill] sm:$0xff] }
 0x3d7   :  { %v4559_v12 = vadd.f32 %v4118_v23, %v3719_v45  ;;  %v4560_v40 = vadd.f32 %v4118_v23, %v3720_v3  ;;  %v4173_v18 = vpop.permute.xlu0 %4172  ;;  %v11856_v3 = vld [vmem:[#allocation126_spill] sm:$0xff] }
 0x3d8   :  { %v4581_v48 = vadd.f32 %v4173_v18, %v3741_v21  ;;  %v4582_v52 = vadd.f32 %v4173_v18, %v3742_v32  ;;  %v3735_v22 = vmul.f32 %v11857_v6, %v11856_v3  ;;  %v11858_v21 = vld [vmem:[#allocation123_spill] sm:$0xff]  ;;  %v11859_v32 = vld [vmem:[#allocation145_spill] sm:$0xff]  ;;  %v11860_v23 = vld [vmem:[#allocation258_spill] sm:$0xff] }
 0x3d9   :  { %4799 = vst [vmem:[%s11086_s3 + $0x340] sm:$0xff] %v4559_v12  ;;  %4800 = vst.msk [vmem:[%s11086_s3 + $0x348] sm:$0xff] %vm494_vm0, %v4560_v40  ;;  %v3736_v46 = vmul.f32 %v11857_v6, %v11858_v21  ;;  %v3757_v12 = vmul.f32 %v11860_v23, %v11859_v32  ;;  %v11861_v40 = vld [vmem:[#allocation143_spill] sm:$0xff]  ;;  %v11880_v21 = vld [vmem:[#allocation141_spill] sm:$0xff] }
 0x3da   :  { %4821 = vst [vmem:[%s11086_s3 + $0x3f0] sm:$0xff] %v4581_v48  ;;  %4822 = vst.msk [vmem:[%s11086_s3 + $0x3f8] sm:$0xff] %vm494_vm0, %v4582_v52  ;;  %4447 = vperm.xlu1 %4941, %v2893_v56   ;;  %v4128_v53 = vpop.permute.xlu1 %4127  ;;  %v3758_v18 = vmul.f32 %v11860_v23, %v11861_v40  ;;  %v11882_v23 = vld [vmem:[#allocation139_spill] sm:$0xff]  ;;  %v11883_v40 = vld [vmem:[#allocation161_spill] sm:$0xff] }
 0x3db   :  { %v4563_v19 = vadd.f32 %v4128_v53, %v3723_v42  ;;  %v4564_v15 = vadd.f32 %v4128_v53, %v3724_v25  ;;  %v4183_v30 = vpop.permute.xlu0 %4182  ;;  %v11863_v25 = vld [vmem:[#allocation259_spill] sm:$0xff] }
 0x3dc   :  { %v4585_v27 = vadd.f32 %v4183_v30, %v3745_v7  ;;  %v4586_v63 = vadd.f32 %v4183_v30, %v3746_v13  ;;  %v3739_v62 = vmul.f32 %v11863_v25, %v11862_v38  ;;  %v3740_v7 = vmul.f32 %v11863_v25, %v11864_v24  ;;  %v11866_v13 = vld [vmem:[#allocation260_spill] sm:$0xff]  ;;  %v11886_v24 = vld [vmem:[#allocation146_spill] sm:$0xff] }
 0x3dd   :  { %4803 = vst [vmem:[%s11086_s3 + $0x360] sm:$0xff] %v4563_v19  ;;  %4804 = vst.msk [vmem:[%s11086_s3 + $0x368] sm:$0xff] %vm494_vm0, %v4564_v15  ;;  %v3761_v53 = vmul.f32 %v11866_v13, %v11865_v60  ;;  %v11867_v19 = vld [vmem:[#allocation147_spill] sm:$0xff] }
 0x3de   :  { %4825 = vst [vmem:[%s11086_s3 + $0x410] sm:$0xff] %v4585_v27  ;;  %4826 = vst.msk [vmem:[%s11086_s3 + $0x418] sm:$0xff] %vm494_vm0, %v4586_v63  ;;  %v4138_v58 = vpop.permute.xlu1 %4137  ;;  %v3762_v15 = vmul.f32 %v11866_v13, %v11867_v19  ;;  %v11888_v13 = vld [vmem:[#allocation144_spill] sm:$0xff]  ;;  %v11889_v19 = vld [vmem:[#allocation165_spill] sm:$0xff] }
 0x3df   :  { %v4567_v26 = vadd.f32 %v4138_v58, %v3727_v37  ;;  %v4568_v0 = vadd.f32 %v4138_v58, %v3728_v10  ;;  %v4193_v55 = vpop.permute.xlu0 %4192  ;;  %v11869_v10 = vld [vmem:[#allocation261_spill] sm:$0xff] }
 0x3e0   :  { %v4589_v5 = vadd.f32 %v4193_v55, %v3749_v41  ;;  %v4590_v35 = vadd.f32 %v4193_v55, %v3750_v8  ;;  %v3743_v1 = vmul.f32 %v11869_v10, %v11868_v44  ;;  %v3744_v41 = vmul.f32 %v11869_v10, %v11870_v57  ;;  %v11872_v8 = vld [vmem:[#allocation262_spill] sm:$0xff]  ;;  %v11892_v57 = vld [vmem:[#allocation151_spill] sm:$0xff] }
 0x3e1   :  { %4807 = vst [vmem:[%s11086_s3 + $0x380] sm:$0xff] %v4567_v26  ;;  %4808 = vst.msk [vmem:[%s11086_s3 + $0x388] sm:$0xff] %vm494_vm0, %v4568_v0  ;;  %v3765_v58 = vmul.f32 %v11872_v8, %v11871_v11  ;;  %v11873_v26 = vld [vmem:[#allocation150_spill] sm:$0xff] }
 0x3e2   :  { %4829 = vst [vmem:[%s11086_s3 + $0x430] sm:$0xff] %v4589_v5  ;;  %4830 = vst.msk [vmem:[%s11086_s3 + $0x438] sm:$0xff] %vm494_vm0, %v4590_v35  ;;  %v4148_v4 = vpop.permute.xlu1 %4147  ;;  %v3766_v0 = vmul.f32 %v11872_v8, %v11873_v26  ;;  %v11894_v8 = vld [vmem:[#allocation148_spill] sm:$0xff]  ;;  %v11895_v26 = vld [vmem:[#allocation169_spill] sm:$0xff] }
 0x3e3   :  { %v4571_v51 = vadd.f32 %v4148_v4, %v3731_v16  ;;  %v4572_v34 = vadd.f32 %v4148_v4, %v3732_v31  ;;  %v4203_v2 = vpop.permute.xlu0 %4202  ;;  %v11875_v31 = vld [vmem:[#allocation263_spill] sm:$0xff] }
 0x3e4   :  { %v4593_v45 = vadd.f32 %v4203_v2, %v3753_v17  ;;  %v4594_v14 = vadd.f32 %v4203_v2, %v3754_v20  ;;  %v3747_v9 = vmul.f32 %v11875_v31, %v11874_v54  ;;  %v3748_v17 = vmul.f32 %v11875_v31, %v11876_v29  ;;  %v11878_v20 = vld [vmem:[#allocation264_spill] sm:$0xff]  ;;  %v11898_v29 = vld [vmem:[#allocation154_spill] sm:$0xff] }
 0x3e5   :  { %4811 = vst [vmem:[%s11086_s3 + $0x3a0] sm:$0xff] %v4571_v51  ;;  %4812 = vst.msk [vmem:[%s11086_s3 + $0x3a8] sm:$0xff] %vm494_vm0, %v4572_v34  ;;  %v3769_v4 = vmul.f32 %v11878_v20, %v11877_v61  ;;  %v11879_v51 = vld [vmem:[#allocation155_spill] sm:$0xff] }
 0x3e6   :  { %4833 = vst [vmem:[%s11086_s3 + $0x450] sm:$0xff] %v4593_v45  ;;  %4834 = vst.msk [vmem:[%s11086_s3 + $0x458] sm:$0xff] %vm494_vm0, %v4594_v14  ;;  %v4158_v56 = vpop.permute.xlu1 %4157  ;;  %v3770_v34 = vmul.f32 %v11878_v20, %v11879_v51  ;;  %v11900_v20 = vld [vmem:[#allocation152_spill] sm:$0xff]  ;;  %v11901_v51 = vld [vmem:[#allocation173_spill] sm:$0xff] }
 0x3e7   :  { %v4575_v48 = vadd.f32 %v4158_v56, %v3735_v22  ;;  %v4576_v52 = vadd.f32 %v4158_v56, %v3736_v46  ;;  %v4213_v43 = vpop.permute.xlu0 %4212  ;;  %v11881_v46 = vld [vmem:[#allocation265_spill] sm:$0xff] }
 0x3e8   :  { %v4597_v49 = vadd.f32 %v4213_v43, %v3757_v12  ;;  %v4598_v42 = vadd.f32 %v4213_v43, %v3758_v18  ;;  %v3751_v32 = vmul.f32 %v11881_v46, %v11880_v21  ;;  %v3752_v12 = vmul.f32 %v11881_v46, %v11882_v23  ;;  %v11884_v18 = vld [vmem:[#allocation266_spill] sm:$0xff] }
 0x3e9   :  { %4815 = vst [vmem:[%s11086_s3 + $0x3c0] sm:$0xff] %v4575_v48  ;;  %4816 = vst.msk [vmem:[%s11086_s3 + $0x3c8] sm:$0xff] %vm494_vm0, %v4576_v52  ;;  %v3773_v56 = vmul.f32 %v11884_v18, %v11883_v40  ;;  %v11885_v48 = vld [vmem:[#allocation159_spill] sm:$0xff]  ;;  %v11904_v23 = vld [vmem:[#allocation158_spill] sm:$0xff] }
 0x3ea   :  { %4837 = vst [vmem:[%s11086_s3 + $0x470] sm:$0xff] %v4597_v49  ;;  %4838 = vst.msk [vmem:[%s11086_s3 + $0x478] sm:$0xff] %vm494_vm0, %v4598_v42  ;;  %v4168_v30 = vpop.permute.xlu1 %4167  ;;  %v3774_v52 = vmul.f32 %v11884_v18, %v11885_v48  ;;  %v11906_v18 = vld [vmem:[#allocation156_spill] sm:$0xff]  ;;  %v11907_v48 = vld [vmem:[#allocation177_spill] sm:$0xff] }
 0x3eb   :  { %v4579_v27 = vadd.f32 %v4168_v30, %v3739_v62  ;;  %v4580_v63 = vadd.f32 %v4168_v30, %v3740_v7  ;;  %v4223_v36 = vpop.permute.xlu0 %4222  ;;  %v11887_v7 = vld [vmem:[#allocation267_spill] sm:$0xff] }
 0x3ec   :  { %v4601_v33 = vadd.f32 %v4223_v36, %v3761_v53  ;;  %v4602_v37 = vadd.f32 %v4223_v36, %v3762_v15  ;;  %v3755_v60 = vmul.f32 %v11887_v7, %v11886_v24  ;;  %v3756_v53 = vmul.f32 %v11887_v7, %v11888_v13  ;;  %v11890_v15 = vld [vmem:[#allocation268_spill] sm:$0xff]  ;;  %v11910_v13 = vld [vmem:[#allocation163_spill] sm:$0xff] }
 0x3ed   :  { %4819 = vst [vmem:[%s11086_s3 + $0x3e0] sm:$0xff] %v4579_v27  ;;  %4820 = vst.msk [vmem:[%s11086_s3 + $0x3e8] sm:$0xff] %vm494_vm0, %v4580_v63  ;;  %v3777_v30 = vmul.f32 %v11890_v15, %v11889_v19  ;;  %v11891_v27 = vld [vmem:[#allocation162_spill] sm:$0xff] }
 0x3ee   :  { %4841 = vst [vmem:[%s11086_s3 + $0x490] sm:$0xff] %v4601_v33  ;;  %4842 = vst.msk [vmem:[%s11086_s3 + $0x498] sm:$0xff] %vm494_vm0, %v4602_v37  ;;  %v4178_v55 = vpop.permute.xlu1 %4177  ;;  %v3778_v63 = vmul.f32 %v11890_v15, %v11891_v27  ;;  %v11912_v15 = vld [vmem:[#allocation160_spill] sm:$0xff]  ;;  %v11913_v27 = vld [vmem:[#allocation181_spill] sm:$0xff] }
 0x3ef   :  { %v4583_v5 = vadd.f32 %v4178_v55, %v3743_v1  ;;  %v4584_v35 = vadd.f32 %v4178_v55, %v3744_v41  ;;  %v4233_v47 = vpop.permute.xlu0 %4232  ;;  %v11893_v41 = vld [vmem:[#allocation269_spill] sm:$0xff] }
 0x3f0   :  { %v4605_v39 = vadd.f32 %v4233_v47, %v3765_v58  ;;  %v4606_v16 = vadd.f32 %v4233_v47, %v3766_v0  ;;  %v3759_v11 = vmul.f32 %v11893_v41, %v11892_v57  ;;  %v3760_v58 = vmul.f32 %v11893_v41, %v11894_v8  ;;  %v11896_v0 = vld [vmem:[#allocation270_spill] sm:$0xff] }
 0x3f1   :  { %4823 = vst [vmem:[%s11086_s3 + $0x400] sm:$0xff] %v4583_v5  ;;  %4824 = vst.msk [vmem:[%s11086_s3 + $0x408] sm:$0xff] %vm494_vm0, %v4584_v35  ;;  %v3781_v55 = vmul.f32 %v11896_v0, %v11895_v26  ;;  %v11897_v5 = vld [vmem:[#allocation167_spill] sm:$0xff]  ;;  %v11916_v8 = vld [vmem:[#allocation166_spill] sm:$0xff] }
 0x3f2   :  { %4845 = vst [vmem:[%s11086_s3 + $0x4b0] sm:$0xff] %v4605_v39  ;;  %4846 = vst.msk [vmem:[%s11086_s3 + $0x4b8] sm:$0xff] %vm494_vm0, %v4606_v16  ;;  %v4188_v2 = vpop.permute.xlu1 %4187  ;;  %v3782_v35 = vmul.f32 %v11896_v0, %v11897_v5  ;;  %v11918_v0 = vld [vmem:[#allocation164_spill] sm:$0xff]  ;;  %v11919_v5 = vld [vmem:[#allocation185_spill] sm:$0xff] }
 0x3f3   :  { %v4587_v45 = vadd.f32 %v4188_v2, %v3747_v9  ;;  %v4588_v14 = vadd.f32 %v4188_v2, %v3748_v17  ;;  %v4243_v3 = vpop.permute.xlu0 %4242  ;;  %v11899_v17 = vld [vmem:[#allocation271_spill] sm:$0xff] }
 0x3f4   :  { %v4609_v6 = vadd.f32 %v4243_v3, %v3769_v4  ;;  %v4610_v22 = vadd.f32 %v4243_v3, %v3770_v34  ;;  %v3763_v61 = vmul.f32 %v11899_v17, %v11898_v29  ;;  %v3764_v4 = vmul.f32 %v11899_v17, %v11900_v20  ;;  %v11902_v34 = vld [vmem:[#allocation272_spill] sm:$0xff]  ;;  %v11922_v20 = vld [vmem:[#allocation170_spill] sm:$0xff] }
 0x3f5   :  { %4827 = vst [vmem:[%s11086_s3 + $0x420] sm:$0xff] %v4587_v45  ;;  %4828 = vst.msk [vmem:[%s11086_s3 + $0x428] sm:$0xff] %vm494_vm0, %v4588_v14  ;;  %v3785_v2 = vmul.f32 %v11902_v34, %v11901_v51  ;;  %v11903_v45 = vld [vmem:[#allocation171_spill] sm:$0xff] }
 0x3f6   :  { %4849 = vst [vmem:[%s11086_s3 + $0x4d0] sm:$0xff] %v4609_v6  ;;  %4850 = vst.msk [vmem:[%s11086_s3 + $0x4d8] sm:$0xff] %vm494_vm0, %v4610_v22  ;;  %v4198_v43 = vpop.permute.xlu1 %4197  ;;  %v3786_v14 = vmul.f32 %v11902_v34, %v11903_v45  ;;  %v11924_v34 = vld [vmem:[#allocation168_spill] sm:$0xff]  ;;  %v11925_v45 = vld [vmem:[#allocation189_spill] sm:$0xff] }
 0x3f7   :  { %v4591_v49 = vadd.f32 %v4198_v43, %v3751_v32  ;;  %v4592_v42 = vadd.f32 %v4198_v43, %v3752_v12  ;;  %v4253_v38 = vpop.permute.xlu0 %4252  ;;  %v11905_v12 = vld [vmem:[#allocation273_spill] sm:$0xff] }
 0x3f8   :  { %v4613_v25 = vadd.f32 %v4253_v38, %v3773_v56  ;;  %v4614_v62 = vadd.f32 %v4253_v38, %v3774_v52  ;;  %v3767_v40 = vmul.f32 %v11905_v12, %v11904_v23  ;;  %v3768_v56 = vmul.f32 %v11905_v12, %v11906_v18  ;;  %v11908_v52 = vld [vmem:[#allocation274_spill] sm:$0xff]  ;;  %v11928_v18 = vld [vmem:[#allocation175_spill] sm:$0xff] }
 0x3f9   :  { %4831 = vst [vmem:[%s11086_s3 + $0x440] sm:$0xff] %v4591_v49  ;;  %4832 = vst.msk [vmem:[%s11086_s3 + $0x448] sm:$0xff] %vm494_vm0, %v4592_v42  ;;  %v3789_v43 = vmul.f32 %v11908_v52, %v11907_v48  ;;  %v11909_v49 = vld [vmem:[#allocation174_spill] sm:$0xff] }
 0x3fa   :  { %4853 = vst [vmem:[%s11086_s3 + $0x4f0] sm:$0xff] %v4613_v25  ;;  %4854 = vst.msk [vmem:[%s11086_s3 + $0x4f8] sm:$0xff] %vm494_vm0, %v4614_v62  ;;  %v4208_v36 = vpop.permute.xlu1 %4207  ;;  %v3790_v42 = vmul.f32 %v11908_v52, %v11909_v49  ;;  %v11930_v52 = vld [vmem:[#allocation172_spill] sm:$0xff]  ;;  %v11931_v49 = vld [vmem:[#allocation193_spill] sm:$0xff] }
 0x3fb   :  { %v4595_v33 = vadd.f32 %v4208_v36, %v3755_v60  ;;  %v4596_v37 = vadd.f32 %v4208_v36, %v3756_v53  ;;  %v4263_v44 = vpop.permute.xlu0 %4262  ;;  %v11911_v53 = vld [vmem:[#allocation275_spill] sm:$0xff] }
 0x3fc   :  { %v4617_v10 = vadd.f32 %v4263_v44, %v3777_v30  ;;  %v4618_v1 = vadd.f32 %v4263_v44, %v3778_v63  ;;  %v3771_v19 = vmul.f32 %v11911_v53, %v11910_v13  ;;  %v3772_v30 = vmul.f32 %v11911_v53, %v11912_v15  ;;  %v11914_v63 = vld [vmem:[#allocation276_spill] sm:$0xff]  ;;  %v11934_v15 = vld [vmem:[#allocation178_spill] sm:$0xff] }
 0x3fd   :  { %4835 = vst [vmem:[%s11086_s3 + $0x460] sm:$0xff] %v4595_v33  ;;  %4836 = vst.msk [vmem:[%s11086_s3 + $0x468] sm:$0xff] %vm494_vm0, %v4596_v37  ;;  %v3793_v36 = vmul.f32 %v11914_v63, %v11913_v27  ;;  %v11915_v33 = vld [vmem:[#allocation179_spill] sm:$0xff] }
 0x3fe   :  { %4857 = vst [vmem:[%s11086_s3 + $0x510] sm:$0xff] %v4617_v10  ;;  %4858 = vst.msk [vmem:[%s11086_s3 + $0x518] sm:$0xff] %vm494_vm0, %v4618_v1  ;;  %v4218_v47 = vpop.permute.xlu1 %4217  ;;  %v3794_v37 = vmul.f32 %v11914_v63, %v11915_v33  ;;  %v11936_v63 = vld [vmem:[#allocation176_spill] sm:$0xff]  ;;  %v11937_v33 = vld [vmem:[#allocation197_spill] sm:$0xff] }
 0x3ff   :  { %v4599_v39 = vadd.f32 %v4218_v47, %v3759_v11  ;;  %v4600_v16 = vadd.f32 %v4218_v47, %v3760_v58  ;;  %v4273_v54 = vpop.permute.xlu0 %4272  ;;  %v11917_v58 = vld [vmem:[#allocation277_spill] sm:$0xff] }
 0x400   :  { %v4621_v31 = vadd.f32 %v4273_v54, %v3781_v55  ;;  %v4622_v9 = vadd.f32 %v4273_v54, %v3782_v35  ;;  %v3775_v26 = vmul.f32 %v11917_v58, %v11916_v8  ;;  %v3776_v55 = vmul.f32 %v11917_v58, %v11918_v0  ;;  %v11920_v35 = vld [vmem:[#allocation278_spill] sm:$0xff] }
 0x401   :  { %4839 = vst [vmem:[%s11086_s3 + $0x480] sm:$0xff] %v4599_v39  ;;  %4840 = vst.msk [vmem:[%s11086_s3 + $0x488] sm:$0xff] %vm494_vm0, %v4600_v16  ;;  %v3797_v47 = vmul.f32 %v11920_v35, %v11919_v5  ;;  %v11921_v39 = vld [vmem:[#allocation183_spill] sm:$0xff]  ;;  %v11940_v0 = vld [vmem:[#allocation182_spill] sm:$0xff] }
 0x402   :  { %4861 = vst [vmem:[%s11086_s3 + $0x530] sm:$0xff] %v4621_v31  ;;  %4862 = vst.msk [vmem:[%s11086_s3 + $0x538] sm:$0xff] %vm494_vm0, %v4622_v9  ;;  %v4228_v3 = vpop.permute.xlu1 %4227  ;;  %v3798_v16 = vmul.f32 %v11920_v35, %v11921_v39  ;;  %v11942_v35 = vld [vmem:[#allocation180_spill] sm:$0xff]  ;;  %v11943_v39 = vld [vmem:[#allocation201_spill] sm:$0xff] }
 0x403   :  { %v4603_v6 = vadd.f32 %v4228_v3, %v3763_v61  ;;  %v4604_v22 = vadd.f32 %v4228_v3, %v3764_v4  ;;  %v4283_v21 = vpop.permute.xlu0 %4282  ;;  %v11923_v4 = vld [vmem:[#allocation279_spill] sm:$0xff] }
 0x404   :  { %v4625_v46 = vadd.f32 %v4283_v21, %v3785_v2  ;;  %v4626_v32 = vadd.f32 %v4283_v21, %v3786_v14  ;;  %v3779_v51 = vmul.f32 %v11923_v4, %v11922_v20  ;;  %v3780_v2 = vmul.f32 %v11923_v4, %v11924_v34  ;;  %v11926_v14 = vld [vmem:[#allocation280_spill] sm:$0xff]  ;;  %v11946_v34 = vld [vmem:[#allocation187_spill] sm:$0xff] }
 0x405   :  { %4843 = vst [vmem:[%s11086_s3 + $0x4a0] sm:$0xff] %v4603_v6  ;;  %4844 = vst.msk [vmem:[%s11086_s3 + $0x4a8] sm:$0xff] %vm494_vm0, %v4604_v22  ;;  %v3801_v3 = vmul.f32 %v11926_v14, %v11925_v45  ;;  %v11927_v6 = vld [vmem:[#allocation186_spill] sm:$0xff] }
 0x406   :  { %4865 = vst [vmem:[%s11086_s3 + $0x550] sm:$0xff] %v4625_v46  ;;  %4866 = vst.msk [vmem:[%s11086_s3 + $0x558] sm:$0xff] %vm494_vm0, %v4626_v32  ;;  %v4238_v38 = vpop.permute.xlu1 %4237  ;;  %v3802_v22 = vmul.f32 %v11926_v14, %v11927_v6  ;;  %v11948_v14 = vld [vmem:[#allocation184_spill] sm:$0xff]  ;;  %v11949_v6 = vld [vmem:[#allocation205_spill] sm:$0xff] }
 0x407   :  { %v4607_v25 = vadd.f32 %v4238_v38, %v3767_v40  ;;  %v4608_v62 = vadd.f32 %v4238_v38, %v3768_v56  ;;  %v4293_v24 = vpop.permute.xlu0 %4292  ;;  %v11929_v56 = vld [vmem:[#allocation281_spill] sm:$0xff] }
 0x408   :  { %v4629_v7 = vadd.f32 %v4293_v24, %v3789_v43  ;;  %v4630_v60 = vadd.f32 %v4293_v24, %v3790_v42  ;;  %v3783_v48 = vmul.f32 %v11929_v56, %v11928_v18  ;;  %v3784_v43 = vmul.f32 %v11929_v56, %v11930_v52  ;;  %v11932_v42 = vld [vmem:[#allocation282_spill] sm:$0xff] }
 0x409   :  { %4847 = vst [vmem:[%s11086_s3 + $0x4c0] sm:$0xff] %v4607_v25  ;;  %4848 = vst.msk [vmem:[%s11086_s3 + $0x4c8] sm:$0xff] %vm494_vm0, %v4608_v62  ;;  %v3805_v38 = vmul.f32 %v11932_v42, %v11931_v49  ;;  %v11933_v25 = vld [vmem:[#allocation191_spill] sm:$0xff]  ;;  %v11952_v52 = vld [vmem:[#allocation190_spill] sm:$0xff] }
 0x40a   :  { %4869 = vst [vmem:[%s11086_s3 + $0x570] sm:$0xff] %v4629_v7  ;;  %4870 = vst.msk [vmem:[%s11086_s3 + $0x578] sm:$0xff] %vm494_vm0, %v4630_v60  ;;  %v4248_v44 = vpop.permute.xlu1 %4247  ;;  %v3806_v62 = vmul.f32 %v11932_v42, %v11933_v25  ;;  %v11954_v42 = vld [vmem:[#allocation188_spill] sm:$0xff]  ;;  %v11955_v25 = vld [vmem:[#allocation209_spill] sm:$0xff] }
 0x40b   :  { %v4611_v10 = vadd.f32 %v4248_v44, %v3771_v19  ;;  %v4612_v1 = vadd.f32 %v4248_v44, %v3772_v30  ;;  %v4303_v57 = vpop.permute.xlu0 %4302  ;;  %v11935_v30 = vld [vmem:[#allocation283_spill] sm:$0xff] }
 0x40c   :  { %v4633_v41 = vadd.f32 %v4303_v57, %v3793_v36  ;;  %v4634_v11 = vadd.f32 %v4303_v57, %v3794_v37  ;;  %v3787_v27 = vmul.f32 %v11935_v30, %v11934_v15  ;;  %v3788_v36 = vmul.f32 %v11935_v30, %v11936_v63  ;;  %v11938_v37 = vld [vmem:[#allocation284_spill] sm:$0xff]  ;;  %v11958_v63 = vld [vmem:[#allocation194_spill] sm:$0xff] }
 0x40d   :  { %4851 = vst [vmem:[%s11086_s3 + $0x4e0] sm:$0xff] %v4611_v10  ;;  %4852 = vst.msk [vmem:[%s11086_s3 + $0x4e8] sm:$0xff] %vm494_vm0, %v4612_v1  ;;  %v3809_v44 = vmul.f32 %v11938_v37, %v11937_v33  ;;  %v11939_v10 = vld [vmem:[#allocation195_spill] sm:$0xff] }
 0x40e   :  { %4873 = vst [vmem:[%s11086_s3 + $0x590] sm:$0xff] %v4633_v41  ;;  %4874 = vst.msk [vmem:[%s11086_s3 + $0x598] sm:$0xff] %vm494_vm0, %v4634_v11  ;;  %v4258_v54 = vpop.permute.xlu1 %4257  ;;  %v3810_v1 = vmul.f32 %v11938_v37, %v11939_v10  ;;  %v11960_v37 = vld [vmem:[#allocation192_spill] sm:$0xff]  ;;  %v11961_v10 = vld [vmem:[#allocation213_spill] sm:$0xff] }
 0x40f   :  { %v4615_v31 = vadd.f32 %v4258_v54, %v3775_v26  ;;  %v4616_v9 = vadd.f32 %v4258_v54, %v3776_v55  ;;  %v4313_v29 = vpop.permute.xlu0 %4312  ;;  %v11941_v55 = vld [vmem:[#allocation285_spill] sm:$0xff] }
 0x410   :  { %v4637_v17 = vadd.f32 %v4313_v29, %v3797_v47  ;;  %v4638_v61 = vadd.f32 %v4313_v29, %v3798_v16  ;;  %v3791_v5 = vmul.f32 %v11941_v55, %v11940_v0  ;;  %v3792_v47 = vmul.f32 %v11941_v55, %v11942_v35  ;;  %v11944_v16 = vld [vmem:[#allocation286_spill] sm:$0xff]  ;;  %v11964_v35 = vld [vmem:[#allocation199_spill] sm:$0xff] }
 0x411   :  { %4855 = vst [vmem:[%s11086_s3 + $0x500] sm:$0xff] %v4615_v31  ;;  %4856 = vst.msk [vmem:[%s11086_s3 + $0x508] sm:$0xff] %vm494_vm0, %v4616_v9  ;;  %v3813_v54 = vmul.f32 %v11944_v16, %v11943_v39  ;;  %v11945_v31 = vld [vmem:[#allocation198_spill] sm:$0xff] }
 0x412   :  { %4877 = vst [vmem:[%s11086_s3 + $0x5b0] sm:$0xff] %v4637_v17  ;;  %4878 = vst.msk [vmem:[%s11086_s3 + $0x5b8] sm:$0xff] %vm494_vm0, %v4638_v61  ;;  %v4268_v21 = vpop.permute.xlu1 %4267  ;;  %v3814_v9 = vmul.f32 %v11944_v16, %v11945_v31  ;;  %v11966_v16 = vld [vmem:[#allocation196_spill] sm:$0xff]  ;;  %v11967_v31 = vld [vmem:[#allocation218_spill] sm:$0xff] }
 0x413   :  { %v4619_v46 = vadd.f32 %v4268_v21, %v3779_v51  ;;  %v4620_v32 = vadd.f32 %v4268_v21, %v3780_v2  ;;  %v4323_v23 = vpop.permute.xlu0 %4322  ;;  %v11947_v2 = vld [vmem:[#allocation287_spill] sm:$0xff] }
 0x414   :  { %v4641_v12 = vadd.f32 %v4323_v23, %v3801_v3  ;;  %v4642_v40 = vadd.f32 %v4323_v23, %v3802_v22  ;;  %v3795_v45 = vmul.f32 %v11947_v2, %v11946_v34  ;;  %v3796_v3 = vmul.f32 %v11947_v2, %v11948_v14  ;;  %v11950_v22 = vld [vmem:[#allocation288_spill] sm:$0xff]  ;;  %v11970_v14 = vld [vmem:[#allocation202_spill] sm:$0xff] }
 0x415   :  { %4859 = vst [vmem:[%s11086_s3 + $0x520] sm:$0xff] %v4619_v46  ;;  %4860 = vst.msk [vmem:[%s11086_s3 + $0x528] sm:$0xff] %vm494_vm0, %v4620_v32  ;;  %v3817_v21 = vmul.f32 %v11950_v22, %v11949_v6  ;;  %v11951_v46 = vld [vmem:[#allocation203_spill] sm:$0xff] }
 0x416   :  { %4881 = vst [vmem:[%s11086_s3 + $0x5d0] sm:$0xff] %v4641_v12  ;;  %4882 = vst.msk [vmem:[%s11086_s3 + $0x5d8] sm:$0xff] %vm494_vm0, %v4642_v40  ;;  %v4278_v24 = vpop.permute.xlu1 %4277  ;;  %v3818_v32 = vmul.f32 %v11950_v22, %v11951_v46  ;;  %v11972_v22 = vld [vmem:[#allocation200_spill] sm:$0xff]  ;;  %v11973_v46 = vld [vmem:[#allocation221_spill] sm:$0xff] }
 0x417   :  { %v4623_v7 = vadd.f32 %v4278_v24, %v3783_v48  ;;  %v4624_v60 = vadd.f32 %v4278_v24, %v3784_v43  ;;  %v4333_v13 = vpop.permute.xlu0 %4332  ;;  %v11953_v43 = vld [vmem:[#allocation289_spill] sm:$0xff] }
 0x418   :  { %v4645_v53 = vadd.f32 %v4333_v13, %v3805_v38  ;;  %v4646_v19 = vadd.f32 %v4333_v13, %v3806_v62  ;;  %v3799_v49 = vmul.f32 %v11953_v43, %v11952_v52  ;;  %v3800_v38 = vmul.f32 %v11953_v43, %v11954_v42  ;;  %v11956_v62 = vld [vmem:[#allocation290_spill] sm:$0xff] }
 0x419   :  { %4863 = vst [vmem:[%s11086_s3 + $0x540] sm:$0xff] %v4623_v7  ;;  %4864 = vst.msk [vmem:[%s11086_s3 + $0x548] sm:$0xff] %vm494_vm0, %v4624_v60  ;;  %v3821_v24 = vmul.f32 %v11956_v62, %v11955_v25  ;;  %v11957_v7 = vld [vmem:[#allocation207_spill] sm:$0xff]  ;;  %v11976_v42 = vld [vmem:[#allocation206_spill] sm:$0xff] }
 0x41a   :  { %4885 = vst [vmem:[%s11086_s3 + $0x5f0] sm:$0xff] %v4645_v53  ;;  %4886 = vst.msk [vmem:[%s11086_s3 + $0x5f8] sm:$0xff] %vm494_vm0, %v4646_v19  ;;  %v4288_v57 = vpop.permute.xlu1 %4287  ;;  %v3822_v60 = vmul.f32 %v11956_v62, %v11957_v7  ;;  %v11978_v62 = vld [vmem:[#allocation204_spill] sm:$0xff]  ;;  %v11979_v7 = vld [vmem:[#allocation226_spill] sm:$0xff] }
 0x41b   :  { %v4627_v41 = vadd.f32 %v4288_v57, %v3787_v27  ;;  %v4628_v11 = vadd.f32 %v4288_v57, %v3788_v36  ;;  %v4343_v8 = vpop.permute.xlu0 %4342  ;;  %v11959_v36 = vld [vmem:[#allocation291_spill] sm:$0xff] }
 0x41c   :  { %v4649_v58 = vadd.f32 %v4343_v8, %v3809_v44  ;;  %v4650_v26 = vadd.f32 %v4343_v8, %v3810_v1  ;;  %v3803_v33 = vmul.f32 %v11959_v36, %v11958_v63  ;;  %v3804_v44 = vmul.f32 %v11959_v36, %v11960_v37  ;;  %v11962_v1 = vld [vmem:[#allocation292_spill] sm:$0xff]  ;;  %v11982_v37 = vld [vmem:[#allocation211_spill] sm:$0xff] }
 0x41d   :  { %4867 = vst [vmem:[%s11086_s3 + $0x560] sm:$0xff] %v4627_v41  ;;  %4868 = vst.msk [vmem:[%s11086_s3 + $0x568] sm:$0xff] %vm494_vm0, %v4628_v11  ;;  %v3825_v57 = vmul.f32 %v11962_v1, %v11961_v10  ;;  %v11963_v41 = vld [vmem:[#allocation210_spill] sm:$0xff] }
 0x41e   :  { %4889 = vst [vmem:[%s11086_s3 + $0x610] sm:$0xff] %v4649_v58  ;;  %4890 = vst.msk [vmem:[%s11086_s3 + $0x618] sm:$0xff] %vm494_vm0, %v4650_v26  ;;  %v4298_v29 = vpop.permute.xlu1 %4297  ;;  %v3826_v11 = vmul.f32 %v11962_v1, %v11963_v41  ;;  %v11984_v1 = vld [vmem:[#allocation208_spill] sm:$0xff]  ;;  %v11985_v41 = vld [vmem:[#allocation230_spill] sm:$0xff] }
 0x41f   :  { %v4631_v17 = vadd.f32 %v4298_v29, %v3791_v5  ;;  %v4632_v61 = vadd.f32 %v4298_v29, %v3792_v47  ;;  %v4353_v20 = vpop.permute.xlu0 %4352  ;;  %v11965_v47 = vld [vmem:[#allocation293_spill] sm:$0xff] }
 0x420   :  { %v4653_v4 = vadd.f32 %v4353_v20, %v3813_v54  ;;  %v4654_v51 = vadd.f32 %v4353_v20, %v3814_v9  ;;  %v3807_v39 = vmul.f32 %v11965_v47, %v11964_v35  ;;  %v3808_v54 = vmul.f32 %v11965_v47, %v11966_v16  ;;  %v11968_v9 = vld [vmem:[#allocation294_spill] sm:$0xff] }
 0x421   :  { %4871 = vst [vmem:[%s11086_s3 + $0x580] sm:$0xff] %v4631_v17  ;;  %4872 = vst.msk [vmem:[%s11086_s3 + $0x588] sm:$0xff] %vm494_vm0, %v4632_v61  ;;  %v3829_v29 = vmul.f32 %v11968_v9, %v11967_v31  ;;  %v11969_v17 = vld [vmem:[#allocation215_spill] sm:$0xff]  ;;  %v11988_v16 = vld [vmem:[#allocation214_spill] sm:$0xff] }
 0x422   :  { %4893 = vst [vmem:[%s11086_s3 + $0x630] sm:$0xff] %v4653_v4  ;;  %4894 = vst.msk [vmem:[%s11086_s3 + $0x638] sm:$0xff] %vm494_vm0, %v4654_v51  ;;  %v4308_v23 = vpop.permute.xlu1 %4307  ;;  %v3830_v61 = vmul.f32 %v11968_v9, %v11969_v17  ;;  %v11990_v9 = vld [vmem:[#allocation212_spill] sm:$0xff]  ;;  %v11991_v17 = vld [vmem:[#allocation234_spill] sm:$0xff] }
 0x423   :  { %v4635_v12 = vadd.f32 %v4308_v23, %v3795_v45  ;;  %v4636_v40 = vadd.f32 %v4308_v23, %v3796_v3  ;;  %v4363_v18 = vpop.permute.xlu0 %4362  ;;  %v11971_v3 = vld [vmem:[#allocation295_spill] sm:$0xff] }
 0x424   :  { %v4657_v56 = vadd.f32 %v4363_v18, %v3817_v21  ;;  %v4658_v48 = vadd.f32 %v4363_v18, %v3818_v32  ;;  %v3811_v6 = vmul.f32 %v11971_v3, %v11970_v14  ;;  %v3812_v21 = vmul.f32 %v11971_v3, %v11972_v22  ;;  %v11974_v32 = vld [vmem:[#allocation296_spill] sm:$0xff] }
 0x425   :  { %4875 = vst [vmem:[%s11086_s3 + $0x5a0] sm:$0xff] %v4635_v12  ;;  %4876 = vst.msk [vmem:[%s11086_s3 + $0x5a8] sm:$0xff] %vm494_vm0, %v4636_v40  ;;  %v3833_v23 = vmul.f32 %v11974_v32, %v11973_v46  ;;  %v11975_v12 = vld [vmem:[#allocation217_spill] sm:$0xff]  ;;  %v11994_v22 = vld [vmem:[#allocation220_spill] sm:$0xff] }
 0x426   :  { %4897 = vst [vmem:[%s11086_s3 + $0x650] sm:$0xff] %v4657_v56  ;;  %4898 = vst.msk [vmem:[%s11086_s3 + $0x658] sm:$0xff] %vm494_vm0, %v4658_v48  ;;  %v4318_v13 = vpop.permute.xlu1 %4317  ;;  %v3834_v40 = vmul.f32 %v11974_v32, %v11975_v12  ;;  %v11996_v32 = vld [vmem:[#allocation216_spill] sm:$0xff]  ;;  %v11997_v12 = vld [vmem:[#allocation238_spill] sm:$0xff] }
 0x427   :  { %v4639_v53 = vadd.f32 %v4318_v13, %v3799_v49  ;;  %v4640_v19 = vadd.f32 %v4318_v13, %v3800_v38  ;;  %v4373_v15 = vpop.permute.xlu0 %4372  ;;  %v11977_v38 = vld [vmem:[#allocation297_spill] sm:$0xff] }
 0x428   :  { %v4661_v30 = vadd.f32 %v4373_v15, %v3821_v24  ;;  %v4662_v27 = vadd.f32 %v4373_v15, %v3822_v60  ;;  %v3815_v25 = vmul.f32 %v11977_v38, %v11976_v42  ;;  %v3816_v24 = vmul.f32 %v11977_v38, %v11978_v62  ;;  %v11980_v60 = vld [vmem:[#allocation298_spill] sm:$0xff]  ;;  %v12000_v62 = vld [vmem:[#allocation225_spill] sm:$0xff] }
 0x429   :  { %4879 = vst [vmem:[%s11086_s3 + $0x5c0] sm:$0xff] %v4639_v53  ;;  %4880 = vst.msk [vmem:[%s11086_s3 + $0x5c8] sm:$0xff] %vm494_vm0, %v4640_v19  ;;  %v3837_v13 = vmul.f32 %v11980_v60, %v11979_v7  ;;  %v11981_v53 = vld [vmem:[#allocation223_spill] sm:$0xff] }
 0x42a   :  { %4901 = vst [vmem:[%s11086_s3 + $0x670] sm:$0xff] %v4661_v30  ;;  %4902 = vst.msk [vmem:[%s11086_s3 + $0x678] sm:$0xff] %vm494_vm0, %v4662_v27  ;;  %v4328_v8 = vpop.permute.xlu1 %4327  ;;  %v3838_v19 = vmul.f32 %v11980_v60, %v11981_v53  ;;  %v12002_v60 = vld [vmem:[#allocation222_spill] sm:$0xff] }
 0x42b   :  { %v4643_v58 = vadd.f32 %v4328_v8, %v3803_v33  ;;  %v4644_v26 = vadd.f32 %v4328_v8, %v3804_v44  ;;  %v4383_v0 = vpop.permute.xlu0 %4382  ;;  %v11983_v44 = vld [vmem:[#allocation299_spill] sm:$0xff] }
 0x42c   :  { %v4665_v55 = vadd.f32 %v4383_v0, %v3825_v57  ;;  %v4666_v5 = vadd.f32 %v4383_v0, %v3826_v11  ;;  %v3819_v10 = vmul.f32 %v11983_v44, %v11982_v37  ;;  %v3820_v57 = vmul.f32 %v11983_v44, %v11984_v1  ;;  %v11986_v11 = vld [vmem:[#allocation300_spill] sm:$0xff]  ;;  %v12006_v1 = vld [vmem:[#allocation227_spill] sm:$0xff] }
 0x42d   :  { %4883 = vst [vmem:[%s11086_s3 + $0x5e0] sm:$0xff] %v4643_v58  ;;  %4884 = vst.msk [vmem:[%s11086_s3 + $0x5e8] sm:$0xff] %vm494_vm0, %v4644_v26  ;;  %v3841_v8 = vmul.f32 %v11986_v11, %v11985_v41  ;;  %v11987_v58 = vld [vmem:[#allocation228_spill] sm:$0xff] }
 0x42e   :  { %4905 = vst [vmem:[%s11086_s3 + $0x690] sm:$0xff] %v4665_v55  ;;  %4906 = vst.msk [vmem:[%s11086_s3 + $0x698] sm:$0xff] %vm494_vm0, %v4666_v5  ;;  %v4338_v20 = vpop.permute.xlu1 %4337  ;;  %v3842_v26 = vmul.f32 %v11986_v11, %v11987_v58  ;;  %v12007_v41 = vld [vmem:[#allocation224_spill] sm:$0xff] }
 0x42f   :  { %v4647_v4 = vadd.f32 %v4338_v20, %v3807_v39  ;;  %v4648_v51 = vadd.f32 %v4338_v20, %v3808_v54  ;;  %v4393_v34 = vpop.permute.xlu0 %4392  ;;  %v11989_v54 = vld [vmem:[#allocation301_spill] sm:$0xff]  ;;  %v3836_v11 = vmul.f32 %v9580_v50, %v12007_v41 }
 0x430   :  { %v4669_v2 = vadd.f32 %v4393_v34, %v3829_v29  ;;  %v4670_v45 = vadd.f32 %v4393_v34, %v3830_v61  ;;  %v3823_v31 = vmul.f32 %v11989_v54, %v11988_v16  ;;  %v3824_v29 = vmul.f32 %v11989_v54, %v11990_v9  ;;  %v11992_v61 = vld [vmem:[#allocation302_spill] sm:$0xff]  ;;  %v12010_v16 = vld [vmem:[#allocation235_spill] sm:$0xff] }
 0x431   :  { %4887 = vst [vmem:[%s11086_s3 + $0x600] sm:$0xff] %v4647_v4  ;;  %4888 = vst.msk [vmem:[%s11086_s3 + $0x608] sm:$0xff] %vm494_vm0, %v4648_v51  ;;  %v3845_v20 = vmul.f32 %v11992_v61, %v11991_v17  ;;  %v11993_v4 = vld [vmem:[#allocation232_spill] sm:$0xff]  ;;  %v3843_v54 = vmul.f32 %v9618_v28, %v12010_v16 }
 0x432   :  { %4909 = vst [vmem:[%s11086_s3 + $0x6b0] sm:$0xff] %v4669_v2  ;;  %4910 = vst.msk [vmem:[%s11086_s3 + $0x6b8] sm:$0xff] %vm494_vm0, %v4670_v45  ;;  %v4348_v18 = vpop.permute.xlu1 %4347  ;;  %v3846_v51 = vmul.f32 %v11992_v61, %v11993_v4  ;;  %v12012_v61 = vld [vmem:[#allocation239_spill] sm:$0xff] }
 0x433   :  { %v4651_v56 = vadd.f32 %v4348_v18, %v3811_v6  ;;  %v4652_v48 = vadd.f32 %v4348_v18, %v3812_v21  ;;  %v4403_v52 = vpop.permute.xlu0 %4402  ;;  %v11995_v21 = vld [vmem:[#allocation303_spill] sm:$0xff] }
 0x434   :  { %v4673_v43 = vadd.f32 %v4403_v52, %v3833_v23  ;;  %v4674_v49 = vadd.f32 %v4403_v52, %v3834_v40  ;;  %v3827_v46 = vmul.f32 %v11995_v21, %v11994_v22  ;;  %v3828_v23 = vmul.f32 %v11995_v21, %v11996_v32  ;;  %v11998_v40 = vld [vmem:[#allocation304_spill] sm:$0xff]  ;;  %v12017_v22 = vld [vmem:[#allocation241_spill] sm:$0xff] }
 0x435   :  { %4891 = vst [vmem:[%s11086_s3 + $0x620] sm:$0xff] %v4651_v56  ;;  %4892 = vst.msk [vmem:[%s11086_s3 + $0x628] sm:$0xff] %vm494_vm0, %v4652_v48  ;;  %v3849_v18 = vmul.f32 %v11998_v40, %v11997_v12  ;;  %v11999_v56 = vld [vmem:[#allocation236_spill] sm:$0xff] }
 0x436   :  { %4913 = vst [vmem:[%s11086_s3 + $0x6d0] sm:$0xff] %v4673_v43  ;;  %4914 = vst.msk [vmem:[%s11086_s3 + $0x6d8] sm:$0xff] %vm494_vm0, %v4674_v49  ;;  %v4358_v15 = vpop.permute.xlu1 %4357  ;;  %v3850_v48 = vmul.f32 %v11998_v40, %v11999_v56 }
 0x437   :  { %v4655_v30 = vadd.f32 %v4358_v15, %v3815_v25  ;;  %v4656_v27 = vadd.f32 %v4358_v15, %v3816_v24  ;;  %v4413_v63 = vpop.permute.xlu0 %4412  ;;  %v12001_v24 = vld [vmem:[#allocation305_spill] sm:$0xff]  ;;  %v12004_v15 = vld [vmem:[#allocation306_spill] sm:$0xff] }
 0x438   :  { %v4677_v36 = vadd.f32 %v4413_v63, %v3837_v13  ;;  %v4678_v33 = vadd.f32 %v4413_v63, %v3838_v19  ;;  %v3831_v7 = vmul.f32 %v12001_v24, %v12000_v62  ;;  %v3832_v13 = vmul.f32 %v12001_v24, %v12002_v60  ;;  %v12003_v19 = vld [vmem:[#allocation242_spill] sm:$0xff] }
 0x439   :  { %4895 = vst [vmem:[%s11086_s3 + $0x640] sm:$0xff] %v4655_v30  ;;  %4896 = vst.msk [vmem:[%s11086_s3 + $0x648] sm:$0xff] %vm494_vm0, %v4656_v27  ;;  %v3853_v30 = vmul.f32 %v12004_v15, %v12003_v19  ;;  %v12005_v27 = vld [vmem:[#allocation240_spill] sm:$0xff] }
 0x43a   :  { %4917 = vst [vmem:[%s11086_s3 + $0x6f0] sm:$0xff] %v4677_v36  ;;  %4918 = vst.msk [vmem:[%s11086_s3 + $0x6f8] sm:$0xff] %vm494_vm0, %v4678_v33  ;;  %v4368_v0 = vpop.permute.xlu1 %4367  ;;  %v3854_v63 = vmul.f32 %v12004_v15, %v12005_v27 }
 0x43b   :  { %v4659_v55 = vadd.f32 %v4368_v0, %v3819_v10  ;;  %v4660_v5 = vadd.f32 %v4368_v0, %v3820_v57  ;;  %v4423_v35 = vpop.permute.xlu0 %4422  ;;  %v3835_v57 = vmul.f32 %v9580_v50, %v12006_v1 }
 0x43c   :  { %v4681_v47 = vadd.f32 %v4423_v35, %v3841_v8  ;;  %v4682_v39 = vadd.f32 %v4423_v35, %v3842_v26  ;;  %v12008_v26 = vld [vmem:[#allocation231_spill] sm:$0xff] }
 0x43d   :  { %4899 = vst [vmem:[%s11086_s3 + $0x660] sm:$0xff] %v4659_v55  ;;  %4900 = vst.msk [vmem:[%s11086_s3 + $0x668] sm:$0xff] %vm494_vm0, %v4660_v5  ;;  %v3839_v0 = vmul.f32 %v9599_v59, %v12008_v26  ;;  %v12009_v55 = vld [vmem:[#allocation229_spill] sm:$0xff] }
 0x43e   :  { %4921 = vst [vmem:[%s11086_s3 + $0x710] sm:$0xff] %v4681_v47  ;;  %4922 = vst.msk [vmem:[%s11086_s3 + $0x718] sm:$0xff] %vm494_vm0, %v4682_v39  ;;  %v4378_v34 = vpop.permute.xlu1 %4377  ;;  %v3840_v5 = vmul.f32 %v9599_v59, %v12009_v55 }
 0x43f   :  { %v4663_v2 = vadd.f32 %v4378_v34, %v3823_v31  ;;  %v4664_v45 = vadd.f32 %v4378_v34, %v3824_v29  ;;  %v4433_v14 = vpop.permute.xlu0 %4432  ;;  %v12011_v31 = vld [vmem:[#allocation233_spill] sm:$0xff] }
 0x440   :  { %v4685_v3 = vadd.f32 %v4433_v14, %v3845_v20  ;;  %v4686_v6 = vadd.f32 %v4433_v14, %v3846_v51  ;;  %v3844_v9 = vmul.f32 %v9618_v28, %v12011_v31  ;;  %v12013_v20 = vld [vmem:[#allocation6_spill] sm:$0xff]  ;;  %v12014_v51 = vld [vmem:[#allocation237_spill] sm:$0xff]  ;;  %v12015_v14 = vld [vmem:[#allocation243_spill] sm:$0xff] }
 0x441   :  { %4903 = vst [vmem:[%s11086_s3 + $0x680] sm:$0xff] %v4663_v2  ;;  %4904 = vst.msk [vmem:[%s11086_s3 + $0x688] sm:$0xff] %vm494_vm0, %v4664_v45  ;;  %v3847_v4 = vmul.f32 %v12013_v20, %v12012_v61  ;;  %v3848_v34 = vmul.f32 %v12013_v20, %v12014_v51 }
 0x442   :  { %4925 = vst [vmem:[%s11086_s3 + $0x730] sm:$0xff] %v4685_v3  ;;  %4926 = vst.msk [vmem:[%s11086_s3 + $0x738] sm:$0xff] %vm494_vm0, %v4686_v6  ;;  %v4388_v52 = vpop.permute.xlu1 %4387  ;;  %v12016_v3 = vld [vmem:[#allocation2_spill] sm:$0xff] }
 0x443   :  { %v4667_v43 = vadd.f32 %v4388_v52, %v3827_v46  ;;  %v4668_v49 = vadd.f32 %v4388_v52, %v3828_v23  ;;  %v4443_v42 = vpop.permute.xlu0 %4442  ;;  %v3851_v6 = vmul.f32 %v12016_v3, %v12015_v14  ;;  %v3852_v21 = vmul.f32 %v12016_v3, %v12017_v22 }
 0x444   :  { %v4689_v38 = vadd.f32 %v4443_v42, %v3849_v18  ;;  %v4690_v25 = vadd.f32 %v4443_v42, %v3850_v48 }
 0x445   :  { %4907 = vst [vmem:[%s11086_s3 + $0x6a0] sm:$0xff] %v4667_v43  ;;  %4908 = vst.msk [vmem:[%s11086_s3 + $0x6a8] sm:$0xff] %vm494_vm0, %v4668_v49 }
 0x446   :  { %4929 = vst [vmem:[%s11086_s3 + $0x750] sm:$0xff] %v4689_v38  ;;  %4930 = vst.msk [vmem:[%s11086_s3 + $0x758] sm:$0xff] %vm494_vm0, %v4690_v25  ;;  %v4398_v53 = vpop.permute.xlu1 %4397 }
 0x447   :  { %v4671_v36 = vadd.f32 %v4398_v53, %v3831_v7  ;;  %v4672_v33 = vadd.f32 %v4398_v53, %v3832_v13  ;;  %v4453_v37 = vpop.permute.xlu0 %4452 }
 0x448   :  { %v4693_v44 = vadd.f32 %v4453_v37, %v3853_v30  ;;  %v4694_v10 = vadd.f32 %v4453_v37, %v3854_v63 }
 0x449   :  { %4911 = vst [vmem:[%s11086_s3 + $0x6c0] sm:$0xff] %v4671_v36  ;;  %4912 = vst.msk [vmem:[%s11086_s3 + $0x6c8] sm:$0xff] %vm494_vm0, %v4672_v33 }
 0x44a   :  { %4933 = vst [vmem:[%s11086_s3 + $0x770] sm:$0xff] %v4693_v44  ;;  %4934 = vst.msk [vmem:[%s11086_s3 + $0x778] sm:$0xff] %vm494_vm0, %v4694_v10  ;;  %v4408_v8 = vpop.permute.xlu1 %4407 }
 0x44b   :  { %v4675_v50 = vadd.f32 %v4408_v8, %v3835_v57  ;;  %v4676_v58 = vadd.f32 %v4408_v8, %v3836_v11 }
 0x44d   :  { %4915 = vst [vmem:[%s11086_s3 + $0x6e0] sm:$0xff] %v4675_v50  ;;  %4916 = vst.msk [vmem:[%s11086_s3 + $0x6e8] sm:$0xff] %vm494_vm0, %v4676_v58 }
 0x44e   :  { %v4418_v35 = vpop.permute.xlu1 %4417 }
 0x44f   :  { %v4679_v47 = vadd.f32 %v4418_v35, %v3839_v0  ;;  %v4680_v39 = vadd.f32 %v4418_v35, %v3840_v5 }
 0x451   :  { %4919 = vst [vmem:[%s11086_s3 + $0x700] sm:$0xff] %v4679_v47  ;;  %4920 = vst.msk [vmem:[%s11086_s3 + $0x708] sm:$0xff] %vm494_vm0, %v4680_v39 }
 0x452   :  { %v4428_v59 = vpop.permute.xlu1 %4427 }
 0x453   :  { %v4683_v29 = vadd.f32 %v4428_v59, %v3843_v54  ;;  %v4684_v17 = vadd.f32 %v4428_v59, %v3844_v9 }
 0x455   :  { %4923 = vst [vmem:[%s11086_s3 + $0x720] sm:$0xff] %v4683_v29  ;;  %4924 = vst.msk [vmem:[%s11086_s3 + $0x728] sm:$0xff] %vm494_vm0, %v4684_v17 }
 0x456   :  { %v4438_v28 = vpop.permute.xlu1 %4437 }
 0x457   :  { %v4687_v2 = vadd.f32 %v4438_v28, %v3847_v4  ;;  %v4688_v45 = vadd.f32 %v4438_v28, %v3848_v34 }
 0x459   :  { %4927 = vst [vmem:[%s11086_s3 + $0x740] sm:$0xff] %v4687_v2  ;;  %4928 = vst.msk [vmem:[%s11086_s3 + $0x748] sm:$0xff] %vm494_vm0, %v4688_v45 }
 0x45a   :  { %v4448_v46 = vpop.permute.xlu1 %4447 }
 0x45b   :  { %v4691_v32 = vadd.f32 %v4448_v46, %v3851_v6  ;;  %v4692_v23 = vadd.f32 %v4448_v46, %v3852_v21 }
 0x45d   :  { %4931 = vst [vmem:[%s11086_s3 + $0x760] sm:$0xff] %v4691_v32  ;;  %4932 = vst.msk [vmem:[%s11086_s3 + $0x768] sm:$0xff] %vm494_vm0, %v4692_v23 }

</bundles_post_ra>
